<compile_context>
chip_gen: v5e
topology: v5e:2x2
jax: 0.10.0
libtpu: 0.0.40
codegen_flags: <defaults>
</compile_context>

<pallas_src>
import functools

import jax
import jax.numpy as jnp
from jax.experimental import pallas as pl
from jax.experimental.pallas import tpu as pltpu


def _round_up(x, m):
    return ((x + m - 1) // m) * m


# --------------------------------------------------------------------------
# Fused matmul + bias + activation Pallas kernel (single K step, no scratch)
# --------------------------------------------------------------------------
def _mm_kernel(a_ref, w_ref, b_ref, o_ref, *, act):
    r = jnp.dot(a_ref[...], w_ref[...],
                preferred_element_type=jnp.float32) + b_ref[...]
    if act == "relu":
        r = jnp.maximum(r, 0.0)
    elif act == "sigmoid":
        r = jax.nn.sigmoid(r)
    o_ref[...] = r.astype(o_ref.dtype)


def matmul_bias_act(a, w, b, act="none"):
    """y = act(a @ w + b).  a: [M,K] f32, w: [K,N] f32, b: [N] f32 -> [M,N] f32.

    K and N are kept as full-extent blocks (they all fit VMEM for this model);
    only M is padded (to a multiple of 8) and, for very large M, tiled."""
    M, K = a.shape
    K2, N = w.shape
    assert K == K2
    Mp = _round_up(M, 8)
    if Mp <= 1024:
        tm = Mp                      # single M block, grid of 1
    else:
        tm = 256                     # only exercised for large batches
        Mp = _round_up(M, tm)

    a_p = jnp.pad(a, ((0, Mp - M), (0, 0))).astype(jnp.bfloat16)
    w_bf = w.astype(jnp.bfloat16)
    b2 = b.reshape(1, N).astype(jnp.float32)

    out = pl.pallas_call(
        functools.partial(_mm_kernel, act=act),
        out_shape=jax.ShapeDtypeStruct((Mp, N), jnp.float32),
        grid_spec=pltpu.PrefetchScalarGridSpec(
            num_scalar_prefetch=0,
            grid=(Mp // tm,),
            in_specs=[
                pl.BlockSpec((tm, K), lambda i: (i, 0)),
                pl.BlockSpec((K, N), lambda i: (0, 0)),
                pl.BlockSpec((1, N), lambda i: (0, 0)),
            ],
            out_specs=pl.BlockSpec((tm, N), lambda i: (i, 0)),
        ),
        compiler_params=pltpu.CompilerParams(
            dimension_semantics=("parallel",)),
    )(a_p, w_bf, b2)
    return out[:M]


# --------------------------------------------------------------------------
# Fused MLP chain: flatten -> e4(relu) -> e5(latent) -> d1(relu) -> d2(relu)
# One pallas_call, all weights VMEM-resident, intermediates never hit HBM.
# --------------------------------------------------------------------------
def _mlp_kernel(h_ref, w4_ref, b4_ref, w5_ref, b5_ref,
                wd1_ref, bd1_ref, wd2_ref, bd2_ref,
                latent_ref, d2_ref):
    h1 = jnp.dot(h_ref[...], w4_ref[...],
                 preferred_element_type=jnp.float32) + b4_ref[...]
    h1 = jnp.maximum(h1, 0.0)

    lat = jnp.dot(h1.astype(jnp.bfloat16), w5_ref[...],
                  preferred_element_type=jnp.float32) + b5_ref[...]
    latent_ref[...] = lat

    d1 = jnp.dot(lat.astype(jnp.bfloat16), wd1_ref[...],
                 preferred_element_type=jnp.float32) + bd1_ref[...]
    d1 = jnp.maximum(d1, 0.0)

    d2 = jnp.dot(d1.astype(jnp.bfloat16), wd2_ref[...],
                 preferred_element_type=jnp.float32) + bd2_ref[...]
    d2_ref[...] = jnp.maximum(d2, 0.0)


def mlp_chain(h_flat, params):
    """h_flat: [B, 2048] f32 -> (latent [B, latent_dim] f32, d2 [B, 2048] f32)."""
    B, K = h_flat.shape
    Mp = _round_up(B, 8)
    h_p = jnp.pad(h_flat, ((0, Mp - B), (0, 0))).astype(jnp.bfloat16)

    w4 = params["e4_w"].T.astype(jnp.bfloat16)
    b4 = params["e4_b"].reshape(1, -1).astype(jnp.float32)
    w5 = params["e5_w"].T.astype(jnp.bfloat16)
    b5 = params["e5_b"].reshape(1, -1).astype(jnp.float32)
    wd1 = params["d1_w"].T.astype(jnp.bfloat16)
    bd1 = params["d1_b"].reshape(1, -1).astype(jnp.float32)
    wd2 = params["d2_w"].T.astype(jnp.bfloat16)
    bd2 = params["d2_b"].reshape(1, -1).astype(jnp.float32)

    latent_dim = w5.shape[1]
    d2_dim = wd2.shape[1]
    args = (h_p, w4, b4, w5, b5, wd1, bd1, wd2, bd2)

    latent_p, d2_p = pl.pallas_call(
        _mlp_kernel,
        out_shape=(jax.ShapeDtypeStruct((Mp, latent_dim), jnp.float32),
                   jax.ShapeDtypeStruct((Mp, d2_dim), jnp.float32)),
        grid_spec=pltpu.PrefetchScalarGridSpec(
            num_scalar_prefetch=0,
            grid=(1,),
            in_specs=[pl.BlockSpec(x.shape, lambda i: (0, 0)) for x in args],
            out_specs=[pl.BlockSpec((Mp, latent_dim), lambda i: (0, 0)),
                       pl.BlockSpec((Mp, d2_dim), lambda i: (0, 0))],
        ),
        compiler_params=pltpu.CompilerParams(
            dimension_semantics=("arbitrary",)),
    )(*args)
    return latent_p[:B], d2_p[:B]


# --------------------------------------------------------------------------
# Conv as im2col (glue) + Pallas matmul;  ConvTranspose as Pallas matmul + col2im
# --------------------------------------------------------------------------
# TODO(synk): im2col / col2im patch shuffling stays as (tiny) XLA glue; a pure
# in-kernel gather/scatter over (oh, ow) windows has no clean rectangular
# BlockSpec expression at these shapes.
def _im2col(x, k, s, pad):
    """x: NHWC -> ([B*oh*ow, k*k*C], (B, oh, ow)); patch order (kh, kw, C)."""
    x = jnp.pad(x, ((0, 0), (pad, pad), (pad, pad), (0, 0)))
    B, H, W, C = x.shape
    oh = (H - k) // s + 1
    ow = (W - k) // s + 1
    cols = []
    for i in range(k):
        for j in range(k):
            cols.append(x[:, i:i + (oh - 1) * s + 1:s,
                           j:j + (ow - 1) * s + 1:s, :])
    patches = jnp.stack(cols, axis=3)            # [B, oh, ow, k*k, C]
    return patches.reshape(B * oh * ow, k * k * C), (B, oh, ow)


def conv2d(x, w, b, stride, pad, act):
    """x: NHWC.  w: PyTorch layout [O, C, kh, kw]."""
    O, C, kh, kw = w.shape
    cols, (B, oh, ow) = _im2col(x, kh, stride, pad)
    wmat = jnp.transpose(w, (2, 3, 1, 0)).reshape(kh * kw * C, O)
    y = matmul_bias_act(cols, wmat, b, act)
    return y.reshape(B, oh, ow, O)


def conv_transpose2d(x, w, b, stride, pad, act):
    """x: NHWC.  w: PyTorch ConvTranspose layout [Cin, Cout, kh, kw].

    Dense matmul over input pixels (no zero-dilation waste) + col2im scatter."""
    B, H, W, Cin = x.shape
    Cin2, Cout, kh, kw = w.shape
    assert Cin == Cin2
    # [Cin, kh*kw*Cout], patch order (kh, kw, Cout)
    wmat = jnp.transpose(w, (0, 2, 3, 1)).reshape(Cin, kh * kw * Cout)
    patches = matmul_bias_act(x.reshape(B * H * W, Cin), wmat,
                              jnp.zeros((kh * kw * Cout,), jnp.float32), "none")
    patches = patches.reshape(B, H, W, kh, kw, Cout)

    fh = (H - 1) * stride + kh
    fw = (W - 1) * stride + kw
    out_full = jnp.zeros((B, fh, fw, Cout), jnp.float32)
    for i in range(kh):
        for j in range(kw):
            out_full = out_full.at[:, i:i + (H - 1) * stride + 1:stride,
                                      j:j + (W - 1) * stride + 1:stride, :].add(
                patches[:, :, :, i, j, :])
    oh = (H - 1) * stride - 2 * pad + kh
    ow = (W - 1) * stride - 2 * pad + kw
    out = out_full[:, pad:pad + oh, pad:pad + ow, :] + b.reshape(1, 1, 1, Cout)
    if act == "relu":
        out = jnp.maximum(out, 0.0)
    elif act == "sigmoid":
        out = jax.nn.sigmoid(out)
    return out


# --------------------------------------------------------------------------
# Parameters (deterministic, PyTorch-default-style uniform init)
# --------------------------------------------------------------------------
def init_params(key, latent_dim=64):
    def conv_init(k, out_c, in_c, ks):
        kw_, kb_ = jax.random.split(k)
        bound = 1.0 / (in_c * ks * ks) ** 0.5
        w = jax.random.uniform(kw_, (out_c, in_c, ks, ks), jnp.float32, -bound, bound)
        b = jax.random.uniform(kb_, (out_c,), jnp.float32, -bound, bound)
        return w, b

    def convt_init(k, in_c, out_c, ks):
        kw_, kb_ = jax.random.split(k)
        bound = 1.0 / (out_c * ks * ks) ** 0.5
        w = jax.random.uniform(kw_, (in_c, out_c, ks, ks), jnp.float32, -bound, bound)
        b = jax.random.uniform(kb_, (out_c,), jnp.float32, -bound, bound)
        return w, b

    def linear_init(k, out_f, in_f):
        kw_, kb_ = jax.random.split(k)
        bound = 1.0 / in_f ** 0.5
        w = jax.random.uniform(kw_, (out_f, in_f), jnp.float32, -bound, bound)
        b = jax.random.uniform(kb_, (out_f,), jnp.float32, -bound, bound)
        return w, b

    keys = jax.random.split(key, 10)
    p = {}
    p["e1_w"], p["e1_b"] = conv_init(keys[0], 32, 1, 4)
    p["e2_w"], p["e2_b"] = conv_init(keys[1], 64, 32, 4)
    p["e3_w"], p["e3_b"] = conv_init(keys[2], 128, 64, 3)
    p["e4_w"], p["e4_b"] = linear_init(keys[3], 512, 128 * 4 * 4)
    p["e5_w"], p["e5_b"] = linear_init(keys[4], latent_dim, 512)
    p["d1_w"], p["d1_b"] = linear_init(keys[5], 512, latent_dim)
    p["d2_w"], p["d2_b"] = linear_init(keys[6], 128 * 4 * 4, 512)
    p["d3_w"], p["d3_b"] = convt_init(keys[7], 128, 64, 3)
    p["d4_w"], p["d4_b"] = convt_init(keys[8], 64, 32, 4)
    p["d5_w"], p["d5_b"] = convt_init(keys[9], 32, 1, 4)
    return p


# --------------------------------------------------------------------------
# Forward pass (mirrors AutoEncoder.forward)
# --------------------------------------------------------------------------
def autoencoder_forward(params, x_nchw):
    x = jnp.transpose(x_nchw, (0, 2, 3, 1))                         # NCHW -> NHWC
    # ---- encoder convs ----
    h = conv2d(x, params["e1_w"], params["e1_b"], 2, 1, "relu")     # [B,14,14,32]
    h = conv2d(h, params["e2_w"], params["e2_b"], 2, 1, "relu")     # [B, 7, 7,64]
    h = conv2d(h, params["e3_w"], params["e3_b"], 2, 1, "relu")     # [B, 4, 4,128]
    B = h.shape[0]
    # PyTorch Flatten acts on NCHW -> reproduce that ordering exactly.
    h_flat = jnp.transpose(h, (0, 3, 1, 2)).reshape(B, 128 * 4 * 4)

    # ---- fused MLP chain (e4, e5, d1, d2 in one pallas_call) ----
    latent, d2 = mlp_chain(h_flat, params)

    # ---- decoder convs ----
    d = d2.reshape(B, 128, 4, 4)                                    # Unflatten (NCHW)
    d = jnp.transpose(d, (0, 2, 3, 1))                              # -> NHWC
    d = conv_transpose2d(d, params["d3_w"], params["d3_b"], 2, 1, "relu")     # 7x7x64
    d = conv_transpose2d(d, params["d4_w"], params["d4_b"], 2, 1, "relu")     # 14x14x32
    d = conv_transpose2d(d, params["d5_w"], params["d5_b"], 2, 1, "sigmoid")  # 28x28x1
    recon = jnp.transpose(d, (0, 3, 1, 2))                          # -> NCHW
    return recon, latent


if __name__ == "__main__":
    key = jax.random.PRNGKey(0)
    pkey, xkey = jax.random.split(key)
    params = init_params(pkey, latent_dim=64)
    x = jax.random.uniform(xkey, (2, 1, 28, 28), jnp.float32)   # small batch, MNIST-size

    recon, latent = jax.jit(autoencoder_forward)(params, x)
    jax.block_until_ready((recon, latent))

    assert recon.shape == (2, 1, 28, 28), recon.shape
    assert latent.shape == (2, 64), latent.shape
    assert bool(jnp.all(jnp.isfinite(recon))) and bool(jnp.all(jnp.isfinite(latent)))
    assert bool(jnp.all(recon >= 0.0)) and bool(jnp.all(recon <= 1.0))  # sigmoid output
    print("KERNEL_OK")
</pallas_src>

<mosaic_0001>
module attributes {stable_mosaic.version = 11 : i64} {
  func.func @_mm_kernel(%arg0: i32, %arg1: memref<392x16xbf16, #tpu.memory_space<vmem>>, %arg2: memref<16x32xbf16, #tpu.memory_space<vmem>>, %arg3: memref<1x32xf32, #tpu.memory_space<vmem>>, %arg4: memref<392x32xf32, #tpu.memory_space<vmem>>) attributes {dimension_semantics = [#tpu.dimension_semantics<parallel>], iteration_bounds = array<i64: 1>, scalar_prefetch = 0 : i64, scratch_operands = 0 : i64, tpu.core_type = #tpu.core_type<tc>, window_params = [{transform_indices = @transform_0, window_bounds = array<i64: 392, 16>}, {pipeline_mode = #tpu.pipeline_mode<synchronous>, transform_indices = @transform_1, window_bounds = array<i64: 16, 32>}, {pipeline_mode = #tpu.pipeline_mode<synchronous>, transform_indices = @transform_2, window_bounds = array<i64: 1, 32>}, {transform_indices = @transform_3, window_bounds = array<i64: 392, 32>}]} {
    %c0 = arith.constant 0 : index
    %c0_0 = arith.constant 0 : index
    %0 = vector.load %arg1[%c0, %c0_0] : memref<392x16xbf16, #tpu.memory_space<vmem>>, vector<392x16xbf16>
    %c0_1 = arith.constant 0 : index
    %c0_2 = arith.constant 0 : index
    %1 = vector.load %arg2[%c0_1, %c0_2] : memref<16x32xbf16, #tpu.memory_space<vmem>>, vector<16x32xbf16>
    %cst = arith.constant dense<0.000000e+00> : vector<392x32xf32>
    %2 = tpu.matmul %0, %1, %cst {dimension_numbers = #tpu.dot_dimension_numbers<[1], [0], [0], [1], [0, 0, 1, 1], [], []>} : vector<392x16xbf16>, vector<16x32xbf16>, vector<392x32xf32> -> vector<392x32xf32>
    %c0_3 = arith.constant 0 : index
    %c0_4 = arith.constant 0 : index
    %3 = vector.load %arg3[%c0_3, %c0_4] : memref<1x32xf32, #tpu.memory_space<vmem>>, vector<1x32xf32>
    %4 = vector.broadcast %3 : vector<1x32xf32> to vector<392x32xf32>
    %5 = arith.addf %2, %4 : vector<392x32xf32>
    %cst_5 = arith.constant 0.000000e+00 : f32
    %6 = vector.broadcast %cst_5 : f32 to vector<392x32xf32>
    %7 = arith.maximumf %5, %6 : vector<392x32xf32>
    %c0_6 = arith.constant 0 : index
    %c0_7 = arith.constant 0 : index
    %8 = vector.load %arg4[%c0_6, %c0_7] : memref<392x32xf32, #tpu.memory_space<vmem>>, vector<392x32xf32>
    tpu.vector_store %arg4[%c0_6, %c0_7], %7 {strides = array<i32>} : memref<392x32xf32, #tpu.memory_space<vmem>>, vector<392x32xf32>,
    return
  }
  func.func @transform_0(%arg0: i32) -> (i32, i32) {
    %c0_i32 = arith.constant 0 : i32
    %c0_i32_0 = arith.constant 0 : i32
    return %arg0, %c0_i32 : i32, i32
  }
  func.func @transform_1(%arg0: i32) -> (i32, i32) {
    %c0_i32 = arith.constant 0 : i32
    %c0_i32_0 = arith.constant 0 : i32
    %c0_i32_1 = arith.constant 0 : i32
    return %c0_i32, %c0_i32_0 : i32, i32
  }
  func.func @transform_2(%arg0: i32) -> (i32, i32) {
    %c0_i32 = arith.constant 0 : i32
    %c0_i32_0 = arith.constant 0 : i32
    %c0_i32_1 = arith.constant 0 : i32
    return %c0_i32, %c0_i32_0 : i32, i32
  }
  func.func @transform_3(%arg0: i32) -> (i32, i32) {
    %c0_i32 = arith.constant 0 : i32
    %c0_i32_0 = arith.constant 0 : i32
    return %arg0, %c0_i32 : i32, i32
  }
}

module attributes {stable_mosaic.version = 11 : i64} {
  func.func @_mm_kernel(%arg0: i32, %arg1: memref<104x512xbf16, #tpu.memory_space<vmem>>, %arg2: memref<512x64xbf16, #tpu.memory_space<vmem>>, %arg3: memref<1x64xf32, #tpu.memory_space<vmem>>, %arg4: memref<104x64xf32, #tpu.memory_space<vmem>>) attributes {dimension_semantics = [#tpu.dimension_semantics<parallel>], iteration_bounds = array<i64: 1>, scalar_prefetch = 0 : i64, scratch_operands = 0 : i64, tpu.core_type = #tpu.core_type<tc>, window_params = [{transform_indices = @transform_0, window_bounds = array<i64: 104, 512>}, {pipeline_mode = #tpu.pipeline_mode<synchronous>, transform_indices = @transform_1, window_bounds = array<i64: 512, 64>}, {pipeline_mode = #tpu.pipeline_mode<synchronous>, transform_indices = @transform_2, window_bounds = array<i64: 1, 64>}, {transform_indices = @transform_3, window_bounds = array<i64: 104, 64>}]} {
    %c0 = arith.constant 0 : index
    %c0_0 = arith.constant 0 : index
    %0 = vector.load %arg1[%c0, %c0_0] : memref<104x512xbf16, #tpu.memory_space<vmem>>, vector<104x512xbf16>
    %c0_1 = arith.constant 0 : index
    %c0_2 = arith.constant 0 : index
    %1 = vector.load %arg2[%c0_1, %c0_2] : memref<512x64xbf16, #tpu.memory_space<vmem>>, vector<512x64xbf16>
    %cst = arith.constant dense<0.000000e+00> : vector<104x64xf32>
    %2 = tpu.matmul %0, %1, %cst {dimension_numbers = #tpu.dot_dimension_numbers<[1], [0], [0], [1], [0, 0, 1, 1], [], []>} : vector<104x512xbf16>, vector<512x64xbf16>, vector<104x64xf32> -> vector<104x64xf32>
    %c0_3 = arith.constant 0 : index
    %c0_4 = arith.constant 0 : index
    %3 = vector.load %arg3[%c0_3, %c0_4] : memref<1x64xf32, #tpu.memory_space<vmem>>, vector<1x64xf32>
    %4 = vector.broadcast %3 : vector<1x64xf32> to vector<104x64xf32>
    %5 = arith.addf %2, %4 : vector<104x64xf32>
    %cst_5 = arith.constant 0.000000e+00 : f32
    %6 = vector.broadcast %cst_5 : f32 to vector<104x64xf32>
    %7 = arith.maximumf %5, %6 : vector<104x64xf32>
    %c0_6 = arith.constant 0 : index
    %c0_7 = arith.constant 0 : index
    %8 = vector.load %arg4[%c0_6, %c0_7] : memref<104x64xf32, #tpu.memory_space<vmem>>, vector<104x64xf32>
    tpu.vector_store %arg4[%c0_6, %c0_7], %7 {strides = array<i32>} : memref<104x64xf32, #tpu.memory_space<vmem>>, vector<104x64xf32>,
    return
  }
  func.func @transform_0(%arg0: i32) -> (i32, i32) {
    %c0_i32 = arith.constant 0 : i32
    %c0_i32_0 = arith.constant 0 : i32
    return %arg0, %c0_i32 : i32, i32
  }
  func.func @transform_1(%arg0: i32) -> (i32, i32) {
    %c0_i32 = arith.constant 0 : i32
    %c0_i32_0 = arith.constant 0 : i32
    %c0_i32_1 = arith.constant 0 : i32
    return %c0_i32, %c0_i32_0 : i32, i32
  }
  func.func @transform_2(%arg0: i32) -> (i32, i32) {
    %c0_i32 = arith.constant 0 : i32
    %c0_i32_0 = arith.constant 0 : i32
    %c0_i32_1 = arith.constant 0 : i32
    return %c0_i32, %c0_i32_0 : i32, i32
  }
  func.func @transform_3(%arg0: i32) -> (i32, i32) {
    %c0_i32 = arith.constant 0 : i32
    %c0_i32_0 = arith.constant 0 : i32
    return %arg0, %c0_i32 : i32, i32
  }
}

module attributes {stable_mosaic.version = 11 : i64} {
  func.func @_mm_kernel(%arg0: i32, %arg1: memref<32x576xbf16, #tpu.memory_space<vmem>>, %arg2: memref<576x128xbf16, #tpu.memory_space<vmem>>, %arg3: memref<1x128xf32, #tpu.memory_space<vmem>>, %arg4: memref<32x128xf32, #tpu.memory_space<vmem>>) attributes {dimension_semantics = [#tpu.dimension_semantics<parallel>], iteration_bounds = array<i64: 1>, scalar_prefetch = 0 : i64, scratch_operands = 0 : i64, tpu.core_type = #tpu.core_type<tc>, window_params = [{transform_indices = @transform_0, window_bounds = array<i64: 32, 576>}, {pipeline_mode = #tpu.pipeline_mode<synchronous>, transform_indices = @transform_1, window_bounds = array<i64: 576, 128>}, {pipeline_mode = #tpu.pipeline_mode<synchronous>, transform_indices = @transform_2, window_bounds = array<i64: 1, 128>}, {transform_indices = @transform_3, window_bounds = array<i64: 32, 128>}]} {
    %c0 = arith.constant 0 : index
    %c0_0 = arith.constant 0 : index
    %0 = vector.load %arg1[%c0, %c0_0] : memref<32x576xbf16, #tpu.memory_space<vmem>>, vector<32x576xbf16>
    %c0_1 = arith.constant 0 : index
    %c0_2 = arith.constant 0 : index
    %1 = vector.load %arg2[%c0_1, %c0_2] : memref<576x128xbf16, #tpu.memory_space<vmem>>, vector<576x128xbf16>
    %cst = arith.constant dense<0.000000e+00> : vector<32x128xf32>
    %2 = tpu.matmul %0, %1, %cst {dimension_numbers = #tpu.dot_dimension_numbers<[1], [0], [0], [1], [0, 0, 1, 1], [], []>} : vector<32x576xbf16>, vector<576x128xbf16>, vector<32x128xf32> -> vector<32x128xf32>
    %c0_3 = arith.constant 0 : index
    %c0_4 = arith.constant 0 : index
    %3 = vector.load %arg3[%c0_3, %c0_4] : memref<1x128xf32, #tpu.memory_space<vmem>>, vector<1x128xf32>
    %4 = vector.broadcast %3 : vector<1x128xf32> to vector<32x128xf32>
    %5 = arith.addf %2, %4 : vector<32x128xf32>
    %cst_5 = arith.constant 0.000000e+00 : f32
    %6 = vector.broadcast %cst_5 : f32 to vector<32x128xf32>
    %7 = arith.maximumf %5, %6 : vector<32x128xf32>
    %c0_6 = arith.constant 0 : index
    %c0_7 = arith.constant 0 : index
    %8 = vector.load %arg4[%c0_6, %c0_7] : memref<32x128xf32, #tpu.memory_space<vmem>>, vector<32x128xf32>
    tpu.vector_store %arg4[%c0_6, %c0_7], %7 {strides = array<i32>} : memref<32x128xf32, #tpu.memory_space<vmem>>, vector<32x128xf32>,
    return
  }
  func.func @transform_0(%arg0: i32) -> (i32, i32) {
    %c0_i32 = arith.constant 0 : i32
    %c0_i32_0 = arith.constant 0 : i32
    return %arg0, %c0_i32 : i32, i32
  }
  func.func @transform_1(%arg0: i32) -> (i32, i32) {
    %c0_i32 = arith.constant 0 : i32
    %c0_i32_0 = arith.constant 0 : i32
    %c0_i32_1 = arith.constant 0 : i32
    return %c0_i32, %c0_i32_0 : i32, i32
  }
  func.func @transform_2(%arg0: i32) -> (i32, i32) {
    %c0_i32 = arith.constant 0 : i32
    %c0_i32_0 = arith.constant 0 : i32
    %c0_i32_1 = arith.constant 0 : i32
    return %c0_i32, %c0_i32_0 : i32, i32
  }
  func.func @transform_3(%arg0: i32) -> (i32, i32) {
    %c0_i32 = arith.constant 0 : i32
    %c0_i32_0 = arith.constant 0 : i32
    return %arg0, %c0_i32 : i32, i32
  }
}

module attributes {stable_mosaic.version = 11 : i64} {
  func.func @_mlp_kernel(%arg0: i32, %arg1: memref<8x2048xbf16, #tpu.memory_space<vmem>>, %arg2: memref<2048x512xbf16, #tpu.memory_space<vmem>>, %arg3: memref<1x512xf32, #tpu.memory_space<vmem>>, %arg4: memref<512x64xbf16, #tpu.memory_space<vmem>>, %arg5: memref<1x64xf32, #tpu.memory_space<vmem>>, %arg6: memref<64x512xbf16, #tpu.memory_space<vmem>>, %arg7: memref<1x512xf32, #tpu.memory_space<vmem>>, %arg8: memref<512x2048xbf16, #tpu.memory_space<vmem>>, %arg9: memref<1x2048xf32, #tpu.memory_space<vmem>>, %arg10: memref<8x64xf32, #tpu.memory_space<vmem>>, %arg11: memref<8x2048xf32, #tpu.memory_space<vmem>>) attributes {dimension_semantics = [#tpu.dimension_semantics<arbitrary>], iteration_bounds = array<i64: 1>, scalar_prefetch = 0 : i64, scratch_operands = 0 : i64, tpu.core_type = #tpu.core_type<tc>, window_params = [{pipeline_mode = #tpu.pipeline_mode<synchronous>, transform_indices = @transform_0, window_bounds = array<i64: 8, 2048>}, {pipeline_mode = #tpu.pipeline_mode<synchronous>, transform_indices = @transform_1, window_bounds = array<i64: 2048, 512>}, {pipeline_mode = #tpu.pipeline_mode<synchronous>, transform_indices = @transform_2, window_bounds = array<i64: 1, 512>}, {pipeline_mode = #tpu.pipeline_mode<synchronous>, transform_indices = @transform_3, window_bounds = array<i64: 512, 64>}, {pipeline_mode = #tpu.pipeline_mode<synchronous>, transform_indices = @transform_4, window_bounds = array<i64: 1, 64>}, {pipeline_mode = #tpu.pipeline_mode<synchronous>, transform_indices = @transform_5, window_bounds = array<i64: 64, 512>}, {pipeline_mode = #tpu.pipeline_mode<synchronous>, transform_indices = @transform_6, window_bounds = array<i64: 1, 512>}, {pipeline_mode = #tpu.pipeline_mode<synchronous>, transform_indices = @transform_7, window_bounds = array<i64: 512, 2048>}, {pipeline_mode = #tpu.pipeline_mode<synchronous>, transform_indices = @transform_8, window_bounds = array<i64: 1, 2048>}, {pipeline_mode = #tpu.pipeline_mode<synchronous>, transform_indices = @transform_9, window_bounds = array<i64: 8, 64>}, {pipeline_mode = #tpu.pipeline_mode<synchronous>, transform_indices = @transform_10, window_bounds = array<i64: 8, 2048>}]} {
    %c0 = arith.constant 0 : index
    %c0_0 = arith.constant 0 : index
    %0 = vector.load %arg1[%c0, %c0_0] : memref<8x2048xbf16, #tpu.memory_space<vmem>>, vector<8x2048xbf16>
    %c0_1 = arith.constant 0 : index
    %c0_2 = arith.constant 0 : index
    %1 = vector.load %arg2[%c0_1, %c0_2] : memref<2048x512xbf16, #tpu.memory_space<vmem>>, vector<2048x512xbf16>
    %cst = arith.constant dense<0.000000e+00> : vector<8x512xf32>
    %2 = tpu.matmul %0, %1, %cst {dimension_numbers = #tpu.dot_dimension_numbers<[1], [0], [0], [1], [0, 0, 1, 1], [], []>} : vector<8x2048xbf16>, vector<2048x512xbf16>, vector<8x512xf32> -> vector<8x512xf32>
    %c0_3 = arith.constant 0 : index
    %c0_4 = arith.constant 0 : index
    %3 = vector.load %arg3[%c0_3, %c0_4] : memref<1x512xf32, #tpu.memory_space<vmem>>, vector<1x512xf32>
    %4 = vector.broadcast %3 : vector<1x512xf32> to vector<8x512xf32>
    %5 = arith.addf %2, %4 : vector<8x512xf32>
    %cst_5 = arith.constant 0.000000e+00 : f32
    %6 = vector.broadcast %cst_5 : f32 to vector<8x512xf32>
    %7 = arith.maximumf %5, %6 : vector<8x512xf32>
    %8 = arith.truncf %7 : vector<8x512xf32> to vector<8x512xbf16>
    %c0_6 = arith.constant 0 : index
    %c0_7 = arith.constant 0 : index
    %9 = vector.load %arg4[%c0_6, %c0_7] : memref<512x64xbf16, #tpu.memory_space<vmem>>, vector<512x64xbf16>
    %cst_8 = arith.constant dense<0.000000e+00> : vector<8x64xf32>
    %10 = tpu.matmul %8, %9, %cst_8 {dimension_numbers = #tpu.dot_dimension_numbers<[1], [0], [0], [1], [0, 0, 1, 1], [], []>} : vector<8x512xbf16>, vector<512x64xbf16>, vector<8x64xf32> -> vector<8x64xf32>
    %c0_9 = arith.constant 0 : index
    %c0_10 = arith.constant 0 : index
    %11 = vector.load %arg5[%c0_9, %c0_10] : memref<1x64xf32, #tpu.memory_space<vmem>>, vector<1x64xf32>
    %12 = vector.broadcast %11 : vector<1x64xf32> to vector<8x64xf32>
    %13 = arith.addf %10, %12 : vector<8x64xf32>
    %c0_11 = arith.constant 0 : index
    %c0_12 = arith.constant 0 : index
    %14 = vector.load %arg10[%c0_11, %c0_12] : memref<8x64xf32, #tpu.memory_space<vmem>>, vector<8x64xf32>
    tpu.vector_store %arg10[%c0_11, %c0_12], %13 {strides = array<i32>} : memref<8x64xf32, #tpu.memory_space<vmem>>, vector<8x64xf32>,
    %15 = arith.truncf %13 : vector<8x64xf32> to vector<8x64xbf16>
    %c0_13 = arith.constant 0 : index
    %c0_14 = arith.constant 0 : index
    %16 = vector.load %arg6[%c0_13, %c0_14] : memref<64x512xbf16, #tpu.memory_space<vmem>>, vector<64x512xbf16>
    %cst_15 = arith.constant dense<0.000000e+00> : vector<8x512xf32>
    %17 = tpu.matmul %15, %16, %cst_15 {dimension_numbers = #tpu.dot_dimension_numbers<[1], [0], [0], [1], [0, 0, 1, 1], [], []>} : vector<8x64xbf16>, vector<64x512xbf16>, vector<8x512xf32> -> vector<8x512xf32>
    %c0_16 = arith.constant 0 : index
    %c0_17 = arith.constant 0 : index
    %18 = vector.load %arg7[%c0_16, %c0_17] : memref<1x512xf32, #tpu.memory_space<vmem>>, vector<1x512xf32>
    %19 = vector.broadcast %18 : vector<1x512xf32> to vector<8x512xf32>
    %20 = arith.addf %17, %19 : vector<8x512xf32>
    %cst_18 = arith.constant 0.000000e+00 : f32
    %21 = vector.broadcast %cst_18 : f32 to vector<8x512xf32>
    %22 = arith.maximumf %20, %21 : vector<8x512xf32>
    %23 = arith.truncf %22 : vector<8x512xf32> to vector<8x512xbf16>
    %c0_19 = arith.constant 0 : index
    %c0_20 = arith.constant 0 : index
    %24 = vector.load %arg8[%c0_19, %c0_20] : memref<512x2048xbf16, #tpu.memory_space<vmem>>, vector<512x2048xbf16>
    %cst_21 = arith.constant dense<0.000000e+00> : vector<8x2048xf32>
    %25 = tpu.matmul %23, %24, %cst_21 {dimension_numbers = #tpu.dot_dimension_numbers<[1], [0], [0], [1], [0, 0, 1, 1], [], []>} : vector<8x512xbf16>, vector<512x2048xbf16>, vector<8x2048xf32> -> vector<8x2048xf32>
    %c0_22 = arith.constant 0 : index
    %c0_23 = arith.constant 0 : index
    %26 = vector.load %arg9[%c0_22, %c0_23] : memref<1x2048xf32, #tpu.memory_space<vmem>>, vector<1x2048xf32>
    %27 = vector.broadcast %26 : vector<1x2048xf32> to vector<8x2048xf32>
    %28 = arith.addf %25, %27 : vector<8x2048xf32>
    %cst_24 = arith.constant 0.000000e+00 : f32
    %29 = vector.broadcast %cst_24 : f32 to vector<8x2048xf32>
    %30 = arith.maximumf %28, %29 : vector<8x2048xf32>
    %c0_25 = arith.constant 0 : index
    %c0_26 = arith.constant 0 : index
    %31 = vector.load %arg11[%c0_25, %c0_26] : memref<8x2048xf32, #tpu.memory_space<vmem>>, vector<8x2048xf32>
    tpu.vector_store %arg11[%c0_25, %c0_26], %30 {strides = array<i32>} : memref<8x2048xf32, #tpu.memory_space<vmem>>, vector<8x2048xf32>,
    return
  }
  func.func @transform_0(%arg0: i32) -> (i32, i32) {
    %c0_i32 = arith.constant 0 : i32
    %c0_i32_0 = arith.constant 0 : i32
    %c0_i32_1 = arith.constant 0 : i32
    return %c0_i32, %c0_i32_0 : i32, i32
  }
  func.func @transform_1(%arg0: i32) -> (i32, i32) {
    %c0_i32 = arith.constant 0 : i32
    %c0_i32_0 = arith.constant 0 : i32
    %c0_i32_1 = arith.constant 0 : i32
    return %c0_i32, %c0_i32_0 : i32, i32
  }
  func.func @transform_2(%arg0: i32) -> (i32, i32) {
    %c0_i32 = arith.constant 0 : i32
    %c0_i32_0 = arith.constant 0 : i32
    %c0_i32_1 = arith.constant 0 : i32
    return %c0_i32, %c0_i32_0 : i32, i32
  }
  func.func @transform_3(%arg0: i32) -> (i32, i32) {
    %c0_i32 = arith.constant 0 : i32
    %c0_i32_0 = arith.constant 0 : i32
    %c0_i32_1 = arith.constant 0 : i32
    return %c0_i32, %c0_i32_0 : i32, i32
  }
  func.func @transform_4(%arg0: i32) -> (i32, i32) {
    %c0_i32 = arith.constant 0 : i32
    %c0_i32_0 = arith.constant 0 : i32
    %c0_i32_1 = arith.constant 0 : i32
    return %c0_i32, %c0_i32_0 : i32, i32
  }
  func.func @transform_5(%arg0: i32) -> (i32, i32) {
    %c0_i32 = arith.constant 0 : i32
    %c0_i32_0 = arith.constant 0 : i32
    %c0_i32_1 = arith.constant 0 : i32
    return %c0_i32, %c0_i32_0 : i32, i32
  }
  func.func @transform_6(%arg0: i32) -> (i32, i32) {
    %c0_i32 = arith.constant 0 : i32
    %c0_i32_0 = arith.constant 0 : i32
    %c0_i32_1 = arith.constant 0 : i32
    return %c0_i32, %c0_i32_0 : i32, i32
  }
  func.func @transform_7(%arg0: i32) -> (i32, i32) {
    %c0_i32 = arith.constant 0 : i32
    %c0_i32_0 = arith.constant 0 : i32
    %c0_i32_1 = arith.constant 0 : i32
    return %c0_i32, %c0_i32_0 : i32, i32
  }
  func.func @transform_8(%arg0: i32) -> (i32, i32) {
    %c0_i32 = arith.constant 0 : i32
    %c0_i32_0 = arith.constant 0 : i32
    %c0_i32_1 = arith.constant 0 : i32
    return %c0_i32, %c0_i32_0 : i32, i32
  }
  func.func @transform_9(%arg0: i32) -> (i32, i32) {
    %c0_i32 = arith.constant 0 : i32
    %c0_i32_0 = arith.constant 0 : i32
    %c0_i32_1 = arith.constant 0 : i32
    return %c0_i32, %c0_i32_0 : i32, i32
  }
  func.func @transform_10(%arg0: i32) -> (i32, i32) {
    %c0_i32 = arith.constant 0 : i32
    %c0_i32_0 = arith.constant 0 : i32
    %c0_i32_1 = arith.constant 0 : i32
    return %c0_i32, %c0_i32_0 : i32, i32
  }
}

module attributes {stable_mosaic.version = 11 : i64} {
  func.func @_mm_kernel(%arg0: i32, %arg1: memref<32x128xbf16, #tpu.memory_space<vmem>>, %arg2: memref<128x576xbf16, #tpu.memory_space<vmem>>, %arg3: memref<1x576xf32, #tpu.memory_space<vmem>>, %arg4: memref<32x576xf32, #tpu.memory_space<vmem>>) attributes {dimension_semantics = [#tpu.dimension_semantics<parallel>], iteration_bounds = array<i64: 1>, scalar_prefetch = 0 : i64, scratch_operands = 0 : i64, tpu.core_type = #tpu.core_type<tc>, window_params = [{transform_indices = @transform_0, window_bounds = array<i64: 32, 128>}, {pipeline_mode = #tpu.pipeline_mode<synchronous>, transform_indices = @transform_1, window_bounds = array<i64: 128, 576>}, {pipeline_mode = #tpu.pipeline_mode<synchronous>, transform_indices = @transform_2, window_bounds = array<i64: 1, 576>}, {transform_indices = @transform_3, window_bounds = array<i64: 32, 576>}]} {
    %c0 = arith.constant 0 : index
    %c0_0 = arith.constant 0 : index
    %0 = vector.load %arg1[%c0, %c0_0] : memref<32x128xbf16, #tpu.memory_space<vmem>>, vector<32x128xbf16>
    %c0_1 = arith.constant 0 : index
    %c0_2 = arith.constant 0 : index
    %1 = vector.load %arg2[%c0_1, %c0_2] : memref<128x576xbf16, #tpu.memory_space<vmem>>, vector<128x576xbf16>
    %cst = arith.constant dense<0.000000e+00> : vector<32x576xf32>
    %2 = tpu.matmul %0, %1, %cst {dimension_numbers = #tpu.dot_dimension_numbers<[1], [0], [0], [1], [0, 0, 1, 1], [], []>} : vector<32x128xbf16>, vector<128x576xbf16>, vector<32x576xf32> -> vector<32x576xf32>
    %c0_3 = arith.constant 0 : index
    %c0_4 = arith.constant 0 : index
    %3 = vector.load %arg3[%c0_3, %c0_4] : memref<1x576xf32, #tpu.memory_space<vmem>>, vector<1x576xf32>
    %4 = vector.broadcast %3 : vector<1x576xf32> to vector<32x576xf32>
    %5 = arith.addf %2, %4 : vector<32x576xf32>
    %c0_5 = arith.constant 0 : index
    %c0_6 = arith.constant 0 : index
    %6 = vector.load %arg4[%c0_5, %c0_6] : memref<32x576xf32, #tpu.memory_space<vmem>>, vector<32x576xf32>
    tpu.vector_store %arg4[%c0_5, %c0_6], %5 {strides = array<i32>} : memref<32x576xf32, #tpu.memory_space<vmem>>, vector<32x576xf32>,
    return
  }
  func.func @transform_0(%arg0: i32) -> (i32, i32) {
    %c0_i32 = arith.constant 0 : i32
    %c0_i32_0 = arith.constant 0 : i32
    return %arg0, %c0_i32 : i32, i32
  }
  func.func @transform_1(%arg0: i32) -> (i32, i32) {
    %c0_i32 = arith.constant 0 : i32
    %c0_i32_0 = arith.constant 0 : i32
    %c0_i32_1 = arith.constant 0 : i32
    return %c0_i32, %c0_i32_0 : i32, i32
  }
  func.func @transform_2(%arg0: i32) -> (i32, i32) {
    %c0_i32 = arith.constant 0 : i32
    %c0_i32_0 = arith.constant 0 : i32
    %c0_i32_1 = arith.constant 0 : i32
    return %c0_i32, %c0_i32_0 : i32, i32
  }
  func.func @transform_3(%arg0: i32) -> (i32, i32) {
    %c0_i32 = arith.constant 0 : i32
    %c0_i32_0 = arith.constant 0 : i32
    return %arg0, %c0_i32 : i32, i32
  }
}

module attributes {stable_mosaic.version = 11 : i64} {
  func.func @_mm_kernel(%arg0: i32, %arg1: memref<104x64xbf16, #tpu.memory_space<vmem>>, %arg2: memref<64x512xbf16, #tpu.memory_space<vmem>>, %arg3: memref<1x512xf32, #tpu.memory_space<vmem>>, %arg4: memref<104x512xf32, #tpu.memory_space<vmem>>) attributes {dimension_semantics = [#tpu.dimension_semantics<parallel>], iteration_bounds = array<i64: 1>, scalar_prefetch = 0 : i64, scratch_operands = 0 : i64, tpu.core_type = #tpu.core_type<tc>, window_params = [{transform_indices = @transform_0, window_bounds = array<i64: 104, 64>}, {pipeline_mode = #tpu.pipeline_mode<synchronous>, transform_indices = @transform_1, window_bounds = array<i64: 64, 512>}, {pipeline_mode = #tpu.pipeline_mode<synchronous>, transform_indices = @transform_2, window_bounds = array<i64: 1, 512>}, {transform_indices = @transform_3, window_bounds = array<i64: 104, 512>}]} {
    %c0 = arith.constant 0 : index
    %c0_0 = arith.constant 0 : index
    %0 = vector.load %arg1[%c0, %c0_0] : memref<104x64xbf16, #tpu.memory_space<vmem>>, vector<104x64xbf16>
    %c0_1 = arith.constant 0 : index
    %c0_2 = arith.constant 0 : index
    %1 = vector.load %arg2[%c0_1, %c0_2] : memref<64x512xbf16, #tpu.memory_space<vmem>>, vector<64x512xbf16>
    %cst = arith.constant dense<0.000000e+00> : vector<104x512xf32>
    %2 = tpu.matmul %0, %1, %cst {dimension_numbers = #tpu.dot_dimension_numbers<[1], [0], [0], [1], [0, 0, 1, 1], [], []>} : vector<104x64xbf16>, vector<64x512xbf16>, vector<104x512xf32> -> vector<104x512xf32>
    %c0_3 = arith.constant 0 : index
    %c0_4 = arith.constant 0 : index
    %3 = vector.load %arg3[%c0_3, %c0_4] : memref<1x512xf32, #tpu.memory_space<vmem>>, vector<1x512xf32>
    %4 = vector.broadcast %3 : vector<1x512xf32> to vector<104x512xf32>
    %5 = arith.addf %2, %4 : vector<104x512xf32>
    %c0_5 = arith.constant 0 : index
    %c0_6 = arith.constant 0 : index
    %6 = vector.load %arg4[%c0_5, %c0_6] : memref<104x512xf32, #tpu.memory_space<vmem>>, vector<104x512xf32>
    tpu.vector_store %arg4[%c0_5, %c0_6], %5 {strides = array<i32>} : memref<104x512xf32, #tpu.memory_space<vmem>>, vector<104x512xf32>,
    return
  }
  func.func @transform_0(%arg0: i32) -> (i32, i32) {
    %c0_i32 = arith.constant 0 : i32
    %c0_i32_0 = arith.constant 0 : i32
    return %arg0, %c0_i32 : i32, i32
  }
  func.func @transform_1(%arg0: i32) -> (i32, i32) {
    %c0_i32 = arith.constant 0 : i32
    %c0_i32_0 = arith.constant 0 : i32
    %c0_i32_1 = arith.constant 0 : i32
    return %c0_i32, %c0_i32_0 : i32, i32
  }
  func.func @transform_2(%arg0: i32) -> (i32, i32) {
    %c0_i32 = arith.constant 0 : i32
    %c0_i32_0 = arith.constant 0 : i32
    %c0_i32_1 = arith.constant 0 : i32
    return %c0_i32, %c0_i32_0 : i32, i32
  }
  func.func @transform_3(%arg0: i32) -> (i32, i32) {
    %c0_i32 = arith.constant 0 : i32
    %c0_i32_0 = arith.constant 0 : i32
    return %arg0, %c0_i32 : i32, i32
  }
}

module attributes {stable_mosaic.version = 11 : i64} {
  func.func @_mm_kernel(%arg0: i32, %arg1: memref<392x32xbf16, #tpu.memory_space<vmem>>, %arg2: memref<32x16xbf16, #tpu.memory_space<vmem>>, %arg3: memref<1x16xf32, #tpu.memory_space<vmem>>, %arg4: memref<392x16xf32, #tpu.memory_space<vmem>>) attributes {dimension_semantics = [#tpu.dimension_semantics<parallel>], iteration_bounds = array<i64: 1>, scalar_prefetch = 0 : i64, scratch_operands = 0 : i64, tpu.core_type = #tpu.core_type<tc>, window_params = [{transform_indices = @transform_0, window_bounds = array<i64: 392, 32>}, {pipeline_mode = #tpu.pipeline_mode<synchronous>, transform_indices = @transform_1, window_bounds = array<i64: 32, 16>}, {pipeline_mode = #tpu.pipeline_mode<synchronous>, transform_indices = @transform_2, window_bounds = array<i64: 1, 16>}, {transform_indices = @transform_3, window_bounds = array<i64: 392, 16>}]} {
    %c0 = arith.constant 0 : index
    %c0_0 = arith.constant 0 : index
    %0 = vector.load %arg1[%c0, %c0_0] : memref<392x32xbf16, #tpu.memory_space<vmem>>, vector<392x32xbf16>
    %c0_1 = arith.constant 0 : index
    %c0_2 = arith.constant 0 : index
    %1 = vector.load %arg2[%c0_1, %c0_2] : memref<32x16xbf16, #tpu.memory_space<vmem>>, vector<32x16xbf16>
    %cst = arith.constant dense<0.000000e+00> : vector<392x16xf32>
    %2 = tpu.matmul %0, %1, %cst {dimension_numbers = #tpu.dot_dimension_numbers<[1], [0], [0], [1], [0, 0, 1, 1], [], []>} : vector<392x32xbf16>, vector<32x16xbf16>, vector<392x16xf32> -> vector<392x16xf32>
    %c0_3 = arith.constant 0 : index
    %c0_4 = arith.constant 0 : index
    %3 = vector.load %arg3[%c0_3, %c0_4] : memref<1x16xf32, #tpu.memory_space<vmem>>, vector<1x16xf32>
    %4 = vector.broadcast %3 : vector<1x16xf32> to vector<392x16xf32>
    %5 = arith.addf %2, %4 : vector<392x16xf32>
    %c0_5 = arith.constant 0 : index
    %c0_6 = arith.constant 0 : index
    %6 = vector.load %arg4[%c0_5, %c0_6] : memref<392x16xf32, #tpu.memory_space<vmem>>, vector<392x16xf32>
    tpu.vector_store %arg4[%c0_5, %c0_6], %5 {strides = array<i32>} : memref<392x16xf32, #tpu.memory_space<vmem>>, vector<392x16xf32>,
    return
  }
  func.func @transform_0(%arg0: i32) -> (i32, i32) {
    %c0_i32 = arith.constant 0 : i32
    %c0_i32_0 = arith.constant 0 : i32
    return %arg0, %c0_i32 : i32, i32
  }
  func.func @transform_1(%arg0: i32) -> (i32, i32) {
    %c0_i32 = arith.constant 0 : i32
    %c0_i32_0 = arith.constant 0 : i32
    %c0_i32_1 = arith.constant 0 : i32
    return %c0_i32, %c0_i32_0 : i32, i32
  }
  func.func @transform_2(%arg0: i32) -> (i32, i32) {
    %c0_i32 = arith.constant 0 : i32
    %c0_i32_0 = arith.constant 0 : i32
    %c0_i32_1 = arith.constant 0 : i32
    return %c0_i32, %c0_i32_0 : i32, i32
  }
  func.func @transform_3(%arg0: i32) -> (i32, i32) {
    %c0_i32 = arith.constant 0 : i32
    %c0_i32_0 = arith.constant 0 : i32
    return %arg0, %c0_i32 : i32, i32
  }
}

</mosaic_0001>

<bundles_post_ra>
// kernel: autoencoder_forward.7
= control target key start
LH: loop header
LB: loop body
LE: loop exit
PB: predicated region body
PF: predicated region fallthrough
CT: control target
= control target key end

     0   :  { %8 = vsyncpa [#allocation3], 0  ;;  %s707_s15 = smov [#allocation2]   ;;  %s1081_s0 = inlined_call_operand.vmem [shape: bf16[392,16], index: 0, kind: input, shape index: {}]   ;;  %s1082_s1 = inlined_call_operand.vmem [shape: bf16[16,32], index: 1, kind: input, shape index: {}]   ;;  %s1083_s2 = inlined_call_operand.hbm [shape: f32[1,32], index: 2, kind: input, shape index: {}]   ;;  %s1084_s3 = inlined_call_operand.vmem [shape: f32[392,32], index: 3, kind: output, shape index: {}]  }
   0x1   :  { %s18_s14 = sshll.u32 %s1083_s2, 4  ;;  %s20_s16 = sshll.u32 %s707_s15, 4  ;;  %s19_s14 = int_to_ptr.hbm [resolvable:$true] %s18_s14  ;;  %s21_s16 = int_to_ptr.vmem [resolvable:$true] %s20_s16 }
   0x2   :  { %23 = dma.hbm_to_vmem [thread:$0]  %s19_s14, 16, %s21_s16, [#allocation3]  }
   0x3   :  { %705 = dma.done.wait [#allocation3], 16  }
   0x4   :  { %706 = vsyncadd [#allocation3], 4294967280  ;;  %v675_v0 = vld [vmem:[%s1082_s1] sm:$0xff]  ;;  %v658_v2 = vld [vmem:[%s1081_s0 + $0x38] sm:$0xff]  ;;  %vm213_vm0 = vcmask 130048   ;;  %vm471_vm1 = vcmask 261120  }
   0x5   :  { %v651_v1 = vld [vmem:[%s1081_s0] sm:$0xff]  ;;  %296 = vmatpush.bf16.msra.mxu0 %v675_v0  ;;  %676 = vmatpush.bf16.msra.mxu1 %v675_v0  ;;  %v665_v3 = vld [vmem:[%s1081_s0 + $0x70] sm:$0xff]  ;;  %v672_v4 = vld [vmem:[%s1081_s0 + $0xa8] sm:$0xff] }
   0x6   :  { %677 = vmatpush.bf16.msra.mxu2 %v675_v0  ;;  %678 = vmatpush.bf16.msra.mxu3 %v675_v0  ;;  %v652_v5 = vld [vmem:[%s1081_s0 + $0x8] sm:$0xff]  ;;  %v659_v6 = vld [vmem:[%s1081_s0 + $0x40] sm:$0xff]  ;;  %v666_v7 = vld [vmem:[%s1081_s0 + $0x78] sm:$0xff] }
   0x7   :  { %v673_v8 = vld [vmem:[%s1081_s0 + $0xb0] sm:$0xff]  ;;  %v660_v10 = vld [vmem:[%s1081_s0 + $0x48] sm:$0xff]  ;;  %v667_v11 = vld [vmem:[%s1081_s0 + $0x80] sm:$0xff] }
   0x8   :  { %626 = vmatmul.msk.bf16.vlgmr.msra.gmra.mxu0 %vm213_vm0, %v651_v1  ;;  %633 = vmatmul.msk.bf16.vlgmr.msra.gmra.mxu1 %vm213_vm0, %v658_v2  ;;  %v653_v9 = vld [vmem:[%s1081_s0 + $0x10] sm:$0xff]  ;;  %v674_v12 = vld [vmem:[%s1081_s0 + $0xb8] sm:$0xff]  ;;  %v668_v15 = vld [vmem:[%s1081_s0 + $0x88] sm:$0xff] }
   0x9   :  { %640 = vmatmul.msk.bf16.vlgmr.msra.gmra.mxu2 %vm213_vm0, %v665_v3  ;;  %647 = vmatmul.msk.bf16.vlgmr.msra.gmra.mxu3 %vm213_vm0, %v672_v4  ;;  %v654_v13 = vld [vmem:[%s1081_s0 + $0x18] sm:$0xff]  ;;  %v661_v14 = vld [vmem:[%s1081_s0 + $0x50] sm:$0xff]  ;;  %v77_v16 = vld [vmem:[%s1081_s0 + $0xc0] sm:$0xf] }
   0xa   :  { %v181_v17 = vunpack.c.l.b16 %v77_v16  ;;  %v655_v19 = vld [vmem:[%s1081_s0 + $0x20] sm:$0xff]  ;;  %v662_v20 = vld [vmem:[%s1081_s0 + $0x58] sm:$0xff]  ;;  %v669_v21 = vld [vmem:[%s1081_s0 + $0x90] sm:$0xff] }
   0xb   :  { %v656_v22 = vld [vmem:[%s1081_s0 + $0x28] sm:$0xff]  ;;  %v663_v23 = vld [vmem:[%s1081_s0 + $0x60] sm:$0xff]  ;;  %v670_v24 = vld [vmem:[%s1081_s0 + $0x98] sm:$0xff] }
   0xc   :  { %v206_v18 = vpack.c.b16 %v181_v17, %v181_v17  ;;  %v657_v25 = vld [vmem:[%s1081_s0 + $0x30] sm:$0xff]  ;;  %v664_v26 = vld [vmem:[%s1081_s0 + $0x68] sm:$0xff]  ;;  %v671_v27 = vld [vmem:[%s1081_s0 + $0xa0] sm:$0xff] }
   0xd   :  { %v834_v28 = vld [vmem:[#allocation2] ss:$0 sm:$0xff] }
  0x18   :  { %627 = vmatmul.msk.bf16.gmra.mxu0 %vm213_vm0, %v652_v5  ;;  %634 = vmatmul.msk.bf16.gmra.mxu1 %vm213_vm0, %v659_v6 }
  0x19   :  { %641 = vmatmul.msk.bf16.gmra.mxu2 %vm213_vm0, %v666_v7  ;;  %648 = vmatmul.msk.bf16.gmra.mxu3 %vm213_vm0, %v673_v8 }
  0x28   :  { %628 = vmatmul.msk.bf16.gmra.mxu0 %vm213_vm0, %v653_v9  ;;  %635 = vmatmul.msk.bf16.gmra.mxu1 %vm213_vm0, %v660_v10 }
  0x29   :  { %642 = vmatmul.msk.bf16.gmra.mxu2 %vm213_vm0, %v667_v11  ;;  %649 = vmatmul.msk.bf16.gmra.mxu3 %vm213_vm0, %v674_v12 }
  0x38   :  { %629 = vmatmul.msk.bf16.gmra.mxu0 %vm213_vm0, %v654_v13  ;;  %636 = vmatmul.msk.bf16.gmra.mxu1 %vm213_vm0, %v661_v14 }
  0x39   :  { %643 = vmatmul.msk.bf16.gmra.mxu2 %vm213_vm0, %v668_v15  ;;  %650 = vmatmul.msk.bf16.gmra.mxu3 %vm213_vm0, %v206_v18 }
  0x48   :  { %630 = vmatmul.msk.bf16.gmra.mxu0 %vm213_vm0, %v655_v19  ;;  %637 = vmatmul.msk.bf16.gmra.mxu1 %vm213_vm0, %v662_v20 }
  0x49   :  { %644 = vmatmul.msk.bf16.gmra.mxu2 %vm213_vm0, %v669_v21 }
  0x58   :  { %631 = vmatmul.msk.bf16.gmra.mxu0 %vm213_vm0, %v656_v22  ;;  %638 = vmatmul.msk.bf16.gmra.mxu1 %vm213_vm0, %v663_v23 }
  0x59   :  { %645 = vmatmul.msk.bf16.gmra.mxu2 %vm213_vm0, %v670_v24 }
  0x68   :  { %632 = vmatmul.msk.bf16.gmra.mxu0 %vm213_vm0, %v657_v25  ;;  %639 = vmatmul.msk.bf16.gmra.mxu1 %vm213_vm0, %v664_v26 }
  0x69   :  { %646 = vmatmul.msk.bf16.gmra.mxu2 %vm213_vm0, %v671_v27 }
  0x85   :  { %v298_v29 = vpop.f32.mrf.mxu0  ;;  %v333_v30 = vpop.f32.mrf.mxu1 }
  0x86   :  { %v299_v31 = vadd.f32 %v834_v28, %v298_v29  ;;  %v334_v32 = vadd.f32 %v834_v28, %v333_v30 }
  0x88   :  { %v422_v33 = vmax.f32 %v299_v31, 0.0  ;;  %v436_v34 = vmax.f32 %v334_v32, 0.0 }
  0x8a   :  { %472 = vst.msk [vmem:[%s1084_s3] sm:$0xff] %vm471_vm1, %v422_v33 }
  0x8b   :  { %486 = vst.msk [vmem:[%s1084_s3 + $0x70] sm:$0xff] %vm471_vm1, %v436_v34 }
  0x8c   :  { %v368_v35 = vpop.f32.mrf.mxu2  ;;  %v403_v53 = vpop.f32.mrf.mxu3 }
  0x8d   :  { %v369_v36 = vadd.f32 %v834_v28, %v368_v35  ;;  %v300_v37 = vpop.f32.mrf.mxu0  ;;  %v335_v38 = vpop.f32.mrf.mxu1  ;;  %v404_v54 = vadd.f32 %v834_v28, %v403_v53 }
  0x8e   :  { %v301_v39 = vadd.f32 %v834_v28, %v300_v37  ;;  %v336_v40 = vadd.f32 %v834_v28, %v335_v38 }
  0x8f   :  { %v450_v41 = vmax.f32 %v369_v36, 0.0  ;;  %v464_v59 = vmax.f32 %v404_v54, 0.0 }
  0x90   :  { %v423_v42 = vmax.f32 %v301_v39, 0.0  ;;  %v437_v43 = vmax.f32 %v336_v40, 0.0 }
  0x91   :  { %500 = vst.msk [vmem:[%s1084_s3 + $0xe0] sm:$0xff] %vm471_vm1, %v450_v41 }
  0x92   :  { %473 = vst.msk [vmem:[%s1084_s3 + $0x8] sm:$0xff] %vm471_vm1, %v423_v42 }
  0x93   :  { %487 = vst.msk [vmem:[%s1084_s3 + $0x78] sm:$0xff] %vm471_vm1, %v437_v43 }
  0x94   :  { %v370_v44 = vpop.f32.mrf.mxu2  ;;  %514 = vst.msk [vmem:[%s1084_s3 + $0x150] sm:$0xff] %vm471_vm1, %v464_v59  ;;  %v405_v1 = vpop.f32.mrf.mxu3 }
  0x95   :  { %v371_v45 = vadd.f32 %v834_v28, %v370_v44  ;;  %v303_v46 = vpop.f32.mrf.mxu0  ;;  %v338_v47 = vpop.f32.mrf.mxu1  ;;  %v406_v2 = vadd.f32 %v834_v28, %v405_v1 }
  0x96   :  { %v304_v48 = vadd.f32 %v834_v28, %v303_v46  ;;  %v339_v49 = vadd.f32 %v834_v28, %v338_v47 }
  0x97   :  { %v451_v50 = vmax.f32 %v371_v45, 0.0  ;;  %v465_v4 = vmax.f32 %v406_v2, 0.0 }
  0x98   :  { %v424_v51 = vmax.f32 %v304_v48, 0.0  ;;  %v438_v52 = vmax.f32 %v339_v49, 0.0 }
  0x99   :  { %501 = vst.msk [vmem:[%s1084_s3 + $0xe8] sm:$0xff] %vm471_vm1, %v451_v50 }
  0x9a   :  { %474 = vst.msk [vmem:[%s1084_s3 + $0x10] sm:$0xff] %vm471_vm1, %v424_v51 }
  0x9b   :  { %488 = vst.msk [vmem:[%s1084_s3 + $0x80] sm:$0xff] %vm471_vm1, %v438_v52 }
  0x9c   :  { %v373_v55 = vpop.f32.mrf.mxu2  ;;  %515 = vst.msk [vmem:[%s1084_s3 + $0x158] sm:$0xff] %vm471_vm1, %v465_v4  ;;  %v408_v13 = vpop.f32.mrf.mxu3 }
  0x9d   :  { %v374_v56 = vadd.f32 %v834_v28, %v373_v55  ;;  %v305_v57 = vpop.f32.mrf.mxu0  ;;  %v340_v58 = vpop.f32.mrf.mxu1  ;;  %v409_v14 = vadd.f32 %v834_v28, %v408_v13 }
  0x9e   :  { %v306_v60 = vadd.f32 %v834_v28, %v305_v57  ;;  %v341_v61 = vadd.f32 %v834_v28, %v340_v58 }
  0x9f   :  { %v452_v62 = vmax.f32 %v374_v56, 0.0  ;;  %v466_v19 = vmax.f32 %v409_v14, 0.0 }
  0xa0   :  { %v425_v63 = vmax.f32 %v306_v60, 0.0  ;;  %v439_v0 = vmax.f32 %v341_v61, 0.0 }
  0xa1   :  { %502 = vst.msk [vmem:[%s1084_s3 + $0xf0] sm:$0xff] %vm471_vm1, %v452_v62 }
  0xa2   :  { %475 = vst.msk [vmem:[%s1084_s3 + $0x18] sm:$0xff] %vm471_vm1, %v425_v63 }
  0xa3   :  { %489 = vst.msk [vmem:[%s1084_s3 + $0x88] sm:$0xff] %vm471_vm1, %v439_v0 }
  0xa4   :  { %v375_v3 = vpop.f32.mrf.mxu2  ;;  %516 = vst.msk [vmem:[%s1084_s3 + $0x160] sm:$0xff] %vm471_vm1, %v466_v19  ;;  %v410_v25 = vpop.f32.mrf.mxu3 }
  0xa5   :  { %v376_v5 = vadd.f32 %v834_v28, %v375_v3  ;;  %v308_v6 = vpop.f32.mrf.mxu0  ;;  %v343_v7 = vpop.f32.mrf.mxu1  ;;  %v411_v26 = vadd.f32 %v834_v28, %v410_v25 }
  0xa6   :  { %v309_v8 = vadd.f32 %v834_v28, %v308_v6  ;;  %v344_v9 = vadd.f32 %v834_v28, %v343_v7 }
  0xa7   :  { %v453_v10 = vmax.f32 %v376_v5, 0.0  ;;  %v467_v29 = vmax.f32 %v411_v26, 0.0 }
  0xa8   :  { %v426_v11 = vmax.f32 %v309_v8, 0.0  ;;  %v440_v12 = vmax.f32 %v344_v9, 0.0 }
  0xa9   :  { %503 = vst.msk [vmem:[%s1084_s3 + $0xf8] sm:$0xff] %vm471_vm1, %v453_v10 }
  0xaa   :  { %476 = vst.msk [vmem:[%s1084_s3 + $0x20] sm:$0xff] %vm471_vm1, %v426_v11 }
  0xab   :  { %490 = vst.msk [vmem:[%s1084_s3 + $0x90] sm:$0xff] %vm471_vm1, %v440_v12 }
  0xac   :  { %v378_v15 = vpop.f32.mrf.mxu2  ;;  %517 = vst.msk [vmem:[%s1084_s3 + $0x168] sm:$0xff] %vm471_vm1, %v467_v29  ;;  %v413_v38 = vpop.f32.mrf.mxu3 }
  0xad   :  { %v379_v16 = vadd.f32 %v834_v28, %v378_v15  ;;  %v310_v17 = vpop.f32.mrf.mxu0  ;;  %v345_v18 = vpop.f32.mrf.mxu1  ;;  %v414_v39 = vadd.f32 %v834_v28, %v413_v38 }
  0xae   :  { %v311_v20 = vadd.f32 %v834_v28, %v310_v17  ;;  %v346_v21 = vadd.f32 %v834_v28, %v345_v18 }
  0xaf   :  { %v454_v22 = vmax.f32 %v379_v16, 0.0  ;;  %v468_v44 = vmax.f32 %v414_v39, 0.0 }
  0xb0   :  { %v427_v23 = vmax.f32 %v311_v20, 0.0  ;;  %v441_v24 = vmax.f32 %v346_v21, 0.0 }
  0xb1   :  { %504 = vst.msk [vmem:[%s1084_s3 + $0x100] sm:$0xff] %vm471_vm1, %v454_v22 }
  0xb2   :  { %477 = vst.msk [vmem:[%s1084_s3 + $0x28] sm:$0xff] %vm471_vm1, %v427_v23 }
  0xb3   :  { %491 = vst.msk [vmem:[%s1084_s3 + $0x98] sm:$0xff] %vm471_vm1, %v441_v24 }
  0xb4   :  { %v380_v27 = vpop.f32.mrf.mxu2  ;;  %518 = vst.msk [vmem:[%s1084_s3 + $0x170] sm:$0xff] %vm471_vm1, %v468_v44  ;;  %v415_v50 = vpop.f32.mrf.mxu3 }
  0xb5   :  { %v381_v30 = vadd.f32 %v834_v28, %v380_v27  ;;  %v313_v31 = vpop.f32.mrf.mxu0  ;;  %v348_v32 = vpop.f32.mrf.mxu1  ;;  %v416_v51 = vadd.f32 %v834_v28, %v415_v50 }
  0xb6   :  { %v314_v33 = vadd.f32 %v834_v28, %v313_v31  ;;  %v349_v34 = vadd.f32 %v834_v28, %v348_v32 }
  0xb7   :  { %v455_v35 = vmax.f32 %v381_v30, 0.0  ;;  %v469_v53 = vmax.f32 %v416_v51, 0.0 }
  0xb8   :  { %v428_v36 = vmax.f32 %v314_v33, 0.0  ;;  %v442_v37 = vmax.f32 %v349_v34, 0.0 }
  0xb9   :  { %505 = vst.msk [vmem:[%s1084_s3 + $0x108] sm:$0xff] %vm471_vm1, %v455_v35 }
  0xba   :  { %478 = vst.msk [vmem:[%s1084_s3 + $0x30] sm:$0xff] %vm471_vm1, %v428_v36 }
  0xbb   :  { %492 = vst.msk [vmem:[%s1084_s3 + $0xa0] sm:$0xff] %vm471_vm1, %v442_v37 }
  0xbc   :  { %v383_v40 = vpop.f32.mrf.mxu2  ;;  %519 = vst.msk [vmem:[%s1084_s3 + $0x178] sm:$0xff] %vm471_vm1, %v469_v53  ;;  %v418_v62 = vpop.f32.mrf.mxu3 }
  0xbd   :  { %v384_v41 = vadd.f32 %v834_v28, %v383_v40  ;;  %v315_v42 = vpop.f32.mrf.mxu0  ;;  %v350_v43 = vpop.f32.mrf.mxu1  ;;  %v419_v63 = vadd.f32 %v834_v28, %v418_v62 }
  0xbe   :  { %v316_v45 = vadd.f32 %v834_v28, %v315_v42  ;;  %v351_v46 = vadd.f32 %v834_v28, %v350_v43 }
  0xbf   :  { %v456_v47 = vmax.f32 %v384_v41, 0.0  ;;  %v470_v4 = vmax.f32 %v419_v63, 0.0 }
  0xc0   :  { %v429_v48 = vmax.f32 %v316_v45, 0.0  ;;  %v443_v49 = vmax.f32 %v351_v46, 0.0 }
  0xc1   :  { %506 = vst.msk [vmem:[%s1084_s3 + $0x110] sm:$0xff] %vm471_vm1, %v456_v47 }
  0xc2   :  { %479 = vst.msk [vmem:[%s1084_s3 + $0x38] sm:$0xff] %vm471_vm1, %v429_v48 }
  0xc3   :  { %493 = vst.msk [vmem:[%s1084_s3 + $0xa8] sm:$0xff] %vm471_vm1, %v443_v49 }
  0xc4   :  { %v385_v52 = vpop.f32.mrf.mxu2  ;;  %520 = vst.msk [vmem:[%s1084_s3 + $0x180] sm:$0xff] %vm471_vm1, %v470_v4  ;;  %v420_v10 = vpop.f32.mrf.mxu3 }
  0xc5   :  { %v386_v54 = vadd.f32 %v834_v28, %v385_v52  ;;  %v318_v55 = vpop.f32.mrf.mxu0  ;;  %v353_v56 = vpop.f32.mrf.mxu1 }
  0xc6   :  { %v319_v57 = vadd.f32 %v834_v28, %v318_v55  ;;  %v354_v58 = vadd.f32 %v834_v28, %v353_v56 }
  0xc7   :  { %v457_v59 = vmax.f32 %v386_v54, 0.0 }
  0xc8   :  { %v430_v60 = vmax.f32 %v319_v57, 0.0  ;;  %v444_v61 = vmax.f32 %v354_v58, 0.0 }
  0xc9   :  { %507 = vst.msk [vmem:[%s1084_s3 + $0x118] sm:$0xff] %vm471_vm1, %v457_v59 }
  0xca   :  { %480 = vst.msk [vmem:[%s1084_s3 + $0x40] sm:$0xff] %vm471_vm1, %v430_v60 }
  0xcb   :  { %494 = vst.msk [vmem:[%s1084_s3 + $0xb0] sm:$0xff] %vm471_vm1, %v444_v61 }
  0xcc   :  { %v388_v0 = vpop.f32.mrf.mxu2 }
  0xcd   :  { %v389_v1 = vadd.f32 %v834_v28, %v388_v0  ;;  %v320_v2 = vpop.f32.mrf.mxu0  ;;  %v355_v3 = vpop.f32.mrf.mxu1 }
  0xce   :  { %v321_v5 = vadd.f32 %v834_v28, %v320_v2  ;;  %v356_v6 = vadd.f32 %v834_v28, %v355_v3 }
  0xcf   :  { %v458_v7 = vmax.f32 %v389_v1, 0.0 }
  0xd0   :  { %v431_v8 = vmax.f32 %v321_v5, 0.0  ;;  %v445_v9 = vmax.f32 %v356_v6, 0.0 }
  0xd1   :  { %508 = vst.msk [vmem:[%s1084_s3 + $0x120] sm:$0xff] %vm471_vm1, %v458_v7 }
  0xd2   :  { %481 = vst.msk [vmem:[%s1084_s3 + $0x48] sm:$0xff] %vm471_vm1, %v431_v8 }
  0xd3   :  { %495 = vst.msk [vmem:[%s1084_s3 + $0xb8] sm:$0xff] %vm471_vm1, %v445_v9 }
  0xd4   :  { %v390_v11 = vpop.f32.mrf.mxu2 }
  0xd5   :  { %v391_v12 = vadd.f32 %v834_v28, %v390_v11  ;;  %v323_v13 = vpop.f32.mrf.mxu0  ;;  %v358_v14 = vpop.f32.mrf.mxu1 }
  0xd6   :  { %v324_v15 = vadd.f32 %v834_v28, %v323_v13  ;;  %v359_v16 = vadd.f32 %v834_v28, %v358_v14 }
  0xd7   :  { %v459_v17 = vmax.f32 %v391_v12, 0.0 }
  0xd8   :  { %v432_v18 = vmax.f32 %v324_v15, 0.0  ;;  %v446_v19 = vmax.f32 %v359_v16, 0.0 }
  0xd9   :  { %509 = vst.msk [vmem:[%s1084_s3 + $0x128] sm:$0xff] %vm471_vm1, %v459_v17 }
  0xda   :  { %482 = vst.msk [vmem:[%s1084_s3 + $0x50] sm:$0xff] %vm471_vm1, %v432_v18 }
  0xdb   :  { %496 = vst.msk [vmem:[%s1084_s3 + $0xc0] sm:$0xff] %vm471_vm1, %v446_v19 }
  0xdc   :  { %v393_v20 = vpop.f32.mrf.mxu2 }
  0xdd   :  { %v394_v21 = vadd.f32 %v834_v28, %v393_v20  ;;  %v325_v22 = vpop.f32.mrf.mxu0  ;;  %v360_v23 = vpop.f32.mrf.mxu1 }
  0xde   :  { %v326_v24 = vadd.f32 %v834_v28, %v325_v22  ;;  %v361_v25 = vadd.f32 %v834_v28, %v360_v23 }
  0xdf   :  { %v460_v26 = vmax.f32 %v394_v21, 0.0 }
  0xe0   :  { %v433_v27 = vmax.f32 %v326_v24, 0.0  ;;  %v447_v29 = vmax.f32 %v361_v25, 0.0 }
  0xe1   :  { %510 = vst.msk [vmem:[%s1084_s3 + $0x130] sm:$0xff] %vm471_vm1, %v460_v26 }
  0xe2   :  { %483 = vst.msk [vmem:[%s1084_s3 + $0x58] sm:$0xff] %vm471_vm1, %v433_v27 }
  0xe3   :  { %497 = vst.msk [vmem:[%s1084_s3 + $0xc8] sm:$0xff] %vm471_vm1, %v447_v29 }
  0xe4   :  { %v395_v30 = vpop.f32.mrf.mxu2 }
  0xe5   :  { %v396_v31 = vadd.f32 %v834_v28, %v395_v30  ;;  %v328_v32 = vpop.f32.mrf.mxu0  ;;  %v363_v33 = vpop.f32.mrf.mxu1 }
  0xe6   :  { %v329_v34 = vadd.f32 %v834_v28, %v328_v32  ;;  %v364_v35 = vadd.f32 %v834_v28, %v363_v33 }
  0xe7   :  { %v461_v36 = vmax.f32 %v396_v31, 0.0 }
  0xe8   :  { %v434_v37 = vmax.f32 %v329_v34, 0.0  ;;  %v448_v38 = vmax.f32 %v364_v35, 0.0 }
  0xe9   :  { %511 = vst.msk [vmem:[%s1084_s3 + $0x138] sm:$0xff] %vm471_vm1, %v461_v36 }
  0xea   :  { %484 = vst.msk [vmem:[%s1084_s3 + $0x60] sm:$0xff] %vm471_vm1, %v434_v37 }
  0xeb   :  { %498 = vst.msk [vmem:[%s1084_s3 + $0xd0] sm:$0xff] %vm471_vm1, %v448_v38 }
  0xec   :  { %v398_v39 = vpop.f32.mrf.mxu2 }
  0xed   :  { %v399_v40 = vadd.f32 %v834_v28, %v398_v39  ;;  %v330_v41 = vpop.f32.mrf.mxu0  ;;  %v365_v42 = vpop.f32.mrf.mxu1 }
  0xee   :  { %v331_v43 = vadd.f32 %v834_v28, %v330_v41  ;;  %v366_v44 = vadd.f32 %v834_v28, %v365_v42 }
  0xef   :  { %v462_v45 = vmax.f32 %v399_v40, 0.0 }
  0xf0   :  { %v435_v46 = vmax.f32 %v331_v43, 0.0  ;;  %v449_v47 = vmax.f32 %v366_v44, 0.0 }
  0xf1   :  { %512 = vst.msk [vmem:[%s1084_s3 + $0x140] sm:$0xff] %vm471_vm1, %v462_v45 }
  0xf2   :  { %485 = vst.msk [vmem:[%s1084_s3 + $0x68] sm:$0xff] %vm471_vm1, %v435_v46 }
  0xf3   :  { %499 = vst.msk [vmem:[%s1084_s3 + $0xd8] sm:$0xff] %vm471_vm1, %v449_v47 }
  0xf4   :  { %v400_v48 = vpop.f32.mrf.mxu2 }
  0xf5   :  { %v401_v49 = vadd.f32 %v834_v28, %v400_v48 }
  0xf7   :  { %v463_v50 = vmax.f32 %v401_v49, 0.0 }
  0xf9   :  { %513 = vst.msk [vmem:[%s1084_s3 + $0x148] sm:$0xff] %vm471_vm1, %v463_v50 }
  0xfa   :  { %525 = vsyncpa [#allocation3], 1 }

// kernel: autoencoder_forward.8
= control target key start
LH: loop header
LB: loop body
LE: loop exit
PB: predicated region body
PF: predicated region fallthrough
CT: control target
= control target key end

     0   :  { %vm619_vm0 = vcmask 523264   ;;  %s1254_s1 = inlined_call_operand.vmem [shape: bf16[512,64], index: 1, kind: input, shape index: {}]   ;;  %s1255_s2 = inlined_call_operand.vmem [shape: f32[1,64], index: 2, kind: input, shape index: {}]   ;;  %s1256_s0 = inlined_call_operand.vmem [shape: bf16[104,512], index: 0, kind: input, shape index: {}]   ;;  %s1257_s3 = inlined_call_operand.vmem [shape: f32[104,64], index: 3, kind: output, shape index: {}]  }
   0x1   :  { %v892_v0 = vld [vmem:[%s1254_s1 + $0x38] sm:$0xff]  ;;  %v891_v4 = vld [vmem:[%s1254_s1 + $0x30] sm:$0xff]  ;;  %v890_v8 = vld [vmem:[%s1254_s1 + $0x28] sm:$0xff] }
   0x2   :  { %v900_v1 = vld [vmem:[%s1254_s1 + $0x78] sm:$0xff]  ;;  %434 = vmatpush.bf16.msra.mxu0 %v892_v0  ;;  %v899_v5 = vld [vmem:[%s1254_s1 + $0x70] sm:$0xff]  ;;  %v898_v9 = vld [vmem:[%s1254_s1 + $0x68] sm:$0xff] }
   0x3   :  { %v908_v2 = vld [vmem:[%s1254_s1 + $0xb8] sm:$0xff]  ;;  %477 = vmatpush.bf16.msra.mxu1 %v900_v1  ;;  %v907_v6 = vld [vmem:[%s1254_s1 + $0xb0] sm:$0xff]  ;;  %v906_v10 = vld [vmem:[%s1254_s1 + $0xa8] sm:$0xff] }
   0x4   :  { %v916_v3 = vld [vmem:[%s1254_s1 + $0xf8] sm:$0xff]  ;;  %520 = vmatpush.bf16.msra.mxu2 %v908_v2  ;;  %v915_v7 = vld [vmem:[%s1254_s1 + $0xf0] sm:$0xff]  ;;  %v914_v11 = vld [vmem:[%s1254_s1 + $0xe8] sm:$0xff] }
   0x5   :  { %563 = vmatpush.bf16.msra.mxu3 %v916_v3  ;;  %v889_v12 = vld [vmem:[%s1254_s1 + $0x20] sm:$0xff]  ;;  %v888_v16 = vld [vmem:[%s1254_s1 + $0x18] sm:$0xff]  ;;  %v887_v20 = vld [vmem:[%s1254_s1 + $0x10] sm:$0xff] }
   0x6   :  { %435 = vmatpush.bf16.msra.mxu0 %v891_v4  ;;  %v897_v13 = vld [vmem:[%s1254_s1 + $0x60] sm:$0xff]  ;;  %v896_v17 = vld [vmem:[%s1254_s1 + $0x58] sm:$0xff]  ;;  %v895_v21 = vld [vmem:[%s1254_s1 + $0x50] sm:$0xff] }
   0x7   :  { %478 = vmatpush.bf16.msra.mxu1 %v899_v5  ;;  %v905_v14 = vld [vmem:[%s1254_s1 + $0xa0] sm:$0xff]  ;;  %v904_v18 = vld [vmem:[%s1254_s1 + $0x98] sm:$0xff]  ;;  %v903_v22 = vld [vmem:[%s1254_s1 + $0x90] sm:$0xff] }
   0x8   :  { %521 = vmatpush.bf16.msra.mxu2 %v907_v6  ;;  %v913_v15 = vld [vmem:[%s1254_s1 + $0xe0] sm:$0xff]  ;;  %v912_v19 = vld [vmem:[%s1254_s1 + $0xd8] sm:$0xff]  ;;  %v911_v23 = vld [vmem:[%s1254_s1 + $0xd0] sm:$0xff] }
   0x9   :  { %564 = vmatpush.bf16.msra.mxu3 %v915_v7  ;;  %v886_v24 = vld [vmem:[%s1254_s1 + $0x8] sm:$0xff]  ;;  %v885_v28 = vld [vmem:[%s1254_s1] sm:$0xff]  ;;  %v863_v33 = vld [vmem:[%s1256_s0 + $0xc] sm:$0xf0] }
   0xa   :  { %436 = vmatpush.bf16.msra.mxu0 %v890_v8  ;;  %v894_v25 = vld [vmem:[%s1254_s1 + $0x48] sm:$0xff]  ;;  %v893_v29 = vld [vmem:[%s1254_s1 + $0x40] sm:$0xff]  ;;  %v641_v35 = vld [vmem:[%s1256_s0 + $0x10] sm:$0xf0] }
   0xb   :  { %479 = vmatpush.bf16.msra.mxu1 %v898_v9  ;;  %v902_v26 = vld [vmem:[%s1254_s1 + $0x88] sm:$0xff]  ;;  %v901_v30 = vld [vmem:[%s1254_s1 + $0x80] sm:$0xff]  ;;  %v864_v37 = vld [vmem:[%s1256_s0 + $0x14] sm:$0xf0] }
   0xc   :  { %522 = vmatpush.bf16.msra.mxu2 %v906_v10  ;;  %v910_v27 = vld [vmem:[%s1254_s1 + $0xc8] sm:$0xff]  ;;  %v909_v31 = vld [vmem:[%s1254_s1 + $0xc0] sm:$0xff]  ;;  %v649_v39 = vld [vmem:[%s1256_s0 + $0x18] sm:$0xf0] }
   0xd   :  { %565 = vmatpush.bf16.msra.mxu3 %v914_v11  ;;  %v639_v32 = vld [vmem:[%s1256_s0] sm:$0xf]  ;;  %v861_v34 = vld [vmem:[%s1256_s0 + $0x4] sm:$0xf]  ;;  %v647_v36 = vld [vmem:[%s1256_s0 + $0x8] sm:$0xf] }
   0xe   :  { %437 = vmatpush.bf16.msra.mxu0 %v889_v12  ;;  %v862_v38 = vld [vmem:[%s1256_s0 + $0xc] sm:$0xf]  ;;  %v640_v40 = vor.u32 %v863_v33, %v639_v32  ;;  %v644_v41 = vor.u32 %v861_v34, %v641_v35  ;;  %v648_v42 = vor.u32 %v864_v37, %v647_v36  ;;  %v655_v44 = vld [vmem:[%s1256_s0 + $0x20] sm:$0xf]  ;;  %v867_v45 = vld [vmem:[%s1256_s0 + $0x2c] sm:$0xf0] }
   0xf   :  { %480 = vmatpush.bf16.msra.mxu1 %v897_v13  ;;  %v652_v43 = vor.u32 %v862_v38, %v649_v39  ;;  %v865_v46 = vld [vmem:[%s1256_s0 + $0x24] sm:$0xf]  ;;  %v657_v47 = vld [vmem:[%s1256_s0 + $0x30] sm:$0xf0]  ;;  %v663_v48 = vld [vmem:[%s1256_s0 + $0x28] sm:$0xf]  ;;  %v656_v52 = vor.u32 %v867_v45, %v655_v44 }
  0x10   :  { %523 = vmatpush.bf16.msra.mxu2 %v905_v14  ;;  %v868_v49 = vld [vmem:[%s1256_s0 + $0x34] sm:$0xf0]  ;;  %v866_v50 = vld [vmem:[%s1256_s0 + $0x2c] sm:$0xf]  ;;  %v665_v51 = vld [vmem:[%s1256_s0 + $0x38] sm:$0xf0]  ;;  %v660_v53 = vor.u32 %v865_v46, %v657_v47 }
  0x11   :  { %566 = vmatpush.bf16.msra.mxu3 %v913_v15  ;;  %v664_v54 = vor.u32 %v868_v49, %v663_v48  ;;  %v668_v55 = vor.u32 %v866_v50, %v665_v51  ;;  %v671_v56 = vld [vmem:[%s1256_s0 + $0x40] sm:$0xf]  ;;  %v871_v57 = vld [vmem:[%s1256_s0 + $0x4c] sm:$0xf0]  ;;  %v869_v58 = vld [vmem:[%s1256_s0 + $0x44] sm:$0xf] }
  0x12   :  { %438 = vmatpush.bf16.msra.mxu0 %v888_v16  ;;  %v673_v59 = vld [vmem:[%s1256_s0 + $0x50] sm:$0xf0]  ;;  %v679_v60 = vld [vmem:[%s1256_s0 + $0x48] sm:$0xf]  ;;  %v872_v61 = vld [vmem:[%s1256_s0 + $0x54] sm:$0xf0]  ;;  %v672_v0 = vor.u32 %v871_v57, %v671_v56 }
  0x13   :  { %481 = vmatpush.bf16.msra.mxu1 %v896_v17  ;;  %v870_v62 = vld [vmem:[%s1256_s0 + $0x4c] sm:$0xf]  ;;  %v681_v63 = vld [vmem:[%s1256_s0 + $0x58] sm:$0xf0]  ;;  %v676_v1 = vor.u32 %v869_v58, %v673_v59  ;;  %v680_v2 = vor.u32 %v872_v61, %v679_v60  ;;  %v687_v4 = vld [vmem:[%s1256_s0 + $0x60] sm:$0xf] }
  0x14   :  { %524 = vmatpush.bf16.msra.mxu2 %v904_v18  ;;  %v684_v3 = vor.u32 %v870_v62, %v681_v63  ;;  %v875_v5 = vld [vmem:[%s1256_s0 + $0x6c] sm:$0xf0]  ;;  %v873_v6 = vld [vmem:[%s1256_s0 + $0x64] sm:$0xf]  ;;  %v689_v7 = vld [vmem:[%s1256_s0 + $0x70] sm:$0xf0] }
  0x15   :  { %567 = vmatpush.bf16.msra.mxu3 %v912_v19  ;;  %v695_v8 = vld [vmem:[%s1256_s0 + $0x68] sm:$0xf]  ;;  %v876_v9 = vld [vmem:[%s1256_s0 + $0x74] sm:$0xf0]  ;;  %v874_v10 = vld [vmem:[%s1256_s0 + $0x6c] sm:$0xf]  ;;  %v688_v12 = vor.u32 %v875_v5, %v687_v4  ;;  %v692_v13 = vor.u32 %v873_v6, %v689_v7 }
  0x16   :  { %439 = vmatpush.bf16.msra.mxu0 %v887_v20  ;;  %v697_v11 = vld [vmem:[%s1256_s0 + $0x78] sm:$0xf0]  ;;  %v696_v14 = vor.u32 %v876_v9, %v695_v8  ;;  %v703_v16 = vld [vmem:[%s1256_s0 + $0x80] sm:$0xf]  ;;  %v879_v17 = vld [vmem:[%s1256_s0 + $0x8c] sm:$0xf0] }
  0x17   :  { %482 = vmatpush.bf16.msra.mxu1 %v895_v21  ;;  %v700_v15 = vor.u32 %v874_v10, %v697_v11  ;;  %v877_v18 = vld [vmem:[%s1256_s0 + $0x84] sm:$0xf]  ;;  %v705_v19 = vld [vmem:[%s1256_s0 + $0x90] sm:$0xf0]  ;;  %v711_v20 = vld [vmem:[%s1256_s0 + $0x88] sm:$0xf] }
  0x18   :  { %525 = vmatpush.bf16.msra.mxu2 %v903_v22  ;;  %v880_v21 = vld [vmem:[%s1256_s0 + $0x94] sm:$0xf0]  ;;  %v878_v22 = vld [vmem:[%s1256_s0 + $0x8c] sm:$0xf]  ;;  %v727_v32 = vld [vmem:[%s1256_s0 + $0xa8] sm:$0xf] }
  0x19   :  { %568 = vmatpush.bf16.msra.mxu3 %v911_v23  ;;  %v713_v23 = vld [vmem:[%s1256_s0 + $0x98] sm:$0xf0]  ;;  %v884_v33 = vld [vmem:[%s1256_s0 + $0xb4] sm:$0xf0]  ;;  %v882_v34 = vld [vmem:[%s1256_s0 + $0xac] sm:$0xf] }
  0x1a   :  { %440 = vmatpush.bf16.msra.mxu0 %v886_v24  ;;  %v704_v24 = vor.u32 %v879_v17, %v703_v16  ;;  %v729_v35 = vld [vmem:[%s1256_s0 + $0xb8] sm:$0xf0]  ;;  %v728_v38 = vor.u32 %v884_v33, %v727_v32  ;;  %v1187_v50 = vld [vmem:[%s1255_s2] ss:$0 sm:$0xff] }
  0x1b   :  { %483 = vmatpush.bf16.msra.mxu1 %v894_v25  ;;  %v708_v25 = vor.u32 %v877_v18, %v705_v19  ;;  %v732_v39 = vor.u32 %v882_v34, %v729_v35 }
  0x1c   :  { %526 = vmatpush.bf16.msra.mxu2 %v902_v26  ;;  %v712_v26 = vor.u32 %v880_v21, %v711_v20 }
  0x1d   :  { %569 = vmatpush.bf16.msra.mxu3 %v910_v27  ;;  %v716_v27 = vor.u32 %v878_v22, %v713_v23 }
  0x1e   :  { %441 = vmatpush.bf16.msra.mxu0 %v885_v28  ;;  %v719_v28 = vld [vmem:[%s1256_s0 + $0xa0] sm:$0xf] }
  0x1f   :  { %484 = vmatpush.bf16.msra.mxu1 %v893_v29  ;;  %v883_v29 = vld [vmem:[%s1256_s0 + $0xac] sm:$0xf0] }
  0x20   :  { %527 = vmatpush.bf16.msra.mxu2 %v901_v30  ;;  %v881_v30 = vld [vmem:[%s1256_s0 + $0xa4] sm:$0xf]  ;;  %v720_v36 = vor.u32 %v883_v29, %v719_v28 }
  0x21   :  { %570 = vmatpush.bf16.msra.mxu3 %v909_v31  ;;  %442 = vmatmul.bf16.vlgmr.msra.gmra.mxu0 %v640_v40  ;;  %v721_v31 = vld [vmem:[%s1256_s0 + $0xb0] sm:$0xf0]  ;;  %v38_v40 = vld [vmem:[%s1256_s0 + $0xc0] sm:$0xff] }
  0x22   :  { %485 = vmatmul.bf16.vlgmr.msra.gmra.mxu1 %v644_v41  ;;  %v724_v37 = vor.u32 %v881_v30, %v721_v31  ;;  %v39_v41 = vld [vmem:[%s1256_s0 + $0xc8] sm:$0xff] }
  0x23   :  { %528 = vmatmul.bf16.vlgmr.msra.gmra.mxu2 %v648_v42  ;;  %v182_v42 = vunpack.c.l.b16 %v38_v40  ;;  %v184_v44 = vunpack.c.l.b16 %v39_v41  ;;  %v185_v45 = vunpack.c.h.b16 %v39_v41 }
  0x24   :  { %571 = vmatmul.bf16.vlgmr.msra.gmra.mxu3 %v652_v43  ;;  %v183_v43 = vunpack.c.h.b16 %v38_v40 }
  0x25   :  { %v210_v46 = vpack.c.b16 %v182_v42, %v182_v42  ;;  %v212_v48 = vpack.c.b16 %v184_v44, %v184_v44  ;;  %v213_v49 = vpack.c.b16 %v185_v45, %v185_v45 }
  0x26   :  { %v211_v47 = vpack.c.b16 %v183_v43, %v183_v43 }
  0x31   :  { %447 = vmatmul.bf16.gmra.mxu0 %v656_v52 }
  0x32   :  { %490 = vmatmul.bf16.gmra.mxu1 %v660_v53 }
  0x33   :  { %533 = vmatmul.bf16.gmra.mxu2 %v664_v54 }
  0x34   :  { %576 = vmatmul.bf16.gmra.mxu3 %v668_v55 }
  0x41   :  { %452 = vmatmul.bf16.gmra.mxu0 %v672_v0 }
  0x42   :  { %495 = vmatmul.bf16.gmra.mxu1 %v676_v1 }
  0x43   :  { %538 = vmatmul.bf16.gmra.mxu2 %v680_v2 }
  0x44   :  { %581 = vmatmul.bf16.gmra.mxu3 %v684_v3 }
  0x51   :  { %457 = vmatmul.bf16.gmra.mxu0 %v688_v12 }
  0x52   :  { %500 = vmatmul.bf16.gmra.mxu1 %v692_v13 }
  0x53   :  { %543 = vmatmul.bf16.gmra.mxu2 %v696_v14 }
  0x54   :  { %586 = vmatmul.bf16.gmra.mxu3 %v700_v15 }
  0x61   :  { %462 = vmatmul.bf16.gmra.mxu0 %v704_v24 }
  0x62   :  { %505 = vmatmul.bf16.gmra.mxu1 %v708_v25 }
  0x63   :  { %548 = vmatmul.bf16.gmra.mxu2 %v712_v26 }
  0x64   :  { %591 = vmatmul.bf16.gmra.mxu3 %v716_v27 }
  0x71   :  { %467 = vmatmul.bf16.gmra.mxu0 %v720_v36 }
  0x72   :  { %510 = vmatmul.bf16.gmra.mxu1 %v724_v37 }
  0x73   :  { %553 = vmatmul.bf16.gmra.mxu2 %v728_v38 }
  0x74   :  { %596 = vmatmul.bf16.gmra.mxu3 %v732_v39 }
  0x81   :  { %472 = vmatmul.bf16.gmra.mxu0 %v210_v46 }
  0x82   :  { %515 = vmatmul.bf16.gmra.mxu1 %v211_v47 }
  0x83   :  { %558 = vmatmul.bf16.gmra.mxu2 %v212_v48 }
  0x84   :  { %601 = vmatmul.bf16.gmra.mxu3 %v213_v49 }
  0x9e   :  { %v443_v51 = vpop.f32.mrf.mxu0 }
  0x9f   :  { %v486_v52 = vpop.f32.mrf.mxu1  ;;  %v444_v53 = vadd.f32 %v1187_v50, %v443_v51 }
  0xa1   :  { %v487_v54 = vadd.f32 %v486_v52, %v444_v53 }
  0xa6   :  { %v529_v55 = vpop.f32.mrf.mxu2  ;;  %v445_v58 = vpop.f32.mrf.mxu0 }
  0xa7   :  { %v572_v56 = vpop.f32.mrf.mxu3  ;;  %v530_v57 = vadd.f32 %v529_v55, %v487_v54  ;;  %v488_v59 = vpop.f32.mrf.mxu1  ;;  %v446_v61 = vadd.f32 %v1187_v50, %v445_v58 }
  0xa9   :  { %v573_v60 = vadd.f32 %v572_v56, %v530_v57  ;;  %v489_v63 = vadd.f32 %v488_v59, %v446_v61 }
  0xab   :  { %v606_v62 = vmax.f32 %v573_v60, 0.0 }
  0xad   :  { %620 = vst.msk [vmem:[%s1257_s3] sm:$0xff] %vm619_vm0, %v606_v62 }
  0xae   :  { %v531_v0 = vpop.f32.mrf.mxu2  ;;  %v448_v3 = vpop.f32.mrf.mxu0 }
  0xaf   :  { %v574_v1 = vpop.f32.mrf.mxu3  ;;  %v532_v2 = vadd.f32 %v531_v0, %v489_v63  ;;  %v491_v4 = vpop.f32.mrf.mxu1  ;;  %v449_v5 = vadd.f32 %v1187_v50, %v448_v3 }
  0xb1   :  { %v575_v6 = vadd.f32 %v574_v1, %v532_v2  ;;  %v492_v8 = vadd.f32 %v491_v4, %v449_v5 }
  0xb3   :  { %v607_v7 = vmax.f32 %v575_v6, 0.0 }
  0xb5   :  { %621 = vst.msk [vmem:[%s1257_s3 + $0x8] sm:$0xff] %vm619_vm0, %v607_v7 }
  0xb6   :  { %v534_v9 = vpop.f32.mrf.mxu2  ;;  %v450_v12 = vpop.f32.mrf.mxu0 }
  0xb7   :  { %v577_v10 = vpop.f32.mrf.mxu3  ;;  %v535_v11 = vadd.f32 %v534_v9, %v492_v8  ;;  %v493_v13 = vpop.f32.mrf.mxu1  ;;  %v451_v15 = vadd.f32 %v1187_v50, %v450_v12 }
  0xb9   :  { %v578_v14 = vadd.f32 %v577_v10, %v535_v11  ;;  %v494_v17 = vadd.f32 %v493_v13, %v451_v15 }
  0xbb   :  { %v608_v16 = vmax.f32 %v578_v14, 0.0 }
  0xbd   :  { %622 = vst.msk [vmem:[%s1257_s3 + $0x10] sm:$0xff] %vm619_vm0, %v608_v16 }
  0xbe   :  { %v536_v18 = vpop.f32.mrf.mxu2  ;;  %v453_v21 = vpop.f32.mrf.mxu0 }
  0xbf   :  { %v579_v19 = vpop.f32.mrf.mxu3  ;;  %v537_v20 = vadd.f32 %v536_v18, %v494_v17  ;;  %v496_v22 = vpop.f32.mrf.mxu1  ;;  %v454_v23 = vadd.f32 %v1187_v50, %v453_v21 }
  0xc1   :  { %v580_v24 = vadd.f32 %v579_v19, %v537_v20  ;;  %v497_v26 = vadd.f32 %v496_v22, %v454_v23 }
  0xc3   :  { %v609_v25 = vmax.f32 %v580_v24, 0.0 }
  0xc5   :  { %623 = vst.msk [vmem:[%s1257_s3 + $0x18] sm:$0xff] %vm619_vm0, %v609_v25 }
  0xc6   :  { %v539_v27 = vpop.f32.mrf.mxu2  ;;  %v455_v30 = vpop.f32.mrf.mxu0 }
  0xc7   :  { %v582_v28 = vpop.f32.mrf.mxu3  ;;  %v540_v29 = vadd.f32 %v539_v27, %v497_v26  ;;  %v498_v31 = vpop.f32.mrf.mxu1  ;;  %v456_v33 = vadd.f32 %v1187_v50, %v455_v30 }
  0xc9   :  { %v583_v32 = vadd.f32 %v582_v28, %v540_v29  ;;  %v499_v35 = vadd.f32 %v498_v31, %v456_v33 }
  0xcb   :  { %v610_v34 = vmax.f32 %v583_v32, 0.0 }
  0xcd   :  { %624 = vst.msk [vmem:[%s1257_s3 + $0x20] sm:$0xff] %vm619_vm0, %v610_v34 }
  0xce   :  { %v541_v36 = vpop.f32.mrf.mxu2  ;;  %v458_v39 = vpop.f32.mrf.mxu0 }
  0xcf   :  { %v584_v37 = vpop.f32.mrf.mxu3  ;;  %v542_v38 = vadd.f32 %v541_v36, %v499_v35  ;;  %v501_v40 = vpop.f32.mrf.mxu1  ;;  %v459_v41 = vadd.f32 %v1187_v50, %v458_v39 }
  0xd1   :  { %v585_v42 = vadd.f32 %v584_v37, %v542_v38  ;;  %v502_v44 = vadd.f32 %v501_v40, %v459_v41 }
  0xd3   :  { %v611_v43 = vmax.f32 %v585_v42, 0.0 }
  0xd5   :  { %625 = vst.msk [vmem:[%s1257_s3 + $0x28] sm:$0xff] %vm619_vm0, %v611_v43 }
  0xd6   :  { %v544_v45 = vpop.f32.mrf.mxu2  ;;  %v460_v48 = vpop.f32.mrf.mxu0 }
  0xd7   :  { %v587_v46 = vpop.f32.mrf.mxu3  ;;  %v545_v47 = vadd.f32 %v544_v45, %v502_v44  ;;  %v503_v49 = vpop.f32.mrf.mxu1  ;;  %v461_v52 = vadd.f32 %v1187_v50, %v460_v48 }
  0xd9   :  { %v588_v51 = vadd.f32 %v587_v46, %v545_v47  ;;  %v504_v54 = vadd.f32 %v503_v49, %v461_v52 }
  0xdb   :  { %v612_v53 = vmax.f32 %v588_v51, 0.0 }
  0xdd   :  { %626 = vst.msk [vmem:[%s1257_s3 + $0x30] sm:$0xff] %vm619_vm0, %v612_v53 }
  0xde   :  { %v546_v55 = vpop.f32.mrf.mxu2  ;;  %v463_v58 = vpop.f32.mrf.mxu0 }
  0xdf   :  { %v589_v56 = vpop.f32.mrf.mxu3  ;;  %v547_v57 = vadd.f32 %v546_v55, %v504_v54  ;;  %v506_v59 = vpop.f32.mrf.mxu1  ;;  %v464_v60 = vadd.f32 %v1187_v50, %v463_v58 }
  0xe1   :  { %v590_v61 = vadd.f32 %v589_v56, %v547_v57  ;;  %v507_v63 = vadd.f32 %v506_v59, %v464_v60 }
  0xe3   :  { %v613_v62 = vmax.f32 %v590_v61, 0.0 }
  0xe5   :  { %627 = vst.msk [vmem:[%s1257_s3 + $0x38] sm:$0xff] %vm619_vm0, %v613_v62 }
  0xe6   :  { %v549_v0 = vpop.f32.mrf.mxu2  ;;  %v465_v3 = vpop.f32.mrf.mxu0 }
  0xe7   :  { %v592_v1 = vpop.f32.mrf.mxu3  ;;  %v550_v2 = vadd.f32 %v549_v0, %v507_v63  ;;  %v508_v4 = vpop.f32.mrf.mxu1  ;;  %v466_v6 = vadd.f32 %v1187_v50, %v465_v3 }
  0xe9   :  { %v593_v5 = vadd.f32 %v592_v1, %v550_v2  ;;  %v509_v8 = vadd.f32 %v508_v4, %v466_v6 }
  0xeb   :  { %v614_v7 = vmax.f32 %v593_v5, 0.0 }
  0xed   :  { %628 = vst.msk [vmem:[%s1257_s3 + $0x40] sm:$0xff] %vm619_vm0, %v614_v7 }
  0xee   :  { %v551_v9 = vpop.f32.mrf.mxu2  ;;  %v468_v12 = vpop.f32.mrf.mxu0 }
  0xef   :  { %v594_v10 = vpop.f32.mrf.mxu3  ;;  %v552_v11 = vadd.f32 %v551_v9, %v509_v8  ;;  %v511_v13 = vpop.f32.mrf.mxu1  ;;  %v469_v14 = vadd.f32 %v1187_v50, %v468_v12 }
  0xf1   :  { %v595_v15 = vadd.f32 %v594_v10, %v552_v11  ;;  %v512_v17 = vadd.f32 %v511_v13, %v469_v14 }
  0xf3   :  { %v615_v16 = vmax.f32 %v595_v15, 0.0 }
  0xf5   :  { %629 = vst.msk [vmem:[%s1257_s3 + $0x48] sm:$0xff] %vm619_vm0, %v615_v16 }
  0xf6   :  { %v554_v18 = vpop.f32.mrf.mxu2  ;;  %v470_v21 = vpop.f32.mrf.mxu0 }
  0xf7   :  { %v597_v19 = vpop.f32.mrf.mxu3  ;;  %v555_v20 = vadd.f32 %v554_v18, %v512_v17  ;;  %v513_v22 = vpop.f32.mrf.mxu1  ;;  %v471_v24 = vadd.f32 %v1187_v50, %v470_v21 }
  0xf9   :  { %v598_v23 = vadd.f32 %v597_v19, %v555_v20  ;;  %v514_v26 = vadd.f32 %v513_v22, %v471_v24 }
  0xfb   :  { %v616_v25 = vmax.f32 %v598_v23, 0.0 }
  0xfd   :  { %630 = vst.msk [vmem:[%s1257_s3 + $0x50] sm:$0xff] %vm619_vm0, %v616_v25 }
  0xfe   :  { %v556_v27 = vpop.f32.mrf.mxu2  ;;  %v473_v30 = vpop.f32.mrf.mxu0 }
  0xff   :  { %v599_v28 = vpop.f32.mrf.mxu3  ;;  %v557_v29 = vadd.f32 %v556_v27, %v514_v26  ;;  %v516_v31 = vpop.f32.mrf.mxu1  ;;  %v474_v32 = vadd.f32 %v1187_v50, %v473_v30 }
 0x101   :  { %v600_v33 = vadd.f32 %v599_v28, %v557_v29  ;;  %v517_v35 = vadd.f32 %v516_v31, %v474_v32 }
 0x103   :  { %v617_v34 = vmax.f32 %v600_v33, 0.0 }
 0x105   :  { %631 = vst.msk [vmem:[%s1257_s3 + $0x58] sm:$0xff] %vm619_vm0, %v617_v34 }
 0x106   :  { %v559_v36 = vpop.f32.mrf.mxu2  ;;  %v475_v39 = vpop.f32.mrf.mxu0 }
 0x107   :  { %v602_v37 = vpop.f32.mrf.mxu3  ;;  %v560_v38 = vadd.f32 %v559_v36, %v517_v35  ;;  %v518_v40 = vpop.f32.mrf.mxu1 }
 0x109   :  { %v603_v41 = vadd.f32 %v602_v37, %v560_v38 }
 0x10b   :  { %v618_v42 = vmax.f32 %v603_v41, 0.0 }
 0x10d   :  { %632 = vst.msk [vmem:[%s1257_s3 + $0x60] sm:$0xff] %vm619_vm0, %v618_v42 }
 0x10e   :  { %v561_v50 = vpop.f32.mrf.mxu2 }
 0x10f   :  { %v604_v43 = vpop.f32.mrf.mxu3 }

// kernel: autoencoder_forward.9
= control target key start
LH: loop header
LB: loop body
LE: loop exit
PB: predicated region body
PF: predicated region fallthrough
CT: control target
= control target key end

     0   :  { %vm369_vm0 = vcmask 523264   ;;  %s923_s1 = inlined_call_operand.vmem [shape: bf16[576,128], index: 1, kind: input, shape index: {}]   ;;  %s924_s2 = inlined_call_operand.vmem [shape: f32[1,128], index: 2, kind: input, shape index: {}]   ;;  %s925_s0 = inlined_call_operand.vmem [shape: bf16[32,576], index: 0, kind: input, shape index: {}]   ;;  %s926_s3 = inlined_call_operand.vmem [shape: f32[32,128], index: 3, kind: output, shape index: {}]  }
   0x1   :  { %v686_v0 = vld [vmem:[%s923_s1 + $0x38] sm:$0xff]  ;;  %v685_v4 = vld [vmem:[%s923_s1 + $0x30] sm:$0xff]  ;;  %v684_v8 = vld [vmem:[%s923_s1 + $0x28] sm:$0xff] }
   0x2   :  { %v694_v1 = vld [vmem:[%s923_s1 + $0x78] sm:$0xff]  ;;  %376 = vmatpush.bf16.msra.mxu0 %v686_v0  ;;  %v693_v5 = vld [vmem:[%s923_s1 + $0x70] sm:$0xff]  ;;  %v692_v9 = vld [vmem:[%s923_s1 + $0x68] sm:$0xff] }
   0x3   :  { %v702_v2 = vld [vmem:[%s923_s1 + $0xb8] sm:$0xff]  ;;  %395 = vmatpush.bf16.msra.mxu1 %v694_v1  ;;  %v701_v6 = vld [vmem:[%s923_s1 + $0xb0] sm:$0xff]  ;;  %v700_v10 = vld [vmem:[%s923_s1 + $0xa8] sm:$0xff] }
   0x4   :  { %v710_v3 = vld [vmem:[%s923_s1 + $0xf8] sm:$0xff]  ;;  %414 = vmatpush.bf16.msra.mxu2 %v702_v2  ;;  %v709_v7 = vld [vmem:[%s923_s1 + $0xf0] sm:$0xff]  ;;  %v708_v11 = vld [vmem:[%s923_s1 + $0xe8] sm:$0xff] }
   0x5   :  { %433 = vmatpush.bf16.msra.mxu3 %v710_v3  ;;  %v683_v12 = vld [vmem:[%s923_s1 + $0x20] sm:$0xff]  ;;  %v682_v16 = vld [vmem:[%s923_s1 + $0x18] sm:$0xff]  ;;  %v681_v20 = vld [vmem:[%s923_s1 + $0x10] sm:$0xff] }
   0x6   :  { %377 = vmatpush.bf16.msra.mxu0 %v685_v4  ;;  %v691_v13 = vld [vmem:[%s923_s1 + $0x60] sm:$0xff]  ;;  %v690_v17 = vld [vmem:[%s923_s1 + $0x58] sm:$0xff]  ;;  %v689_v21 = vld [vmem:[%s923_s1 + $0x50] sm:$0xff] }
   0x7   :  { %396 = vmatpush.bf16.msra.mxu1 %v693_v5  ;;  %v699_v14 = vld [vmem:[%s923_s1 + $0xa0] sm:$0xff]  ;;  %v698_v18 = vld [vmem:[%s923_s1 + $0x98] sm:$0xff]  ;;  %v697_v22 = vld [vmem:[%s923_s1 + $0x90] sm:$0xff] }
   0x8   :  { %415 = vmatpush.bf16.msra.mxu2 %v701_v6  ;;  %v707_v15 = vld [vmem:[%s923_s1 + $0xe0] sm:$0xff]  ;;  %v706_v19 = vld [vmem:[%s923_s1 + $0xd8] sm:$0xff]  ;;  %v705_v23 = vld [vmem:[%s923_s1 + $0xd0] sm:$0xff] }
   0x9   :  { %434 = vmatpush.bf16.msra.mxu3 %v709_v7  ;;  %v680_v24 = vld [vmem:[%s923_s1 + $0x8] sm:$0xff]  ;;  %v679_v28 = vld [vmem:[%s923_s1] sm:$0xff]  ;;  %v671_v33 = vld [vmem:[%s925_s0 + $0x10] sm:$0xf0] }
   0xa   :  { %378 = vmatpush.bf16.msra.mxu0 %v684_v8  ;;  %v688_v25 = vld [vmem:[%s923_s1 + $0x48] sm:$0xff]  ;;  %v687_v29 = vld [vmem:[%s923_s1 + $0x40] sm:$0xff]  ;;  %v487_v35 = vld [vmem:[%s925_s0 + $0x14] sm:$0xf0] }
   0xb   :  { %397 = vmatpush.bf16.msra.mxu1 %v692_v9  ;;  %v696_v26 = vld [vmem:[%s923_s1 + $0x88] sm:$0xff]  ;;  %v695_v30 = vld [vmem:[%s923_s1 + $0x80] sm:$0xff]  ;;  %v672_v37 = vld [vmem:[%s925_s0 + $0x18] sm:$0xf0] }
   0xc   :  { %416 = vmatpush.bf16.msra.mxu2 %v700_v10  ;;  %v704_v27 = vld [vmem:[%s923_s1 + $0xc8] sm:$0xff]  ;;  %v703_v31 = vld [vmem:[%s923_s1 + $0xc0] sm:$0xff]  ;;  %v714_v40 = vld [vmem:[%s923_s1 + $0x118] sm:$0xff] }
   0xd   :  { %435 = vmatpush.bf16.msra.mxu3 %v708_v11  ;;  %v485_v32 = vld [vmem:[%s925_s0] sm:$0xf]  ;;  %v669_v34 = vld [vmem:[%s925_s0 + $0x4] sm:$0xf]  ;;  %v493_v36 = vld [vmem:[%s925_s0 + $0x8] sm:$0xf] }
   0xe   :  { %379 = vmatpush.bf16.msra.mxu0 %v683_v12  ;;  %v670_v38 = vld [vmem:[%s925_s0 + $0xc] sm:$0xf]  ;;  %v495_v39 = vld [vmem:[%s925_s0 + $0x1c] sm:$0xf0]  ;;  %v486_v41 = vor.u32 %v671_v33, %v485_v32  ;;  %v490_v42 = vor.u32 %v669_v34, %v487_v35  ;;  %v494_v43 = vor.u32 %v672_v37, %v493_v36  ;;  %v713_v45 = vld [vmem:[%s923_s1 + $0x110] sm:$0xff] }
   0xf   :  { %398 = vmatpush.bf16.msra.mxu1 %v691_v13  ;;  %v498_v44 = vor.u32 %v670_v38, %v495_v39  ;;  %v712_v46 = vld [vmem:[%s923_s1 + $0x108] sm:$0xff]  ;;  %v711_v47 = vld [vmem:[%s923_s1 + $0x100] sm:$0xff]  ;;  %v676_v49 = vld [vmem:[%s925_s0 + $0x38] sm:$0xf0] }
  0x10   :  { %417 = vmatpush.bf16.msra.mxu2 %v699_v14  ;;  %v505_v48 = vld [vmem:[%s925_s0 + $0x28] sm:$0xf]  ;;  %v674_v50 = vld [vmem:[%s925_s0 + $0x2c] sm:$0xf]  ;;  %v507_v51 = vld [vmem:[%s925_s0 + $0x3c] sm:$0xf0] }
  0x11   :  { %436 = vmatpush.bf16.msra.mxu3 %v707_v15  ;;  %v513_v52 = vld [vmem:[%s925_s0 + $0x30] sm:$0xf]  ;;  %v677_v53 = vld [vmem:[%s925_s0 + $0x40] sm:$0xf0]  ;;  %v675_v54 = vld [vmem:[%s925_s0 + $0x34] sm:$0xf]  ;;  %v506_v56 = vor.u32 %v676_v49, %v505_v48  ;;  %v510_v57 = vor.u32 %v674_v50, %v507_v51 }
  0x12   :  { %380 = vmatpush.bf16.msra.mxu0 %v682_v16  ;;  %v515_v55 = vld [vmem:[%s925_s0 + $0x44] sm:$0xf0]  ;;  %v514_v58 = vor.u32 %v677_v53, %v513_v52  ;;  %v501_v60 = vld [vmem:[%s925_s0 + $0x10] sm:$0xf]  ;;  %v673_v61 = vld [vmem:[%s925_s0 + $0x20] sm:$0xf0] }
  0x13   :  { %399 = vmatpush.bf16.msra.mxu1 %v690_v17  ;;  %v518_v59 = vor.u32 %v675_v54, %v515_v55  ;;  %v521_v62 = vld [vmem:[%s925_s0 + $0x38] sm:$0xf]  ;;  %v678_v63 = vld [vmem:[%s925_s0 + $0x48] sm:$0xf0]  ;;  %v502_v0 = vor.u32 %v673_v61, %v501_v60  ;;  %v719_v11 = vld [vmem:[%s924_s2] ss:$0 sm:$0xff] }
  0x14   :  { %418 = vmatpush.bf16.msra.mxu2 %v698_v18  ;;  %v522_v1 = vor.u32 %v678_v63, %v521_v62 }
  0x15   :  { %437 = vmatpush.bf16.msra.mxu3 %v706_v19 }
  0x16   :  { %381 = vmatpush.bf16.msra.mxu0 %v681_v20 }
  0x17   :  { %400 = vmatpush.bf16.msra.mxu1 %v689_v21 }
  0x18   :  { %419 = vmatpush.bf16.msra.mxu2 %v697_v22 }
  0x19   :  { %438 = vmatpush.bf16.msra.mxu3 %v705_v23 }
  0x1a   :  { %382 = vmatpush.bf16.msra.mxu0 %v680_v24 }
  0x1b   :  { %401 = vmatpush.bf16.msra.mxu1 %v688_v25 }
  0x1c   :  { %420 = vmatpush.bf16.msra.mxu2 %v696_v26 }
  0x1d   :  { %439 = vmatpush.bf16.msra.mxu3 %v704_v27 }
  0x1e   :  { %383 = vmatpush.bf16.msra.mxu0 %v679_v28 }
  0x1f   :  { %402 = vmatpush.bf16.msra.mxu1 %v687_v29 }
  0x20   :  { %421 = vmatpush.bf16.msra.mxu2 %v695_v30 }
  0x21   :  { %440 = vmatpush.bf16.msra.mxu3 %v703_v31  ;;  %384 = vmatmul.bf16.vlgmr.msra.gmra.mxu0 %v486_v41 }
  0x22   :  { %456 = vmatpush.bf16.msrb.mxu0 %v714_v40  ;;  %403 = vmatmul.bf16.vlgmr.msra.gmra.mxu1 %v490_v42 }
  0x23   :  { %715 = vmatpush.bf16.msrb.mxu1 %v714_v40  ;;  %422 = vmatmul.bf16.vlgmr.msra.gmra.mxu2 %v494_v43 }
  0x24   :  { %441 = vmatmul.bf16.vlgmr.msra.gmra.mxu3 %v498_v44 }
  0x26   :  { %457 = vmatpush.bf16.msrb.mxu0 %v713_v45 }
  0x27   :  { %716 = vmatpush.bf16.msrb.mxu1 %v713_v45 }
  0x2a   :  { %458 = vmatpush.bf16.msrb.mxu0 %v712_v46 }
  0x2b   :  { %717 = vmatpush.bf16.msrb.mxu1 %v712_v46 }
  0x2e   :  { %459 = vmatpush.bf16.msrb.mxu0 %v711_v47 }
  0x2f   :  { %718 = vmatpush.bf16.msrb.mxu1 %v711_v47 }
  0x31   :  { %389 = vmatmul.bf16.gmra.mxu0 %v506_v56 }
  0x32   :  { %408 = vmatmul.bf16.gmra.mxu1 %v510_v57 }
  0x33   :  { %427 = vmatmul.bf16.gmra.mxu2 %v514_v58 }
  0x34   :  { %446 = vmatmul.bf16.gmra.mxu3 %v518_v59 }
  0x41   :  { %667 = vmatmul.msk.bf16.vlgmr.msrb.gmra.mxu0 %vm369_vm0, %v502_v0 }
  0x42   :  { %668 = vmatmul.msk.bf16.vlgmr.msrb.gmra.mxu1 %vm369_vm0, %v522_v1 }
  0x9e   :  { %v385_v2 = vpop.f32.mrf.mxu0 }
  0x9f   :  { %v404_v3 = vpop.f32.mrf.mxu1  ;;  %v386_v13 = vadd.f32 %v719_v11, %v385_v2 }
  0xa1   :  { %v405_v18 = vadd.f32 %v404_v3, %v386_v13 }
  0xa6   :  { %v423_v4 = vpop.f32.mrf.mxu2  ;;  %v387_v6 = vpop.f32.mrf.mxu0 }
  0xa7   :  { %v442_v5 = vpop.f32.mrf.mxu3  ;;  %v406_v7 = vpop.f32.mrf.mxu1  ;;  %v424_v20 = vadd.f32 %v423_v4, %v405_v18  ;;  %v388_v23 = vadd.f32 %v719_v11, %v387_v6 }
  0xa9   :  { %v443_v25 = vadd.f32 %v442_v5, %v424_v20  ;;  %v407_v30 = vadd.f32 %v406_v7, %v388_v23 }
  0xae   :  { %v425_v8 = vpop.f32.mrf.mxu2  ;;  %v390_v9 = vpop.f32.mrf.mxu0 }
  0xaf   :  { %v409_v10 = vpop.f32.mrf.mxu1  ;;  %v444_v12 = vpop.f32.mrf.mxu3  ;;  %v391_v14 = vadd.f32 %v719_v11, %v390_v9  ;;  %v426_v34 = vadd.f32 %v425_v8, %v407_v30 }
  0xb1   :  { %v410_v19 = vadd.f32 %v409_v10, %v391_v14  ;;  %v445_v39 = vadd.f32 %v444_v12, %v426_v34 }
  0xb6   :  { %v428_v15 = vpop.f32.mrf.mxu2  ;;  %v392_v16 = vpop.f32.mrf.mxu0 }
  0xb7   :  { %v411_v17 = vpop.f32.mrf.mxu1  ;;  %v429_v21 = vadd.f32 %v428_v15, %v410_v19  ;;  %v447_v22 = vpop.f32.mrf.mxu3  ;;  %v393_v24 = vadd.f32 %v719_v11, %v392_v16 }
  0xb9   :  { %v448_v26 = vadd.f32 %v447_v22, %v429_v21  ;;  %v412_v31 = vadd.f32 %v411_v17, %v393_v24 }
  0xbe   :  { %v430_v27 = vpop.f32.mrf.mxu2  ;;  %v461_v28 = vpop.f32.mrf.mxu0 }
  0xbf   :  { %v466_v29 = vpop.f32.mrf.mxu1  ;;  %v462_v32 = vadd.f32 %v461_v28, %v443_v25  ;;  %v431_v35 = vadd.f32 %v430_v27, %v412_v31  ;;  %v449_v38 = vpop.f32.mrf.mxu3 }
  0xc0   :  { %v467_v33 = vadd.f32 %v466_v29, %v448_v26 }
  0xc1   :  { %v471_v36 = vmax.f32 %v462_v32, 0.0  ;;  %v450_v40 = vadd.f32 %v449_v38, %v431_v35 }
  0xc2   :  { %v473_v37 = vmax.f32 %v467_v33, 0.0 }
  0xc3   :  { %475 = vst [vmem:[%s926_s3] sm:$0xff] %v471_v36 }
  0xc4   :  { %477 = vst [vmem:[%s926_s3 + $0x10] sm:$0xff] %v473_v37 }
  0xc6   :  { %v463_v41 = vpop.f32.mrf.mxu0 }
  0xc7   :  { %v468_v42 = vpop.f32.mrf.mxu1  ;;  %v464_v43 = vadd.f32 %v463_v41, %v445_v39 }
  0xc8   :  { %v469_v44 = vadd.f32 %v468_v42, %v450_v40 }
  0xc9   :  { %v472_v45 = vmax.f32 %v464_v43, 0.0 }
  0xca   :  { %v474_v46 = vmax.f32 %v469_v44, 0.0 }
  0xcb   :  { %476 = vst [vmem:[%s926_s3 + $0x8] sm:$0xff] %v472_v45 }
  0xcc   :  { %478 = vst [vmem:[%s926_s3 + $0x18] sm:$0xff] %v474_v46 }

// kernel: autoencoder_forward.11
= control target key start
LH: loop header
LB: loop body
LE: loop exit
PB: predicated region body
PF: predicated region fallthrough
CT: control target
= control target key end

     0   :  { %vm397_vm0 = vcmask 523264   ;;  %s965_s1 = inlined_call_operand.vmem [shape: bf16[128,576], index: 1, kind: input, shape index: {}]   ;;  %s966_s0 = inlined_call_operand.vmem [shape: bf16[32,128], index: 0, kind: input, shape index: {}]   ;;  %s967_s2 = inlined_call_operand.vmem [shape: f32[1,576], index: 2, kind: input, shape index: {}]   ;;  %s968_s3 = inlined_call_operand.vmem [shape: f32[32,576], index: 3, kind: output, shape index: {}]  }
   0x1   :  { %v568_v0 = vld [vmem:[%s965_s1 + $0x118] sm:$0xf]  ;;  %v625_v1 = vld [vmem:[%s965_s1 + $0x128] sm:$0xf0]  ;;  %v623_v2 = vld [vmem:[%s965_s1 + $0x11c] sm:$0xf] }
   0x2   :  { %v569_v3 = vor.u32 %v625_v1, %v568_v0  ;;  %v570_v4 = vld [vmem:[%s965_s1 + $0x12c] sm:$0xf0]  ;;  %v576_v5 = vld [vmem:[%s965_s1 + $0x120] sm:$0xf]  ;;  %v626_v6 = vld [vmem:[%s965_s1 + $0x130] sm:$0xf0] }
   0x3   :  { %v573_v7 = vor.u32 %v623_v2, %v570_v4  ;;  %v577_v8 = vor.u32 %v626_v6, %v576_v5  ;;  %v624_v9 = vld [vmem:[%s965_s1 + $0x124] sm:$0xf]  ;;  %v578_v10 = vld [vmem:[%s965_s1 + $0x134] sm:$0xf0]  ;;  %v548_v11 = vld [vmem:[%s965_s1 + $0xf0] sm:$0xf] }
   0x4   :  { %298 = vmatpush.bf16.msra.mxu0 %v569_v3  ;;  %v581_v12 = vor.u32 %v624_v9, %v578_v10  ;;  %v620_v13 = vld [vmem:[%s965_s1 + $0x100] sm:$0xf0]  ;;  %v618_v14 = vld [vmem:[%s965_s1 + $0xf4] sm:$0xf]  ;;  %v550_v15 = vld [vmem:[%s965_s1 + $0x104] sm:$0xf0] }
   0x5   :  { %317 = vmatpush.bf16.msra.mxu1 %v573_v7  ;;  %336 = vmatpush.bf16.msra.mxu2 %v577_v8  ;;  %v549_v16 = vor.u32 %v620_v13, %v548_v11  ;;  %v553_v17 = vor.u32 %v618_v14, %v550_v15  ;;  %v556_v18 = vld [vmem:[%s965_s1 + $0xf8] sm:$0xf]  ;;  %v621_v19 = vld [vmem:[%s965_s1 + $0x108] sm:$0xf0]  ;;  %v619_v20 = vld [vmem:[%s965_s1 + $0xfc] sm:$0xf] }
   0x6   :  { %355 = vmatpush.bf16.msra.mxu3 %v581_v12  ;;  %v557_v21 = vor.u32 %v621_v19, %v556_v18  ;;  %v558_v22 = vld [vmem:[%s965_s1 + $0x10c] sm:$0xf0]  ;;  %v528_v23 = vld [vmem:[%s965_s1 + $0xc8] sm:$0xf]  ;;  %v615_v24 = vld [vmem:[%s965_s1 + $0xd8] sm:$0xf0] }
   0x7   :  { %v561_v25 = vor.u32 %v619_v20, %v558_v22  ;;  %v613_v26 = vld [vmem:[%s965_s1 + $0xcc] sm:$0xf]  ;;  %v530_v27 = vld [vmem:[%s965_s1 + $0xdc] sm:$0xf0]  ;;  %v536_v28 = vld [vmem:[%s965_s1 + $0xd0] sm:$0xf]  ;;  %v529_v29 = vor.u32 %v615_v24, %v528_v23 }
   0x8   :  { %299 = vmatpush.bf16.msra.mxu0 %v549_v16  ;;  %v616_v30 = vld [vmem:[%s965_s1 + $0xe0] sm:$0xf0]  ;;  %v614_v31 = vld [vmem:[%s965_s1 + $0xd4] sm:$0xf]  ;;  %v538_v32 = vld [vmem:[%s965_s1 + $0xe4] sm:$0xf0]  ;;  %v533_v33 = vor.u32 %v613_v26, %v530_v27 }
   0x9   :  { %318 = vmatpush.bf16.msra.mxu1 %v553_v17  ;;  %337 = vmatpush.bf16.msra.mxu2 %v557_v21  ;;  %v537_v34 = vor.u32 %v616_v30, %v536_v28  ;;  %v508_v35 = vld [vmem:[%s965_s1 + $0xa0] sm:$0xf]  ;;  %v610_v36 = vld [vmem:[%s965_s1 + $0xb0] sm:$0xf0]  ;;  %v608_v37 = vld [vmem:[%s965_s1 + $0xa4] sm:$0xf]  ;;  %v541_v38 = vor.u32 %v614_v31, %v538_v32 }
   0xa   :  { %356 = vmatpush.bf16.msra.mxu3 %v561_v25  ;;  %v510_v39 = vld [vmem:[%s965_s1 + $0xb4] sm:$0xf0]  ;;  %v516_v40 = vld [vmem:[%s965_s1 + $0xa8] sm:$0xf]  ;;  %v611_v41 = vld [vmem:[%s965_s1 + $0xb8] sm:$0xf0]  ;;  %v509_v44 = vor.u32 %v610_v36, %v508_v35 }
   0xb   :  { %v609_v42 = vld [vmem:[%s965_s1 + $0xac] sm:$0xf]  ;;  %v518_v43 = vld [vmem:[%s965_s1 + $0xbc] sm:$0xf0]  ;;  %v513_v45 = vor.u32 %v608_v37, %v510_v39  ;;  %v517_v46 = vor.u32 %v611_v41, %v516_v40  ;;  %v488_v47 = vld [vmem:[%s965_s1 + $0x78] sm:$0xf] }
   0xc   :  { %300 = vmatpush.bf16.msra.mxu0 %v529_v29  ;;  %v605_v48 = vld [vmem:[%s965_s1 + $0x88] sm:$0xf0]  ;;  %v603_v49 = vld [vmem:[%s965_s1 + $0x7c] sm:$0xf]  ;;  %v521_v50 = vor.u32 %v609_v42, %v518_v43  ;;  %v490_v51 = vld [vmem:[%s965_s1 + $0x8c] sm:$0xf0] }
   0xd   :  { %319 = vmatpush.bf16.msra.mxu1 %v533_v33  ;;  %338 = vmatpush.bf16.msra.mxu2 %v537_v34  ;;  %v496_v52 = vld [vmem:[%s965_s1 + $0x80] sm:$0xf]  ;;  %v606_v53 = vld [vmem:[%s965_s1 + $0x90] sm:$0xf0]  ;;  %v604_v54 = vld [vmem:[%s965_s1 + $0x84] sm:$0xf]  ;;  %v489_v56 = vor.u32 %v605_v48, %v488_v47  ;;  %v493_v57 = vor.u32 %v603_v49, %v490_v51 }
   0xe   :  { %357 = vmatpush.bf16.msra.mxu3 %v541_v38  ;;  %v498_v55 = vld [vmem:[%s965_s1 + $0x94] sm:$0xf0]  ;;  %v497_v58 = vor.u32 %v606_v53, %v496_v52  ;;  %v468_v59 = vld [vmem:[%s965_s1 + $0x50] sm:$0xf]  ;;  %v600_v60 = vld [vmem:[%s965_s1 + $0x60] sm:$0xf0] }
   0xf   :  { %v598_v61 = vld [vmem:[%s965_s1 + $0x54] sm:$0xf]  ;;  %v501_v62 = vor.u32 %v604_v54, %v498_v55  ;;  %v470_v63 = vld [vmem:[%s965_s1 + $0x64] sm:$0xf0]  ;;  %v476_v0 = vld [vmem:[%s965_s1 + $0x58] sm:$0xf]  ;;  %v469_v4 = vor.u32 %v600_v60, %v468_v59 }
  0x10   :  { %301 = vmatpush.bf16.msra.mxu0 %v509_v44  ;;  %v601_v1 = vld [vmem:[%s965_s1 + $0x68] sm:$0xf0]  ;;  %v599_v2 = vld [vmem:[%s965_s1 + $0x5c] sm:$0xf]  ;;  %v478_v3 = vld [vmem:[%s965_s1 + $0x6c] sm:$0xf0]  ;;  %v473_v5 = vor.u32 %v598_v61, %v470_v63 }
  0x11   :  { %320 = vmatpush.bf16.msra.mxu1 %v513_v45  ;;  %339 = vmatpush.bf16.msra.mxu2 %v517_v46  ;;  %v477_v6 = vor.u32 %v601_v1, %v476_v0  ;;  %v448_v7 = vld [vmem:[%s965_s1 + $0x28] sm:$0xf]  ;;  %v595_v8 = vld [vmem:[%s965_s1 + $0x38] sm:$0xf0]  ;;  %v593_v9 = vld [vmem:[%s965_s1 + $0x2c] sm:$0xf]  ;;  %v481_v10 = vor.u32 %v599_v2, %v478_v3 }
  0x12   :  { %358 = vmatpush.bf16.msra.mxu3 %v521_v50  ;;  %v450_v11 = vld [vmem:[%s965_s1 + $0x3c] sm:$0xf0]  ;;  %v456_v12 = vld [vmem:[%s965_s1 + $0x30] sm:$0xf]  ;;  %v596_v13 = vld [vmem:[%s965_s1 + $0x40] sm:$0xf0]  ;;  %v449_v16 = vor.u32 %v595_v8, %v448_v7 }
  0x13   :  { %v594_v14 = vld [vmem:[%s965_s1 + $0x34] sm:$0xf]  ;;  %v458_v15 = vld [vmem:[%s965_s1 + $0x44] sm:$0xf0]  ;;  %v428_v17 = vld [vmem:[%s965_s1] sm:$0xf]  ;;  %v453_v18 = vor.u32 %v593_v9, %v450_v11  ;;  %v457_v19 = vor.u32 %v596_v13, %v456_v12 }
  0x14   :  { %302 = vmatpush.bf16.msra.mxu0 %v489_v56  ;;  %v590_v20 = vld [vmem:[%s965_s1 + $0x10] sm:$0xf0]  ;;  %v588_v21 = vld [vmem:[%s965_s1 + $0x4] sm:$0xf]  ;;  %v430_v22 = vld [vmem:[%s965_s1 + $0x14] sm:$0xf0]  ;;  %v461_v23 = vor.u32 %v594_v14, %v458_v15 }
  0x15   :  { %321 = vmatpush.bf16.msra.mxu1 %v493_v57  ;;  %340 = vmatpush.bf16.msra.mxu2 %v497_v58  ;;  %v436_v24 = vld [vmem:[%s965_s1 + $0x8] sm:$0xf]  ;;  %v591_v25 = vld [vmem:[%s965_s1 + $0x18] sm:$0xf0]  ;;  %v589_v26 = vld [vmem:[%s965_s1 + $0xc] sm:$0xf]  ;;  %v429_v30 = vor.u32 %v590_v20, %v428_v17  ;;  %v433_v31 = vor.u32 %v588_v21, %v430_v22 }
  0x16   :  { %359 = vmatpush.bf16.msra.mxu3 %v501_v62  ;;  %v438_v27 = vld [vmem:[%s965_s1 + $0x1c] sm:$0xf0]  ;;  %v584_v28 = vld [vmem:[%s965_s1 + $0x128] sm:$0xf]  ;;  %v627_v29 = vld [vmem:[%s965_s1 + $0x138] sm:$0xf0]  ;;  %v437_v32 = vor.u32 %v591_v25, %v436_v24 }
  0x17   :  { %v441_v33 = vor.u32 %v589_v26, %v438_v27  ;;  %v585_v34 = vor.u32 %v627_v29, %v584_v28  ;;  %v586_v35 = vld [vmem:[%s966_s0] sm:$0xff]  ;;  %v622_v37 = vld [vmem:[%s965_s1 + $0x110] sm:$0xf0]  ;;  %v544_v39 = vld [vmem:[%s965_s1 + $0xd8] sm:$0xf] }
  0x18   :  { %303 = vmatpush.bf16.msra.mxu0 %v469_v4  ;;  %v564_v36 = vld [vmem:[%s965_s1 + $0x100] sm:$0xf]  ;;  %v617_v40 = vld [vmem:[%s965_s1 + $0xe8] sm:$0xf0]  ;;  %v524_v42 = vld [vmem:[%s965_s1 + $0xb0] sm:$0xf] }
  0x19   :  { %322 = vmatpush.bf16.msra.mxu1 %v473_v5  ;;  %341 = vmatpush.bf16.msra.mxu2 %v477_v6  ;;  %v565_v38 = vor.u32 %v622_v37, %v564_v36  ;;  %v545_v41 = vor.u32 %v617_v40, %v544_v39  ;;  %v612_v43 = vld [vmem:[%s965_s1 + $0xc0] sm:$0xf0]  ;;  %v504_v45 = vld [vmem:[%s965_s1 + $0x88] sm:$0xf]  ;;  %v607_v46 = vld [vmem:[%s965_s1 + $0x98] sm:$0xf0] }
  0x1a   :  { %360 = vmatpush.bf16.msra.mxu3 %v481_v10  ;;  %v525_v44 = vor.u32 %v612_v43, %v524_v42  ;;  %v505_v47 = vor.u32 %v607_v46, %v504_v45  ;;  %v587_v48 = vld [vmem:[%s966_s0 + $0x8] sm:$0xff]  ;;  %v484_v49 = vld [vmem:[%s965_s1 + $0x60] sm:$0xf]  ;;  %v602_v50 = vld [vmem:[%s965_s1 + $0x70] sm:$0xf0] }
  0x1b   :  { %v485_v51 = vor.u32 %v602_v50, %v484_v49  ;;  %v464_v52 = vld [vmem:[%s965_s1 + $0x38] sm:$0xf]  ;;  %v597_v53 = vld [vmem:[%s965_s1 + $0x48] sm:$0xf0]  ;;  %v444_v55 = vld [vmem:[%s965_s1 + $0x10] sm:$0xf] }
  0x1c   :  { %304 = vmatpush.bf16.msra.mxu0 %v449_v16  ;;  %v465_v54 = vor.u32 %v597_v53, %v464_v52  ;;  %v592_v56 = vld [vmem:[%s965_s1 + $0x20] sm:$0xf0] }
  0x1d   :  { %323 = vmatpush.bf16.msra.mxu1 %v453_v18  ;;  %342 = vmatpush.bf16.msra.mxu2 %v457_v19  ;;  %v445_v57 = vor.u32 %v592_v56, %v444_v55  ;;  %v66_v58 = vld [vmem:[%s967_s2] sm:$0x1f] }
  0x1e   :  { %361 = vmatpush.bf16.msra.mxu3 %v461_v23  ;;  %v68_v59 = vperm.slane %v66_v58, 0  ;;  %v69_v60 = vperm.slane %v66_v58, 1  ;;  %v70_v1 = vperm.slane %v66_v58, 2  ;;  %v71_v2 = vperm.slane %v66_v58, 3 }
  0x1f   :  { %v72_v27 = vperm.slane %v66_v58, 4 }
  0x20   :  { %305 = vmatpush.bf16.msra.mxu0 %v429_v30 }
  0x21   :  { %324 = vmatpush.bf16.msra.mxu1 %v433_v31  ;;  %343 = vmatpush.bf16.msra.mxu2 %v437_v32 }
  0x22   :  { %362 = vmatpush.bf16.msra.mxu3 %v441_v33 }
  0x23   :  { %306 = vmatmul.bf16.vlgmr.msra.gmra.mxu0 %v586_v35 }
  0x24   :  { %374 = vmatpush.bf16.msrb.mxu0 %v585_v34  ;;  %325 = vmatmul.bf16.vlgmr.msra.gmra.mxu1 %v586_v35 }
  0x25   :  { %628 = vmatpush.bf16.msrb.mxu1 %v585_v34  ;;  %344 = vmatmul.bf16.vlgmr.msra.gmra.mxu2 %v586_v35 }
  0x26   :  { %363 = vmatmul.bf16.vlgmr.msra.gmra.mxu3 %v586_v35 }
  0x28   :  { %375 = vmatpush.bf16.msrb.mxu0 %v565_v38 }
  0x29   :  { %629 = vmatpush.bf16.msrb.mxu1 %v565_v38 }
  0x2c   :  { %376 = vmatpush.bf16.msrb.mxu0 %v545_v41 }
  0x2d   :  { %630 = vmatpush.bf16.msrb.mxu1 %v545_v41 }
  0x30   :  { %377 = vmatpush.bf16.msrb.mxu0 %v525_v44 }
  0x31   :  { %631 = vmatpush.bf16.msrb.mxu1 %v525_v44 }
  0x33   :  { %311 = vmatmul.bf16.gmra.mxu0 %v587_v48 }
  0x34   :  { %378 = vmatpush.bf16.msrb.mxu0 %v505_v47  ;;  %330 = vmatmul.bf16.gmra.mxu1 %v587_v48 }
  0x35   :  { %632 = vmatpush.bf16.msrb.mxu1 %v505_v47  ;;  %349 = vmatmul.bf16.gmra.mxu2 %v587_v48 }
  0x36   :  { %368 = vmatmul.bf16.gmra.mxu3 %v587_v48 }
  0x38   :  { %379 = vmatpush.bf16.msrb.mxu0 %v485_v51 }
  0x39   :  { %633 = vmatpush.bf16.msrb.mxu1 %v485_v51 }
  0x3c   :  { %380 = vmatpush.bf16.msrb.mxu0 %v465_v54 }
  0x3d   :  { %634 = vmatpush.bf16.msrb.mxu1 %v465_v54 }
  0x40   :  { %381 = vmatpush.bf16.msrb.mxu0 %v445_v57 }
  0x41   :  { %635 = vmatpush.bf16.msrb.mxu1 %v445_v57 }
  0x43   :  { %382 = vmatmul.bf16.vlgmr.msrb.gmra.mxu0 %v586_v35 }
  0x44   :  { %387 = vmatmul.bf16.vlgmr.msrb.gmra.mxu1 %v587_v48 }
  0xa0   :  { %v307_v61 = vpop.f32.mrf.mxu0 }
  0xa1   :  { %v308_v62 = vadd.f32 %v307_v61, %v68_v59  ;;  %v326_v63 = vpop.f32.mrf.mxu1 }
  0xa2   :  { %v327_v0 = vadd.f32 %v326_v63, %v69_v60 }
  0xa3   :  { %393 = vst [vmem:[%s968_s3] sm:$0xff] %v308_v62 }
  0xa4   :  { %394 = vst [vmem:[%s968_s3 + $0x8] sm:$0xff] %v327_v0 }
  0xa8   :  { %v345_v3 = vpop.f32.mrf.mxu2  ;;  %v309_v4 = vpop.f32.mrf.mxu0 }
  0xa9   :  { %v346_v5 = vadd.f32 %v345_v3, %v70_v1  ;;  %v364_v6 = vpop.f32.mrf.mxu3  ;;  %v310_v7 = vadd.f32 %v309_v4, %v68_v59  ;;  %v328_v8 = vpop.f32.mrf.mxu1 }
  0xaa   :  { %v365_v9 = vadd.f32 %v364_v6, %v71_v2  ;;  %v329_v10 = vadd.f32 %v328_v8, %v69_v60 }
  0xab   :  { %395 = vst [vmem:[%s968_s3 + $0x10] sm:$0xff] %v346_v5 }
  0xac   :  { %399 = vst [vmem:[%s968_s3 + $0x28] sm:$0xff] %v310_v7 }
  0xad   :  { %400 = vst [vmem:[%s968_s3 + $0x30] sm:$0xff] %v329_v10 }
  0xae   :  { %396 = vst [vmem:[%s968_s3 + $0x18] sm:$0xff] %v365_v9 }
  0xb0   :  { %v347_v11 = vpop.f32.mrf.mxu2  ;;  %v312_v12 = vpop.f32.mrf.mxu0 }
  0xb1   :  { %v348_v13 = vadd.f32 %v347_v11, %v70_v1  ;;  %v366_v14 = vpop.f32.mrf.mxu3  ;;  %v313_v15 = vadd.f32 %v312_v12, %v68_v59  ;;  %v331_v16 = vpop.f32.mrf.mxu1 }
  0xb2   :  { %v367_v17 = vadd.f32 %v366_v14, %v71_v2  ;;  %v332_v18 = vadd.f32 %v331_v16, %v69_v60 }
  0xb3   :  { %401 = vst [vmem:[%s968_s3 + $0x38] sm:$0xff] %v348_v13 }
  0xb4   :  { %404 = vst [vmem:[%s968_s3 + $0x50] sm:$0xff] %v313_v15 }
  0xb5   :  { %405 = vst [vmem:[%s968_s3 + $0x58] sm:$0xff] %v332_v18 }
  0xb6   :  { %402 = vst [vmem:[%s968_s3 + $0x40] sm:$0xff] %v367_v17 }
  0xb8   :  { %v350_v19 = vpop.f32.mrf.mxu2  ;;  %v314_v20 = vpop.f32.mrf.mxu0 }
  0xb9   :  { %v351_v21 = vadd.f32 %v350_v19, %v70_v1  ;;  %v369_v22 = vpop.f32.mrf.mxu3  ;;  %v315_v23 = vadd.f32 %v314_v20, %v68_v59  ;;  %v333_v24 = vpop.f32.mrf.mxu1 }
  0xba   :  { %v370_v25 = vadd.f32 %v369_v22, %v71_v2  ;;  %v334_v26 = vadd.f32 %v333_v24, %v69_v60 }
  0xbb   :  { %406 = vst [vmem:[%s968_s3 + $0x60] sm:$0xff] %v351_v21 }
  0xbc   :  { %409 = vst [vmem:[%s968_s3 + $0x78] sm:$0xff] %v315_v23 }
  0xbd   :  { %410 = vst [vmem:[%s968_s3 + $0x80] sm:$0xff] %v334_v26 }
  0xbe   :  { %407 = vst [vmem:[%s968_s3 + $0x68] sm:$0xff] %v370_v25 }
  0xc0   :  { %v352_v28 = vpop.f32.mrf.mxu2  ;;  %v383_v31 = vpop.f32.mrf.mxu0 }
  0xc1   :  { %v353_v29 = vadd.f32 %v352_v28, %v70_v1  ;;  %v371_v30 = vpop.f32.mrf.mxu3  ;;  %v384_v33 = vadd.f32 %v383_v31, %v72_v27  ;;  %v388_v34 = vpop.f32.mrf.mxu1 }
  0xc2   :  { %v372_v32 = vadd.f32 %v371_v30, %v71_v2  ;;  %v389_v35 = vadd.f32 %v388_v34, %v72_v27 }
  0xc3   :  { %411 = vst [vmem:[%s968_s3 + $0x88] sm:$0xff] %v353_v29 }
  0xc4   :  { %412 = vst [vmem:[%s968_s3 + $0x90] sm:$0xff] %v372_v32 }
  0xc5   :  { %398 = vst.msk [vmem:[%s968_s3 + $0x20] sm:$0xff] %vm397_vm0, %v384_v33 }
  0xc6   :  { %408 = vst.msk [vmem:[%s968_s3 + $0x70] sm:$0xff] %vm397_vm0, %v389_v35 }
  0xc8   :  { %v385_v36 = vpop.f32.mrf.mxu0 }
  0xc9   :  { %v386_v37 = vadd.f32 %v385_v36, %v72_v27  ;;  %v390_v38 = vpop.f32.mrf.mxu1 }
  0xca   :  { %v391_v39 = vadd.f32 %v390_v38, %v72_v27 }
  0xcb   :  { %403 = vst.msk [vmem:[%s968_s3 + $0x48] sm:$0xff] %vm397_vm0, %v386_v37 }
  0xcc   :  { %413 = vst.msk [vmem:[%s968_s3 + $0x98] sm:$0xff] %vm397_vm0, %v391_v39 }

// kernel: autoencoder_forward.10
= control target key start
LH: loop header
LB: loop body
LE: loop exit
PB: predicated region body
PF: predicated region fallthrough
CT: control target
= control target key end

     0   :  { %vm4333_vm0 = vcmask 523264   ;;  %s20596_s1 = inlined_call_operand.vmem [shape: bf16[2048,512], index: 1, kind: input, shape index: {}]   ;;  %s20597_s0 = inlined_call_operand.vmem [shape: bf16[8,2048], index: 0, kind: input, shape index: {}]   ;;  %s20598_s2 = inlined_call_operand.vmem [shape: f32[1,512], index: 2, kind: input, shape index: {}]   ;;  %s20599_s3 = inlined_call_operand.vmem [shape: bf16[512,64], index: 3, kind: input, shape index: {}]   ;;  %s20600_s4 = inlined_call_operand.vmem [shape: f32[1,64], index: 4, kind: input, shape index: {}]   ;;  %s20601_s5 = inlined_call_operand.vmem [shape: bf16[64,512], index: 5, kind: input, shape index: {}]   ;;  %s20602_s7 = inlined_call_operand.vmem [shape: bf16[512,2048], index: 7, kind: input, shape index: {}]   ;;  %s20603_s9 = inlined_call_operand.vmem [shape: f32[8,64], index: 9, kind: output, shape index: {0}]   ;;  %s20604_s6 = inlined_call_operand.vmem [shape: f32[1,512], index: 6, kind: input, shape index: {}]   ;;  %s20605_s8 = inlined_call_operand.vmem [shape: f32[1,2048], index: 8, kind: input, shape index: {}]   ;;  %s20606_s10 = inlined_call_operand.vmem [shape: f32[8,2048], index: 10, kind: output, shape index: {1}]  }
   0x1   :  { %v8599_v0 = vld [vmem:[%s20596_s1 + $0xe0] sm:$0xf]  ;;  %v12807_v1 = vld [vmem:[%s20596_s1 + $0xec] sm:$0xf0] }
   0x2   :  { %v8727_v2 = vld [vmem:[%s20596_s1 + $0x1e0] sm:$0xf]  ;;  %v8600_v3 = vor.u32 %v12807_v1, %v8599_v0  ;;  %v12839_v4 = vld [vmem:[%s20596_s1 + $0x1ec] sm:$0xf0] }
   0x3   :  { %v8855_v5 = vld [vmem:[%s20596_s1 + $0x2e0] sm:$0xf]  ;;  %v12871_v6 = vld [vmem:[%s20596_s1 + $0x2ec] sm:$0xf0]  ;;  %v8728_v7 = vor.u32 %v12839_v4, %v8727_v2 }
   0x4   :  { %v8856_v8 = vor.u32 %v12871_v6, %v8855_v5  ;;  %v8983_v9 = vld [vmem:[%s20596_s1 + $0x3e0] sm:$0xf]  ;;  %v12903_v10 = vld [vmem:[%s20596_s1 + $0x3ec] sm:$0xf0]  ;;  %3181 = vmatpush.bf16.msra.mxu0 %v8600_v3 }
   0x5   :  { %v8583_v11 = vld [vmem:[%s20596_s1 + $0xc0] sm:$0xf]  ;;  %v8984_v12 = vor.u32 %v12903_v10, %v8983_v9  ;;  %v12803_v13 = vld [vmem:[%s20596_s1 + $0xcc] sm:$0xf0]  ;;  %3194 = vmatpush.bf16.msra.mxu1 %v8728_v7 }
   0x6   :  { %v8711_v14 = vld [vmem:[%s20596_s1 + $0x1c0] sm:$0xf]  ;;  %v12835_v15 = vld [vmem:[%s20596_s1 + $0x1cc] sm:$0xf0]  ;;  %3207 = vmatpush.bf16.msra.mxu2 %v8856_v8  ;;  %v8584_v16 = vor.u32 %v12803_v13, %v8583_v11 }
   0x7   :  { %v8712_v17 = vor.u32 %v12835_v15, %v8711_v14  ;;  %v8839_v18 = vld [vmem:[%s20596_s1 + $0x2c0] sm:$0xf]  ;;  %v12867_v19 = vld [vmem:[%s20596_s1 + $0x2cc] sm:$0xf0]  ;;  %3220 = vmatpush.bf16.msra.mxu3 %v8984_v12 }
   0x8   :  { %v8967_v20 = vld [vmem:[%s20596_s1 + $0x3c0] sm:$0xf]  ;;  %v8840_v21 = vor.u32 %v12867_v19, %v8839_v18  ;;  %v12899_v22 = vld [vmem:[%s20596_s1 + $0x3cc] sm:$0xf0]  ;;  %3182 = vmatpush.bf16.msra.mxu0 %v8584_v16 }
   0x9   :  { %v8567_v23 = vld [vmem:[%s20596_s1 + $0xa0] sm:$0xf]  ;;  %v12799_v24 = vld [vmem:[%s20596_s1 + $0xac] sm:$0xf0]  ;;  %v8968_v25 = vor.u32 %v12899_v22, %v8967_v20  ;;  %3195 = vmatpush.bf16.msra.mxu1 %v8712_v17 }
   0xa   :  { %v8695_v26 = vld [vmem:[%s20596_s1 + $0x1a0] sm:$0xf]  ;;  %v12831_v27 = vld [vmem:[%s20596_s1 + $0x1ac] sm:$0xf0]  ;;  %v8568_v29 = vor.u32 %v12799_v24, %v8567_v23  ;;  %3208 = vmatpush.bf16.msra.mxu2 %v8840_v21 }
   0xb   :  { %v8823_v28 = vld [vmem:[%s20596_s1 + $0x2a0] sm:$0xf]  ;;  %v12863_v30 = vld [vmem:[%s20596_s1 + $0x2ac] sm:$0xf0]  ;;  %v8696_v33 = vor.u32 %v12831_v27, %v8695_v26  ;;  %3221 = vmatpush.bf16.msra.mxu3 %v8968_v25 }
   0xc   :  { %v8951_v31 = vld [vmem:[%s20596_s1 + $0x3a0] sm:$0xf]  ;;  %v12895_v32 = vld [vmem:[%s20596_s1 + $0x3ac] sm:$0xf0]  ;;  %v8824_v34 = vor.u32 %v12863_v30, %v8823_v28  ;;  %3183 = vmatpush.bf16.msra.mxu0 %v8568_v29 }
   0xd   :  { %v8551_v35 = vld [vmem:[%s20596_s1 + $0x80] sm:$0xf]  ;;  %v12795_v36 = vld [vmem:[%s20596_s1 + $0x8c] sm:$0xf0]  ;;  %v8952_v38 = vor.u32 %v12895_v32, %v8951_v31  ;;  %3196 = vmatpush.bf16.msra.mxu1 %v8696_v33 }
   0xe   :  { %v8679_v37 = vld [vmem:[%s20596_s1 + $0x180] sm:$0xf]  ;;  %v12827_v39 = vld [vmem:[%s20596_s1 + $0x18c] sm:$0xf0]  ;;  %v8552_v44 = vor.u32 %v12795_v36, %v8551_v35  ;;  %3209 = vmatpush.bf16.msra.mxu2 %v8824_v34 }
   0xf   :  { %v8807_v40 = vld [vmem:[%s20596_s1 + $0x280] sm:$0xf]  ;;  %v12859_v41 = vld [vmem:[%s20596_s1 + $0x28c] sm:$0xf0]  ;;  %v8680_v45 = vor.u32 %v12827_v39, %v8679_v37  ;;  %3222 = vmatpush.bf16.msra.mxu3 %v8952_v38 }
  0x10   :  { %v8935_v42 = vld [vmem:[%s20596_s1 + $0x380] sm:$0xf]  ;;  %v12891_v43 = vld [vmem:[%s20596_s1 + $0x38c] sm:$0xf0]  ;;  %v8808_v46 = vor.u32 %v12859_v41, %v8807_v40  ;;  %3184 = vmatpush.bf16.msra.mxu0 %v8552_v44 }
  0x11   :  { %v8535_v47 = vld [vmem:[%s20596_s1 + $0x60] sm:$0xf]  ;;  %v12791_v48 = vld [vmem:[%s20596_s1 + $0x6c] sm:$0xf0]  ;;  %v8936_v50 = vor.u32 %v12891_v43, %v8935_v42  ;;  %3197 = vmatpush.bf16.msra.mxu1 %v8680_v45 }
  0x12   :  { %v8663_v49 = vld [vmem:[%s20596_s1 + $0x160] sm:$0xf]  ;;  %v12823_v51 = vld [vmem:[%s20596_s1 + $0x16c] sm:$0xf0]  ;;  %v8536_v56 = vor.u32 %v12791_v48, %v8535_v47  ;;  %3210 = vmatpush.bf16.msra.mxu2 %v8808_v46 }
  0x13   :  { %v8791_v52 = vld [vmem:[%s20596_s1 + $0x260] sm:$0xf]  ;;  %v12855_v53 = vld [vmem:[%s20596_s1 + $0x26c] sm:$0xf0]  ;;  %v8664_v57 = vor.u32 %v12823_v51, %v8663_v49  ;;  %3223 = vmatpush.bf16.msra.mxu3 %v8936_v50 }
  0x14   :  { %v8919_v54 = vld [vmem:[%s20596_s1 + $0x360] sm:$0xf]  ;;  %v12887_v55 = vld [vmem:[%s20596_s1 + $0x36c] sm:$0xf0]  ;;  %v8792_v58 = vor.u32 %v12855_v53, %v8791_v52  ;;  %3185 = vmatpush.bf16.msra.mxu0 %v8536_v56 }
  0x15   :  { %v8519_v59 = vld [vmem:[%s20596_s1 + $0x40] sm:$0xf]  ;;  %v12787_v60 = vld [vmem:[%s20596_s1 + $0x4c] sm:$0xf0]  ;;  %v8920_v62 = vor.u32 %v12887_v55, %v8919_v54  ;;  %3198 = vmatpush.bf16.msra.mxu1 %v8664_v57 }
  0x16   :  { %v8647_v61 = vld [vmem:[%s20596_s1 + $0x140] sm:$0xf]  ;;  %v12819_v63 = vld [vmem:[%s20596_s1 + $0x14c] sm:$0xf0]  ;;  %v8520_v4 = vor.u32 %v12787_v60, %v8519_v59  ;;  %3211 = vmatpush.bf16.msra.mxu2 %v8792_v58 }
  0x17   :  { %v8775_v0 = vld [vmem:[%s20596_s1 + $0x240] sm:$0xf]  ;;  %v12851_v1 = vld [vmem:[%s20596_s1 + $0x24c] sm:$0xf0]  ;;  %v8648_v5 = vor.u32 %v12819_v63, %v8647_v61  ;;  %3224 = vmatpush.bf16.msra.mxu3 %v8920_v62 }
  0x18   :  { %v8903_v2 = vld [vmem:[%s20596_s1 + $0x340] sm:$0xf]  ;;  %v12883_v3 = vld [vmem:[%s20596_s1 + $0x34c] sm:$0xf0]  ;;  %v8776_v6 = vor.u32 %v12851_v1, %v8775_v0  ;;  %3186 = vmatpush.bf16.msra.mxu0 %v8520_v4 }
  0x19   :  { %v8503_v7 = vld [vmem:[%s20596_s1 + $0x20] sm:$0xf]  ;;  %v12783_v8 = vld [vmem:[%s20596_s1 + $0x2c] sm:$0xf0]  ;;  %v8904_v10 = vor.u32 %v12883_v3, %v8903_v2  ;;  %3199 = vmatpush.bf16.msra.mxu1 %v8648_v5  ;;  %v36_v2 = vld [vmem:[%s20597_s0 + $0x8] sm:$0xff] }
  0x1a   :  { %v8631_v9 = vld [vmem:[%s20596_s1 + $0x120] sm:$0xf]  ;;  %v12815_v11 = vld [vmem:[%s20596_s1 + $0x12c] sm:$0xf0]  ;;  %v8504_v16 = vor.u32 %v12783_v8, %v8503_v7  ;;  %3212 = vmatpush.bf16.msra.mxu2 %v8776_v6  ;;  %v575_v8 = vunpack.c.l.b16 %v36_v2 }
  0x1b   :  { %v8759_v12 = vld [vmem:[%s20596_s1 + $0x220] sm:$0xf]  ;;  %v12847_v13 = vld [vmem:[%s20596_s1 + $0x22c] sm:$0xf0]  ;;  %v8632_v19 = vor.u32 %v12815_v11, %v8631_v9  ;;  %3225 = vmatpush.bf16.msra.mxu3 %v8904_v10  ;;  %v576_v10 = vunpack.c.h.b16 %v36_v2 }
  0x1c   :  { %v8887_v14 = vld [vmem:[%s20596_s1 + $0x320] sm:$0xf]  ;;  %v12879_v15 = vld [vmem:[%s20596_s1 + $0x32c] sm:$0xf0]  ;;  %v8760_v20 = vor.u32 %v12847_v13, %v8759_v12  ;;  %3187 = vmatpush.bf16.msra.mxu0 %v8504_v16 }
  0x1d   :  { %v8487_v17 = vld [vmem:[%s20596_s1] sm:$0xf]  ;;  %v12779_v18 = vld [vmem:[%s20596_s1 + $0xc] sm:$0xf0]  ;;  %v8888_v24 = vor.u32 %v12879_v15, %v8887_v14  ;;  %3200 = vmatpush.bf16.msra.mxu1 %v8632_v19 }
  0x1e   :  { %v8615_v21 = vld [vmem:[%s20596_s1 + $0x100] sm:$0xf]  ;;  %v12811_v22 = vld [vmem:[%s20596_s1 + $0x10c] sm:$0xf0]  ;;  %v8488_v31 = vor.u32 %v12779_v18, %v8487_v17  ;;  %3213 = vmatpush.bf16.msra.mxu2 %v8760_v20  ;;  %v14202_v18 = vpack.c.b16 %v575_v8, %v575_v8  ;;  %v14206_v20 = vpack.c.b16 %v576_v10, %v576_v10 }
  0x1f   :  { %v8743_v23 = vld [vmem:[%s20596_s1 + $0x200] sm:$0xf]  ;;  %v12843_v25 = vld [vmem:[%s20596_s1 + $0x20c] sm:$0xf0]  ;;  %v8616_v35 = vor.u32 %v12811_v22, %v8615_v21  ;;  %3226 = vmatpush.bf16.msra.mxu3 %v8888_v24 }
  0x20   :  { %v8871_v26 = vld [vmem:[%s20596_s1 + $0x300] sm:$0xf]  ;;  %v12875_v27 = vld [vmem:[%s20596_s1 + $0x30c] sm:$0xf0]  ;;  %v8744_v36 = vor.u32 %v12843_v25, %v8743_v23  ;;  %3188 = vmatpush.bf16.msra.mxu0 %v8488_v31 }
  0x21   :  { %v9111_v28 = vld [vmem:[%s20596_s1 + $0x4e0] sm:$0xf]  ;;  %v12935_v29 = vld [vmem:[%s20596_s1 + $0x4ec] sm:$0xf0]  ;;  %v8872_v39 = vor.u32 %v12875_v27, %v8871_v26  ;;  %3201 = vmatpush.bf16.msra.mxu1 %v8616_v35 }
  0x22   :  { %v9239_v30 = vld [vmem:[%s20596_s1 + $0x5e0] sm:$0xf]  ;;  %v12967_v32 = vld [vmem:[%s20596_s1 + $0x5ec] sm:$0xf0]  ;;  %v9112_v40 = vor.u32 %v12935_v29, %v9111_v28  ;;  %3214 = vmatpush.bf16.msra.mxu2 %v8744_v36 }
  0x23   :  { %v9367_v33 = vld [vmem:[%s20596_s1 + $0x6e0] sm:$0xf]  ;;  %v12999_v34 = vld [vmem:[%s20596_s1 + $0x6ec] sm:$0xf0]  ;;  %v9240_v41 = vor.u32 %v12967_v32, %v9239_v30  ;;  %3227 = vmatpush.bf16.msra.mxu3 %v8872_v39 }
  0x24   :  { %v9495_v37 = vld [vmem:[%s20596_s1 + $0x7e0] sm:$0xf]  ;;  %v13031_v38 = vld [vmem:[%s20596_s1 + $0x7ec] sm:$0xf0]  ;;  %v9368_v42 = vor.u32 %v12999_v34, %v9367_v33  ;;  %3233 = vmatpush.bf16.msrb.mxu0 %v9112_v40 }
  0x25   :  { %v9095_v43 = vld [vmem:[%s20596_s1 + $0x4c0] sm:$0xf]  ;;  %v12931_v44 = vld [vmem:[%s20596_s1 + $0x4cc] sm:$0xf0]  ;;  %v9496_v46 = vor.u32 %v13031_v38, %v9495_v37  ;;  %3246 = vmatpush.bf16.msrb.mxu1 %v9240_v41  ;;  %3215 = vmatmul.bf16.vlgmr.msra.gmra.mxu2 %v14202_v18 }
  0x26   :  { %v9223_v45 = vld [vmem:[%s20596_s1 + $0x5c0] sm:$0xf]  ;;  %v12963_v47 = vld [vmem:[%s20596_s1 + $0x5cc] sm:$0xf0]  ;;  %v9096_v52 = vor.u32 %v12931_v44, %v9095_v43  ;;  %3259 = vmatpush.bf16.msrb.mxu2 %v9368_v42  ;;  %3228 = vmatmul.bf16.vlgmr.msra.gmra.mxu3 %v14206_v20 }
  0x27   :  { %v9351_v48 = vld [vmem:[%s20596_s1 + $0x6c0] sm:$0xf]  ;;  %v12995_v49 = vld [vmem:[%s20596_s1 + $0x6cc] sm:$0xf0]  ;;  %v9224_v54 = vor.u32 %v12963_v47, %v9223_v45  ;;  %3272 = vmatpush.bf16.msrb.mxu3 %v9496_v46 }
  0x28   :  { %v9479_v50 = vld [vmem:[%s20596_s1 + $0x7c0] sm:$0xf]  ;;  %v13027_v51 = vld [vmem:[%s20596_s1 + $0x7cc] sm:$0xf0]  ;;  %v9352_v55 = vor.u32 %v12995_v49, %v9351_v48  ;;  %3234 = vmatpush.bf16.msrb.mxu0 %v9096_v52 }
  0x29   :  { %v9079_v53 = vld [vmem:[%s20596_s1 + $0x4a0] sm:$0xf]  ;;  %v12927_v56 = vld [vmem:[%s20596_s1 + $0x4ac] sm:$0xf0]  ;;  %v9480_v59 = vor.u32 %v13027_v51, %v9479_v50  ;;  %3247 = vmatpush.bf16.msrb.mxu1 %v9224_v54 }
  0x2a   :  { %v9207_v57 = vld [vmem:[%s20596_s1 + $0x5a0] sm:$0xf]  ;;  %v12959_v58 = vld [vmem:[%s20596_s1 + $0x5ac] sm:$0xf0]  ;;  %v9080_v0 = vor.u32 %v12927_v56, %v9079_v53  ;;  %3260 = vmatpush.bf16.msrb.mxu2 %v9352_v55 }
  0x2b   :  { %v9335_v60 = vld [vmem:[%s20596_s1 + $0x6a0] sm:$0xf]  ;;  %v12991_v61 = vld [vmem:[%s20596_s1 + $0x6ac] sm:$0xf0]  ;;  %v9208_v1 = vor.u32 %v12959_v58, %v9207_v57  ;;  %3273 = vmatpush.bf16.msrb.mxu3 %v9480_v59 }
  0x2c   :  { %v9463_v62 = vld [vmem:[%s20596_s1 + $0x7a0] sm:$0xf]  ;;  %v13023_v63 = vld [vmem:[%s20596_s1 + $0x7ac] sm:$0xf0]  ;;  %v9336_v4 = vor.u32 %v12991_v61, %v9335_v60  ;;  %3235 = vmatpush.bf16.msrb.mxu0 %v9080_v0 }
  0x2d   :  { %v35_v3 = vld [vmem:[%s20597_s0] sm:$0xff]  ;;  %v12923_v6 = vld [vmem:[%s20596_s1 + $0x48c] sm:$0xf0]  ;;  %v9464_v11 = vor.u32 %v13023_v63, %v9463_v62  ;;  %3248 = vmatpush.bf16.msrb.mxu1 %v9208_v1 }
  0x2e   :  { %v9063_v5 = vld [vmem:[%s20596_s1 + $0x480] sm:$0xf]  ;;  %v573_v9 = vunpack.c.l.b16 %v35_v3  ;;  %v12955_v12 = vld [vmem:[%s20596_s1 + $0x58c] sm:$0xf0]  ;;  %v574_v15 = vunpack.c.h.b16 %v35_v3  ;;  %3261 = vmatpush.bf16.msrb.mxu2 %v9336_v4  ;;  %v38_v3 = vld [vmem:[%s20597_s0 + $0x18] sm:$0xff] }
  0x2f   :  { %v9191_v7 = vld [vmem:[%s20596_s1 + $0x580] sm:$0xf]  ;;  %v12987_v14 = vld [vmem:[%s20596_s1 + $0x68c] sm:$0xf0]  ;;  %v9064_v21 = vor.u32 %v12923_v6, %v9063_v5  ;;  %3274 = vmatpush.bf16.msrb.mxu3 %v9464_v11 }
  0x30   :  { %v9319_v13 = vld [vmem:[%s20596_s1 + $0x680] sm:$0xf]  ;;  %v13019_v17 = vld [vmem:[%s20596_s1 + $0x78c] sm:$0xf0]  ;;  %v14204_v19 = vpack.c.b16 %v573_v9, %v573_v9  ;;  %v14208_v22 = vpack.c.b16 %v574_v15, %v574_v15  ;;  %v9192_v23 = vor.u32 %v12955_v12, %v9191_v7  ;;  %v579_v15 = vunpack.c.l.b16 %v38_v3 }
  0x31   :  { %v9447_v16 = vld [vmem:[%s20596_s1 + $0x780] sm:$0xf]  ;;  %v9320_v24 = vor.u32 %v12987_v14, %v9319_v13  ;;  %v12919_v26 = vld [vmem:[%s20596_s1 + $0x46c] sm:$0xf0]  ;;  %3236 = vmatpush.bf16.msrb.mxu0 %v9064_v21 }
  0x32   :  { %v9047_v25 = vld [vmem:[%s20596_s1 + $0x460] sm:$0xf]  ;;  %v9448_v28 = vor.u32 %v13019_v17, %v9447_v16  ;;  %v12951_v29 = vld [vmem:[%s20596_s1 + $0x56c] sm:$0xf0]  ;;  %3189 = vmatmul.bf16.vlgmr.msra.gmra.mxu0 %v14204_v19  ;;  %3202 = vmatmul.bf16.vlgmr.msra.gmra.mxu1 %v14208_v22 }
  0x33   :  { %v9175_v27 = vld [vmem:[%s20596_s1 + $0x560] sm:$0xf]  ;;  %v12983_v31 = vld [vmem:[%s20596_s1 + $0x66c] sm:$0xf0]  ;;  %v9048_v34 = vor.u32 %v12919_v26, %v9047_v25  ;;  %3249 = vmatpush.bf16.msrb.mxu1 %v9192_v23  ;;  %3262 = vmatpush.bf16.msrb.mxu2 %v9320_v24  ;;  %v580_v25 = vunpack.c.h.b16 %v38_v3 }
  0x34   :  { %v9303_v30 = vld [vmem:[%s20596_s1 + $0x660] sm:$0xf]  ;;  %v13015_v33 = vld [vmem:[%s20596_s1 + $0x76c] sm:$0xf0]  ;;  %v9176_v35 = vor.u32 %v12951_v29, %v9175_v27  ;;  %3275 = vmatpush.bf16.msrb.mxu3 %v9448_v28 }
  0x35   :  { %v9431_v32 = vld [vmem:[%s20596_s1 + $0x760] sm:$0xf]  ;;  %v9304_v36 = vor.u32 %v12983_v31, %v9303_v30  ;;  %v12915_v38 = vld [vmem:[%s20596_s1 + $0x44c] sm:$0xf0]  ;;  %3237 = vmatpush.bf16.msrb.mxu0 %v9048_v34 }
  0x36   :  { %v9031_v37 = vld [vmem:[%s20596_s1 + $0x440] sm:$0xf]  ;;  %v9432_v40 = vor.u32 %v13015_v33, %v9431_v32  ;;  %v12947_v41 = vld [vmem:[%s20596_s1 + $0x54c] sm:$0xf0] }
  0x37   :  { %v9159_v39 = vld [vmem:[%s20596_s1 + $0x540] sm:$0xf]  ;;  %v12979_v43 = vld [vmem:[%s20596_s1 + $0x64c] sm:$0xf0]  ;;  %v9032_v46 = vor.u32 %v12915_v38, %v9031_v37  ;;  %3250 = vmatpush.bf16.msrb.mxu1 %v9176_v35  ;;  %3263 = vmatpush.bf16.msrb.mxu2 %v9304_v36  ;;  %v14358_v38 = vpack.c.b16 %v579_v15, %v579_v15 }
  0x38   :  { %v9287_v42 = vld [vmem:[%s20596_s1 + $0x640] sm:$0xf]  ;;  %v13011_v45 = vld [vmem:[%s20596_s1 + $0x74c] sm:$0xf0]  ;;  %v9160_v47 = vor.u32 %v12947_v41, %v9159_v39  ;;  %3276 = vmatpush.bf16.msrb.mxu3 %v9432_v40 }
  0x39   :  { %v9415_v44 = vld [vmem:[%s20596_s1 + $0x740] sm:$0xf]  ;;  %v9288_v48 = vor.u32 %v12979_v43, %v9287_v42  ;;  %v12911_v50 = vld [vmem:[%s20596_s1 + $0x42c] sm:$0xf0]  ;;  %3238 = vmatpush.bf16.msrb.mxu0 %v9032_v46  ;;  %v14368_v42 = vpack.c.b16 %v580_v25, %v580_v25 }
  0x3a   :  { %v9015_v49 = vld [vmem:[%s20596_s1 + $0x420] sm:$0xf]  ;;  %v9416_v52 = vor.u32 %v13011_v45, %v9415_v44  ;;  %v12943_v53 = vld [vmem:[%s20596_s1 + $0x52c] sm:$0xf0] }
  0x3b   :  { %v9143_v51 = vld [vmem:[%s20596_s1 + $0x520] sm:$0xf]  ;;  %v12975_v55 = vld [vmem:[%s20596_s1 + $0x62c] sm:$0xf0]  ;;  %v9016_v59 = vor.u32 %v12911_v50, %v9015_v49  ;;  %3251 = vmatpush.bf16.msrb.mxu1 %v9160_v47  ;;  %3264 = vmatpush.bf16.msrb.mxu2 %v9288_v48 }
  0x3c   :  { %v9271_v54 = vld [vmem:[%s20596_s1 + $0x620] sm:$0xf]  ;;  %v13007_v57 = vld [vmem:[%s20596_s1 + $0x72c] sm:$0xf0]  ;;  %v9144_v63 = vor.u32 %v12943_v53, %v9143_v51  ;;  %3277 = vmatpush.bf16.msrb.mxu3 %v9416_v52 }
  0x3d   :  { %v9399_v56 = vld [vmem:[%s20596_s1 + $0x720] sm:$0xf]  ;;  %v12907_v60 = vld [vmem:[%s20596_s1 + $0x40c] sm:$0xf0]  ;;  %v9272_v0 = vor.u32 %v12975_v55, %v9271_v54  ;;  %3239 = vmatpush.bf16.msrb.mxu0 %v9016_v59 }
  0x3e   :  { %v8999_v58 = vld [vmem:[%s20596_s1 + $0x400] sm:$0xf]  ;;  %v12939_v62 = vld [vmem:[%s20596_s1 + $0x50c] sm:$0xf0]  ;;  %v9400_v4 = vor.u32 %v13007_v57, %v9399_v56 }
  0x3f   :  { %v9127_v61 = vld [vmem:[%s20596_s1 + $0x500] sm:$0xf]  ;;  %v12971_v2 = vld [vmem:[%s20596_s1 + $0x60c] sm:$0xf0]  ;;  %v9000_v11 = vor.u32 %v12907_v60, %v8999_v58  ;;  %3252 = vmatpush.bf16.msrb.mxu1 %v9144_v63  ;;  %3265 = vmatpush.bf16.msrb.mxu2 %v9272_v0 }
  0x40   :  { %v9255_v1 = vld [vmem:[%s20596_s1 + $0x600] sm:$0xf]  ;;  %v13003_v6 = vld [vmem:[%s20596_s1 + $0x70c] sm:$0xf0]  ;;  %v9128_v16 = vor.u32 %v12939_v62, %v9127_v61  ;;  %3278 = vmatpush.bf16.msrb.mxu3 %v9400_v4 }
  0x41   :  { %v9383_v5 = vld [vmem:[%s20596_s1 + $0x700] sm:$0xf]  ;;  %v37_v7 = vld [vmem:[%s20597_s0 + $0x10] sm:$0xff]  ;;  %v9256_v17 = vor.u32 %v12971_v2, %v9255_v1  ;;  %3240 = vmatpush.bf16.msrb.mxu0 %v9000_v11 }
  0x42   :  { %v9623_v8 = vld [vmem:[%s20596_s1 + $0x8e0] sm:$0xf]  ;;  %v13063_v9 = vld [vmem:[%s20596_s1 + $0x8ec] sm:$0xf0]  ;;  %v577_v24 = vunpack.c.l.b16 %v37_v7  ;;  %v9384_v26 = vor.u32 %v13003_v6, %v9383_v5  ;;  %v578_v28 = vunpack.c.h.b16 %v37_v7 }
  0x43   :  { %v9751_v10 = vld [vmem:[%s20596_s1 + $0x9e0] sm:$0xf]  ;;  %v13095_v12 = vld [vmem:[%s20596_s1 + $0x9ec] sm:$0xf0]  ;;  %v9624_v27 = vor.u32 %v13063_v9, %v9623_v8  ;;  %3253 = vmatpush.bf16.msrb.mxu1 %v9128_v16  ;;  %3266 = vmatpush.bf16.msrb.mxu2 %v9256_v17 }
  0x44   :  { %v9879_v13 = vld [vmem:[%s20596_s1 + $0xae0] sm:$0xf]  ;;  %v13127_v14 = vld [vmem:[%s20596_s1 + $0xaec] sm:$0xf0]  ;;  %v9752_v29 = vor.u32 %v13095_v12, %v9751_v10  ;;  %v14366_v41 = vpack.c.b16 %v577_v24, %v577_v24  ;;  %3279 = vmatpush.bf16.msrb.mxu3 %v9384_v26  ;;  %v14370_v44 = vpack.c.b16 %v578_v28, %v578_v28 }
  0x45   :  { %v10007_v21 = vld [vmem:[%s20596_s1 + $0xbe0] sm:$0xf]  ;;  %v13159_v23 = vld [vmem:[%s20596_s1 + $0xbec] sm:$0xf0]  ;;  %v9880_v30 = vor.u32 %v13127_v14, %v9879_v13  ;;  %3285 = vmatpush.bf16.msra.mxu0 %v9624_v27 }
  0x46   :  { %v9607_v31 = vld [vmem:[%s20596_s1 + $0x8c0] sm:$0xf]  ;;  %v13059_v32 = vld [vmem:[%s20596_s1 + $0x8cc] sm:$0xf0]  ;;  %v10008_v34 = vor.u32 %v13159_v23, %v10007_v21  ;;  %3267 = vmatmul.bf16.vlgmr.msrb.gmra.mxu2 %v14358_v38  ;;  %3241 = vmatmul.bf16.vlgmr.msrb.gmra.mxu0 %v14366_v41 }
  0x47   :  { %v9735_v33 = vld [vmem:[%s20596_s1 + $0x9c0] sm:$0xf]  ;;  %v13091_v35 = vld [vmem:[%s20596_s1 + $0x9cc] sm:$0xf0]  ;;  %v9608_v43 = vor.u32 %v13059_v32, %v9607_v31  ;;  %3298 = vmatpush.bf16.msra.mxu1 %v9752_v29  ;;  %3311 = vmatpush.bf16.msra.mxu2 %v9880_v30 }
  0x48   :  { %v9863_v36 = vld [vmem:[%s20596_s1 + $0xac0] sm:$0xf]  ;;  %v13123_v37 = vld [vmem:[%s20596_s1 + $0xacc] sm:$0xf0]  ;;  %v9736_v45 = vor.u32 %v13091_v35, %v9735_v33  ;;  %3324 = vmatpush.bf16.msra.mxu3 %v10008_v34  ;;  %3254 = vmatmul.bf16.vlgmr.msrb.gmra.mxu1 %v14370_v44 }
  0x49   :  { %v9991_v39 = vld [vmem:[%s20596_s1 + $0xbc0] sm:$0xf]  ;;  %v13155_v40 = vld [vmem:[%s20596_s1 + $0xbcc] sm:$0xf0]  ;;  %v9864_v46 = vor.u32 %v13123_v37, %v9863_v36  ;;  %3280 = vmatmul.bf16.vlgmr.msrb.gmra.mxu3 %v14368_v42  ;;  %3286 = vmatpush.bf16.msra.mxu0 %v9608_v43 }
  0x4a   :  { %v9591_v47 = vld [vmem:[%s20596_s1 + $0x8a0] sm:$0xf]  ;;  %v13055_v48 = vld [vmem:[%s20596_s1 + $0x8ac] sm:$0xf0]  ;;  %v9992_v50 = vor.u32 %v13155_v40, %v9991_v39 }
  0x4b   :  { %v9719_v49 = vld [vmem:[%s20596_s1 + $0x9a0] sm:$0xf]  ;;  %v13087_v51 = vld [vmem:[%s20596_s1 + $0x9ac] sm:$0xf0]  ;;  %v9592_v56 = vor.u32 %v13055_v48, %v9591_v47  ;;  %3299 = vmatpush.bf16.msra.mxu1 %v9736_v45  ;;  %3312 = vmatpush.bf16.msra.mxu2 %v9864_v46 }
  0x4c   :  { %v9847_v52 = vld [vmem:[%s20596_s1 + $0xaa0] sm:$0xf]  ;;  %v13119_v53 = vld [vmem:[%s20596_s1 + $0xaac] sm:$0xf0]  ;;  %v9720_v57 = vor.u32 %v13087_v51, %v9719_v49  ;;  %3325 = vmatpush.bf16.msra.mxu3 %v9992_v50 }
  0x4d   :  { %v9975_v54 = vld [vmem:[%s20596_s1 + $0xba0] sm:$0xf]  ;;  %v13151_v55 = vld [vmem:[%s20596_s1 + $0xbac] sm:$0xf0]  ;;  %v9848_v58 = vor.u32 %v13119_v53, %v9847_v52  ;;  %3287 = vmatpush.bf16.msra.mxu0 %v9592_v56 }
  0x4e   :  { %v9575_v59 = vld [vmem:[%s20596_s1 + $0x880] sm:$0xf]  ;;  %v13051_v60 = vld [vmem:[%s20596_s1 + $0x88c] sm:$0xf0]  ;;  %v9976_v62 = vor.u32 %v13151_v55, %v9975_v54 }
  0x4f   :  { %v9703_v61 = vld [vmem:[%s20596_s1 + $0x980] sm:$0xf]  ;;  %v13083_v63 = vld [vmem:[%s20596_s1 + $0x98c] sm:$0xf0]  ;;  %v9576_v4 = vor.u32 %v13051_v60, %v9575_v59  ;;  %3300 = vmatpush.bf16.msra.mxu1 %v9720_v57  ;;  %3313 = vmatpush.bf16.msra.mxu2 %v9848_v58 }
  0x50   :  { %v9831_v0 = vld [vmem:[%s20596_s1 + $0xa80] sm:$0xf]  ;;  %v13115_v1 = vld [vmem:[%s20596_s1 + $0xa8c] sm:$0xf0]  ;;  %v9704_v5 = vor.u32 %v13083_v63, %v9703_v61  ;;  %3326 = vmatpush.bf16.msra.mxu3 %v9976_v62  ;;  %v40_v61 = vld [vmem:[%s20597_s0 + $0x28] sm:$0xff] }
  0x51   :  { %v9959_v2 = vld [vmem:[%s20596_s1 + $0xb80] sm:$0xf]  ;;  %v13147_v3 = vld [vmem:[%s20596_s1 + $0xb8c] sm:$0xf0]  ;;  %v9832_v6 = vor.u32 %v13115_v1, %v9831_v0  ;;  %3288 = vmatpush.bf16.msra.mxu0 %v9576_v4 }
  0x52   :  { %v9559_v7 = vld [vmem:[%s20596_s1 + $0x860] sm:$0xf]  ;;  %v13047_v8 = vld [vmem:[%s20596_s1 + $0x86c] sm:$0xf0]  ;;  %v9960_v10 = vor.u32 %v13147_v3, %v9959_v2 }
  0x53   :  { %v9687_v9 = vld [vmem:[%s20596_s1 + $0x960] sm:$0xf]  ;;  %v13079_v11 = vld [vmem:[%s20596_s1 + $0x96c] sm:$0xf0]  ;;  %v9560_v16 = vor.u32 %v13047_v8, %v9559_v7  ;;  %3301 = vmatpush.bf16.msra.mxu1 %v9704_v5  ;;  %3314 = vmatpush.bf16.msra.mxu2 %v9832_v6 }
  0x54   :  { %v9815_v12 = vld [vmem:[%s20596_s1 + $0xa60] sm:$0xf]  ;;  %v13111_v13 = vld [vmem:[%s20596_s1 + $0xa6c] sm:$0xf0]  ;;  %v9688_v17 = vor.u32 %v13079_v11, %v9687_v9  ;;  %3327 = vmatpush.bf16.msra.mxu3 %v9960_v10  ;;  %v583_v10 = vunpack.c.l.b16 %v40_v61 }
  0x55   :  { %v9943_v14 = vld [vmem:[%s20596_s1 + $0xb60] sm:$0xf]  ;;  %v13143_v15 = vld [vmem:[%s20596_s1 + $0xb6c] sm:$0xf0]  ;;  %v9816_v21 = vor.u32 %v13111_v13, %v9815_v12  ;;  %3289 = vmatpush.bf16.msra.mxu0 %v9560_v16 }
  0x56   :  { %v9543_v23 = vld [vmem:[%s20596_s1 + $0x840] sm:$0xf]  ;;  %v13043_v24 = vld [vmem:[%s20596_s1 + $0x84c] sm:$0xf0]  ;;  %v9944_v26 = vor.u32 %v13143_v15, %v9943_v14  ;;  %v584_v14 = vunpack.c.h.b16 %v40_v61 }
  0x57   :  { %v9671_v25 = vld [vmem:[%s20596_s1 + $0x940] sm:$0xf]  ;;  %v13075_v27 = vld [vmem:[%s20596_s1 + $0x94c] sm:$0xf0]  ;;  %v9544_v32 = vor.u32 %v13043_v24, %v9543_v23  ;;  %3302 = vmatpush.bf16.msra.mxu1 %v9688_v17  ;;  %3315 = vmatpush.bf16.msra.mxu2 %v9816_v21 }
  0x58   :  { %v9799_v28 = vld [vmem:[%s20596_s1 + $0xa40] sm:$0xf]  ;;  %v13107_v29 = vld [vmem:[%s20596_s1 + $0xa4c] sm:$0xf0]  ;;  %v9672_v33 = vor.u32 %v13075_v27, %v9671_v25  ;;  %3328 = vmatpush.bf16.msra.mxu3 %v9944_v26 }
  0x59   :  { %v9927_v30 = vld [vmem:[%s20596_s1 + $0xb40] sm:$0xf]  ;;  %v13139_v31 = vld [vmem:[%s20596_s1 + $0xb4c] sm:$0xf0]  ;;  %v9800_v34 = vor.u32 %v13107_v29, %v9799_v28  ;;  %3290 = vmatpush.bf16.msra.mxu0 %v9544_v32  ;;  %v14570_v29 = vpack.c.b16 %v583_v10, %v583_v10 }
  0x5a   :  { %v9527_v35 = vld [vmem:[%s20596_s1 + $0x820] sm:$0xf]  ;;  %v13039_v36 = vld [vmem:[%s20596_s1 + $0x82c] sm:$0xf0]  ;;  %v9928_v39 = vor.u32 %v13139_v31, %v9927_v30 }
  0x5b   :  { %v9655_v37 = vld [vmem:[%s20596_s1 + $0x920] sm:$0xf]  ;;  %v13071_v40 = vld [vmem:[%s20596_s1 + $0x92c] sm:$0xf0]  ;;  %v9528_v49 = vor.u32 %v13039_v36, %v9527_v35  ;;  %3303 = vmatpush.bf16.msra.mxu1 %v9672_v33  ;;  %3316 = vmatpush.bf16.msra.mxu2 %v9800_v34  ;;  %v14580_v33 = vpack.c.b16 %v584_v14, %v584_v14 }
  0x5c   :  { %v9783_v43 = vld [vmem:[%s20596_s1 + $0xa20] sm:$0xf]  ;;  %v13103_v45 = vld [vmem:[%s20596_s1 + $0xa2c] sm:$0xf0]  ;;  %v9656_v53 = vor.u32 %v13071_v40, %v9655_v37  ;;  %3329 = vmatpush.bf16.msra.mxu3 %v9928_v39 }
  0x5d   :  { %v9911_v46 = vld [vmem:[%s20596_s1 + $0xb20] sm:$0xf]  ;;  %v13135_v47 = vld [vmem:[%s20596_s1 + $0xb2c] sm:$0xf0]  ;;  %v9784_v54 = vor.u32 %v13103_v45, %v9783_v43  ;;  %3291 = vmatpush.bf16.msra.mxu0 %v9528_v49 }
  0x5e   :  { %v9511_v48 = vld [vmem:[%s20596_s1 + $0x800] sm:$0xf]  ;;  %v13035_v50 = vld [vmem:[%s20596_s1 + $0x80c] sm:$0xf0]  ;;  %v9912_v58 = vor.u32 %v13135_v47, %v9911_v46 }
  0x5f   :  { %v9639_v51 = vld [vmem:[%s20596_s1 + $0x900] sm:$0xf]  ;;  %v13067_v52 = vld [vmem:[%s20596_s1 + $0x90c] sm:$0xf0]  ;;  %v9512_v1 = vor.u32 %v13035_v50, %v9511_v48  ;;  %3304 = vmatpush.bf16.msra.mxu1 %v9656_v53  ;;  %3317 = vmatpush.bf16.msra.mxu2 %v9784_v54 }
  0x60   :  { %v9767_v55 = vld [vmem:[%s20596_s1 + $0xa00] sm:$0xf]  ;;  %v13099_v56 = vld [vmem:[%s20596_s1 + $0xa0c] sm:$0xf0]  ;;  %v9640_v6 = vor.u32 %v13067_v52, %v9639_v51  ;;  %3330 = vmatpush.bf16.msra.mxu3 %v9912_v58 }
  0x61   :  { %v39_v57 = vld [vmem:[%s20597_s0 + $0x20] sm:$0xff]  ;;  %v13131_v60 = vld [vmem:[%s20596_s1 + $0xb0c] sm:$0xf0]  ;;  %v9768_v7 = vor.u32 %v13099_v56, %v9767_v55  ;;  %3292 = vmatpush.bf16.msra.mxu0 %v9512_v1 }
  0x62   :  { %v9895_v59 = vld [vmem:[%s20596_s1 + $0xb00] sm:$0xf]  ;;  %v13191_v63 = vld [vmem:[%s20596_s1 + $0xcec] sm:$0xf0]  ;;  %v581_v5 = vunpack.c.l.b16 %v39_v57  ;;  %v582_v11 = vunpack.c.h.b16 %v39_v57 }
  0x63   :  { %v10135_v62 = vld [vmem:[%s20596_s1 + $0xce0] sm:$0xf]  ;;  %v13223_v2 = vld [vmem:[%s20596_s1 + $0xdec] sm:$0xf0]  ;;  %v9896_v12 = vor.u32 %v13131_v60, %v9895_v59  ;;  %3305 = vmatpush.bf16.msra.mxu1 %v9640_v6  ;;  %3318 = vmatpush.bf16.msra.mxu2 %v9768_v7 }
  0x64   :  { %v10263_v0 = vld [vmem:[%s20596_s1 + $0xde0] sm:$0xf]  ;;  %v13255_v4 = vld [vmem:[%s20596_s1 + $0xeec] sm:$0xf0]  ;;  %v10136_v13 = vor.u32 %v13191_v63, %v10135_v62  ;;  %v14559_v25 = vpack.c.b16 %v581_v5, %v581_v5  ;;  %v14572_v30 = vpack.c.b16 %v582_v11, %v582_v11 }
  0x65   :  { %v10391_v3 = vld [vmem:[%s20596_s1 + $0xee0] sm:$0xf]  ;;  %v13287_v9 = vld [vmem:[%s20596_s1 + $0xfec] sm:$0xf0]  ;;  %v10264_v15 = vor.u32 %v13223_v2, %v10263_v0  ;;  %3331 = vmatpush.bf16.msra.mxu3 %v9896_v12 }
  0x66   :  { %v10519_v8 = vld [vmem:[%s20596_s1 + $0xfe0] sm:$0xf]  ;;  %v10392_v16 = vor.u32 %v13255_v4, %v10391_v3  ;;  %v13187_v21 = vld [vmem:[%s20596_s1 + $0xccc] sm:$0xf0]  ;;  %3337 = vmatpush.bf16.msrb.mxu0 %v10136_v13  ;;  %3319 = vmatmul.bf16.vlgmr.msra.gmra.mxu2 %v14570_v29 }
  0x67   :  { %v10119_v17 = vld [vmem:[%s20596_s1 + $0xcc0] sm:$0xf]  ;;  %v10520_v24 = vor.u32 %v13287_v9, %v10519_v8  ;;  %v13219_v26 = vld [vmem:[%s20596_s1 + $0xdcc] sm:$0xf0]  ;;  %3350 = vmatpush.bf16.msrb.mxu1 %v10264_v15  ;;  %3293 = vmatmul.bf16.vlgmr.msra.gmra.mxu0 %v14559_v25 }
  0x68   :  { %v10247_v23 = vld [vmem:[%s20596_s1 + $0xdc0] sm:$0xf]  ;;  %v13251_v28 = vld [vmem:[%s20596_s1 + $0xecc] sm:$0xf0]  ;;  %v10120_v34 = vor.u32 %v13187_v21, %v10119_v17  ;;  %3363 = vmatpush.bf16.msrb.mxu2 %v10392_v16  ;;  %3306 = vmatmul.bf16.vlgmr.msra.gmra.mxu1 %v14572_v30 }
  0x69   :  { %v10375_v27 = vld [vmem:[%s20596_s1 + $0xec0] sm:$0xf]  ;;  %v13283_v32 = vld [vmem:[%s20596_s1 + $0xfcc] sm:$0xf0]  ;;  %v10248_v35 = vor.u32 %v13219_v26, %v10247_v23  ;;  %3376 = vmatpush.bf16.msrb.mxu3 %v10520_v24 }
  0x6a   :  { %v10503_v31 = vld [vmem:[%s20596_s1 + $0xfc0] sm:$0xf]  ;;  %v10376_v36 = vor.u32 %v13251_v28, %v10375_v27  ;;  %v13183_v39 = vld [vmem:[%s20596_s1 + $0xcac] sm:$0xf0]  ;;  %3332 = vmatmul.bf16.vlgmr.msra.gmra.mxu3 %v14580_v33  ;;  %3338 = vmatpush.bf16.msrb.mxu0 %v10120_v34 }
  0x6b   :  { %v10103_v37 = vld [vmem:[%s20596_s1 + $0xca0] sm:$0xf]  ;;  %v10504_v43 = vor.u32 %v13283_v32, %v10503_v31  ;;  %v13215_v45 = vld [vmem:[%s20596_s1 + $0xdac] sm:$0xf0]  ;;  %3351 = vmatpush.bf16.msrb.mxu1 %v10248_v35 }
  0x6c   :  { %v10231_v40 = vld [vmem:[%s20596_s1 + $0xda0] sm:$0xf]  ;;  %v13247_v47 = vld [vmem:[%s20596_s1 + $0xeac] sm:$0xf0]  ;;  %v10104_v50 = vor.u32 %v13183_v39, %v10103_v37  ;;  %3364 = vmatpush.bf16.msrb.mxu2 %v10376_v36 }
  0x6d   :  { %v10359_v46 = vld [vmem:[%s20596_s1 + $0xea0] sm:$0xf]  ;;  %v13279_v49 = vld [vmem:[%s20596_s1 + $0xfac] sm:$0xf0]  ;;  %v10232_v51 = vor.u32 %v13215_v45, %v10231_v40  ;;  %3377 = vmatpush.bf16.msrb.mxu3 %v10504_v43 }
  0x6e   :  { %v10487_v48 = vld [vmem:[%s20596_s1 + $0xfa0] sm:$0xf]  ;;  %v10360_v52 = vor.u32 %v13247_v47, %v10359_v46  ;;  %v13179_v54 = vld [vmem:[%s20596_s1 + $0xc8c] sm:$0xf0]  ;;  %3339 = vmatpush.bf16.msrb.mxu0 %v10104_v50 }
  0x6f   :  { %v10087_v53 = vld [vmem:[%s20596_s1 + $0xc80] sm:$0xf]  ;;  %v10488_v56 = vor.u32 %v13279_v49, %v10487_v48  ;;  %v13211_v57 = vld [vmem:[%s20596_s1 + $0xd8c] sm:$0xf0]  ;;  %3352 = vmatpush.bf16.msrb.mxu1 %v10232_v51 }
  0x70   :  { %v10215_v55 = vld [vmem:[%s20596_s1 + $0xd80] sm:$0xf]  ;;  %v13243_v59 = vld [vmem:[%s20596_s1 + $0xe8c] sm:$0xf0]  ;;  %v10088_v62 = vor.u32 %v13179_v54, %v10087_v53  ;;  %3365 = vmatpush.bf16.msrb.mxu2 %v10360_v52 }
  0x71   :  { %v10343_v58 = vld [vmem:[%s20596_s1 + $0xe80] sm:$0xf]  ;;  %v13275_v61 = vld [vmem:[%s20596_s1 + $0xf8c] sm:$0xf0]  ;;  %v10216_v63 = vor.u32 %v13211_v57, %v10215_v55  ;;  %3378 = vmatpush.bf16.msrb.mxu3 %v10488_v56 }
  0x72   :  { %v10471_v60 = vld [vmem:[%s20596_s1 + $0xf80] sm:$0xf]  ;;  %v10344_v0 = vor.u32 %v13243_v59, %v10343_v58  ;;  %v13175_v2 = vld [vmem:[%s20596_s1 + $0xc6c] sm:$0xf0]  ;;  %3340 = vmatpush.bf16.msrb.mxu0 %v10088_v62  ;;  %v42_v59 = vld [vmem:[%s20597_s0 + $0x38] sm:$0xff] }
  0x73   :  { %v10071_v1 = vld [vmem:[%s20596_s1 + $0xc60] sm:$0xf]  ;;  %v10472_v4 = vor.u32 %v13275_v61, %v10471_v60  ;;  %v13207_v5 = vld [vmem:[%s20596_s1 + $0xd6c] sm:$0xf0]  ;;  %3353 = vmatpush.bf16.msrb.mxu1 %v10216_v63  ;;  %v12805_v60 = vld [vmem:[%s20596_s1 + $0xe4] sm:$0xf] }
  0x74   :  { %v10199_v3 = vld [vmem:[%s20596_s1 + $0xd60] sm:$0xf]  ;;  %v13239_v7 = vld [vmem:[%s20596_s1 + $0xe6c] sm:$0xf0]  ;;  %v10072_v10 = vor.u32 %v13175_v2, %v10071_v1  ;;  %3366 = vmatpush.bf16.msrb.mxu2 %v10344_v0  ;;  %v8601_v61 = vld [vmem:[%s20596_s1 + $0xf0] sm:$0xf0] }
  0x75   :  { %v10327_v6 = vld [vmem:[%s20596_s1 + $0xe60] sm:$0xf]  ;;  %v13271_v9 = vld [vmem:[%s20596_s1 + $0xf6c] sm:$0xf0]  ;;  %v10200_v11 = vor.u32 %v13207_v5, %v10199_v3  ;;  %3379 = vmatpush.bf16.msrb.mxu3 %v10472_v4  ;;  %v12837_v62 = vld [vmem:[%s20596_s1 + $0x1e4] sm:$0xf] }
  0x76   :  { %v10455_v8 = vld [vmem:[%s20596_s1 + $0xf60] sm:$0xf]  ;;  %v10328_v12 = vor.u32 %v13239_v7, %v10327_v6  ;;  %v13171_v14 = vld [vmem:[%s20596_s1 + $0xc4c] sm:$0xf0]  ;;  %3341 = vmatpush.bf16.msrb.mxu0 %v10072_v10  ;;  %v8729_v0 = vld [vmem:[%s20596_s1 + $0x1f0] sm:$0xf0] }
  0x77   :  { %v10055_v13 = vld [vmem:[%s20596_s1 + $0xc40] sm:$0xf]  ;;  %v10456_v16 = vor.u32 %v13271_v9, %v10455_v8  ;;  %v13203_v17 = vld [vmem:[%s20596_s1 + $0xd4c] sm:$0xf0]  ;;  %3354 = vmatpush.bf16.msrb.mxu1 %v10200_v11  ;;  %v12869_v1 = vld [vmem:[%s20596_s1 + $0x2e4] sm:$0xf]  ;;  %v587_v8 = vunpack.c.l.b16 %v42_v59  ;;  %v8604_v11 = vor.u32 %v12805_v60, %v8601_v61 }
  0x78   :  { %v10183_v15 = vld [vmem:[%s20596_s1 + $0xd40] sm:$0xf]  ;;  %v13235_v23 = vld [vmem:[%s20596_s1 + $0xe4c] sm:$0xf0]  ;;  %v10056_v27 = vor.u32 %v13171_v14, %v10055_v13  ;;  %3367 = vmatpush.bf16.msrb.mxu2 %v10328_v12  ;;  %v8857_v2 = vld [vmem:[%s20596_s1 + $0x2f0] sm:$0xf0]  ;;  %v588_v12 = vunpack.c.h.b16 %v42_v59  ;;  %v8732_v13 = vor.u32 %v12837_v62, %v8729_v0 }
  0x79   :  { %v10311_v21 = vld [vmem:[%s20596_s1 + $0xe40] sm:$0xf]  ;;  %v13267_v26 = vld [vmem:[%s20596_s1 + $0xf4c] sm:$0xf0]  ;;  %v10184_v28 = vor.u32 %v13203_v17, %v10183_v15  ;;  %3380 = vmatpush.bf16.msrb.mxu3 %v10456_v16  ;;  %v12901_v6 = vld [vmem:[%s20596_s1 + $0x3e4] sm:$0xf]  ;;  %v8860_v14 = vor.u32 %v12869_v1, %v8857_v2 }
  0x7a   :  { %v10439_v24 = vld [vmem:[%s20596_s1 + $0xf40] sm:$0xf]  ;;  %v10312_v31 = vor.u32 %v13235_v23, %v10311_v21  ;;  %v13167_v34 = vld [vmem:[%s20596_s1 + $0xc2c] sm:$0xf0]  ;;  %3342 = vmatpush.bf16.msrb.mxu0 %v10056_v27  ;;  %v8985_v7 = vld [vmem:[%s20596_s1 + $0x3f0] sm:$0xf0] }
  0x7b   :  { %v10039_v32 = vld [vmem:[%s20596_s1 + $0xc20] sm:$0xf]  ;;  %v10440_v36 = vor.u32 %v13267_v26, %v10439_v24  ;;  %v13199_v37 = vld [vmem:[%s20596_s1 + $0xd2c] sm:$0xf0]  ;;  %3355 = vmatpush.bf16.msrb.mxu1 %v10184_v28  ;;  %v12801_v15 = vld [vmem:[%s20596_s1 + $0xc4] sm:$0xf]  ;;  %v8988_v21 = vor.u32 %v12901_v6, %v8985_v7  ;;  %v14780_v28 = vpack.c.b16 %v587_v8, %v587_v8 }
  0x7c   :  { %v10167_v35 = vld [vmem:[%s20596_s1 + $0xd20] sm:$0xf]  ;;  %v13231_v40 = vld [vmem:[%s20596_s1 + $0xe2c] sm:$0xf0]  ;;  %v10040_v47 = vor.u32 %v13167_v34, %v10039_v32  ;;  %3368 = vmatpush.bf16.msrb.mxu2 %v10312_v31  ;;  %v8585_v16 = vld [vmem:[%s20596_s1 + $0xd0] sm:$0xf0] }
  0x7d   :  { %v10295_v39 = vld [vmem:[%s20596_s1 + $0xe20] sm:$0xf]  ;;  %v13263_v45 = vld [vmem:[%s20596_s1 + $0xf2c] sm:$0xf0]  ;;  %v10168_v51 = vor.u32 %v13199_v37, %v10167_v35  ;;  %3381 = vmatpush.bf16.msrb.mxu3 %v10440_v36  ;;  %v12833_v17 = vld [vmem:[%s20596_s1 + $0x1c4] sm:$0xf]  ;;  %v14790_v35 = vpack.c.b16 %v588_v12, %v588_v12  ;;  %v8588_v36 = vor.u32 %v12801_v15, %v8585_v16 }
  0x7e   :  { %v10423_v43 = vld [vmem:[%s20596_s1 + $0xf20] sm:$0xf]  ;;  %v13163_v48 = vld [vmem:[%s20596_s1 + $0xc0c] sm:$0xf0]  ;;  %v10296_v52 = vor.u32 %v13231_v40, %v10295_v39  ;;  %3343 = vmatpush.bf16.msrb.mxu0 %v10040_v47  ;;  %v8713_v24 = vld [vmem:[%s20596_s1 + $0x1d0] sm:$0xf0] }
  0x7f   :  { %v10023_v46 = vld [vmem:[%s20596_s1 + $0xc00] sm:$0xf]  ;;  %v13195_v50 = vld [vmem:[%s20596_s1 + $0xd0c] sm:$0xf0]  ;;  %v10424_v56 = vor.u32 %v13263_v45, %v10423_v43  ;;  %3356 = vmatpush.bf16.msrb.mxu1 %v10168_v51  ;;  %v12865_v26 = vld [vmem:[%s20596_s1 + $0x2c4] sm:$0xf]  ;;  %v8716_v37 = vor.u32 %v12833_v17, %v8713_v24 }
  0x80   :  { %v10151_v49 = vld [vmem:[%s20596_s1 + $0xd00] sm:$0xf]  ;;  %v13227_v54 = vld [vmem:[%s20596_s1 + $0xe0c] sm:$0xf0]  ;;  %v10024_v63 = vor.u32 %v13163_v48, %v10023_v46  ;;  %3369 = vmatpush.bf16.msrb.mxu2 %v10296_v52  ;;  %v8841_v27 = vld [vmem:[%s20596_s1 + $0x2d0] sm:$0xf0] }
  0x81   :  { %v10279_v53 = vld [vmem:[%s20596_s1 + $0xe00] sm:$0xf]  ;;  %v41_v55 = vld [vmem:[%s20597_s0 + $0x30] sm:$0xff]  ;;  %v10152_v4 = vor.u32 %v13195_v50, %v10151_v49  ;;  %3382 = vmatpush.bf16.msrb.mxu3 %v10424_v56  ;;  %v12897_v32 = vld [vmem:[%s20596_s1 + $0x3c4] sm:$0xf]  ;;  %v8844_v39 = vor.u32 %v12865_v26, %v8841_v27 }
  0x82   :  { %v10407_v57 = vld [vmem:[%s20596_s1 + $0xf00] sm:$0xf]  ;;  %v13259_v58 = vld [vmem:[%s20596_s1 + $0xf0c] sm:$0xf0]  ;;  %v585_v3 = vunpack.c.l.b16 %v41_v55  ;;  %v10280_v5 = vor.u32 %v13227_v54, %v10279_v53  ;;  %v586_v9 = vunpack.c.h.b16 %v41_v55  ;;  %3344 = vmatpush.bf16.msrb.mxu0 %v10024_v63  ;;  %v8969_v34 = vld [vmem:[%s20596_s1 + $0x3d0] sm:$0xf0] }
  0x83   :  { %v10408_v10 = vor.u32 %v13259_v58, %v10407_v57  ;;  %3357 = vmatpush.bf16.msrb.mxu1 %v10152_v4  ;;  %v12797_v40 = vld [vmem:[%s20596_s1 + $0xa4] sm:$0xf]  ;;  %v8569_v43 = vld [vmem:[%s20596_s1 + $0xb0] sm:$0xf0]  ;;  %v8972_v46 = vor.u32 %v12897_v32, %v8969_v34 }
  0x84   :  { %v14769_v23 = vpack.c.b16 %v585_v3, %v585_v3  ;;  %3370 = vmatpush.bf16.msrb.mxu2 %v10280_v5  ;;  %v14782_v31 = vpack.c.b16 %v586_v9, %v586_v9  ;;  %v12829_v45 = vld [vmem:[%s20596_s1 + $0x1a4] sm:$0xf]  ;;  %v8697_v47 = vld [vmem:[%s20596_s1 + $0x1b0] sm:$0xf0]  ;;  %v8572_v52 = vor.u32 %v12797_v40, %v8569_v43 }
  0x85   :  { %3383 = vmatpush.bf16.msrb.mxu3 %v10408_v10  ;;  %v12861_v48 = vld [vmem:[%s20596_s1 + $0x2a4] sm:$0xf]  ;;  %v8825_v49 = vld [vmem:[%s20596_s1 + $0x2b0] sm:$0xf0]  ;;  %v8700_v53 = vor.u32 %v12829_v45, %v8697_v47 }
  0x86   :  { %3389 = vmatpush.bf16.msra.mxu0 %v8604_v11  ;;  %3358 = vmatmul.bf16.vlgmr.msrb.gmra.mxu1 %v14782_v31  ;;  %v12893_v50 = vld [vmem:[%s20596_s1 + $0x3a4] sm:$0xf]  ;;  %v8953_v51 = vld [vmem:[%s20596_s1 + $0x3b0] sm:$0xf0]  ;;  %v8828_v54 = vor.u32 %v12861_v48, %v8825_v49 }
  0x87   :  { %3402 = vmatpush.bf16.msra.mxu1 %v8732_v13  ;;  %3345 = vmatmul.bf16.vlgmr.msrb.gmra.mxu0 %v14769_v23  ;;  %v12793_v55 = vld [vmem:[%s20596_s1 + $0x84] sm:$0xf]  ;;  %v8553_v56 = vld [vmem:[%s20596_s1 + $0x90] sm:$0xf0]  ;;  %v8956_v58 = vor.u32 %v12893_v50, %v8953_v51 }
  0x88   :  { %3415 = vmatpush.bf16.msra.mxu2 %v8860_v14  ;;  %3384 = vmatmul.bf16.vlgmr.msrb.gmra.mxu3 %v14790_v35  ;;  %v12825_v57 = vld [vmem:[%s20596_s1 + $0x184] sm:$0xf]  ;;  %v8681_v59 = vld [vmem:[%s20596_s1 + $0x190] sm:$0xf0]  ;;  %v8556_v0 = vor.u32 %v12793_v55, %v8553_v56 }
  0x89   :  { %3428 = vmatpush.bf16.msra.mxu3 %v8988_v21  ;;  %3371 = vmatmul.bf16.vlgmr.msrb.gmra.mxu2 %v14780_v28  ;;  %v12857_v60 = vld [vmem:[%s20596_s1 + $0x284] sm:$0xf]  ;;  %v8809_v61 = vld [vmem:[%s20596_s1 + $0x290] sm:$0xf0]  ;;  %v8684_v1 = vor.u32 %v12825_v57, %v8681_v59 }
  0x8a   :  { %3390 = vmatpush.bf16.msra.mxu0 %v8588_v36  ;;  %v12889_v62 = vld [vmem:[%s20596_s1 + $0x384] sm:$0xf]  ;;  %v8937_v63 = vld [vmem:[%s20596_s1 + $0x390] sm:$0xf0]  ;;  %v8812_v2 = vor.u32 %v12857_v60, %v8809_v61 }
  0x8b   :  { %3403 = vmatpush.bf16.msra.mxu1 %v8716_v37  ;;  %v12789_v3 = vld [vmem:[%s20596_s1 + $0x64] sm:$0xf]  ;;  %v8537_v4 = vld [vmem:[%s20596_s1 + $0x70] sm:$0xf0]  ;;  %v8940_v6 = vor.u32 %v12889_v62, %v8937_v63 }
  0x8c   :  { %3416 = vmatpush.bf16.msra.mxu2 %v8844_v39  ;;  %v12821_v5 = vld [vmem:[%s20596_s1 + $0x164] sm:$0xf]  ;;  %v8665_v7 = vld [vmem:[%s20596_s1 + $0x170] sm:$0xf0]  ;;  %v8540_v12 = vor.u32 %v12789_v3, %v8537_v4 }
  0x8d   :  { %3429 = vmatpush.bf16.msra.mxu3 %v8972_v46  ;;  %v12853_v8 = vld [vmem:[%s20596_s1 + $0x264] sm:$0xf]  ;;  %v8793_v9 = vld [vmem:[%s20596_s1 + $0x270] sm:$0xf0]  ;;  %v8668_v13 = vor.u32 %v12821_v5, %v8665_v7 }
  0x8e   :  { %3391 = vmatpush.bf16.msra.mxu0 %v8572_v52  ;;  %v12885_v10 = vld [vmem:[%s20596_s1 + $0x364] sm:$0xf]  ;;  %v8921_v11 = vld [vmem:[%s20596_s1 + $0x370] sm:$0xf0]  ;;  %v8796_v14 = vor.u32 %v12853_v8, %v8793_v9 }
  0x8f   :  { %3404 = vmatpush.bf16.msra.mxu1 %v8700_v53  ;;  %v12785_v15 = vld [vmem:[%s20596_s1 + $0x44] sm:$0xf]  ;;  %v8521_v16 = vld [vmem:[%s20596_s1 + $0x50] sm:$0xf0]  ;;  %v8924_v21 = vor.u32 %v12885_v10, %v8921_v11 }
  0x90   :  { %3417 = vmatpush.bf16.msra.mxu2 %v8828_v54  ;;  %v12817_v17 = vld [vmem:[%s20596_s1 + $0x144] sm:$0xf]  ;;  %v8649_v24 = vld [vmem:[%s20596_s1 + $0x150] sm:$0xf0]  ;;  %v8524_v36 = vor.u32 %v12785_v15, %v8521_v16 }
  0x91   :  { %3430 = vmatpush.bf16.msra.mxu3 %v8956_v58  ;;  %v12849_v26 = vld [vmem:[%s20596_s1 + $0x244] sm:$0xf]  ;;  %v8777_v27 = vld [vmem:[%s20596_s1 + $0x250] sm:$0xf0]  ;;  %v8652_v37 = vor.u32 %v12817_v17, %v8649_v24 }
  0x92   :  { %3392 = vmatpush.bf16.msra.mxu0 %v8556_v0  ;;  %v12881_v32 = vld [vmem:[%s20596_s1 + $0x344] sm:$0xf]  ;;  %v8905_v34 = vld [vmem:[%s20596_s1 + $0x350] sm:$0xf0]  ;;  %v8780_v39 = vor.u32 %v12849_v26, %v8777_v27 }
  0x93   :  { %3405 = vmatpush.bf16.msra.mxu1 %v8684_v1  ;;  %v12781_v40 = vld [vmem:[%s20596_s1 + $0x24] sm:$0xf]  ;;  %v8505_v43 = vld [vmem:[%s20596_s1 + $0x30] sm:$0xf0]  ;;  %v8908_v46 = vor.u32 %v12881_v32, %v8905_v34 }
  0x94   :  { %3418 = vmatpush.bf16.msra.mxu2 %v8812_v2  ;;  %v12813_v45 = vld [vmem:[%s20596_s1 + $0x124] sm:$0xf]  ;;  %v8633_v47 = vld [vmem:[%s20596_s1 + $0x130] sm:$0xf0]  ;;  %v8508_v52 = vor.u32 %v12781_v40, %v8505_v43 }
  0x95   :  { %3431 = vmatpush.bf16.msra.mxu3 %v8940_v6  ;;  %v12845_v48 = vld [vmem:[%s20596_s1 + $0x224] sm:$0xf]  ;;  %v8761_v49 = vld [vmem:[%s20596_s1 + $0x230] sm:$0xf0]  ;;  %v8636_v55 = vor.u32 %v12813_v45, %v8633_v47 }
  0x96   :  { %3393 = vmatpush.bf16.msra.mxu0 %v8540_v12  ;;  %v12877_v50 = vld [vmem:[%s20596_s1 + $0x324] sm:$0xf]  ;;  %v8889_v51 = vld [vmem:[%s20596_s1 + $0x330] sm:$0xf0]  ;;  %v8764_v56 = vor.u32 %v12845_v48, %v8761_v49 }
  0x97   :  { %3406 = vmatpush.bf16.msra.mxu1 %v8668_v13  ;;  %v12777_v53 = vld [vmem:[%s20596_s1 + $0x4] sm:$0xf]  ;;  %v8489_v54 = vld [vmem:[%s20596_s1 + $0x10] sm:$0xf0]  ;;  %v8892_v60 = vor.u32 %v12877_v50, %v8889_v51 }
  0x98   :  { %3419 = vmatpush.bf16.msra.mxu2 %v8796_v14  ;;  %v12809_v57 = vld [vmem:[%s20596_s1 + $0x104] sm:$0xf]  ;;  %v8617_v58 = vld [vmem:[%s20596_s1 + $0x110] sm:$0xf0]  ;;  %v8492_v3 = vor.u32 %v12777_v53, %v8489_v54 }
  0x99   :  { %3432 = vmatpush.bf16.msra.mxu3 %v8924_v21  ;;  %v12841_v59 = vld [vmem:[%s20596_s1 + $0x204] sm:$0xf]  ;;  %v8745_v61 = vld [vmem:[%s20596_s1 + $0x210] sm:$0xf0]  ;;  %v8620_v7 = vor.u32 %v12809_v57, %v8617_v58 }
  0x9a   :  { %3394 = vmatpush.bf16.msra.mxu0 %v8524_v36  ;;  %v12873_v62 = vld [vmem:[%s20596_s1 + $0x304] sm:$0xf]  ;;  %v8873_v63 = vld [vmem:[%s20596_s1 + $0x310] sm:$0xf0]  ;;  %v8748_v8 = vor.u32 %v12841_v59, %v8745_v61 }
  0x9b   :  { %3407 = vmatpush.bf16.msra.mxu1 %v8652_v37  ;;  %v12933_v0 = vld [vmem:[%s20596_s1 + $0x4e4] sm:$0xf]  ;;  %v9113_v1 = vld [vmem:[%s20596_s1 + $0x4f0] sm:$0xf0]  ;;  %v8876_v11 = vor.u32 %v12873_v62, %v8873_v63 }
  0x9c   :  { %3420 = vmatpush.bf16.msra.mxu2 %v8780_v39  ;;  %v12965_v2 = vld [vmem:[%s20596_s1 + $0x5e4] sm:$0xf]  ;;  %v9241_v4 = vld [vmem:[%s20596_s1 + $0x5f0] sm:$0xf0]  ;;  %v9116_v12 = vor.u32 %v12933_v0, %v9113_v1 }
  0x9d   :  { %3433 = vmatpush.bf16.msra.mxu3 %v8908_v46  ;;  %v12997_v5 = vld [vmem:[%s20596_s1 + $0x6e4] sm:$0xf]  ;;  %v9369_v6 = vld [vmem:[%s20596_s1 + $0x6f0] sm:$0xf0]  ;;  %v9244_v13 = vor.u32 %v12965_v2, %v9241_v4 }
  0x9e   :  { %3395 = vmatpush.bf16.msra.mxu0 %v8508_v52  ;;  %v13029_v9 = vld [vmem:[%s20596_s1 + $0x7e4] sm:$0xf]  ;;  %v9497_v10 = vld [vmem:[%s20596_s1 + $0x7f0] sm:$0xf0]  ;;  %v9372_v14 = vor.u32 %v12997_v5, %v9369_v6 }
  0x9f   :  { %3408 = vmatpush.bf16.msra.mxu1 %v8636_v55  ;;  %v12929_v15 = vld [vmem:[%s20596_s1 + $0x4c4] sm:$0xf]  ;;  %v9097_v16 = vld [vmem:[%s20596_s1 + $0x4d0] sm:$0xf0]  ;;  %v9500_v21 = vor.u32 %v13029_v9, %v9497_v10  ;;  %v555_v10 = vld [vmem:[%s20598_s2] sm:$0xf] }
  0xa0   :  { %3421 = vmatpush.bf16.msra.mxu2 %v8764_v56  ;;  %v12961_v17 = vld [vmem:[%s20596_s1 + $0x5c4] sm:$0xf]  ;;  %v9225_v24 = vld [vmem:[%s20596_s1 + $0x5d0] sm:$0xf0]  ;;  %v9100_v36 = vor.u32 %v12929_v15, %v9097_v16 }
  0xa1   :  { %3434 = vmatpush.bf16.msra.mxu3 %v8892_v60  ;;  %v12993_v26 = vld [vmem:[%s20596_s1 + $0x6c4] sm:$0xf]  ;;  %v9353_v27 = vld [vmem:[%s20596_s1 + $0x6d0] sm:$0xf0]  ;;  %v9228_v37 = vor.u32 %v12961_v17, %v9225_v24  ;;  %v557_v24 = vperm.slane %v555_v10, 0 }
  0xa2   :  { %3396 = vmatpush.bf16.msra.mxu0 %v8492_v3  ;;  %v13025_v32 = vld [vmem:[%s20596_s1 + $0x7c4] sm:$0xf]  ;;  %v9481_v34 = vld [vmem:[%s20596_s1 + $0x7d0] sm:$0xf0]  ;;  %v9356_v39 = vor.u32 %v12993_v26, %v9353_v27 }
  0xa3   :  { %3409 = vmatpush.bf16.msra.mxu1 %v8620_v7  ;;  %v12925_v40 = vld [vmem:[%s20596_s1 + $0x4a4] sm:$0xf]  ;;  %v9081_v43 = vld [vmem:[%s20596_s1 + $0x4b0] sm:$0xf0]  ;;  %v9484_v46 = vor.u32 %v13025_v32, %v9481_v34 }
  0xa4   :  { %3422 = vmatpush.bf16.msra.mxu2 %v8748_v8  ;;  %v12957_v45 = vld [vmem:[%s20596_s1 + $0x5a4] sm:$0xf]  ;;  %v9209_v47 = vld [vmem:[%s20596_s1 + $0x5b0] sm:$0xf0]  ;;  %v9084_v52 = vor.u32 %v12925_v40, %v9081_v43 }
  0xa5   :  { %3435 = vmatpush.bf16.msra.mxu3 %v8876_v11  ;;  %v12989_v48 = vld [vmem:[%s20596_s1 + $0x6a4] sm:$0xf]  ;;  %v9337_v49 = vld [vmem:[%s20596_s1 + $0x6b0] sm:$0xf0]  ;;  %3397 = vmatmul.bf16.vlgmr.msra.gmra.mxu0 %v14204_v19  ;;  %v9212_v53 = vor.u32 %v12957_v45, %v9209_v47 }
  0xa6   :  { %3441 = vmatpush.bf16.msrb.mxu0 %v9116_v12  ;;  %v13021_v50 = vld [vmem:[%s20596_s1 + $0x7a4] sm:$0xf]  ;;  %v9465_v51 = vld [vmem:[%s20596_s1 + $0x7b0] sm:$0xf0]  ;;  %3410 = vmatmul.bf16.vlgmr.msra.gmra.mxu1 %v14208_v22  ;;  %v9340_v54 = vor.u32 %v12989_v48, %v9337_v49 }
  0xa7   :  { %3454 = vmatpush.bf16.msrb.mxu1 %v9244_v13  ;;  %3423 = vmatmul.bf16.vlgmr.msra.gmra.mxu2 %v14202_v18  ;;  %v12921_v55 = vld [vmem:[%s20596_s1 + $0x484] sm:$0xf]  ;;  %v9065_v56 = vld [vmem:[%s20596_s1 + $0x490] sm:$0xf0]  ;;  %v9468_v58 = vor.u32 %v13021_v50, %v9465_v51 }
  0xa8   :  { %3467 = vmatpush.bf16.msrb.mxu2 %v9372_v14  ;;  %3436 = vmatmul.bf16.vlgmr.msra.gmra.mxu3 %v14206_v20  ;;  %v12953_v57 = vld [vmem:[%s20596_s1 + $0x584] sm:$0xf]  ;;  %v9193_v59 = vld [vmem:[%s20596_s1 + $0x590] sm:$0xf0]  ;;  %v9068_v0 = vor.u32 %v12921_v55, %v9065_v56 }
  0xa9   :  { %3480 = vmatpush.bf16.msrb.mxu3 %v9500_v21  ;;  %v12985_v60 = vld [vmem:[%s20596_s1 + $0x684] sm:$0xf]  ;;  %v9321_v61 = vld [vmem:[%s20596_s1 + $0x690] sm:$0xf0]  ;;  %v9196_v2 = vor.u32 %v12953_v57, %v9193_v59 }
  0xaa   :  { %3442 = vmatpush.bf16.msrb.mxu0 %v9100_v36  ;;  %v13017_v62 = vld [vmem:[%s20596_s1 + $0x784] sm:$0xf]  ;;  %v9449_v63 = vld [vmem:[%s20596_s1 + $0x790] sm:$0xf0]  ;;  %v9324_v3 = vor.u32 %v12985_v60, %v9321_v61 }
  0xab   :  { %3455 = vmatpush.bf16.msrb.mxu1 %v9228_v37  ;;  %v12917_v1 = vld [vmem:[%s20596_s1 + $0x464] sm:$0xf]  ;;  %v9049_v4 = vld [vmem:[%s20596_s1 + $0x470] sm:$0xf0]  ;;  %v9452_v7 = vor.u32 %v13017_v62, %v9449_v63 }
  0xac   :  { %3468 = vmatpush.bf16.msrb.mxu2 %v9356_v39  ;;  %v12949_v5 = vld [vmem:[%s20596_s1 + $0x564] sm:$0xf]  ;;  %v9177_v6 = vld [vmem:[%s20596_s1 + $0x570] sm:$0xf0]  ;;  %v9052_v13 = vor.u32 %v12917_v1, %v9049_v4 }
  0xad   :  { %3481 = vmatpush.bf16.msrb.mxu3 %v9484_v46  ;;  %v12981_v8 = vld [vmem:[%s20596_s1 + $0x664] sm:$0xf]  ;;  %v9305_v9 = vld [vmem:[%s20596_s1 + $0x670] sm:$0xf0]  ;;  %v9180_v15 = vor.u32 %v12949_v5, %v9177_v6 }
  0xae   :  { %3443 = vmatpush.bf16.msrb.mxu0 %v9084_v52  ;;  %v13013_v11 = vld [vmem:[%s20596_s1 + $0x764] sm:$0xf]  ;;  %v9433_v12 = vld [vmem:[%s20596_s1 + $0x770] sm:$0xf0]  ;;  %v9308_v16 = vor.u32 %v12981_v8, %v9305_v9  ;;  %v3229_v8 = vpop.f32.mrf.mxu3 }
  0xaf   :  { %3456 = vmatpush.bf16.msrb.mxu1 %v9212_v53  ;;  %v12913_v14 = vld [vmem:[%s20596_s1 + $0x444] sm:$0xf]  ;;  %v9033_v17 = vld [vmem:[%s20596_s1 + $0x450] sm:$0xf0]  ;;  %v9436_v26 = vor.u32 %v13013_v11, %v9433_v12  ;;  %v3190_v40 = vpop.f32.mrf.mxu0  ;;  %v3203_v50 = vpop.f32.mrf.mxu1 }
  0xb0   :  { %3469 = vmatpush.bf16.msrb.mxu2 %v9340_v54  ;;  %v12945_v21 = vld [vmem:[%s20596_s1 + $0x544] sm:$0xf]  ;;  %v9161_v27 = vld [vmem:[%s20596_s1 + $0x550] sm:$0xf0]  ;;  %v9036_v39 = vor.u32 %v12913_v14, %v9033_v17  ;;  %v3191_v49 = vadd.f32 %v3190_v40, %v557_v24 }
  0xb1   :  { %3482 = vmatpush.bf16.msrb.mxu3 %v9468_v58  ;;  %v12977_v32 = vld [vmem:[%s20596_s1 + $0x644] sm:$0xf]  ;;  %v9289_v34 = vld [vmem:[%s20596_s1 + $0x650] sm:$0xf0]  ;;  %v9164_v43 = vor.u32 %v12945_v21, %v9161_v27 }
  0xb2   :  { %3444 = vmatpush.bf16.msrb.mxu0 %v9068_v0  ;;  %v13009_v36 = vld [vmem:[%s20596_s1 + $0x744] sm:$0xf]  ;;  %v9417_v37 = vld [vmem:[%s20596_s1 + $0x750] sm:$0xf0]  ;;  %v9292_v45 = vor.u32 %v12977_v32, %v9289_v34  ;;  %v3204_v57 = vadd.f32 %v3203_v50, %v3191_v49 }
  0xb3   :  { %3457 = vmatpush.bf16.msrb.mxu1 %v9196_v2  ;;  %v12909_v46 = vld [vmem:[%s20596_s1 + $0x424] sm:$0xf]  ;;  %v9017_v47 = vld [vmem:[%s20596_s1 + $0x430] sm:$0xf0]  ;;  %v9420_v51 = vor.u32 %v13009_v36, %v9417_v37  ;;  %v3216_v2 = vpop.f32.mrf.mxu2 }
  0xb4   :  { %3470 = vmatpush.bf16.msrb.mxu2 %v9324_v3  ;;  %v12941_v48 = vld [vmem:[%s20596_s1 + $0x524] sm:$0xf]  ;;  %v9145_v52 = vld [vmem:[%s20596_s1 + $0x530] sm:$0xf0]  ;;  %v9020_v58 = vor.u32 %v12909_v46, %v9017_v47 }
  0xb5   :  { %3483 = vmatpush.bf16.msrb.mxu3 %v9452_v7  ;;  %v12973_v53 = vld [vmem:[%s20596_s1 + $0x624] sm:$0xf]  ;;  %v9273_v54 = vld [vmem:[%s20596_s1 + $0x630] sm:$0xf0]  ;;  %v9148_v61 = vor.u32 %v12941_v48, %v9145_v52  ;;  %v3217_v7 = vadd.f32 %v3216_v2, %v3204_v57 }
  0xb6   :  { %3445 = vmatpush.bf16.msrb.mxu0 %v9052_v13  ;;  %v13005_v55 = vld [vmem:[%s20596_s1 + $0x724] sm:$0xf]  ;;  %v9401_v56 = vld [vmem:[%s20596_s1 + $0x730] sm:$0xf0]  ;;  %v9276_v62 = vor.u32 %v12973_v53, %v9273_v54  ;;  %v3231_v54 = vpop.f32.mrf.mxu3 }
  0xb7   :  { %3458 = vmatpush.bf16.msrb.mxu1 %v9180_v15  ;;  %v12905_v59 = vld [vmem:[%s20596_s1 + $0x404] sm:$0xf]  ;;  %v9001_v60 = vld [vmem:[%s20596_s1 + $0x410] sm:$0xf0]  ;;  %v9404_v3 = vor.u32 %v13005_v55, %v9401_v56  ;;  %v3192_v17 = vpop.f32.mrf.mxu0  ;;  %v3205_v32 = vpop.f32.mrf.mxu1 }
  0xb8   :  { %3471 = vmatpush.bf16.msrb.mxu2 %v9308_v16  ;;  %v12937_v63 = vld [vmem:[%s20596_s1 + $0x504] sm:$0xf]  ;;  %v9129_v0 = vld [vmem:[%s20596_s1 + $0x510] sm:$0xf0]  ;;  %v9004_v12 = vor.u32 %v12905_v59, %v9001_v60  ;;  %v15157_v16 = vadd.f32 %v3229_v8, %v3217_v7 }
  0xb9   :  { %3484 = vmatpush.bf16.msrb.mxu3 %v9436_v26  ;;  %v12969_v1 = vld [vmem:[%s20596_s1 + $0x604] sm:$0xf]  ;;  %v9257_v4 = vld [vmem:[%s20596_s1 + $0x610] sm:$0xf0]  ;;  %v9132_v21 = vor.u32 %v12937_v63, %v9129_v0 }
  0xba   :  { %3446 = vmatpush.bf16.msrb.mxu0 %v9036_v39  ;;  %v13001_v5 = vld [vmem:[%s20596_s1 + $0x704] sm:$0xf]  ;;  %v9385_v6 = vld [vmem:[%s20596_s1 + $0x710] sm:$0xf0]  ;;  %v9260_v24 = vor.u32 %v12969_v1, %v9257_v4 }
  0xbb   :  { %3459 = vmatpush.bf16.msrb.mxu1 %v9164_v43  ;;  %v13061_v9 = vld [vmem:[%s20596_s1 + $0x8e4] sm:$0xf]  ;;  %v9625_v10 = vld [vmem:[%s20596_s1 + $0x8f0] sm:$0xf0]  ;;  %v9388_v34 = vor.u32 %v13001_v5, %v9385_v6  ;;  %v3218_v52 = vpop.f32.mrf.mxu2 }
  0xbc   :  { %3472 = vmatpush.bf16.msrb.mxu2 %v9292_v45  ;;  %v13093_v11 = vld [vmem:[%s20596_s1 + $0x9e4] sm:$0xf]  ;;  %v9753_v13 = vld [vmem:[%s20596_s1 + $0x9f0] sm:$0xf0]  ;;  %v9628_v36 = vor.u32 %v13061_v9, %v9625_v10 }
  0xbd   :  { %3485 = vmatpush.bf16.msrb.mxu3 %v9420_v51  ;;  %v13125_v14 = vld [vmem:[%s20596_s1 + $0xae4] sm:$0xf]  ;;  %v9881_v15 = vld [vmem:[%s20596_s1 + $0xaf0] sm:$0xf0]  ;;  %v9756_v37 = vor.u32 %v13093_v11, %v9753_v13 }
  0xbe   :  { %3447 = vmatpush.bf16.msrb.mxu0 %v9020_v58  ;;  %v13157_v26 = vld [vmem:[%s20596_s1 + $0xbe4] sm:$0xf]  ;;  %v10009_v27 = vld [vmem:[%s20596_s1 + $0xbf0] sm:$0xf0]  ;;  %v9884_v39 = vor.u32 %v13125_v14, %v9881_v15 }
  0xbf   :  { %3460 = vmatpush.bf16.msrb.mxu1 %v9148_v61  ;;  %v13057_v40 = vld [vmem:[%s20596_s1 + $0x8c4] sm:$0xf]  ;;  %v9609_v43 = vld [vmem:[%s20596_s1 + $0x8d0] sm:$0xf0]  ;;  %v10012_v46 = vor.u32 %v13157_v26, %v10009_v27 }
  0xc0   :  { %3473 = vmatpush.bf16.msrb.mxu2 %v9276_v62  ;;  %v13089_v45 = vld [vmem:[%s20596_s1 + $0x9c4] sm:$0xf]  ;;  %v9737_v47 = vld [vmem:[%s20596_s1 + $0x9d0] sm:$0xf0]  ;;  %v9612_v53 = vor.u32 %v13057_v40, %v9609_v43 }
  0xc1   :  { %3486 = vmatpush.bf16.msrb.mxu3 %v9404_v3  ;;  %v13121_v48 = vld [vmem:[%s20596_s1 + $0xac4] sm:$0xf]  ;;  %v9865_v49 = vld [vmem:[%s20596_s1 + $0xad0] sm:$0xf0]  ;;  %v9740_v55 = vor.u32 %v13089_v45, %v9737_v47 }
  0xc2   :  { %3448 = vmatpush.bf16.msrb.mxu0 %v9004_v12  ;;  %v13153_v50 = vld [vmem:[%s20596_s1 + $0xbc4] sm:$0xf]  ;;  %v9993_v51 = vld [vmem:[%s20596_s1 + $0xbd0] sm:$0xf0]  ;;  %v9868_v56 = vor.u32 %v13121_v48, %v9865_v49 }
  0xc3   :  { %3461 = vmatpush.bf16.msrb.mxu1 %v9132_v21  ;;  %v13053_v57 = vld [vmem:[%s20596_s1 + $0x8a4] sm:$0xf]  ;;  %v9593_v58 = vld [vmem:[%s20596_s1 + $0x8b0] sm:$0xf0]  ;;  %v9996_v60 = vor.u32 %v13153_v50, %v9993_v51  ;;  %v3242_v15 = vpop.f32.mrf.mxu0 }
  0xc4   :  { %3474 = vmatpush.bf16.msrb.mxu2 %v9260_v24  ;;  %v13085_v59 = vld [vmem:[%s20596_s1 + $0x9a4] sm:$0xf]  ;;  %v9721_v61 = vld [vmem:[%s20596_s1 + $0x9b0] sm:$0xf0]  ;;  %v9596_v2 = vor.u32 %v13053_v57, %v9593_v58  ;;  %v3243_v32 = vadd.f32 %v3242_v15, %v15157_v16 }
  0xc5   :  { %3487 = vmatpush.bf16.msrb.mxu3 %v9388_v34  ;;  %v13117_v62 = vld [vmem:[%s20596_s1 + $0xaa4] sm:$0xf]  ;;  %v9849_v63 = vld [vmem:[%s20596_s1 + $0xab0] sm:$0xf0]  ;;  %3449 = vmatmul.bf16.vlgmr.msrb.gmra.mxu0 %v14366_v41  ;;  %v9724_v3 = vor.u32 %v13085_v59, %v9721_v61  ;;  %v3255_v34 = vpop.f32.mrf.mxu1 }
  0xc6   :  { %3493 = vmatpush.bf16.msra.mxu0 %v9628_v36  ;;  %v13149_v0 = vld [vmem:[%s20596_s1 + $0xba4] sm:$0xf]  ;;  %v9977_v1 = vld [vmem:[%s20596_s1 + $0xbb0] sm:$0xf0]  ;;  %3462 = vmatmul.bf16.vlgmr.msrb.gmra.mxu1 %v14370_v44  ;;  %v9852_v4 = vor.u32 %v13117_v62, %v9849_v63  ;;  %v3256_v45 = vadd.f32 %v3255_v34, %v3243_v32 }
  0xc7   :  { %3506 = vmatpush.bf16.msra.mxu1 %v9756_v37  ;;  %3475 = vmatmul.bf16.vlgmr.msrb.gmra.mxu2 %v14358_v38  ;;  %v13049_v5 = vld [vmem:[%s20596_s1 + $0x884] sm:$0xf]  ;;  %v9577_v6 = vld [vmem:[%s20596_s1 + $0x890] sm:$0xf0]  ;;  %v9980_v8 = vor.u32 %v13149_v0, %v9977_v1 }
  0xc8   :  { %3519 = vmatpush.bf16.msra.mxu2 %v9884_v39  ;;  %3488 = vmatmul.bf16.vlgmr.msrb.gmra.mxu3 %v14368_v42  ;;  %v13081_v7 = vld [vmem:[%s20596_s1 + $0x984] sm:$0xf]  ;;  %v9705_v9 = vld [vmem:[%s20596_s1 + $0x990] sm:$0xf0]  ;;  %v9580_v14 = vor.u32 %v13049_v5, %v9577_v6 }
  0xc9   :  { %3532 = vmatpush.bf16.msra.mxu3 %v10012_v46  ;;  %v13113_v10 = vld [vmem:[%s20596_s1 + $0xa84] sm:$0xf]  ;;  %v9833_v11 = vld [vmem:[%s20596_s1 + $0xa90] sm:$0xf0]  ;;  %v9708_v17 = vor.u32 %v13081_v7, %v9705_v9  ;;  %v3268_v52 = vpop.f32.mrf.mxu2 }
  0xca   :  { %3494 = vmatpush.bf16.msra.mxu0 %v9612_v53  ;;  %v13145_v12 = vld [vmem:[%s20596_s1 + $0xb84] sm:$0xf]  ;;  %v9961_v13 = vld [vmem:[%s20596_s1 + $0xb90] sm:$0xf0]  ;;  %v9836_v21 = vor.u32 %v13113_v10, %v9833_v11  ;;  %v3269_v57 = vadd.f32 %v3268_v52, %v3256_v45 }
  0xcb   :  { %3507 = vmatpush.bf16.msra.mxu1 %v9740_v55  ;;  %v13045_v24 = vld [vmem:[%s20596_s1 + $0x864] sm:$0xf]  ;;  %v9561_v26 = vld [vmem:[%s20596_s1 + $0x870] sm:$0xf0]  ;;  %v9964_v36 = vor.u32 %v13145_v12, %v9961_v13  ;;  %v3244_v63 = vpop.f32.mrf.mxu0 }
  0xcc   :  { %3520 = vmatpush.bf16.msra.mxu2 %v9868_v56  ;;  %v13077_v27 = vld [vmem:[%s20596_s1 + $0x964] sm:$0xf]  ;;  %v9689_v37 = vld [vmem:[%s20596_s1 + $0x970] sm:$0xf0]  ;;  %v9564_v46 = vor.u32 %v13045_v24, %v9561_v26  ;;  %v3281_v58 = vpop.f32.mrf.mxu3 }
  0xcd   :  { %3533 = vmatpush.bf16.msra.mxu3 %v9996_v60  ;;  %v13109_v39 = vld [vmem:[%s20596_s1 + $0xa64] sm:$0xf]  ;;  %v9817_v40 = vld [vmem:[%s20596_s1 + $0xa70] sm:$0xf0]  ;;  %v9692_v47 = vor.u32 %v13077_v27, %v9689_v37  ;;  %v15290_v62 = vadd.f32 %v3281_v58, %v3269_v57  ;;  %v3257_v5 = vpop.f32.mrf.mxu1 }
  0xce   :  { %3495 = vmatpush.bf16.msra.mxu0 %v9596_v2  ;;  %v13141_v43 = vld [vmem:[%s20596_s1 + $0xb64] sm:$0xf]  ;;  %v9945_v16 = vld [vmem:[%s20596_s1 + $0xb70] sm:$0xf0]  ;;  %v9820_v48 = vor.u32 %v13109_v39, %v9817_v40 }
  0xcf   :  { %3508 = vmatpush.bf16.msra.mxu1 %v9724_v3  ;;  %v13041_v49 = vld [vmem:[%s20596_s1 + $0x844] sm:$0xf]  ;;  %v9545_v50 = vld [vmem:[%s20596_s1 + $0x850] sm:$0xf0]  ;;  %v9948_v53 = vor.u32 %v13141_v43, %v9945_v16 }
  0xd0   :  { %3521 = vmatpush.bf16.msra.mxu2 %v9852_v4  ;;  %v13073_v51 = vld [vmem:[%s20596_s1 + $0x944] sm:$0xf]  ;;  %v9673_v54 = vld [vmem:[%s20596_s1 + $0x950] sm:$0xf0]  ;;  %v9548_v61 = vor.u32 %v13041_v49, %v9545_v50 }
  0xd1   :  { %3534 = vmatpush.bf16.msra.mxu3 %v9980_v8  ;;  %v13105_v55 = vld [vmem:[%s20596_s1 + $0xa44] sm:$0xf]  ;;  %v9801_v56 = vld [vmem:[%s20596_s1 + $0xa50] sm:$0xf0]  ;;  %v9676_v0 = vor.u32 %v13073_v51, %v9673_v54  ;;  %v3270_v27 = vpop.f32.mrf.mxu2 }
  0xd2   :  { %3496 = vmatpush.bf16.msra.mxu0 %v9580_v14  ;;  %v13137_v59 = vld [vmem:[%s20596_s1 + $0xb44] sm:$0xf]  ;;  %v9929_v60 = vld [vmem:[%s20596_s1 + $0xb50] sm:$0xf0]  ;;  %v9804_v1 = vor.u32 %v13105_v55, %v9801_v56 }
  0xd3   :  { %3509 = vmatpush.bf16.msra.mxu1 %v9708_v17  ;;  %v13037_v2 = vld [vmem:[%s20596_s1 + $0x824] sm:$0xf]  ;;  %v9529_v3 = vld [vmem:[%s20596_s1 + $0x830] sm:$0xf0]  ;;  %v9932_v6 = vor.u32 %v13137_v59, %v9929_v60 }
  0xd4   :  { %3522 = vmatpush.bf16.msra.mxu2 %v9836_v21  ;;  %v13069_v4 = vld [vmem:[%s20596_s1 + $0x924] sm:$0xf]  ;;  %v9657_v7 = vld [vmem:[%s20596_s1 + $0x930] sm:$0xf0]  ;;  %v9532_v12 = vor.u32 %v13037_v2, %v9529_v3  ;;  %v3283_v39 = vpop.f32.mrf.mxu3 }
  0xd5   :  { %3535 = vmatpush.bf16.msra.mxu3 %v9964_v36  ;;  %v13101_v8 = vld [vmem:[%s20596_s1 + $0xa24] sm:$0xf]  ;;  %v9785_v9 = vld [vmem:[%s20596_s1 + $0xa30] sm:$0xf0]  ;;  %v9660_v15 = vor.u32 %v13069_v4, %v9657_v7 }
  0xd6   :  { %3497 = vmatpush.bf16.msra.mxu0 %v9564_v46  ;;  %v13133_v10 = vld [vmem:[%s20596_s1 + $0xb24] sm:$0xf]  ;;  %v9913_v11 = vld [vmem:[%s20596_s1 + $0xb30] sm:$0xf0]  ;;  %v9788_v17 = vor.u32 %v13101_v8, %v9785_v9 }
  0xd7   :  { %3510 = vmatpush.bf16.msra.mxu1 %v9692_v47  ;;  %v13033_v13 = vld [vmem:[%s20596_s1 + $0x804] sm:$0xf]  ;;  %v9513_v14 = vld [vmem:[%s20596_s1 + $0x810] sm:$0xf0]  ;;  %v9916_v32 = vor.u32 %v13133_v10, %v9913_v11 }
  0xd8   :  { %3523 = vmatpush.bf16.msra.mxu2 %v9820_v48  ;;  %v13065_v21 = vld [vmem:[%s20596_s1 + $0x904] sm:$0xf]  ;;  %v9641_v24 = vld [vmem:[%s20596_s1 + $0x910] sm:$0xf0]  ;;  %v9516_v45 = vor.u32 %v13033_v13, %v9513_v14 }
  0xd9   :  { %3536 = vmatpush.bf16.msra.mxu3 %v9948_v53  ;;  %v13097_v26 = vld [vmem:[%s20596_s1 + $0xa04] sm:$0xf]  ;;  %v9769_v34 = vld [vmem:[%s20596_s1 + $0xa10] sm:$0xf0]  ;;  %v9644_v49 = vor.u32 %v13065_v21, %v9641_v24 }
  0xda   :  { %3498 = vmatpush.bf16.msra.mxu0 %v9548_v61  ;;  %v13129_v36 = vld [vmem:[%s20596_s1 + $0xb04] sm:$0xf]  ;;  %v9897_v37 = vld [vmem:[%s20596_s1 + $0xb10] sm:$0xf0]  ;;  %v9772_v50 = vor.u32 %v13097_v26, %v9769_v34 }
  0xdb   :  { %3511 = vmatpush.bf16.msra.mxu1 %v9676_v0  ;;  %v13189_v40 = vld [vmem:[%s20596_s1 + $0xce4] sm:$0xf]  ;;  %v10137_v43 = vld [vmem:[%s20596_s1 + $0xcf0] sm:$0xf0]  ;;  %v9900_v53 = vor.u32 %v13129_v36, %v9897_v37 }
  0xdc   :  { %3524 = vmatpush.bf16.msra.mxu2 %v9804_v1  ;;  %v13221_v16 = vld [vmem:[%s20596_s1 + $0xde4] sm:$0xf]  ;;  %v10265_v46 = vld [vmem:[%s20596_s1 + $0xdf0] sm:$0xf0]  ;;  %v10140_v54 = vor.u32 %v13189_v40, %v10137_v43 }
  0xdd   :  { %3537 = vmatpush.bf16.msra.mxu3 %v9932_v6  ;;  %v13253_v47 = vld [vmem:[%s20596_s1 + $0xee4] sm:$0xf]  ;;  %v10393_v48 = vld [vmem:[%s20596_s1 + $0xef0] sm:$0xf0]  ;;  %v10268_v55 = vor.u32 %v13221_v16, %v10265_v46 }
  0xde   :  { %3499 = vmatpush.bf16.msra.mxu0 %v9532_v12  ;;  %v13285_v51 = vld [vmem:[%s20596_s1 + $0xfe4] sm:$0xf]  ;;  %v10521_v52 = vld [vmem:[%s20596_s1 + $0xff0] sm:$0xf0]  ;;  %v10396_v56 = vor.u32 %v13253_v47, %v10393_v48 }
  0xdf   :  { %3512 = vmatpush.bf16.msra.mxu1 %v9660_v15  ;;  %v13185_v57 = vld [vmem:[%s20596_s1 + $0xcc4] sm:$0xf]  ;;  %v10121_v58 = vld [vmem:[%s20596_s1 + $0xcd0] sm:$0xf0]  ;;  %v10524_v60 = vor.u32 %v13285_v51, %v10521_v52 }
  0xe0   :  { %3525 = vmatpush.bf16.msra.mxu2 %v9788_v17  ;;  %v13217_v59 = vld [vmem:[%s20596_s1 + $0xdc4] sm:$0xf]  ;;  %v10249_v61 = vld [vmem:[%s20596_s1 + $0xdd0] sm:$0xf0]  ;;  %v10124_v3 = vor.u32 %v13185_v57, %v10121_v58 }
  0xe1   :  { %3538 = vmatpush.bf16.msra.mxu3 %v9916_v32  ;;  %v13249_v63 = vld [vmem:[%s20596_s1 + $0xec4] sm:$0xf]  ;;  %v10377_v0 = vld [vmem:[%s20596_s1 + $0xed0] sm:$0xf0]  ;;  %v10252_v4 = vor.u32 %v13217_v59, %v10249_v61 }
  0xe2   :  { %3500 = vmatpush.bf16.msra.mxu0 %v9516_v45  ;;  %v13281_v1 = vld [vmem:[%s20596_s1 + $0xfc4] sm:$0xf]  ;;  %v10505_v2 = vld [vmem:[%s20596_s1 + $0xfd0] sm:$0xf0]  ;;  %v10380_v5 = vor.u32 %v13249_v63, %v10377_v0 }
  0xe3   :  { %3513 = vmatpush.bf16.msra.mxu1 %v9644_v49  ;;  %v13181_v6 = vld [vmem:[%s20596_s1 + $0xca4] sm:$0xf]  ;;  %v10105_v7 = vld [vmem:[%s20596_s1 + $0xcb0] sm:$0xf0]  ;;  %v10508_v9 = vor.u32 %v13281_v1, %v10505_v2 }
  0xe4   :  { %3526 = vmatpush.bf16.msra.mxu2 %v9772_v50  ;;  %v13213_v8 = vld [vmem:[%s20596_s1 + $0xda4] sm:$0xf]  ;;  %v10233_v10 = vld [vmem:[%s20596_s1 + $0xdb0] sm:$0xf0]  ;;  %v10108_v15 = vor.u32 %v13181_v6, %v10105_v7  ;;  %v3294_v39 = vpop.f32.mrf.mxu0 }
  0xe5   :  { %3539 = vmatpush.bf16.msra.mxu3 %v9900_v53  ;;  %3501 = vmatmul.bf16.vlgmr.msra.gmra.mxu0 %v14559_v25  ;;  %v13245_v11 = vld [vmem:[%s20596_s1 + $0xea4] sm:$0xf]  ;;  %v10361_v12 = vld [vmem:[%s20596_s1 + $0xeb0] sm:$0xf0]  ;;  %v10236_v17 = vor.u32 %v13213_v8, %v10233_v10  ;;  %v3295_v16 = vadd.f32 %v3294_v39, %v15290_v62  ;;  %v3307_v46 = vpop.f32.mrf.mxu1 }
  0xe6   :  { %3545 = vmatpush.bf16.msrb.mxu0 %v10140_v54  ;;  %3514 = vmatmul.bf16.vlgmr.msra.gmra.mxu1 %v14572_v30  ;;  %v13277_v13 = vld [vmem:[%s20596_s1 + $0xfa4] sm:$0xf]  ;;  %v10489_v14 = vld [vmem:[%s20596_s1 + $0xfb0] sm:$0xf0]  ;;  %v10364_v21 = vor.u32 %v13245_v11, %v10361_v12 }
  0xe7   :  { %3558 = vmatpush.bf16.msrb.mxu1 %v10268_v55  ;;  %3527 = vmatmul.bf16.vlgmr.msra.gmra.mxu2 %v14570_v29  ;;  %v13177_v24 = vld [vmem:[%s20596_s1 + $0xc84] sm:$0xf]  ;;  %v10089_v26 = vld [vmem:[%s20596_s1 + $0xc90] sm:$0xf0]  ;;  %v10492_v32 = vor.u32 %v13277_v13, %v10489_v14  ;;  %v3308_v52 = vadd.f32 %v3307_v46, %v3295_v16 }
  0xe8   :  { %3571 = vmatpush.bf16.msrb.mxu2 %v10396_v56  ;;  %3540 = vmatmul.bf16.vlgmr.msra.gmra.mxu3 %v14580_v33  ;;  %v13209_v27 = vld [vmem:[%s20596_s1 + $0xd84] sm:$0xf]  ;;  %v10217_v34 = vld [vmem:[%s20596_s1 + $0xd90] sm:$0xf0]  ;;  %v10092_v45 = vor.u32 %v13177_v24, %v10089_v26 }
  0xe9   :  { %3584 = vmatpush.bf16.msrb.mxu3 %v10524_v60  ;;  %v13241_v36 = vld [vmem:[%s20596_s1 + $0xe84] sm:$0xf]  ;;  %v10345_v37 = vld [vmem:[%s20596_s1 + $0xe90] sm:$0xf0]  ;;  %v10220_v47 = vor.u32 %v13209_v27, %v10217_v34  ;;  %v3320_v2 = vpop.f32.mrf.mxu2 }
  0xea   :  { %3546 = vmatpush.bf16.msrb.mxu0 %v10124_v3  ;;  %v13273_v40 = vld [vmem:[%s20596_s1 + $0xf84] sm:$0xf]  ;;  %v10473_v43 = vld [vmem:[%s20596_s1 + $0xf90] sm:$0xf0]  ;;  %v10348_v48 = vor.u32 %v13241_v36, %v10345_v37  ;;  %v3321_v6 = vadd.f32 %v3320_v2, %v3308_v52 }
  0xeb   :  { %3559 = vmatpush.bf16.msrb.mxu1 %v10252_v4  ;;  %v13173_v49 = vld [vmem:[%s20596_s1 + $0xc64] sm:$0xf]  ;;  %v10073_v50 = vld [vmem:[%s20596_s1 + $0xc70] sm:$0xf0]  ;;  %v10476_v62 = vor.u32 %v13273_v40, %v10473_v43 }
  0xec   :  { %3572 = vmatpush.bf16.msrb.mxu2 %v10380_v5  ;;  %v13205_v51 = vld [vmem:[%s20596_s1 + $0xd64] sm:$0xf]  ;;  %v10201_v53 = vld [vmem:[%s20596_s1 + $0xd70] sm:$0xf0]  ;;  %v10076_v58 = vor.u32 %v13173_v49, %v10073_v50  ;;  %v3296_v10 = vpop.f32.mrf.mxu0 }
  0xed   :  { %3585 = vmatpush.bf16.msrb.mxu3 %v10508_v9  ;;  %v13237_v54 = vld [vmem:[%s20596_s1 + $0xe64] sm:$0xf]  ;;  %v10329_v55 = vld [vmem:[%s20596_s1 + $0xe70] sm:$0xf0]  ;;  %v10204_v59 = vor.u32 %v13205_v51, %v10201_v53  ;;  %v3333_v7 = vpop.f32.mrf.mxu3  ;;  %v3309_v12 = vpop.f32.mrf.mxu1  ;;  %v8607_v53 = vld [vmem:[%s20596_s1 + $0xe8] sm:$0xf] }
  0xee   :  { %3547 = vmatpush.bf16.msrb.mxu0 %v10108_v15  ;;  %v13269_v56 = vld [vmem:[%s20596_s1 + $0xf64] sm:$0xf]  ;;  %v10457_v57 = vld [vmem:[%s20596_s1 + $0xf70] sm:$0xf0]  ;;  %v10332_v60 = vor.u32 %v13237_v54, %v10329_v55  ;;  %v15489_v13 = vadd.f32 %v3333_v7, %v3321_v6  ;;  %v12808_v54 = vld [vmem:[%s20596_s1 + $0xf4] sm:$0xf0] }
  0xef   :  { %3560 = vmatpush.bf16.msrb.mxu1 %v10236_v17  ;;  %v13169_v61 = vld [vmem:[%s20596_s1 + $0xc44] sm:$0xf]  ;;  %v10057_v63 = vld [vmem:[%s20596_s1 + $0xc50] sm:$0xf0]  ;;  %v10460_v1 = vor.u32 %v13269_v56, %v10457_v57  ;;  %v8735_v55 = vld [vmem:[%s20596_s1 + $0x1e8] sm:$0xf] }
  0xf0   :  { %3573 = vmatpush.bf16.msrb.mxu2 %v10364_v21  ;;  %v13201_v0 = vld [vmem:[%s20596_s1 + $0xd44] sm:$0xf]  ;;  %v10185_v3 = vld [vmem:[%s20596_s1 + $0xd50] sm:$0xf0]  ;;  %v10060_v11 = vor.u32 %v13169_v61, %v10057_v63  ;;  %v8591_v6 = vld [vmem:[%s20596_s1 + $0xc8] sm:$0xf] }
  0xf1   :  { %3586 = vmatpush.bf16.msrb.mxu3 %v10492_v32  ;;  %v13233_v4 = vld [vmem:[%s20596_s1 + $0xe44] sm:$0xf]  ;;  %v10313_v5 = vld [vmem:[%s20596_s1 + $0xe50] sm:$0xf0]  ;;  %v10188_v14 = vor.u32 %v13201_v0, %v10185_v3  ;;  %v3322_v52 = vpop.f32.mrf.mxu2  ;;  %v8991_v0 = vld [vmem:[%s20596_s1 + $0x3e8] sm:$0xf]  ;;  %v8608_v3 = vor.u32 %v12808_v54, %v8607_v53 }
  0xf2   :  { %3548 = vmatpush.bf16.msrb.mxu0 %v10092_v45  ;;  %v13265_v8 = vld [vmem:[%s20596_s1 + $0xf44] sm:$0xf]  ;;  %v10441_v9 = vld [vmem:[%s20596_s1 + $0xf50] sm:$0xf0]  ;;  %v10316_v15 = vor.u32 %v13233_v4, %v10313_v5  ;;  %v12804_v7 = vld [vmem:[%s20596_s1 + $0xd4] sm:$0xf0] }
  0xf3   :  { %3561 = vmatpush.bf16.msrb.mxu1 %v10220_v47  ;;  %v13165_v17 = vld [vmem:[%s20596_s1 + $0xc24] sm:$0xf]  ;;  %v10041_v21 = vld [vmem:[%s20596_s1 + $0xc30] sm:$0xf0]  ;;  %v10444_v26 = vor.u32 %v13265_v8, %v10441_v9  ;;  %v8719_v8 = vld [vmem:[%s20596_s1 + $0x1c8] sm:$0xf] }
  0xf4   :  { %3574 = vmatpush.bf16.msrb.mxu2 %v10348_v48  ;;  %v13197_v24 = vld [vmem:[%s20596_s1 + $0xd24] sm:$0xf]  ;;  %v10169_v27 = vld [vmem:[%s20596_s1 + $0xd30] sm:$0xf0]  ;;  %v10044_v39 = vor.u32 %v13165_v17, %v10041_v21  ;;  %v12836_v10 = vld [vmem:[%s20596_s1 + $0x1d4] sm:$0xf0]  ;;  %v8592_v17 = vor.u32 %v12804_v7, %v8591_v6 }
  0xf5   :  { %3587 = vmatpush.bf16.msrb.mxu3 %v10476_v62  ;;  %v13229_v32 = vld [vmem:[%s20596_s1 + $0xe24] sm:$0xf]  ;;  %v10297_v34 = vld [vmem:[%s20596_s1 + $0xe30] sm:$0xf0]  ;;  %v10172_v16 = vor.u32 %v13197_v24, %v10169_v27  ;;  %v3335_v56 = vpop.f32.mrf.mxu3  ;;  %v12868_v12 = vld [vmem:[%s20596_s1 + $0x2d4] sm:$0xf0]  ;;  %v8720_v21 = vor.u32 %v12836_v10, %v8719_v8 }
  0xf6   :  { %3549 = vmatpush.bf16.msrb.mxu0 %v10076_v58  ;;  %v13261_v36 = vld [vmem:[%s20596_s1 + $0xf24] sm:$0xf]  ;;  %v10425_v37 = vld [vmem:[%s20596_s1 + $0xf30] sm:$0xf0]  ;;  %v10300_v45 = vor.u32 %v13229_v32, %v10297_v34  ;;  %v12840_v58 = vld [vmem:[%s20596_s1 + $0x1f4] sm:$0xf0] }
  0xf7   :  { %3562 = vmatpush.bf16.msrb.mxu1 %v10204_v59  ;;  %v13161_v40 = vld [vmem:[%s20596_s1 + $0xc04] sm:$0xf]  ;;  %v10025_v43 = vld [vmem:[%s20596_s1 + $0xc10] sm:$0xf0]  ;;  %v10428_v49 = vor.u32 %v13261_v36, %v10425_v37  ;;  %v8863_v59 = vld [vmem:[%s20596_s1 + $0x2e8] sm:$0xf]  ;;  %v8736_v4 = vor.u32 %v12840_v58, %v8735_v55 }
  0xf8   :  { %3575 = vmatpush.bf16.msrb.mxu2 %v10332_v60  ;;  %v13193_v46 = vld [vmem:[%s20596_s1 + $0xd04] sm:$0xf]  ;;  %v10153_v47 = vld [vmem:[%s20596_s1 + $0xd10] sm:$0xf0]  ;;  %v10028_v57 = vor.u32 %v13161_v40, %v10025_v43  ;;  %v12872_v60 = vld [vmem:[%s20596_s1 + $0x2f4] sm:$0xf0] }
  0xf9   :  { %3588 = vmatpush.bf16.msrb.mxu3 %v10460_v1  ;;  %v13225_v48 = vld [vmem:[%s20596_s1 + $0xe04] sm:$0xf]  ;;  %v10281_v50 = vld [vmem:[%s20596_s1 + $0xe10] sm:$0xf0]  ;;  %v10156_v61 = vor.u32 %v13193_v46, %v10153_v47  ;;  %v12904_v1 = vld [vmem:[%s20596_s1 + $0x3f4] sm:$0xf0]  ;;  %v8864_v5 = vor.u32 %v12872_v60, %v8863_v59 }
  0xfa   :  { %3550 = vmatpush.bf16.msrb.mxu0 %v10060_v11  ;;  %v13257_v51 = vld [vmem:[%s20596_s1 + $0xf04] sm:$0xf]  ;;  %v10409_v62 = vld [vmem:[%s20596_s1 + $0xf10] sm:$0xf0]  ;;  %v10284_v63 = vor.u32 %v13225_v48, %v10281_v50  ;;  %v8992_v9 = vor.u32 %v12904_v1, %v8991_v0  ;;  %v8847_v11 = vld [vmem:[%s20596_s1 + $0x2c8] sm:$0xf] }
  0xfb   :  { %3563 = vmatpush.bf16.msrb.mxu1 %v10188_v14  ;;  %v10412_v2 = vor.u32 %v13257_v51, %v10409_v62  ;;  %v8975_v14 = vld [vmem:[%s20596_s1 + $0x3c8] sm:$0xf]  ;;  %v8848_v24 = vor.u32 %v12868_v12, %v8847_v11  ;;  %v12800_v27 = vld [vmem:[%s20596_s1 + $0xb4] sm:$0xf0] }
  0xfc   :  { %3576 = vmatpush.bf16.msrb.mxu2 %v10316_v15  ;;  %v12900_v15 = vld [vmem:[%s20596_s1 + $0x3d4] sm:$0xf0]  ;;  %v8703_v32 = vld [vmem:[%s20596_s1 + $0x1a8] sm:$0xf] }
  0xfd   :  { %3589 = vmatpush.bf16.msrb.mxu3 %v10444_v26  ;;  %v8575_v26 = vld [vmem:[%s20596_s1 + $0xa8] sm:$0xf]  ;;  %v8976_v34 = vor.u32 %v12900_v15, %v8975_v14  ;;  %v12832_v36 = vld [vmem:[%s20596_s1 + $0x1b4] sm:$0xf0] }
  0xfe   :  { %3551 = vmatpush.bf16.msrb.mxu0 %v10044_v39  ;;  %v8831_v37 = vld [vmem:[%s20596_s1 + $0x2a8] sm:$0xf]  ;;  %v12864_v39 = vld [vmem:[%s20596_s1 + $0x2b4] sm:$0xf0] }
  0xff   :  { %3564 = vmatpush.bf16.msrb.mxu1 %v10172_v16  ;;  %v8959_v40 = vld [vmem:[%s20596_s1 + $0x3a8] sm:$0xf]  ;;  %v12896_v43 = vld [vmem:[%s20596_s1 + $0x3b4] sm:$0xf0]  ;;  %v8576_v16 = vor.u32 %v12800_v27, %v8575_v26  ;;  %v8832_v46 = vor.u32 %v12864_v39, %v8831_v37 }
 0x100   :  { %3577 = vmatpush.bf16.msrb.mxu2 %v10300_v45  ;;  %v8704_v45 = vor.u32 %v12832_v36, %v8703_v32  ;;  %v8559_v47 = vld [vmem:[%s20596_s1 + $0x88] sm:$0xf]  ;;  %v12796_v48 = vld [vmem:[%s20596_s1 + $0x94] sm:$0xf0]  ;;  %v8960_v50 = vor.u32 %v12896_v43, %v8959_v40 }
 0x101   :  { %3590 = vmatpush.bf16.msrb.mxu3 %v10428_v49  ;;  %v8687_v49 = vld [vmem:[%s20596_s1 + $0x188] sm:$0xf]  ;;  %v12828_v51 = vld [vmem:[%s20596_s1 + $0x194] sm:$0xf0] }
 0x102   :  { %3552 = vmatpush.bf16.msrb.mxu0 %v10028_v57  ;;  %v8815_v62 = vld [vmem:[%s20596_s1 + $0x288] sm:$0xf]  ;;  %v12860_v52 = vld [vmem:[%s20596_s1 + $0x294] sm:$0xf0]  ;;  %v8560_v57 = vor.u32 %v12796_v48, %v8559_v47  ;;  %v8688_v59 = vor.u32 %v12828_v51, %v8687_v49 }
 0x103   :  { %3565 = vmatpush.bf16.msrb.mxu1 %v10156_v61  ;;  %v8943_v54 = vld [vmem:[%s20596_s1 + $0x388] sm:$0xf]  ;;  %v12892_v55 = vld [vmem:[%s20596_s1 + $0x394] sm:$0xf0]  ;;  %v3359_v58 = vpop.f32.mrf.mxu1  ;;  %v8816_v60 = vor.u32 %v12860_v52, %v8815_v62 }
 0x104   :  { %3578 = vmatpush.bf16.msrb.mxu2 %v10284_v63  ;;  %v3346_v53 = vpop.f32.mrf.mxu0  ;;  %v8543_v61 = vld [vmem:[%s20596_s1 + $0x68] sm:$0xf]  ;;  %v12792_v63 = vld [vmem:[%s20596_s1 + $0x74] sm:$0xf0] }
 0x105   :  { %3591 = vmatpush.bf16.msrb.mxu3 %v10412_v2  ;;  %3553 = vmatmul.bf16.vlgmr.msrb.gmra.mxu0 %v14769_v23  ;;  %v3347_v56 = vadd.f32 %v3346_v53, %v15489_v13  ;;  %v8671_v0 = vld [vmem:[%s20596_s1 + $0x168] sm:$0xf]  ;;  %v8944_v13 = vor.u32 %v12892_v55, %v8943_v54  ;;  %v12824_v2 = vld [vmem:[%s20596_s1 + $0x174] sm:$0xf0]  ;;  %v8544_v7 = vor.u32 %v12792_v63, %v8543_v61 }
 0x106   :  { %3597 = vmatpush.bf16.msra.mxu0 %v8608_v3  ;;  %3566 = vmatmul.bf16.vlgmr.msrb.gmra.mxu1 %v14782_v31  ;;  %v8799_v3 = vld [vmem:[%s20596_s1 + $0x268] sm:$0xf]  ;;  %v12888_v6 = vld [vmem:[%s20596_s1 + $0x374] sm:$0xf0]  ;;  %v8672_v8 = vor.u32 %v12824_v2, %v8671_v0 }
 0x107   :  { %3610 = vmatpush.bf16.msra.mxu1 %v8736_v4  ;;  %3579 = vmatmul.bf16.vlgmr.msrb.gmra.mxu2 %v14780_v28  ;;  %v3360_v1 = vadd.f32 %v3359_v58, %v3347_v56  ;;  %v12856_v4 = vld [vmem:[%s20596_s1 + $0x274] sm:$0xf0]  ;;  %v8527_v10 = vld [vmem:[%s20596_s1 + $0x48] sm:$0xf] }
 0x108   :  { %3623 = vmatpush.bf16.msra.mxu2 %v8864_v5  ;;  %3592 = vmatmul.bf16.vlgmr.msrb.gmra.mxu3 %v14790_v35  ;;  %v8927_v5 = vld [vmem:[%s20596_s1 + $0x368] sm:$0xf]  ;;  %v12788_v11 = vld [vmem:[%s20596_s1 + $0x54] sm:$0xf0] }
 0x109   :  { %3636 = vmatpush.bf16.msra.mxu3 %v8992_v9  ;;  %v8800_v9 = vor.u32 %v12856_v4, %v8799_v3  ;;  %v8655_v12 = vld [vmem:[%s20596_s1 + $0x148] sm:$0xf]  ;;  %v8928_v14 = vor.u32 %v12888_v6, %v8927_v5  ;;  %v8528_v37 = vor.u32 %v12788_v11, %v8527_v10  ;;  %v12816_v49 = vld [vmem:[%s20596_s1 + $0x134] sm:$0xf0] }
 0x10a   :  { %3598 = vmatpush.bf16.msra.mxu0 %v8592_v17  ;;  %v12820_v17 = vld [vmem:[%s20596_s1 + $0x154] sm:$0xf0]  ;;  %v8911_v32 = vld [vmem:[%s20596_s1 + $0x348] sm:$0xf] }
 0x10b   :  { %3611 = vmatpush.bf16.msra.mxu1 %v8720_v21  ;;  %v8783_v21 = vld [vmem:[%s20596_s1 + $0x248] sm:$0xf]  ;;  %v3385_v27 = vpop.f32.mrf.mxu3  ;;  %v3361_v39 = vpop.f32.mrf.mxu1  ;;  %v8656_v43 = vor.u32 %v12820_v17, %v8655_v12  ;;  %v12848_v51 = vld [vmem:[%s20596_s1 + $0x234] sm:$0xf0] }
 0x10c   :  { %3624 = vmatpush.bf16.msra.mxu2 %v8848_v24  ;;  %v3372_v15 = vpop.f32.mrf.mxu2  ;;  %v12852_v24 = vld [vmem:[%s20596_s1 + $0x254] sm:$0xf0]  ;;  %v3348_v36 = vpop.f32.mrf.mxu0  ;;  %v8639_v47 = vld [vmem:[%s20596_s1 + $0x128] sm:$0xf] }
 0x10d   :  { %3637 = vmatpush.bf16.msra.mxu3 %v8976_v34  ;;  %v3373_v26 = vadd.f32 %v3372_v15, %v3360_v1  ;;  %v12884_v34 = vld [vmem:[%s20596_s1 + $0x354] sm:$0xf0]  ;;  %v8895_v62 = vld [vmem:[%s20596_s1 + $0x328] sm:$0xf]  ;;  %v8640_v56 = vor.u32 %v12816_v49, %v8639_v47 }
 0x10e   :  { %3599 = vmatpush.bf16.msra.mxu0 %v8576_v16  ;;  %v8784_v16 = vor.u32 %v12852_v24, %v8783_v21  ;;  %v8912_v48 = vor.u32 %v12884_v34, %v8911_v32  ;;  %v12880_v52 = vld [vmem:[%s20596_s1 + $0x334] sm:$0xf0]  ;;  %v8495_v54 = vld [vmem:[%s20596_s1 + $0x8] sm:$0xf] }
 0x10f   :  { %3612 = vmatpush.bf16.msra.mxu1 %v8704_v45  ;;  %v15688_v40 = vadd.f32 %v3385_v27, %v3373_v26  ;;  %v8511_v45 = vld [vmem:[%s20596_s1 + $0x28] sm:$0xf]  ;;  %v12780_v55 = vld [vmem:[%s20596_s1 + $0x14] sm:$0xf0]  ;;  %v8896_v61 = vor.u32 %v12880_v52, %v8895_v62 }
 0x110   :  { %3625 = vmatpush.bf16.msra.mxu2 %v8832_v46  ;;  %v12784_v46 = vld [vmem:[%s20596_s1 + $0x34] sm:$0xf0]  ;;  %v8623_v58 = vld [vmem:[%s20596_s1 + $0x108] sm:$0xf]  ;;  %v8496_v6 = vor.u32 %v12780_v55, %v8495_v54 }
 0x111   :  { %3638 = vmatpush.bf16.msra.mxu3 %v8960_v50  ;;  %v8767_v50 = vld [vmem:[%s20596_s1 + $0x228] sm:$0xf]  ;;  %v8512_v53 = vor.u32 %v12784_v46, %v8511_v45  ;;  %v12844_v63 = vld [vmem:[%s20596_s1 + $0x214] sm:$0xf0] }
 0x112   :  { %3600 = vmatpush.bf16.msra.mxu0 %v8560_v57  ;;  %v8768_v57 = vor.u32 %v12848_v51, %v8767_v50  ;;  %v8879_v0 = vld [vmem:[%s20596_s1 + $0x308] sm:$0xf]  ;;  %v12936_v3 = vld [vmem:[%s20596_s1 + $0x4f4] sm:$0xf0] }
 0x113   :  { %3613 = vmatpush.bf16.msra.mxu1 %v8688_v59  ;;  %v12812_v59 = vld [vmem:[%s20596_s1 + $0x114] sm:$0xf0]  ;;  %v9119_v2 = vld [vmem:[%s20596_s1 + $0x4e8] sm:$0xf]  ;;  %v3387_v5 = vpop.f32.mrf.mxu3 }
 0x114   :  { %3626 = vmatpush.bf16.msra.mxu2 %v8816_v60  ;;  %v8751_v60 = vld [vmem:[%s20596_s1 + $0x208] sm:$0xf]  ;;  %v3374_v1 = vpop.f32.mrf.mxu2  ;;  %v8624_v10 = vor.u32 %v12812_v59, %v8623_v58  ;;  %v9120_v17 = vor.u32 %v12936_v3, %v9119_v2  ;;  %v12932_v27 = vld [vmem:[%s20596_s1 + $0x4d4] sm:$0xf0] }
 0x115   :  { %3639 = vmatpush.bf16.msra.mxu3 %v8944_v13  ;;  %v12876_v13 = vld [vmem:[%s20596_s1 + $0x314] sm:$0xf0]  ;;  %v9247_v4 = vld [vmem:[%s20596_s1 + $0x5e8] sm:$0xf]  ;;  %v8752_v11 = vor.u32 %v12844_v63, %v8751_v60  ;;  %v13850_v63 = vld [vmem:[%s20598_s2] sm:$0xf] }
 0x116   :  { %3601 = vmatpush.bf16.msra.mxu0 %v8544_v7  ;;  %v12968_v7 = vld [vmem:[%s20596_s1 + $0x5f4] sm:$0xf0]  ;;  %v9503_v12 = vld [vmem:[%s20596_s1 + $0x7e8] sm:$0xf]  ;;  %v8880_v15 = vor.u32 %v12876_v13, %v8879_v0  ;;  %v558_v0 = vperm.slane %v13850_v63, 1 }
 0x117   :  { %3614 = vmatpush.bf16.msra.mxu1 %v8672_v8  ;;  %v9375_v8 = vld [vmem:[%s20596_s1 + $0x6e8] sm:$0xf]  ;;  %v9248_v21 = vor.u32 %v12968_v7, %v9247_v4  ;;  %v12964_v36 = vld [vmem:[%s20596_s1 + $0x5d4] sm:$0xf0] }
 0x118   :  { %3627 = vmatpush.bf16.msra.mxu2 %v8800_v9  ;;  %v13000_v9 = vld [vmem:[%s20596_s1 + $0x6f4] sm:$0xf0]  ;;  %v9103_v26 = vld [vmem:[%s20596_s1 + $0x4c8] sm:$0xf] }
 0x119   :  { %3640 = vmatpush.bf16.msra.mxu3 %v8928_v14  ;;  %v13032_v14 = vld [vmem:[%s20596_s1 + $0x7f4] sm:$0xf0]  ;;  %v9376_v24 = vor.u32 %v13000_v9, %v9375_v8  ;;  %v9231_v32 = vld [vmem:[%s20596_s1 + $0x5c8] sm:$0xf]  ;;  %v9104_v45 = vor.u32 %v12932_v27, %v9103_v26 }
 0x11a   :  { %3602 = vmatpush.bf16.msra.mxu0 %v8528_v37  ;;  %v9504_v34 = vor.u32 %v13032_v14, %v9503_v12  ;;  %v9359_v37 = vld [vmem:[%s20596_s1 + $0x6c8] sm:$0xf]  ;;  %v12996_v39 = vld [vmem:[%s20596_s1 + $0x6d4] sm:$0xf0]  ;;  %v9232_v46 = vor.u32 %v12964_v36, %v9231_v32 }
 0x11b   :  { %3615 = vmatpush.bf16.msra.mxu1 %v8656_v43  ;;  %v9487_v43 = vld [vmem:[%s20596_s1 + $0x7c8] sm:$0xf]  ;;  %v9360_v47 = vor.u32 %v12996_v39, %v9359_v37  ;;  %v12928_v49 = vld [vmem:[%s20596_s1 + $0x4b4] sm:$0xf0] }
 0x11c   :  { %3628 = vmatpush.bf16.msra.mxu2 %v8784_v16  ;;  %v13028_v16 = vld [vmem:[%s20596_s1 + $0x7d4] sm:$0xf0]  ;;  %v9215_v50 = vld [vmem:[%s20596_s1 + $0x5a8] sm:$0xf] }
 0x11d   :  { %3641 = vmatpush.bf16.msra.mxu3 %v8912_v48  ;;  %v9087_v48 = vld [vmem:[%s20596_s1 + $0x4a8] sm:$0xf]  ;;  %v9488_v51 = vor.u32 %v13028_v16, %v9487_v43  ;;  %v12960_v62 = vld [vmem:[%s20596_s1 + $0x5b4] sm:$0xf0] }
 0x11e   :  { %3603 = vmatpush.bf16.msra.mxu0 %v8512_v53  ;;  %v9343_v52 = vld [vmem:[%s20596_s1 + $0x6a8] sm:$0xf]  ;;  %v12992_v53 = vld [vmem:[%s20596_s1 + $0x6b4] sm:$0xf0]  ;;  %v9216_v58 = vor.u32 %v12960_v62, %v9215_v50 }
 0x11f   :  { %3616 = vmatpush.bf16.msra.mxu1 %v8640_v56  ;;  %v9471_v54 = vld [vmem:[%s20596_s1 + $0x7a8] sm:$0xf]  ;;  %v13024_v55 = vld [vmem:[%s20596_s1 + $0x7b4] sm:$0xf0]  ;;  %v9088_v56 = vor.u32 %v12928_v49, %v9087_v48  ;;  %v9344_v59 = vor.u32 %v12992_v53, %v9343_v52 }
 0x120   :  { %3629 = vmatpush.bf16.msra.mxu2 %v8768_v57  ;;  %v9071_v57 = vld [vmem:[%s20596_s1 + $0x488] sm:$0xf]  ;;  %v12924_v60 = vld [vmem:[%s20596_s1 + $0x494] sm:$0xf0]  ;;  %v9472_v13 = vor.u32 %v13024_v55, %v9471_v54 }
 0x121   :  { %3642 = vmatpush.bf16.msra.mxu3 %v8896_v61  ;;  %v9199_v61 = vld [vmem:[%s20596_s1 + $0x588] sm:$0xf]  ;;  %v12956_v1 = vld [vmem:[%s20596_s1 + $0x594] sm:$0xf0] }
 0x122   :  { %3604 = vmatpush.bf16.msra.mxu0 %v8496_v6  ;;  %v9327_v2 = vld [vmem:[%s20596_s1 + $0x688] sm:$0xf]  ;;  %v12988_v3 = vld [vmem:[%s20596_s1 + $0x694] sm:$0xf0]  ;;  %v9072_v6 = vor.u32 %v12924_v60, %v9071_v57  ;;  %v3398_v7 = vpop.f32.mrf.mxu0  ;;  %v9200_v8 = vor.u32 %v12956_v1, %v9199_v61 }
 0x123   :  { %3617 = vmatpush.bf16.msra.mxu1 %v8624_v10  ;;  %v9455_v4 = vld [vmem:[%s20596_s1 + $0x788] sm:$0xf]  ;;  %v13020_v5 = vld [vmem:[%s20596_s1 + $0x794] sm:$0xf0]  ;;  %v9328_v9 = vor.u32 %v12988_v3, %v9327_v2  ;;  %v3399_v14 = vadd.f32 %v3398_v7, %v558_v0 }
 0x124   :  { %3630 = vmatpush.bf16.msra.mxu2 %v8752_v11  ;;  %v9055_v10 = vld [vmem:[%s20596_s1 + $0x468] sm:$0xf]  ;;  %v12920_v11 = vld [vmem:[%s20596_s1 + $0x474] sm:$0xf0] }
 0x125   :  { %3643 = vmatpush.bf16.msra.mxu3 %v8880_v15  ;;  %3605 = vmatmul.bf16.vlgmr.msra.gmra.mxu0 %v14204_v19  ;;  %v9183_v12 = vld [vmem:[%s20596_s1 + $0x568] sm:$0xf]  ;;  %v3411_v15 = vpop.f32.mrf.mxu1  ;;  %v12984_v26 = vld [vmem:[%s20596_s1 + $0x674] sm:$0xf0]  ;;  %v9056_v36 = vor.u32 %v12920_v11, %v9055_v10 }
 0x126   :  { %3649 = vmatpush.bf16.msrb.mxu0 %v9120_v17  ;;  %3618 = vmatmul.bf16.vlgmr.msra.gmra.mxu1 %v14208_v22  ;;  %v9456_v17 = vor.u32 %v13020_v5, %v9455_v4  ;;  %v9439_v27 = vld [vmem:[%s20596_s1 + $0x768] sm:$0xf]  ;;  %v13016_v32 = vld [vmem:[%s20596_s1 + $0x774] sm:$0xf0] }
 0x127   :  { %3662 = vmatpush.bf16.msrb.mxu1 %v9248_v21  ;;  %3631 = vmatmul.bf16.vlgmr.msra.gmra.mxu2 %v14202_v18  ;;  %v12952_v21 = vld [vmem:[%s20596_s1 + $0x574] sm:$0xf0]  ;;  %v9039_v43 = vld [vmem:[%s20596_s1 + $0x448] sm:$0xf] }
 0x128   :  { %3675 = vmatpush.bf16.msrb.mxu2 %v9376_v24  ;;  %3644 = vmatmul.bf16.vlgmr.msra.gmra.mxu3 %v14206_v20  ;;  %v9311_v24 = vld [vmem:[%s20596_s1 + $0x668] sm:$0xf]  ;;  %v9184_v37 = vor.u32 %v12952_v21, %v9183_v12  ;;  %v12916_v16 = vld [vmem:[%s20596_s1 + $0x454] sm:$0xf0] }
 0x129   :  { %3688 = vmatpush.bf16.msrb.mxu3 %v9504_v34  ;;  %v3412_v34 = vadd.f32 %v3411_v15, %v3399_v14  ;;  %v9312_v39 = vor.u32 %v12984_v26, %v9311_v24  ;;  %v12948_v48 = vld [vmem:[%s20596_s1 + $0x554] sm:$0xf0]  ;;  %v9295_v49 = vld [vmem:[%s20596_s1 + $0x648] sm:$0xf]  ;;  %v9040_v54 = vor.u32 %v12916_v16, %v9039_v43 }
 0x12a   :  { %3650 = vmatpush.bf16.msrb.mxu0 %v9104_v45  ;;  %v9167_v45 = vld [vmem:[%s20596_s1 + $0x548] sm:$0xf]  ;;  %v12980_v50 = vld [vmem:[%s20596_s1 + $0x654] sm:$0xf0] }
 0x12b   :  { %3663 = vmatpush.bf16.msrb.mxu1 %v9232_v46  ;;  %v3424_v46 = vpop.f32.mrf.mxu2  ;;  %v3437_v62 = vpop.f32.mrf.mxu3  ;;  %v9423_v52 = vld [vmem:[%s20596_s1 + $0x748] sm:$0xf]  ;;  %v13012_v53 = vld [vmem:[%s20596_s1 + $0x754] sm:$0xf0]  ;;  %v9168_v57 = vor.u32 %v12948_v48, %v9167_v45 }
 0x12c   :  { %3676 = vmatpush.bf16.msrb.mxu2 %v9360_v47  ;;  %v9440_v47 = vor.u32 %v13016_v32, %v9439_v27  ;;  %v12912_v60 = vld [vmem:[%s20596_s1 + $0x434] sm:$0xf0]  ;;  %v9151_v61 = vld [vmem:[%s20596_s1 + $0x528] sm:$0xf]  ;;  %v9424_v0 = vor.u32 %v13012_v53, %v9423_v52 }
 0x12d   :  { %3689 = vmatpush.bf16.msrb.mxu3 %v9488_v51  ;;  %v3425_v51 = vadd.f32 %v3424_v46, %v3412_v34  ;;  %v3413_v63 = vpop.f32.mrf.mxu1  ;;  %v9279_v1 = vld [vmem:[%s20596_s1 + $0x628] sm:$0xf]  ;;  %v12976_v2 = vld [vmem:[%s20596_s1 + $0x634] sm:$0xf0] }
 0x12e   :  { %3651 = vmatpush.bf16.msrb.mxu0 %v9088_v56  ;;  %v3400_v56 = vpop.f32.mrf.mxu0  ;;  %v9407_v3 = vld [vmem:[%s20596_s1 + $0x728] sm:$0xf]  ;;  %v13008_v4 = vld [vmem:[%s20596_s1 + $0x734] sm:$0xf0] }
 0x12f   :  { %3664 = vmatpush.bf16.msrb.mxu1 %v9216_v58  ;;  %v15889_v55 = vadd.f32 %v3437_v62, %v3425_v51  ;;  %v9296_v58 = vor.u32 %v12980_v50, %v9295_v49  ;;  %v12908_v7 = vld [vmem:[%s20596_s1 + $0x414] sm:$0xf0]  ;;  %v9135_v10 = vld [vmem:[%s20596_s1 + $0x508] sm:$0xf]  ;;  %v9408_v15 = vor.u32 %v13008_v4, %v9407_v3 }
 0x130   :  { %3677 = vmatpush.bf16.msrb.mxu2 %v9344_v59  ;;  %v9023_v59 = vld [vmem:[%s20596_s1 + $0x428] sm:$0xf]  ;;  %v12940_v11 = vld [vmem:[%s20596_s1 + $0x514] sm:$0xf0] }
 0x131   :  { %3690 = vmatpush.bf16.msrb.mxu3 %v9472_v13  ;;  %v12944_v13 = vld [vmem:[%s20596_s1 + $0x534] sm:$0xf0]  ;;  %v9024_v5 = vor.u32 %v12912_v60, %v9023_v59  ;;  %v9263_v12 = vld [vmem:[%s20596_s1 + $0x608] sm:$0xf]  ;;  %v9136_v16 = vor.u32 %v12940_v11, %v9135_v10 }
 0x132   :  { %3652 = vmatpush.bf16.msrb.mxu0 %v9072_v6  ;;  %v9007_v6 = vld [vmem:[%s20596_s1 + $0x408] sm:$0xf]  ;;  %v13004_v24 = vld [vmem:[%s20596_s1 + $0x714] sm:$0xf0] }
 0x133   :  { %3665 = vmatpush.bf16.msrb.mxu1 %v9200_v8  ;;  %v9152_v8 = vor.u32 %v12944_v13, %v9151_v61  ;;  %v3426_v14 = vpop.f32.mrf.mxu2  ;;  %v9391_v21 = vld [vmem:[%s20596_s1 + $0x708] sm:$0xf]  ;;  %v3439_v26 = vpop.f32.mrf.mxu3  ;;  %v13064_v32 = vld [vmem:[%s20596_s1 + $0x8f4] sm:$0xf0] }
 0x134   :  { %3678 = vmatpush.bf16.msrb.mxu2 %v9328_v9  ;;  %v9280_v9 = vor.u32 %v12976_v2, %v9279_v1  ;;  %v9631_v27 = vld [vmem:[%s20596_s1 + $0x8e8] sm:$0xf]  ;;  %v13128_v43 = vld [vmem:[%s20596_s1 + $0xaf4] sm:$0xf0]  ;;  %v9392_v48 = vor.u32 %v13004_v24, %v9391_v21 }
 0x135   :  { %3691 = vmatpush.bf16.msrb.mxu3 %v9456_v17  ;;  %v12972_v17 = vld [vmem:[%s20596_s1 + $0x614] sm:$0xf0]  ;;  %v9759_v34 = vld [vmem:[%s20596_s1 + $0x9e8] sm:$0xf]  ;;  %v9632_v49 = vor.u32 %v13064_v32, %v9631_v27 }
 0x136   :  { %3653 = vmatpush.bf16.msrb.mxu0 %v9056_v36  ;;  %v9008_v36 = vor.u32 %v12908_v7, %v9007_v6  ;;  %v9264_v45 = vor.u32 %v12972_v17, %v9263_v12  ;;  %v10015_v46 = vld [vmem:[%s20596_s1 + $0xbe8] sm:$0xf]  ;;  %v13060_v52 = vld [vmem:[%s20596_s1 + $0x8d4] sm:$0xf0] }
 0x137   :  { %3666 = vmatpush.bf16.msrb.mxu1 %v9184_v37  ;;  %v13096_v37 = vld [vmem:[%s20596_s1 + $0x9f4] sm:$0xf0]  ;;  %v9615_v62 = vld [vmem:[%s20596_s1 + $0x8c8] sm:$0xf] }
 0x138   :  { %3679 = vmatpush.bf16.msrb.mxu2 %v9312_v39  ;;  %v9887_v39 = vld [vmem:[%s20596_s1 + $0xae8] sm:$0xf]  ;;  %v9760_v50 = vor.u32 %v13096_v37, %v9759_v34  ;;  %v13092_v56 = vld [vmem:[%s20596_s1 + $0x9d4] sm:$0xf0]  ;;  %v9616_v61 = vor.u32 %v13060_v52, %v9615_v62 }
 0x139   :  { %3692 = vmatpush.bf16.msrb.mxu3 %v9440_v47  ;;  %v13160_v47 = vld [vmem:[%s20596_s1 + $0xbf4] sm:$0xf0]  ;;  %v9888_v51 = vor.u32 %v13128_v43, %v9887_v39  ;;  %v9743_v53 = vld [vmem:[%s20596_s1 + $0x9c8] sm:$0xf] }
 0x13a   :  { %3654 = vmatpush.bf16.msrb.mxu0 %v9040_v54  ;;  %v10016_v54 = vor.u32 %v13160_v47, %v10015_v46  ;;  %v9999_v59 = vld [vmem:[%s20596_s1 + $0xbc8] sm:$0xf]  ;;  %v13156_v60 = vld [vmem:[%s20596_s1 + $0xbd4] sm:$0xf0]  ;;  %v9744_v63 = vor.u32 %v13092_v56, %v9743_v53 }
 0x13b   :  { %3667 = vmatpush.bf16.msrb.mxu1 %v9168_v57  ;;  %v9871_v57 = vld [vmem:[%s20596_s1 + $0xac8] sm:$0xf]  ;;  %v13056_v1 = vld [vmem:[%s20596_s1 + $0x8b4] sm:$0xf0]  ;;  %v10000_v3 = vor.u32 %v13156_v60, %v9999_v59 }
 0x13c   :  { %3680 = vmatpush.bf16.msrb.mxu2 %v9296_v58  ;;  %v13124_v58 = vld [vmem:[%s20596_s1 + $0xad4] sm:$0xf0]  ;;  %v9599_v13 = vld [vmem:[%s20596_s1 + $0x8a8] sm:$0xf] }
 0x13d   :  { %3693 = vmatpush.bf16.msrb.mxu3 %v9424_v0  ;;  %v9872_v0 = vor.u32 %v13124_v58, %v9871_v57  ;;  %v9727_v2 = vld [vmem:[%s20596_s1 + $0x9a8] sm:$0xf]  ;;  %v13088_v4 = vld [vmem:[%s20596_s1 + $0x9b4] sm:$0xf0] }
 0x13e   :  { %3655 = vmatpush.bf16.msrb.mxu0 %v9024_v5  ;;  %v9855_v5 = vld [vmem:[%s20596_s1 + $0xaa8] sm:$0xf]  ;;  %v13120_v6 = vld [vmem:[%s20596_s1 + $0xab4] sm:$0xf0]  ;;  %v9728_v10 = vor.u32 %v13088_v4, %v9727_v2 }
 0x13f   :  { %3668 = vmatpush.bf16.msrb.mxu1 %v9152_v8  ;;  %v9983_v7 = vld [vmem:[%s20596_s1 + $0xba8] sm:$0xf]  ;;  %v13152_v8 = vld [vmem:[%s20596_s1 + $0xbb4] sm:$0xf0]  ;;  %v9856_v11 = vor.u32 %v13120_v6, %v9855_v5 }
 0x140   :  { %3681 = vmatpush.bf16.msrb.mxu2 %v9280_v9  ;;  %v9600_v9 = vor.u32 %v13056_v1, %v9599_v13  ;;  %v9583_v12 = vld [vmem:[%s20596_s1 + $0x888] sm:$0xf]  ;;  %v13052_v14 = vld [vmem:[%s20596_s1 + $0x894] sm:$0xf0]  ;;  %v9984_v17 = vor.u32 %v13152_v8, %v9983_v7 }
 0x141   :  { %3694 = vmatpush.bf16.msrb.mxu3 %v9408_v15  ;;  %v9711_v15 = vld [vmem:[%s20596_s1 + $0x988] sm:$0xf]  ;;  %v13084_v21 = vld [vmem:[%s20596_s1 + $0x994] sm:$0xf0]  ;;  %v9584_v34 = vor.u32 %v13052_v14, %v9583_v12 }
 0x142   :  { %3656 = vmatpush.bf16.msrb.mxu0 %v9008_v36  ;;  %v9839_v24 = vld [vmem:[%s20596_s1 + $0xa88] sm:$0xf]  ;;  %v13116_v26 = vld [vmem:[%s20596_s1 + $0xa94] sm:$0xf0]  ;;  %v3450_v36 = vpop.f32.mrf.mxu0  ;;  %v9712_v37 = vor.u32 %v13084_v21, %v9711_v15 }
 0x143   :  { %3669 = vmatpush.bf16.msrb.mxu1 %v9136_v16  ;;  %v9967_v27 = vld [vmem:[%s20596_s1 + $0xb88] sm:$0xf]  ;;  %v13148_v32 = vld [vmem:[%s20596_s1 + $0xb94] sm:$0xf0]  ;;  %v9840_v39 = vor.u32 %v13116_v26, %v9839_v24  ;;  %v3451_v46 = vadd.f32 %v3450_v36, %v15889_v55  ;;  %v3463_v47 = vpop.f32.mrf.mxu1 }
 0x144   :  { %3682 = vmatpush.bf16.msrb.mxu2 %v9264_v45  ;;  %v9567_v43 = vld [vmem:[%s20596_s1 + $0x868] sm:$0xf]  ;;  %v13048_v16 = vld [vmem:[%s20596_s1 + $0x874] sm:$0xf0] }
 0x145   :  { %3695 = vmatpush.bf16.msrb.mxu3 %v9392_v48  ;;  %3657 = vmatmul.bf16.vlgmr.msrb.gmra.mxu0 %v14366_v41  ;;  %v9695_v45 = vld [vmem:[%s20596_s1 + $0x968] sm:$0xf]  ;;  %v9968_v48 = vor.u32 %v13148_v32, %v9967_v27  ;;  %v13144_v55 = vld [vmem:[%s20596_s1 + $0xb74] sm:$0xf0]  ;;  %v3464_v52 = vadd.f32 %v3463_v47, %v3451_v46  ;;  %v9568_v53 = vor.u32 %v13048_v16, %v9567_v43 }
 0x146   :  { %3701 = vmatpush.bf16.msra.mxu0 %v9632_v49  ;;  %3670 = vmatmul.bf16.vlgmr.msrb.gmra.mxu1 %v14370_v44  ;;  %v13080_v49 = vld [vmem:[%s20596_s1 + $0x974] sm:$0xf0]  ;;  %v9951_v62 = vld [vmem:[%s20596_s1 + $0xb68] sm:$0xf] }
 0x147   :  { %3714 = vmatpush.bf16.msra.mxu1 %v9760_v50  ;;  %3683 = vmatmul.bf16.vlgmr.msrb.gmra.mxu2 %v14358_v38  ;;  %v9823_v50 = vld [vmem:[%s20596_s1 + $0xa68] sm:$0xf]  ;;  %v13044_v58 = vld [vmem:[%s20596_s1 + $0x854] sm:$0xf0] }
 0x148   :  { %3727 = vmatpush.bf16.msra.mxu2 %v9888_v51  ;;  %3696 = vmatmul.bf16.vlgmr.msrb.gmra.mxu3 %v14368_v42  ;;  %v13112_v51 = vld [vmem:[%s20596_s1 + $0xa74] sm:$0xf0]  ;;  %v9551_v57 = vld [vmem:[%s20596_s1 + $0x848] sm:$0xf] }
 0x149   :  { %3740 = vmatpush.bf16.msra.mxu3 %v10016_v54  ;;  %v9696_v54 = vor.u32 %v13080_v49, %v9695_v45  ;;  %v9824_v56 = vor.u32 %v13112_v51, %v9823_v50  ;;  %v9679_v59 = vld [vmem:[%s20596_s1 + $0x948] sm:$0xf]  ;;  %v13108_v13 = vld [vmem:[%s20596_s1 + $0xa54] sm:$0xf0]  ;;  %v9552_v5 = vor.u32 %v13044_v58, %v9551_v57 }
 0x14a   :  { %3702 = vmatpush.bf16.msra.mxu0 %v9616_v61  ;;  %v3476_v60 = vpop.f32.mrf.mxu2  ;;  %v9952_v61 = vor.u32 %v13144_v55, %v9951_v62  ;;  %v13140_v4 = vld [vmem:[%s20596_s1 + $0xb54] sm:$0xf0]  ;;  %v3452_v7 = vpop.f32.mrf.mxu0  ;;  %v9663_v12 = vld [vmem:[%s20596_s1 + $0x928] sm:$0xf] }
 0x14b   :  { %3715 = vmatpush.bf16.msra.mxu1 %v9744_v63  ;;  %v13076_v63 = vld [vmem:[%s20596_s1 + $0x954] sm:$0xf0]  ;;  %v3477_v1 = vadd.f32 %v3476_v60, %v3464_v52  ;;  %v3489_v2 = vpop.f32.mrf.mxu3  ;;  %v3465_v14 = vpop.f32.mrf.mxu1  ;;  %v9791_v21 = vld [vmem:[%s20596_s1 + $0xa28] sm:$0xf] }
 0x14c   :  { %3728 = vmatpush.bf16.msra.mxu2 %v9872_v0  ;;  %v9807_v0 = vld [vmem:[%s20596_s1 + $0xa48] sm:$0xf]  ;;  %v9680_v8 = vor.u32 %v13076_v63, %v9679_v59  ;;  %v13104_v24 = vld [vmem:[%s20596_s1 + $0xa34] sm:$0xf0] }
 0x14d   :  { %3741 = vmatpush.bf16.msra.mxu3 %v10000_v3  ;;  %v9935_v3 = vld [vmem:[%s20596_s1 + $0xb48] sm:$0xf]  ;;  %v16088_v6 = vadd.f32 %v3489_v2, %v3477_v1  ;;  %v13136_v27 = vld [vmem:[%s20596_s1 + $0xb34] sm:$0xf0] }
 0x14e   :  { %3703 = vmatpush.bf16.msra.mxu0 %v9600_v9  ;;  %v9808_v9 = vor.u32 %v13108_v13, %v9807_v0  ;;  %v9936_v15 = vor.u32 %v13140_v4, %v9935_v3  ;;  %v9919_v26 = vld [vmem:[%s20596_s1 + $0xb28] sm:$0xf]  ;;  %v13036_v36 = vld [vmem:[%s20596_s1 + $0x814] sm:$0xf0] }
 0x14f   :  { %3716 = vmatpush.bf16.msra.mxu1 %v9728_v10  ;;  %v9535_v10 = vld [vmem:[%s20596_s1 + $0x828] sm:$0xf]  ;;  %v13068_v16 = vld [vmem:[%s20596_s1 + $0x914] sm:$0xf0]  ;;  %v9920_v47 = vor.u32 %v13136_v27, %v9919_v26 }
 0x150   :  { %3729 = vmatpush.bf16.msra.mxu2 %v9856_v11  ;;  %v13040_v11 = vld [vmem:[%s20596_s1 + $0x834] sm:$0xf0]  ;;  %v9647_v43 = vld [vmem:[%s20596_s1 + $0x908] sm:$0xf] }
 0x151   :  { %3742 = vmatpush.bf16.msra.mxu3 %v9984_v17  ;;  %v13072_v17 = vld [vmem:[%s20596_s1 + $0x934] sm:$0xf0]  ;;  %v9536_v32 = vor.u32 %v13040_v11, %v9535_v10  ;;  %v9775_v45 = vld [vmem:[%s20596_s1 + $0xa08] sm:$0xf]  ;;  %v9648_v58 = vor.u32 %v13068_v16, %v9647_v43 }
 0x152   :  { %3704 = vmatpush.bf16.msra.mxu0 %v9584_v34  ;;  %v9519_v34 = vld [vmem:[%s20596_s1 + $0x808] sm:$0xf]  ;;  %v3478_v46 = vpop.f32.mrf.mxu2  ;;  %v13132_v50 = vld [vmem:[%s20596_s1 + $0xb14] sm:$0xf0] }
 0x153   :  { %3717 = vmatpush.bf16.msra.mxu1 %v9712_v37  ;;  %v9664_v37 = vor.u32 %v13072_v17, %v9663_v12  ;;  %v9903_v49 = vld [vmem:[%s20596_s1 + $0xb08] sm:$0xf]  ;;  %v3491_v51 = vpop.f32.mrf.mxu3  ;;  %v13192_v55 = vld [vmem:[%s20596_s1 + $0xcf4] sm:$0xf0] }
 0x154   :  { %3730 = vmatpush.bf16.msra.mxu2 %v9840_v39  ;;  %v9792_v39 = vor.u32 %v13104_v24, %v9791_v21  ;;  %v10143_v62 = vld [vmem:[%s20596_s1 + $0xce8] sm:$0xf]  ;;  %v13256_v57 = vld [vmem:[%s20596_s1 + $0xef4] sm:$0xf0]  ;;  %v9904_v63 = vor.u32 %v13132_v50, %v9903_v49 }
 0x155   :  { %3743 = vmatpush.bf16.msra.mxu3 %v9968_v48  ;;  %v13100_v48 = vld [vmem:[%s20596_s1 + $0xa14] sm:$0xf0]  ;;  %v10271_v52 = vld [vmem:[%s20596_s1 + $0xde8] sm:$0xf]  ;;  %v10144_v0 = vor.u32 %v13192_v55, %v10143_v62 }
 0x156   :  { %3705 = vmatpush.bf16.msra.mxu0 %v9568_v53  ;;  %v9520_v53 = vor.u32 %v13036_v36, %v9519_v34  ;;  %v9776_v59 = vor.u32 %v13100_v48, %v9775_v45  ;;  %v10527_v60 = vld [vmem:[%s20596_s1 + $0xfe8] sm:$0xf]  ;;  %v13188_v3 = vld [vmem:[%s20596_s1 + $0xcd4] sm:$0xf0] }
 0x157   :  { %3718 = vmatpush.bf16.msra.mxu1 %v9696_v54  ;;  %v13224_v54 = vld [vmem:[%s20596_s1 + $0xdf4] sm:$0xf0]  ;;  %v10127_v2 = vld [vmem:[%s20596_s1 + $0xcc8] sm:$0xf] }
 0x158   :  { %3731 = vmatpush.bf16.msra.mxu2 %v9824_v56  ;;  %v10399_v56 = vld [vmem:[%s20596_s1 + $0xee8] sm:$0xf]  ;;  %v10272_v13 = vor.u32 %v13224_v54, %v10271_v52  ;;  %v13220_v7 = vld [vmem:[%s20596_s1 + $0xdd4] sm:$0xf0]  ;;  %v10128_v12 = vor.u32 %v13188_v3, %v10127_v2 }
 0x159   :  { %3744 = vmatpush.bf16.msra.mxu3 %v9952_v61  ;;  %v13288_v61 = vld [vmem:[%s20596_s1 + $0xff4] sm:$0xf0]  ;;  %v10400_v1 = vor.u32 %v13256_v57, %v10399_v56  ;;  %v10255_v4 = vld [vmem:[%s20596_s1 + $0xdc8] sm:$0xf] }
 0x15a   :  { %3706 = vmatpush.bf16.msra.mxu0 %v9552_v5  ;;  %v10528_v5 = vor.u32 %v13288_v61, %v10527_v60  ;;  %v10511_v10 = vld [vmem:[%s20596_s1 + $0xfc8] sm:$0xf]  ;;  %v13284_v11 = vld [vmem:[%s20596_s1 + $0xfd4] sm:$0xf0]  ;;  %v10256_v14 = vor.u32 %v13220_v7, %v10255_v4 }
 0x15b   :  { %3719 = vmatpush.bf16.msra.mxu1 %v9680_v8  ;;  %v10383_v8 = vld [vmem:[%s20596_s1 + $0xec8] sm:$0xf]  ;;  %v13184_v21 = vld [vmem:[%s20596_s1 + $0xcb4] sm:$0xf0]  ;;  %v10512_v26 = vor.u32 %v13284_v11, %v10511_v10 }
 0x15c   :  { %3732 = vmatpush.bf16.msra.mxu2 %v9808_v9  ;;  %v13252_v9 = vld [vmem:[%s20596_s1 + $0xed4] sm:$0xf0]  ;;  %v10111_v17 = vld [vmem:[%s20596_s1 + $0xca8] sm:$0xf] }
 0x15d   :  { %3745 = vmatpush.bf16.msra.mxu3 %v9936_v15  ;;  %v10384_v15 = vor.u32 %v13252_v9, %v10383_v8  ;;  %v10239_v24 = vld [vmem:[%s20596_s1 + $0xda8] sm:$0xf]  ;;  %v13216_v27 = vld [vmem:[%s20596_s1 + $0xdb4] sm:$0xf0] }
 0x15e   :  { %3707 = vmatpush.bf16.msra.mxu0 %v9536_v32  ;;  %v10367_v32 = vld [vmem:[%s20596_s1 + $0xea8] sm:$0xf]  ;;  %v13248_v34 = vld [vmem:[%s20596_s1 + $0xeb4] sm:$0xf0]  ;;  %v10240_v43 = vor.u32 %v13216_v27, %v10239_v24 }
 0x15f   :  { %3720 = vmatpush.bf16.msra.mxu1 %v9664_v37  ;;  %v10495_v36 = vld [vmem:[%s20596_s1 + $0xfa8] sm:$0xf]  ;;  %v13280_v37 = vld [vmem:[%s20596_s1 + $0xfb4] sm:$0xf0]  ;;  %v10368_v16 = vor.u32 %v13248_v34, %v10367_v32 }
 0x160   :  { %3733 = vmatpush.bf16.msra.mxu2 %v9792_v39  ;;  %v10112_v39 = vor.u32 %v13184_v21, %v10111_v17  ;;  %v10095_v45 = vld [vmem:[%s20596_s1 + $0xc88] sm:$0xf]  ;;  %v13180_v46 = vld [vmem:[%s20596_s1 + $0xc94] sm:$0xf0]  ;;  %v10496_v48 = vor.u32 %v13280_v37, %v10495_v36 }
 0x161   :  { %3746 = vmatpush.bf16.msra.mxu3 %v9920_v47  ;;  %v10223_v47 = vld [vmem:[%s20596_s1 + $0xd88] sm:$0xf]  ;;  %v13212_v49 = vld [vmem:[%s20596_s1 + $0xd94] sm:$0xf0]  ;;  %v10096_v54 = vor.u32 %v13180_v46, %v10095_v45 }
 0x162   :  { %3708 = vmatpush.bf16.msra.mxu0 %v9520_v53  ;;  %v10351_v50 = vld [vmem:[%s20596_s1 + $0xe88] sm:$0xf]  ;;  %v13244_v51 = vld [vmem:[%s20596_s1 + $0xe94] sm:$0xf0]  ;;  %v3502_v62 = vpop.f32.mrf.mxu0  ;;  %v10224_v57 = vor.u32 %v13212_v49, %v10223_v47 }
 0x163   :  { %3721 = vmatpush.bf16.msra.mxu1 %v9648_v58  ;;  %v10479_v55 = vld [vmem:[%s20596_s1 + $0xf88] sm:$0xf]  ;;  %v13276_v52 = vld [vmem:[%s20596_s1 + $0xf94] sm:$0xf0]  ;;  %v3503_v53 = vadd.f32 %v3502_v62, %v16088_v6  ;;  %v3515_v56 = vpop.f32.mrf.mxu1  ;;  %v10352_v58 = vor.u32 %v13244_v51, %v10351_v50 }
 0x164   :  { %3734 = vmatpush.bf16.msra.mxu2 %v9776_v59  ;;  %v10079_v59 = vld [vmem:[%s20596_s1 + $0xc68] sm:$0xf]  ;;  %v13176_v60 = vld [vmem:[%s20596_s1 + $0xc74] sm:$0xf0]  ;;  %v10480_v6 = vor.u32 %v13276_v52, %v10479_v55 }
 0x165   :  { %3747 = vmatpush.bf16.msra.mxu3 %v9904_v63  ;;  %3709 = vmatmul.bf16.vlgmr.msra.gmra.mxu0 %v14559_v25  ;;  %v10207_v61 = vld [vmem:[%s20596_s1 + $0xd68] sm:$0xf]  ;;  %v3516_v63 = vadd.f32 %v3515_v56, %v3503_v53  ;;  %v13272_v3 = vld [vmem:[%s20596_s1 + $0xf74] sm:$0xf0]  ;;  %v10080_v4 = vor.u32 %v13176_v60, %v10079_v59 }
 0x166   :  { %3753 = vmatpush.bf16.msrb.mxu0 %v10144_v0  ;;  %3722 = vmatmul.bf16.vlgmr.msra.gmra.mxu1 %v14572_v30  ;;  %v13208_v0 = vld [vmem:[%s20596_s1 + $0xd74] sm:$0xf0]  ;;  %v10463_v2 = vld [vmem:[%s20596_s1 + $0xf68] sm:$0xf] }
 0x167   :  { %3766 = vmatpush.bf16.msrb.mxu1 %v10272_v13  ;;  %3735 = vmatmul.bf16.vlgmr.msra.gmra.mxu2 %v14570_v29  ;;  %v10335_v13 = vld [vmem:[%s20596_s1 + $0xe68] sm:$0xf]  ;;  %v13172_v9 = vld [vmem:[%s20596_s1 + $0xc54] sm:$0xf0]  ;;  %v10464_v11 = vor.u32 %v13272_v3, %v10463_v2  ;;  %v12838_v2 = vld [vmem:[%s20596_s1 + $0x1ec] sm:$0xf] }
 0x168   :  { %3779 = vmatpush.bf16.msrb.mxu2 %v10400_v1  ;;  %3748 = vmatmul.bf16.vlgmr.msra.gmra.mxu3 %v14580_v33  ;;  %v13240_v1 = vld [vmem:[%s20596_s1 + $0xe74] sm:$0xf0]  ;;  %v10063_v8 = vld [vmem:[%s20596_s1 + $0xc48] sm:$0xf] }
 0x169   :  { %3792 = vmatpush.bf16.msrb.mxu3 %v10528_v5  ;;  %v10208_v5 = vor.u32 %v13208_v0, %v10207_v61  ;;  %v10336_v7 = vor.u32 %v13240_v1, %v10335_v13  ;;  %v10191_v10 = vld [vmem:[%s20596_s1 + $0xd48] sm:$0xf]  ;;  %v13236_v17 = vld [vmem:[%s20596_s1 + $0xe54] sm:$0xf0]  ;;  %v10064_v34 = vor.u32 %v13172_v9, %v10063_v8  ;;  %v12806_v13 = vld [vmem:[%s20596_s1 + $0xec] sm:$0xf] }
 0x16a   :  { %3754 = vmatpush.bf16.msrb.mxu0 %v10128_v12  ;;  %v3528_v12 = vpop.f32.mrf.mxu2  ;;  %v13268_v27 = vld [vmem:[%s20596_s1 + $0xf54] sm:$0xf0]  ;;  %v3504_v32 = vpop.f32.mrf.mxu0  ;;  %v10175_v46 = vld [vmem:[%s20596_s1 + $0xd28] sm:$0xf]  ;;  %v8609_v1 = vld [vmem:[%s20596_s1 + $0xf8] sm:$0xf0] }
 0x16b   :  { %3767 = vmatpush.bf16.msrb.mxu1 %v10256_v14  ;;  %v13204_v14 = vld [vmem:[%s20596_s1 + $0xd54] sm:$0xf0]  ;;  %v3529_v21 = vadd.f32 %v3528_v12, %v3516_v63  ;;  %v3541_v24 = vpop.f32.mrf.mxu3  ;;  %v3517_v36 = vpop.f32.mrf.mxu1  ;;  %v10303_v49 = vld [vmem:[%s20596_s1 + $0xe28] sm:$0xf]  ;;  %v8865_v8 = vld [vmem:[%s20596_s1 + $0x2f8] sm:$0xf0] }
 0x16c   :  { %3780 = vmatpush.bf16.msrb.mxu2 %v10384_v15  ;;  %v10319_v15 = vld [vmem:[%s20596_s1 + $0xe48] sm:$0xf]  ;;  %v13168_v45 = vld [vmem:[%s20596_s1 + $0xc34] sm:$0xf0]  ;;  %v8993_v12 = vld [vmem:[%s20596_s1 + $0x3f8] sm:$0xf0] }
 0x16d   :  { %3793 = vmatpush.bf16.msrb.mxu3 %v10512_v26  ;;  %v10447_v26 = vld [vmem:[%s20596_s1 + $0xf48] sm:$0xf]  ;;  %v16287_v37 = vadd.f32 %v3541_v24, %v3529_v21  ;;  %v13232_v50 = vld [vmem:[%s20596_s1 + $0xe34] sm:$0xf0]  ;;  %v12802_v24 = vld [vmem:[%s20596_s1 + $0xcc] sm:$0xf] }
 0x16e   :  { %3755 = vmatpush.bf16.msrb.mxu0 %v10112_v39  ;;  %v10192_v39 = vor.u32 %v13204_v14, %v10191_v10  ;;  %v10448_v47 = vor.u32 %v13268_v27, %v10447_v26  ;;  %v10431_v51 = vld [vmem:[%s20596_s1 + $0xf28] sm:$0xf]  ;;  %v13264_v62 = vld [vmem:[%s20596_s1 + $0xf34] sm:$0xf0]  ;;  %v10304_v56 = vor.u32 %v13232_v50, %v10303_v49  ;;  %v8593_v26 = vld [vmem:[%s20596_s1 + $0xd8] sm:$0xf0] }
 0x16f   :  { %3768 = vmatpush.bf16.msrb.mxu1 %v10240_v43  ;;  %v10320_v43 = vor.u32 %v13236_v17, %v10319_v15  ;;  %v10031_v52 = vld [vmem:[%s20596_s1 + $0xc08] sm:$0xf]  ;;  %v13164_v53 = vld [vmem:[%s20596_s1 + $0xc14] sm:$0xf0]  ;;  %v10432_v60 = vor.u32 %v13264_v62, %v10431_v51  ;;  %v8612_v15 = vor.u32 %v12806_v13, %v8609_v1  ;;  %v12834_v27 = vld [vmem:[%s20596_s1 + $0x1cc] sm:$0xf] }
 0x170   :  { %3781 = vmatpush.bf16.msrb.mxu2 %v10368_v16  ;;  %v10047_v16 = vld [vmem:[%s20596_s1 + $0xc28] sm:$0xf]  ;;  %v13228_v61 = vld [vmem:[%s20596_s1 + $0xe14] sm:$0xf0]  ;;  %v12866_v36 = vld [vmem:[%s20596_s1 + $0x2cc] sm:$0xf] }
 0x171   :  { %3794 = vmatpush.bf16.msrb.mxu3 %v10496_v48  ;;  %v13200_v48 = vld [vmem:[%s20596_s1 + $0xd34] sm:$0xf0]  ;;  %v10048_v55 = vor.u32 %v13168_v45, %v10047_v16  ;;  %v10287_v59 = vld [vmem:[%s20596_s1 + $0xe08] sm:$0xf]  ;;  %v8977_v16 = vld [vmem:[%s20596_s1 + $0x3d8] sm:$0xf0]  ;;  %v8596_v45 = vor.u32 %v12802_v24, %v8593_v26 }
 0x172   :  { %3756 = vmatpush.bf16.msrb.mxu0 %v10096_v54  ;;  %v10176_v54 = vor.u32 %v13200_v48, %v10175_v46  ;;  %v13260_v63 = vld [vmem:[%s20596_s1 + $0xf14] sm:$0xf0]  ;;  %v3530_v0 = vpop.f32.mrf.mxu2  ;;  %v10288_v10 = vor.u32 %v13228_v61, %v10287_v59  ;;  %v12798_v48 = vld [vmem:[%s20596_s1 + $0xac] sm:$0xf]  ;;  %v8577_v49 = vld [vmem:[%s20596_s1 + $0xb8] sm:$0xf0] }
 0x173   :  { %3769 = vmatpush.bf16.msrb.mxu1 %v10224_v57  ;;  %v10159_v57 = vld [vmem:[%s20596_s1 + $0xd08] sm:$0xf]  ;;  %v3543_v3 = vpop.f32.mrf.mxu3  ;;  %v12830_v50 = vld [vmem:[%s20596_s1 + $0x1ac] sm:$0xf]  ;;  %v8705_v62 = vld [vmem:[%s20596_s1 + $0x1b8] sm:$0xf0] }
 0x174   :  { %3782 = vmatpush.bf16.msrb.mxu2 %v10352_v58  ;;  %v13196_v58 = vld [vmem:[%s20596_s1 + $0xd14] sm:$0xf0]  ;;  %v12794_v59 = vld [vmem:[%s20596_s1 + $0x8c] sm:$0xf]  ;;  %v8817_v13 = vld [vmem:[%s20596_s1 + $0x298] sm:$0xf0] }
 0x175   :  { %3795 = vmatpush.bf16.msrb.mxu3 %v10480_v6  ;;  %v10415_v6 = vld [vmem:[%s20596_s1 + $0xf08] sm:$0xf]  ;;  %v10160_v9 = vor.u32 %v13196_v58, %v10159_v57  ;;  %v8708_v57 = vor.u32 %v12830_v50, %v8705_v62  ;;  %v12826_v61 = vld [vmem:[%s20596_s1 + $0x18c] sm:$0xf]  ;;  %v8945_v3 = vld [vmem:[%s20596_s1 + $0x398] sm:$0xf0] }
 0x176   :  { %3757 = vmatpush.bf16.msrb.mxu0 %v10080_v4  ;;  %v10032_v4 = vor.u32 %v13164_v53, %v10031_v52  ;;  %v10416_v14 = vor.u32 %v13260_v63, %v10415_v6  ;;  %v8833_v52 = vld [vmem:[%s20596_s1 + $0x2b8] sm:$0xf0]  ;;  %v12894_v53 = vld [vmem:[%s20596_s1 + $0x3ac] sm:$0xf] }
 0x177   :  { %3770 = vmatpush.bf16.msrb.mxu1 %v10208_v5  ;;  %v8737_v5 = vld [vmem:[%s20596_s1 + $0x1f8] sm:$0xf0]  ;;  %v12858_v0 = vld [vmem:[%s20596_s1 + $0x28c] sm:$0xf] }
 0x178   :  { %3783 = vmatpush.bf16.msrb.mxu2 %v10336_v7  ;;  %v12870_v7 = vld [vmem:[%s20596_s1 + $0x2ec] sm:$0xf]  ;;  %v8740_v17 = vor.u32 %v12838_v2, %v8737_v5  ;;  %v8689_v63 = vld [vmem:[%s20596_s1 + $0x198] sm:$0xf0] }
 0x179   :  { %3796 = vmatpush.bf16.msrb.mxu3 %v10464_v11  ;;  %v12902_v11 = vld [vmem:[%s20596_s1 + $0x3ec] sm:$0xf]  ;;  %v8868_v21 = vor.u32 %v12870_v7, %v8865_v8  ;;  %v8692_v8 = vor.u32 %v12826_v61, %v8689_v63  ;;  %v8929_v26 = vld [vmem:[%s20596_s1 + $0x378] sm:$0xf0] }
 0x17a   :  { %3758 = vmatpush.bf16.msrb.mxu0 %v10064_v34  ;;  %v8996_v32 = vor.u32 %v12902_v11, %v8993_v12  ;;  %v8721_v34 = vld [vmem:[%s20596_s1 + $0x1d8] sm:$0xf0]  ;;  %v12890_v2 = vld [vmem:[%s20596_s1 + $0x38c] sm:$0xf] }
 0x17b   :  { %3771 = vmatpush.bf16.msrb.mxu1 %v10192_v39  ;;  %v8849_v39 = vld [vmem:[%s20596_s1 + $0x2d8] sm:$0xf0]  ;;  %v8724_v46 = vor.u32 %v12834_v27, %v8721_v34  ;;  %v12822_v12 = vld [vmem:[%s20596_s1 + $0x16c] sm:$0xf] }
 0x17c   :  { %3784 = vmatpush.bf16.msrb.mxu2 %v10320_v43  ;;  %v12898_v43 = vld [vmem:[%s20596_s1 + $0x3cc] sm:$0xf]  ;;  %v8545_v11 = vld [vmem:[%s20596_s1 + $0x78] sm:$0xf0] }
 0x17d   :  { %3797 = vmatpush.bf16.msrb.mxu3 %v10448_v47  ;;  %v8852_v47 = vor.u32 %v12866_v36, %v8849_v39  ;;  %v8980_v51 = vor.u32 %v12898_v43, %v8977_v16  ;;  %v12886_v24 = vld [vmem:[%s20596_s1 + $0x36c] sm:$0xf]  ;;  %v8529_v39 = vld [vmem:[%s20596_s1 + $0x58] sm:$0xf0] }
 0x17e   :  { %3759 = vmatpush.bf16.msrb.mxu0 %v10048_v55  ;;  %v12862_v55 = vld [vmem:[%s20596_s1 + $0x2ac] sm:$0xf]  ;;  %v8932_v16 = vor.u32 %v12886_v24, %v8929_v26  ;;  %v8913_v62 = vld [vmem:[%s20596_s1 + $0x358] sm:$0xf0] }
 0x17f   :  { %3772 = vmatpush.bf16.msrb.mxu1 %v10176_v54  ;;  %v8961_v54 = vld [vmem:[%s20596_s1 + $0x3b8] sm:$0xf0]  ;;  %v8836_v58 = vor.u32 %v12862_v55, %v8833_v52  ;;  %v12786_v36 = vld [vmem:[%s20596_s1 + $0x4c] sm:$0xf] }
 0x180   :  { %3785 = vmatpush.bf16.msrb.mxu2 %v10304_v56  ;;  %v8580_v56 = vor.u32 %v12798_v48, %v8577_v49  ;;  %v8964_v6 = vor.u32 %v12894_v53, %v8961_v54  ;;  %v12818_v43 = vld [vmem:[%s20596_s1 + $0x14c] sm:$0xf]  ;;  %v8785_v48 = vld [vmem:[%s20596_s1 + $0x258] sm:$0xf0]  ;;  %v8532_v52 = vor.u32 %v12786_v36, %v8529_v39 }
 0x181   :  { %3798 = vmatpush.bf16.msrb.mxu3 %v10432_v60  ;;  %v8561_v60 = vld [vmem:[%s20596_s1 + $0x98] sm:$0xf0]  ;;  %v12846_v63 = vld [vmem:[%s20596_s1 + $0x22c] sm:$0xf] }
 0x182   :  { %3760 = vmatpush.bf16.msrb.mxu0 %v10032_v4  ;;  %v3554_v1 = vpop.f32.mrf.mxu0  ;;  %v8564_v5 = vor.u32 %v12794_v59, %v8561_v60  ;;  %v8513_v59 = vld [vmem:[%s20596_s1 + $0x38] sm:$0xf0]  ;;  %v12814_v60 = vld [vmem:[%s20596_s1 + $0x12c] sm:$0xf] }
 0x183   :  { %3773 = vmatpush.bf16.msrb.mxu1 %v10160_v9  ;;  %v3555_v4 = vadd.f32 %v3554_v1, %v16287_v37  ;;  %v3567_v7 = vpop.f32.mrf.mxu1  ;;  %v8820_v9 = vor.u32 %v12858_v0, %v8817_v13  ;;  %v8948_v37 = vor.u32 %v12890_v2, %v8945_v3  ;;  %v8769_v0 = vld [vmem:[%s20596_s1 + $0x238] sm:$0xf0]  ;;  %v12878_v13 = vld [vmem:[%s20596_s1 + $0x32c] sm:$0xf] }
 0x184   :  { %3786 = vmatpush.bf16.msrb.mxu2 %v10288_v10  ;;  %v12790_v10 = vld [vmem:[%s20596_s1 + $0x6c] sm:$0xf]  ;;  %v8897_v1 = vld [vmem:[%s20596_s1 + $0x338] sm:$0xf0] }
 0x185   :  { %3799 = vmatpush.bf16.msrb.mxu3 %v10416_v14  ;;  %3761 = vmatmul.bf16.vlgmr.msrb.gmra.mxu0 %v14769_v23  ;;  %v3568_v14 = vadd.f32 %v3567_v7, %v3555_v4  ;;  %v8548_v27 = vor.u32 %v12790_v10, %v8545_v11  ;;  %v12778_v3 = vld [vmem:[%s20596_s1 + $0xc] sm:$0xf]  ;;  %v8497_v4 = vld [vmem:[%s20596_s1 + $0x18] sm:$0xf0]  ;;  %v8772_v7 = vor.u32 %v12846_v63, %v8769_v0 }
 0x186   :  { %3805 = vmatpush.bf16.msra.mxu0 %v8612_v15  ;;  %3774 = vmatmul.bf16.vlgmr.msrb.gmra.mxu1 %v14782_v31  ;;  %v8673_v15 = vld [vmem:[%s20596_s1 + $0x178] sm:$0xf0]  ;;  %v12842_v10 = vld [vmem:[%s20596_s1 + $0x20c] sm:$0xf]  ;;  %v8900_v11 = vor.u32 %v12878_v13, %v8897_v1 }
 0x187   :  { %3818 = vmatpush.bf16.msra.mxu1 %v8740_v17  ;;  %3787 = vmatmul.bf16.vlgmr.msrb.gmra.mxu2 %v14780_v28  ;;  %v12854_v17 = vld [vmem:[%s20596_s1 + $0x26c] sm:$0xf]  ;;  %v9377_v36 = vld [vmem:[%s20596_s1 + $0x6f8] sm:$0xf0] }
 0x188   :  { %3831 = vmatpush.bf16.msra.mxu2 %v8868_v21  ;;  %3800 = vmatmul.bf16.vlgmr.msrb.gmra.mxu3 %v14790_v35  ;;  %v8801_v21 = vld [vmem:[%s20596_s1 + $0x278] sm:$0xf0]  ;;  %v12966_v24 = vld [vmem:[%s20596_s1 + $0x5ec] sm:$0xf] }
 0x189   :  { %3844 = vmatpush.bf16.msra.mxu3 %v8996_v32  ;;  %v8676_v32 = vor.u32 %v12822_v12, %v8673_v15  ;;  %v8804_v34 = vor.u32 %v12854_v17, %v8801_v21  ;;  %v8753_v12 = vld [vmem:[%s20596_s1 + $0x218] sm:$0xf0]  ;;  %v12934_v17 = vld [vmem:[%s20596_s1 + $0x4ec] sm:$0xf] }
 0x18a   :  { %3806 = vmatpush.bf16.msra.mxu0 %v8596_v45  ;;  %v3580_v45 = vpop.f32.mrf.mxu2  ;;  %v3556_v55 = vpop.f32.mrf.mxu0  ;;  %v9121_v21 = vld [vmem:[%s20596_s1 + $0x4f8] sm:$0xf0]  ;;  %v12958_v0 = vld [vmem:[%s20596_s1 + $0x5ac] sm:$0xf] }
 0x18b   :  { %3819 = vmatpush.bf16.msra.mxu1 %v8724_v46  ;;  %v8657_v46 = vld [vmem:[%s20596_s1 + $0x158] sm:$0xf0]  ;;  %v3581_v49 = vadd.f32 %v3580_v45, %v3568_v14  ;;  %v3593_v50 = vpop.f32.mrf.mxu3  ;;  %v3569_v53 = vpop.f32.mrf.mxu1 }
 0x18c   :  { %3832 = vmatpush.bf16.msra.mxu2 %v8852_v47  ;;  %v12850_v47 = vld [vmem:[%s20596_s1 + $0x24c] sm:$0xf]  ;;  %v8881_v14 = vld [vmem:[%s20596_s1 + $0x318] sm:$0xf0] }
 0x18d   :  { %3845 = vmatpush.bf16.msra.mxu3 %v8980_v51  ;;  %v12882_v51 = vld [vmem:[%s20596_s1 + $0x34c] sm:$0xf]  ;;  %v16486_v54 = vadd.f32 %v3593_v50, %v3581_v49  ;;  %v9505_v45 = vld [vmem:[%s20596_s1 + $0x7f8] sm:$0xf0] }
 0x18e   :  { %3807 = vmatpush.bf16.msra.mxu0 %v8580_v56  ;;  %v8660_v56 = vor.u32 %v12818_v43, %v8657_v46  ;;  %v8916_v61 = vor.u32 %v12882_v51, %v8913_v62  ;;  %v8756_v43 = vor.u32 %v12842_v10, %v8753_v12  ;;  %v12930_v50 = vld [vmem:[%s20596_s1 + $0x4cc] sm:$0xf]  ;;  %v9105_v51 = vld [vmem:[%s20596_s1 + $0x4d8] sm:$0xf0] }
 0x18f   :  { %3820 = vmatpush.bf16.msra.mxu1 %v8708_v57  ;;  %v8788_v57 = vor.u32 %v12850_v47, %v8785_v48  ;;  %v9124_v47 = vor.u32 %v12934_v17, %v9121_v21  ;;  %v12962_v62 = vld [vmem:[%s20596_s1 + $0x5cc] sm:$0xf]  ;;  %v9089_v63 = vld [vmem:[%s20596_s1 + $0x4b8] sm:$0xf0] }
 0x190   :  { %3833 = vmatpush.bf16.msra.mxu2 %v8836_v58  ;;  %v12782_v58 = vld [vmem:[%s20596_s1 + $0x2c] sm:$0xf]  ;;  %v9217_v1 = vld [vmem:[%s20596_s1 + $0x5b8] sm:$0xf0] }
 0x191   :  { %3846 = vmatpush.bf16.msra.mxu3 %v8964_v6  ;;  %v8641_v6 = vld [vmem:[%s20596_s1 + $0x138] sm:$0xf0]  ;;  %v8516_v2 = vor.u32 %v12782_v58, %v8513_v59  ;;  %v12994_v53 = vld [vmem:[%s20596_s1 + $0x6cc] sm:$0xf]  ;;  %v9108_v59 = vor.u32 %v12930_v50, %v9105_v51 }
 0x192   :  { %3808 = vmatpush.bf16.msra.mxu0 %v8564_v5  ;;  %v8644_v5 = vor.u32 %v12814_v60, %v8641_v6  ;;  %v3582_v15 = vpop.f32.mrf.mxu2  ;;  %v9489_v58 = vld [vmem:[%s20596_s1 + $0x7d8] sm:$0xf0]  ;;  %v12926_v6 = vld [vmem:[%s20596_s1 + $0x4ac] sm:$0xf] }
 0x193   :  { %3821 = vmatpush.bf16.msra.mxu1 %v8692_v8  ;;  %v12810_v8 = vld [vmem:[%s20596_s1 + $0x10c] sm:$0xf]  ;;  %v3595_v26 = vpop.f32.mrf.mxu3  ;;  %v9073_v10 = vld [vmem:[%s20596_s1 + $0x498] sm:$0xf0] }
 0x194   :  { %3834 = vmatpush.bf16.msra.mxu2 %v8820_v9  ;;  %v8625_v9 = vld [vmem:[%s20596_s1 + $0x118] sm:$0xf0]  ;;  %v13018_v15 = vld [vmem:[%s20596_s1 + $0x78c] sm:$0xf] }
 0x195   :  { %3847 = vmatpush.bf16.msra.mxu3 %v8948_v37  ;;  %v12874_v37 = vld [vmem:[%s20596_s1 + $0x30c] sm:$0xf]  ;;  %v8628_v39 = vor.u32 %v12810_v8, %v8625_v9  ;;  %v9201_v12 = vld [vmem:[%s20596_s1 + $0x598] sm:$0xf0] }
 0x196   :  { %3809 = vmatpush.bf16.msra.mxu0 %v8548_v27  ;;  %v8500_v27 = vor.u32 %v12778_v3, %v8497_v4  ;;  %v8884_v46 = vor.u32 %v12874_v37, %v8881_v14  ;;  %v9345_v3 = vld [vmem:[%s20596_s1 + $0x6b8] sm:$0xf0]  ;;  %v13022_v4 = vld [vmem:[%s20596_s1 + $0x7ac] sm:$0xf] }
 0x197   :  { %3822 = vmatpush.bf16.msra.mxu1 %v8676_v32  ;;  %v9249_v32 = vld [vmem:[%s20596_s1 + $0x5f8] sm:$0xf0]  ;;  %v12922_v8 = vld [vmem:[%s20596_s1 + $0x48c] sm:$0xf] }
 0x198   :  { %3835 = vmatpush.bf16.msra.mxu2 %v8804_v34  ;;  %v12998_v34 = vld [vmem:[%s20596_s1 + $0x6ec] sm:$0xf]  ;;  %v9252_v48 = vor.u32 %v12966_v24, %v9249_v32  ;;  %v9329_v14 = vld [vmem:[%s20596_s1 + $0x698] sm:$0xf0]  ;;  %v9076_v21 = vor.u32 %v12922_v8, %v9073_v10 }
 0x199   :  { %3848 = vmatpush.bf16.msra.mxu3 %v8932_v16  ;;  %v13030_v16 = vld [vmem:[%s20596_s1 + $0x7ec] sm:$0xf]  ;;  %v9380_v49 = vor.u32 %v12998_v34, %v9377_v36  ;;  %v9457_v17 = vld [vmem:[%s20596_s1 + $0x798] sm:$0xf0] }
 0x19a   :  { %3810 = vmatpush.bf16.msra.mxu0 %v8532_v52  ;;  %v9508_v55 = vor.u32 %v13030_v16, %v9505_v45  ;;  %v9233_v52 = vld [vmem:[%s20596_s1 + $0x5d8] sm:$0xf0]  ;;  %v12986_v37 = vld [vmem:[%s20596_s1 + $0x68c] sm:$0xf]  ;;  %v9460_v16 = vor.u32 %v13018_v15, %v9457_v17 }
 0x19b   :  { %3823 = vmatpush.bf16.msra.mxu1 %v8660_v56  ;;  %v9361_v56 = vld [vmem:[%s20596_s1 + $0x6d8] sm:$0xf0]  ;;  %v9236_v60 = vor.u32 %v12962_v62, %v9233_v52  ;;  %v12918_v32 = vld [vmem:[%s20596_s1 + $0x46c] sm:$0xf] }
 0x19c   :  { %3836 = vmatpush.bf16.msra.mxu2 %v8788_v57  ;;  %v13026_v57 = vld [vmem:[%s20596_s1 + $0x7cc] sm:$0xf]  ;;  %v9057_v34 = vld [vmem:[%s20596_s1 + $0x478] sm:$0xf0] }
 0x19d   :  { %3849 = vmatpush.bf16.msra.mxu3 %v8916_v61  ;;  %v9364_v61 = vor.u32 %v12994_v53, %v9361_v56  ;;  %v9492_v13 = vor.u32 %v13026_v57, %v9489_v58  ;;  %v12950_v36 = vld [vmem:[%s20596_s1 + $0x56c] sm:$0xf]  ;;  %v9185_v45 = vld [vmem:[%s20596_s1 + $0x578] sm:$0xf0]  ;;  %v9060_v51 = vor.u32 %v12918_v32, %v9057_v34 }
 0x19e   :  { %3811 = vmatpush.bf16.msra.mxu0 %v8516_v2  ;;  %v12990_v2 = vld [vmem:[%s20596_s1 + $0x6ac] sm:$0xf]  ;;  %v9188_v62 = vor.u32 %v12950_v36, %v9185_v45  ;;  %v9041_v53 = vld [vmem:[%s20596_s1 + $0x458] sm:$0xf0] }
 0x19f   :  { %3824 = vmatpush.bf16.msra.mxu1 %v8644_v5  ;;  %v9473_v5 = vld [vmem:[%s20596_s1 + $0x7b8] sm:$0xf0]  ;;  %v9348_v9 = vor.u32 %v12990_v2, %v9345_v3  ;;  %v12914_v52 = vld [vmem:[%s20596_s1 + $0x44c] sm:$0xf] }
 0x1a0   :  { %3837 = vmatpush.bf16.msra.mxu2 %v8772_v7  ;;  %v9092_v7 = vor.u32 %v12926_v6, %v9089_v63  ;;  %v12946_v56 = vld [vmem:[%s20596_s1 + $0x54c] sm:$0xf]  ;;  %v9025_v8 = vld [vmem:[%s20596_s1 + $0x438] sm:$0xf0] }
 0x1a1   :  { %3850 = vmatpush.bf16.msra.mxu3 %v8900_v11  ;;  %v12906_v15 = vld [vmem:[%s20596_s1 + $0x40c] sm:$0xf]  ;;  %v9009_v17 = vld [vmem:[%s20596_s1 + $0x418] sm:$0xf0] }
 0x1a2   :  { %3812 = vmatpush.bf16.msra.mxu0 %v8500_v27  ;;  %v3606_v24 = vpop.f32.mrf.mxu0  ;;  %v9332_v27 = vor.u32 %v12986_v37, %v9329_v14  ;;  %v9409_v37 = vld [vmem:[%s20596_s1 + $0x738] sm:$0xf0]  ;;  %v12970_v32 = vld [vmem:[%s20596_s1 + $0x60c] sm:$0xf] }
 0x1a3   :  { %3825 = vmatpush.bf16.msra.mxu1 %v8628_v39 }
 0x1a4   :  { %3838 = vmatpush.bf16.msra.mxu2 %v8756_v43  ;;  %v3619_v43 = vpop.f32.mrf.mxu1 }
 0x1a5   :  { %3851 = vmatpush.bf16.msra.mxu3 %v8884_v46  ;;  %3813 = vmatmul.bf16.vlgmr.msra.gmra.mxu0 %v14204_v19  ;;  %v12954_v19 = vld [vmem:[%s20596_s1 + $0x58c] sm:$0xf] }
 0x1a6   :  { %3857 = vmatpush.bf16.msrb.mxu0 %v9124_v47  ;;  %3826 = vmatmul.bf16.vlgmr.msra.gmra.mxu1 %v14208_v22  ;;  %v9476_v22 = vor.u32 %v13022_v4, %v9473_v5  ;;  %v9204_v26 = vor.u32 %v12954_v19, %v9201_v12  ;;  %v12982_v46 = vld [vmem:[%s20596_s1 + $0x66c] sm:$0xf]  ;;  %v9313_v47 = vld [vmem:[%s20596_s1 + $0x678] sm:$0xf0] }
 0x1a7   :  { %3870 = vmatpush.bf16.msrb.mxu1 %v9252_v48  ;;  %3839 = vmatmul.bf16.vlgmr.msra.gmra.mxu2 %v14202_v18  ;;  %v9220_v18 = vor.u32 %v12958_v0, %v9217_v1  ;;  %v13014_v48 = vld [vmem:[%s20596_s1 + $0x76c] sm:$0xf]  ;;  %v9044_v1 = vor.u32 %v12914_v52, %v9041_v53  ;;  %v9153_v19 = vld [vmem:[%s20596_s1 + $0x538] sm:$0xf0] }
 0x1a8   :  { %3883 = vmatpush.bf16.msrb.mxu2 %v9380_v49  ;;  %3852 = vmatmul.bf16.vlgmr.msra.gmra.mxu3 %v14206_v20  ;;  %v16624_v20 = vld [vmem:[%s20598_s2] sm:$0xf]  ;;  %v9441_v49 = vld [vmem:[%s20596_s1 + $0x778] sm:$0xf0]  ;;  %v13010_v0 = vld [vmem:[%s20596_s1 + $0x74c] sm:$0xf] }
 0x1a9   :  { %3896 = vmatpush.bf16.msrb.mxu3 %v9508_v55  ;;  %v559_v11 = vperm.slane %v16624_v20, 2  ;;  %v9316_v55 = vor.u32 %v12982_v46, %v9313_v47  ;;  %v9444_v58 = vor.u32 %v13014_v48, %v9441_v49  ;;  %v13006_v12 = vld [vmem:[%s20596_s1 + $0x72c] sm:$0xf]  ;;  %v9633_v47 = vld [vmem:[%s20596_s1 + $0x8f8] sm:$0xf0]  ;;  %v9012_v49 = vor.u32 %v12906_v15, %v9009_v17 }
 0x1aa   :  { %3858 = vmatpush.bf16.msrb.mxu0 %v9108_v59  ;;  %v3632_v57 = vpop.f32.mrf.mxu2  ;;  %v9169_v59 = vld [vmem:[%s20596_s1 + $0x558] sm:$0xf0]  ;;  %v3608_v3 = vpop.f32.mrf.mxu0  ;;  %v9412_v36 = vor.u32 %v13006_v12, %v9409_v37  ;;  %v13062_v46 = vld [vmem:[%s20596_s1 + $0x8ec] sm:$0xf] }
 0x1ab   :  { %3871 = vmatpush.bf16.msrb.mxu1 %v9236_v60  ;;  %v3607_v39 = vadd.f32 %v3606_v24, %v559_v11  ;;  %v12978_v60 = vld [vmem:[%s20596_s1 + $0x64c] sm:$0xf]  ;;  %v3645_v63 = vpop.f32.mrf.mxu3  ;;  %v9172_v4 = vor.u32 %v12946_v56, %v9169_v59  ;;  %v10017_v56 = vld [vmem:[%s20596_s1 + $0xbf8] sm:$0xf0] }
 0x1ac   :  { %3884 = vmatpush.bf16.msrb.mxu2 %v9364_v61  ;;  %v9297_v61 = vld [vmem:[%s20596_s1 + $0x658] sm:$0xf0]  ;;  %v12974_v11 = vld [vmem:[%s20596_s1 + $0x62c] sm:$0xf] }
 0x1ad   :  { %3897 = vmatpush.bf16.msrb.mxu3 %v9492_v13  ;;  %v3620_v50 = vadd.f32 %v3619_v43, %v3607_v39  ;;  %v9425_v13 = vld [vmem:[%s20596_s1 + $0x758] sm:$0xf0]  ;;  %v9300_v5 = vor.u32 %v12978_v60, %v9297_v61  ;;  %v13002_v43 = vld [vmem:[%s20596_s1 + $0x70c] sm:$0xf] }
 0x1ae   :  { %3859 = vmatpush.bf16.msrb.mxu0 %v9092_v7  ;;  %v12910_v7 = vld [vmem:[%s20596_s1 + $0x42c] sm:$0xf]  ;;  %v9428_v10 = vor.u32 %v13010_v0, %v9425_v13  ;;  %v9265_v39 = vld [vmem:[%s20596_s1 + $0x618] sm:$0xf0] }
 0x1af   :  { %3872 = vmatpush.bf16.msrb.mxu1 %v9220_v18  ;;  %v3633_v6 = vadd.f32 %v3632_v57, %v3620_v50  ;;  %v12942_v18 = vld [vmem:[%s20596_s1 + $0x52c] sm:$0xf]  ;;  %v9028_v14 = vor.u32 %v12910_v7, %v9025_v8  ;;  %v9761_v50 = vld [vmem:[%s20596_s1 + $0x9f8] sm:$0xf0]  ;;  %v9268_v52 = vor.u32 %v12970_v32, %v9265_v39 }
 0x1b0   :  { %3885 = vmatpush.bf16.msrb.mxu2 %v9348_v9  ;;  %v3621_v9 = vpop.f32.mrf.mxu1  ;;  %v13094_v48 = vld [vmem:[%s20596_s1 + $0x9ec] sm:$0xf]  ;;  %v9745_v13 = vld [vmem:[%s20596_s1 + $0x9d8] sm:$0xf0] }
 0x1b1   :  { %3898 = vmatpush.bf16.msrb.mxu3 %v9476_v22  ;;  %v16690_v2 = vadd.f32 %v3645_v63, %v3633_v6  ;;  %v9281_v22 = vld [vmem:[%s20596_s1 + $0x638] sm:$0xf0]  ;;  %v13158_v53 = vld [vmem:[%s20596_s1 + $0xbec] sm:$0xf]  ;;  %v9764_v59 = vor.u32 %v13094_v48, %v9761_v50 }
 0x1b2   :  { %3860 = vmatpush.bf16.msrb.mxu0 %v9076_v21  ;;  %v9156_v21 = vor.u32 %v12942_v18, %v9153_v19  ;;  %v9284_v24 = vor.u32 %v12974_v11, %v9281_v22  ;;  %v3634_v34 = vpop.f32.mrf.mxu2  ;;  %v13058_v61 = vld [vmem:[%s20596_s1 + $0x8cc] sm:$0xf]  ;;  %v9617_v6 = vld [vmem:[%s20596_s1 + $0x8d8] sm:$0xf0]  ;;  %v10020_v0 = vor.u32 %v13158_v53, %v10017_v56 }
 0x1b3   :  { %3873 = vmatpush.bf16.msrb.mxu1 %v9204_v26  ;;  %v12938_v26 = vld [vmem:[%s20596_s1 + $0x50c] sm:$0xf]  ;;  %v3647_v45 = vpop.f32.mrf.mxu3  ;;  %v9873_v3 = vld [vmem:[%s20596_s1 + $0xad8] sm:$0xf0]  ;;  %v9620_v7 = vor.u32 %v13058_v61, %v9617_v6 }
 0x1b4   :  { %3886 = vmatpush.bf16.msrb.mxu2 %v9332_v27  ;;  %v9137_v27 = vld [vmem:[%s20596_s1 + $0x518] sm:$0xf0]  ;;  %v13090_v63 = vld [vmem:[%s20596_s1 + $0x9cc] sm:$0xf] }
 0x1b5   :  { %3899 = vmatpush.bf16.msrb.mxu3 %v9460_v16  ;;  %v9393_v16 = vld [vmem:[%s20596_s1 + $0x718] sm:$0xf0]  ;;  %v9748_v8 = vor.u32 %v13090_v63, %v9745_v13  ;;  %v13054_v9 = vld [vmem:[%s20596_s1 + $0x8ac] sm:$0xf] }
 0x1b6   :  { %3861 = vmatpush.bf16.msrb.mxu0 %v9060_v51  ;;  %v13126_v51 = vld [vmem:[%s20596_s1 + $0xaec] sm:$0xf]  ;;  %v9396_v57 = vor.u32 %v13002_v43, %v9393_v16  ;;  %v9729_v22 = vld [vmem:[%s20596_s1 + $0x9b8] sm:$0xf0] }
 0x1b7   :  { %3874 = vmatpush.bf16.msrb.mxu1 %v9188_v62  ;;  %v9889_v62 = vld [vmem:[%s20596_s1 + $0xaf8] sm:$0xf0]  ;;  %v13086_v19 = vld [vmem:[%s20596_s1 + $0x9ac] sm:$0xf] }
 0x1b8   :  { %3887 = vmatpush.bf16.msrb.mxu2 %v9316_v55  ;;  %v9140_v55 = vor.u32 %v12938_v26, %v9137_v27  ;;  %v9892_v60 = vor.u32 %v13126_v51, %v9889_v62  ;;  %v13118_v12 = vld [vmem:[%s20596_s1 + $0xaac] sm:$0xf]  ;;  %v9857_v37 = vld [vmem:[%s20596_s1 + $0xab8] sm:$0xf0]  ;;  %v9732_v17 = vor.u32 %v13086_v19, %v9729_v22 }
 0x1b9   :  { %3900 = vmatpush.bf16.msrb.mxu3 %v9444_v58  ;;  %v9636_v58 = vor.u32 %v13062_v46, %v9633_v47  ;;  %v9585_v26 = vld [vmem:[%s20596_s1 + $0x898] sm:$0xf0]  ;;  %v13114_v27 = vld [vmem:[%s20596_s1 + $0xa8c] sm:$0xf] }
 0x1ba   :  { %3862 = vmatpush.bf16.msrb.mxu0 %v9044_v1  ;;  %v13122_v1 = vld [vmem:[%s20596_s1 + $0xacc] sm:$0xf]  ;;  %v9841_v32 = vld [vmem:[%s20596_s1 + $0xa98] sm:$0xf0] }
 0x1bb   :  { %3875 = vmatpush.bf16.msrb.mxu1 %v9172_v4  ;;  %v13154_v4 = vld [vmem:[%s20596_s1 + $0xbcc] sm:$0xf]  ;;  %v9876_v18 = vor.u32 %v13122_v1, %v9873_v3  ;;  %v9844_v45 = vor.u32 %v13114_v27, %v9841_v32  ;;  %v9569_v47 = vld [vmem:[%s20596_s1 + $0x878] sm:$0xf0] }
 0x1bc   :  { %3888 = vmatpush.bf16.msrb.mxu2 %v9300_v5  ;;  %v10001_v5 = vld [vmem:[%s20596_s1 + $0xbd8] sm:$0xf0]  ;;  %v13146_v34 = vld [vmem:[%s20596_s1 + $0xb8c] sm:$0xf] }
 0x1bd   :  { %3901 = vmatpush.bf16.msrb.mxu3 %v9428_v10  ;;  %v9601_v10 = vld [vmem:[%s20596_s1 + $0x8b8] sm:$0xf0]  ;;  %v10004_v11 = vor.u32 %v13154_v4, %v10001_v5  ;;  %v13046_v46 = vld [vmem:[%s20596_s1 + $0x86c] sm:$0xf] }
 0x1be   :  { %3863 = vmatpush.bf16.msrb.mxu0 %v9028_v14  ;;  %v13150_v14 = vld [vmem:[%s20596_s1 + $0xbac] sm:$0xf]  ;;  %v9604_v15 = vor.u32 %v13054_v9, %v9601_v10  ;;  %v9697_v51 = vld [vmem:[%s20596_s1 + $0x978] sm:$0xf0]  ;;  %v9572_v56 = vor.u32 %v13046_v46, %v9569_v47 }
 0x1bf   :  { %3876 = vmatpush.bf16.msrb.mxu1 %v9156_v21  ;;  %v9860_v21 = vor.u32 %v13118_v12, %v9857_v37  ;;  %v13078_v48 = vld [vmem:[%s20596_s1 + $0x96c] sm:$0xf]  ;;  %v9953_v53 = vld [vmem:[%s20596_s1 + $0xb78] sm:$0xf0] }
 0x1c0   :  { %3889 = vmatpush.bf16.msrb.mxu2 %v9284_v24  ;;  %v13050_v24 = vld [vmem:[%s20596_s1 + $0x88c] sm:$0xf]  ;;  %v9809_v1 = vld [vmem:[%s20596_s1 + $0xa58] sm:$0xf0] }
 0x1c1   :  { %3902 = vmatpush.bf16.msrb.mxu3 %v9412_v36  ;;  %v9969_v36 = vld [vmem:[%s20596_s1 + $0xb98] sm:$0xf0]  ;;  %v9588_v39 = vor.u32 %v13050_v24, %v9585_v26  ;;  %v13110_v62 = vld [vmem:[%s20596_s1 + $0xa6c] sm:$0xf] }
 0x1c2   :  { %3864 = vmatpush.bf16.msrb.mxu0 %v9012_v49  ;;  %v16840_v43 = vpop.f32.mrf.mxu0  ;;  %v9972_v50 = vor.u32 %v13146_v34, %v9969_v36  ;;  %v13074_v61 = vld [vmem:[%s20596_s1 + $0x94c] sm:$0xf]  ;;  %v9937_v5 = vld [vmem:[%s20596_s1 + $0xb58] sm:$0xf0] }
 0x1c3   :  { %3877 = vmatpush.bf16.msrb.mxu1 %v9140_v55  ;;  %v16851_v49 = vpop.f32.mrf.mxu1  ;;  %v9825_v55 = vld [vmem:[%s20596_s1 + $0xa78] sm:$0xf0]  ;;  %v13106_v13 = vld [vmem:[%s20596_s1 + $0xa4c] sm:$0xf] }
 0x1c4   :  { %3890 = vmatpush.bf16.msrb.mxu2 %v9268_v52  ;;  %v13142_v52 = vld [vmem:[%s20596_s1 + $0xb6c] sm:$0xf]  ;;  %v9812_v9 = vor.u32 %v13106_v13, %v9809_v1  ;;  %v9537_v19 = vld [vmem:[%s20596_s1 + $0x838] sm:$0xf0] }
 0x1c5   :  { %3903 = vmatpush.bf16.msrb.mxu3 %v9396_v57  ;;  %3865 = vmatmul.bf16.vlgmr.msrb.gmra.mxu0 %v14366_v41  ;;  %v13082_v41 = vld [vmem:[%s20596_s1 + $0x98c] sm:$0xf]  ;;  %v9700_v57 = vor.u32 %v13078_v48, %v9697_v51  ;;  %v9956_v63 = vor.u32 %v13142_v52, %v9953_v53  ;;  %v9665_v37 = vld [vmem:[%s20596_s1 + $0x938] sm:$0xf0] }
 0x1c6   :  { %3909 = vmatpush.bf16.msra.mxu0 %v9636_v58  ;;  %3878 = vmatmul.bf16.vlgmr.msrb.gmra.mxu1 %v14370_v44  ;;  %v9713_v44 = vld [vmem:[%s20596_s1 + $0x998] sm:$0xf0]  ;;  %v9828_v58 = vor.u32 %v13110_v62, %v9825_v55  ;;  %v13138_v4 = vld [vmem:[%s20596_s1 + $0xb4c] sm:$0xf] }
 0x1c7   :  { %3922 = vmatpush.bf16.msra.mxu1 %v9764_v59  ;;  %3891 = vmatmul.bf16.vlgmr.msrb.gmra.mxu2 %v14358_v38  ;;  %v9985_v38 = vld [vmem:[%s20596_s1 + $0xbb8] sm:$0xf0]  ;;  %v9716_v16 = vor.u32 %v13082_v41, %v9713_v44  ;;  %v13042_v59 = vld [vmem:[%s20596_s1 + $0x84c] sm:$0xf]  ;;  %v9940_v12 = vor.u32 %v13138_v4, %v9937_v5 }
 0x1c8   :  { %3935 = vmatpush.bf16.msra.mxu2 %v9892_v60  ;;  %3904 = vmatmul.bf16.vlgmr.msrb.gmra.mxu3 %v14368_v42  ;;  %v9988_v42 = vor.u32 %v13150_v14, %v9985_v38  ;;  %v9553_v60 = vld [vmem:[%s20596_s1 + $0x858] sm:$0xf0]  ;;  %v13038_v10 = vld [vmem:[%s20596_s1 + $0x82c] sm:$0xf] }
 0x1c9   :  { %3948 = vmatpush.bf16.msra.mxu3 %v10020_v0  ;;  %v9681_v0 = vld [vmem:[%s20596_s1 + $0x958] sm:$0xf0]  ;;  %v13102_v14 = vld [vmem:[%s20596_s1 + $0xa2c] sm:$0xf] }
 0x1ca   :  { %3910 = vmatpush.bf16.msra.mxu0 %v9620_v7  ;;  %v16877_v6 = vpop.f32.mrf.mxu2  ;;  %v9556_v7 = vor.u32 %v13042_v59, %v9553_v60  ;;  %v9793_v38 = vld [vmem:[%s20596_s1 + $0xa38] sm:$0xf0]  ;;  %v13034_v24 = vld [vmem:[%s20596_s1 + $0x80c] sm:$0xf] }
 0x1cb   :  { %3923 = vmatpush.bf16.msra.mxu1 %v9748_v8  ;;  %v16888_v3 = vpop.f32.mrf.mxu3  ;;  %v3660_v8 = vpop.f32.mrf.mxu0  ;;  %v9521_v26 = vld [vmem:[%s20596_s1 + $0x818] sm:$0xf0]  ;;  %v13066_v44 = vld [vmem:[%s20596_s1 + $0x90c] sm:$0xf] }
 0x1cc   :  { %3936 = vmatpush.bf16.msra.mxu2 %v9876_v18  ;;  %v9684_v18 = vor.u32 %v13074_v61, %v9681_v0  ;;  %v3673_v22 = vpop.f32.mrf.mxu1  ;;  %v9649_v27 = vld [vmem:[%s20596_s1 + $0x918] sm:$0xf0]  ;;  %v13098_v32 = vld [vmem:[%s20596_s1 + $0xa0c] sm:$0xf]  ;;  %v9524_v51 = vor.u32 %v13034_v24, %v9521_v26 }
 0x1cd   :  { %3949 = vmatpush.bf16.msra.mxu3 %v10004_v11  ;;  %v13070_v11 = vld [vmem:[%s20596_s1 + $0x92c] sm:$0xf]  ;;  %v10145_v48 = vld [vmem:[%s20596_s1 + $0xcf8] sm:$0xf0]  ;;  %v9652_v53 = vor.u32 %v13066_v44, %v9649_v27 }
 0x1ce   :  { %3911 = vmatpush.bf16.msra.mxu0 %v9604_v15  ;;  %v13134_v15 = vld [vmem:[%s20596_s1 + $0xb2c] sm:$0xf]  ;;  %v9668_v41 = vor.u32 %v13070_v11, %v9665_v37  ;;  %v10273_v62 = vld [vmem:[%s20596_s1 + $0xdf8] sm:$0xf0] }
 0x1cf   :  { %3924 = vmatpush.bf16.msra.mxu1 %v9732_v17  ;;  %v9921_v17 = vld [vmem:[%s20596_s1 + $0xb38] sm:$0xf0]  ;;  %v13190_v47 = vld [vmem:[%s20596_s1 + $0xcec] sm:$0xf] }
 0x1d0   :  { %3937 = vmatpush.bf16.msra.mxu2 %v9860_v21  ;;  %v9540_v21 = vor.u32 %v13038_v10, %v9537_v19  ;;  %v9924_v36 = vor.u32 %v13134_v15, %v9921_v17  ;;  %v13254_v55 = vld [vmem:[%s20596_s1 + $0xeec] sm:$0xf]  ;;  %v10401_v52 = vld [vmem:[%s20596_s1 + $0xef8] sm:$0xf0]  ;;  %v10148_v60 = vor.u32 %v13190_v47, %v10145_v48 }
 0x1d1   :  { %3950 = vmatpush.bf16.msra.mxu3 %v9988_v42  ;;  %v9796_v42 = vor.u32 %v13102_v14, %v9793_v38  ;;  %v13186_v0 = vld [vmem:[%s20596_s1 + $0xccc] sm:$0xf]  ;;  %v10129_v13 = vld [vmem:[%s20596_s1 + $0xcd8] sm:$0xf0] }
 0x1d2   :  { %3912 = vmatpush.bf16.msra.mxu0 %v9588_v39  ;;  %v3686_v34 = vpop.f32.mrf.mxu2  ;;  %v9777_v39 = vld [vmem:[%s20596_s1 + $0xa18] sm:$0xf0]  ;;  %v13218_v1 = vld [vmem:[%s20596_s1 + $0xdcc] sm:$0xf]  ;;  %v10132_v10 = vor.u32 %v13186_v0, %v10129_v13 }
 0x1d3   :  { %3925 = vmatpush.bf16.msra.mxu1 %v9716_v16  ;;  %v13130_v16 = vld [vmem:[%s20596_s1 + $0xb0c] sm:$0xf]  ;;  %v3699_v46 = vpop.f32.mrf.mxu3  ;;  %v10257_v5 = vld [vmem:[%s20596_s1 + $0xdd8] sm:$0xf0] }
 0x1d4   :  { %3938 = vmatpush.bf16.msra.mxu2 %v9844_v45  ;;  %v9905_v45 = vld [vmem:[%s20596_s1 + $0xb18] sm:$0xf0]  ;;  %v10260_v19 = vor.u32 %v13218_v1, %v10257_v5  ;;  %v13182_v22 = vld [vmem:[%s20596_s1 + $0xcac] sm:$0xf] }
 0x1d5   :  { %3951 = vmatpush.bf16.msra.mxu3 %v9972_v50  ;;  %v13222_v50 = vld [vmem:[%s20596_s1 + $0xdec] sm:$0xf]  ;;  %v9908_v59 = vor.u32 %v13130_v16, %v9905_v45  ;;  %v10385_v8 = vld [vmem:[%s20596_s1 + $0xed8] sm:$0xf0] }
 0x1d6   :  { %3913 = vmatpush.bf16.msra.mxu0 %v9572_v56  ;;  %v9780_v56 = vor.u32 %v13098_v32, %v9777_v39  ;;  %v10276_v61 = vor.u32 %v13222_v50, %v10273_v62  ;;  %v13214_v37 = vld [vmem:[%s20596_s1 + $0xdac] sm:$0xf]  ;;  %v10241_v38 = vld [vmem:[%s20596_s1 + $0xdb8] sm:$0xf0] }
 0x1d7   :  { %3926 = vmatpush.bf16.msra.mxu1 %v9700_v57  ;;  %v13286_v57 = vld [vmem:[%s20596_s1 + $0xfec] sm:$0xf]  ;;  %v10369_v17 = vld [vmem:[%s20596_s1 + $0xeb8] sm:$0xf0]  ;;  %v10244_v26 = vor.u32 %v13214_v37, %v10241_v38 }
 0x1d8   :  { %3939 = vmatpush.bf16.msra.mxu2 %v9828_v58  ;;  %v10529_v58 = vld [vmem:[%s20596_s1 + $0xff8] sm:$0xf0]  ;;  %v13246_v15 = vld [vmem:[%s20596_s1 + $0xeac] sm:$0xf] }
 0x1d9   :  { %3952 = vmatpush.bf16.msra.mxu3 %v9956_v63  ;;  %v10404_v63 = vor.u32 %v13254_v55, %v10401_v52  ;;  %v10532_v4 = vor.u32 %v13286_v57, %v10529_v58  ;;  %v10225_v44 = vld [vmem:[%s20596_s1 + $0xd98] sm:$0xf0]  ;;  %v13242_v27 = vld [vmem:[%s20596_s1 + $0xe8c] sm:$0xf] }
 0x1da   :  { %3914 = vmatpush.bf16.msra.mxu0 %v9556_v7  ;;  %v13250_v7 = vld [vmem:[%s20596_s1 + $0xecc] sm:$0xf]  ;;  %v10353_v32 = vld [vmem:[%s20596_s1 + $0xe98] sm:$0xf0] }
 0x1db   :  { %3927 = vmatpush.bf16.msra.mxu1 %v9684_v18  ;;  %v13282_v18 = vld [vmem:[%s20596_s1 + $0xfcc] sm:$0xf]  ;;  %v10388_v11 = vor.u32 %v13250_v7, %v10385_v8  ;;  %v10481_v39 = vld [vmem:[%s20596_s1 + $0xf98] sm:$0xf0]  ;;  %v10356_v47 = vor.u32 %v13242_v27, %v10353_v32 }
 0x1dc   :  { %3940 = vmatpush.bf16.msra.mxu2 %v9812_v9  ;;  %v10513_v9 = vld [vmem:[%s20596_s1 + $0xfd8] sm:$0xf0]  ;;  %v13174_v48 = vld [vmem:[%s20596_s1 + $0xc6c] sm:$0xf] }
 0x1dd   :  { %3953 = vmatpush.bf16.msra.mxu3 %v9940_v12  ;;  %v10113_v12 = vld [vmem:[%s20596_s1 + $0xcb8] sm:$0xf0]  ;;  %v10516_v14 = vor.u32 %v13282_v18, %v10513_v9  ;;  %v13238_v52 = vld [vmem:[%s20596_s1 + $0xe6c] sm:$0xf] }
 0x1de   :  { %3915 = vmatpush.bf16.msra.mxu0 %v9540_v21  ;;  %v10497_v21 = vld [vmem:[%s20596_s1 + $0xfb8] sm:$0xf0]  ;;  %v10116_v24 = vor.u32 %v13182_v22, %v10113_v12  ;;  %v13202_v0 = vld [vmem:[%s20596_s1 + $0xd4c] sm:$0xf] }
 0x1df   :  { %3928 = vmatpush.bf16.msra.mxu1 %v9668_v41  ;;  %v10372_v41 = vor.u32 %v13246_v15, %v10369_v17  ;;  %v10081_v50 = vld [vmem:[%s20596_s1 + $0xc78] sm:$0xf0]  ;;  %v13234_v5 = vld [vmem:[%s20596_s1 + $0xe4c] sm:$0xf] }
 0x1e0   :  { %3941 = vmatpush.bf16.msra.mxu2 %v9796_v42  ;;  %v13210_v42 = vld [vmem:[%s20596_s1 + $0xd8c] sm:$0xf]  ;;  %v10209_v55 = vld [vmem:[%s20596_s1 + $0xd78] sm:$0xf0]  ;;  %v10084_v58 = vor.u32 %v13174_v48, %v10081_v50 }
 0x1e1   :  { %3954 = vmatpush.bf16.msra.mxu3 %v9924_v36  ;;  %v13274_v36 = vld [vmem:[%s20596_s1 + $0xf8c] sm:$0xf]  ;;  %v10228_v46 = vor.u32 %v13210_v42, %v10225_v44  ;;  %v10465_v57 = vld [vmem:[%s20596_s1 + $0xf78] sm:$0xf0] }
 0x1e2   :  { %3916 = vmatpush.bf16.msra.mxu0 %v9524_v51  ;;  %v17038_v34 = vpop.f32.mrf.mxu0  ;;  %v13206_v51 = vld [vmem:[%s20596_s1 + $0xd6c] sm:$0xf]  ;;  %v10484_v62 = vor.u32 %v13274_v36, %v10481_v39  ;;  %v10321_v7 = vld [vmem:[%s20596_s1 + $0xe58] sm:$0xf0] }
 0x1e3   :  { %3929 = vmatpush.bf16.msra.mxu1 %v9652_v53  ;;  %v17046_v45 = vpop.f32.mrf.mxu1  ;;  %v10337_v53 = vld [vmem:[%s20596_s1 + $0xe78] sm:$0xf0]  ;;  %v13266_v18 = vld [vmem:[%s20596_s1 + $0xf4c] sm:$0xf]  ;;  %v10324_v37 = vor.u32 %v13234_v5, %v10321_v7 }
 0x1e4   :  { %3942 = vmatpush.bf16.msra.mxu2 %v9780_v56  ;;  %v13270_v56 = vld [vmem:[%s20596_s1 + $0xf6c] sm:$0xf]  ;;  %v10449_v9 = vld [vmem:[%s20596_s1 + $0xf58] sm:$0xf0] }
 0x1e5   :  { %3955 = vmatpush.bf16.msra.mxu3 %v9908_v59  ;;  %3917 = vmatmul.bf16.vlgmr.msra.gmra.mxu0 %v14559_v25  ;;  %v13278_v25 = vld [vmem:[%s20596_s1 + $0xfac] sm:$0xf]  ;;  %v10212_v59 = vor.u32 %v13206_v51, %v10209_v55  ;;  %v10468_v13 = vor.u32 %v13270_v56, %v10465_v57  ;;  %v10049_v38 = vld [vmem:[%s20596_s1 + $0xc38] sm:$0xf0] }
 0x1e6   :  { %3961 = vmatpush.bf16.msrb.mxu0 %v10148_v60  ;;  %3930 = vmatmul.bf16.vlgmr.msra.gmra.mxu1 %v14572_v30  ;;  %v10097_v30 = vld [vmem:[%s20596_s1 + $0xc98] sm:$0xf0]  ;;  %v10340_v60 = vor.u32 %v13238_v52, %v10337_v53  ;;  %v13198_v15 = vld [vmem:[%s20596_s1 + $0xd2c] sm:$0xf] }
 0x1e7   :  { %3974 = vmatpush.bf16.msrb.mxu1 %v10276_v61  ;;  %3943 = vmatmul.bf16.vlgmr.msra.gmra.mxu2 %v14570_v29  ;;  %v13178_v29 = vld [vmem:[%s20596_s1 + $0xc8c] sm:$0xf]  ;;  %v10161_v27 = vld [vmem:[%s20596_s1 + $0xd18] sm:$0xf0] }
 0x1e8   :  { %3987 = vmatpush.bf16.msrb.mxu2 %v10404_v63  ;;  %3956 = vmatmul.bf16.vlgmr.msra.gmra.mxu3 %v14580_v33  ;;  %v10500_v33 = vor.u32 %v13278_v25, %v10497_v21  ;;  %v10100_v16 = vor.u32 %v13178_v29, %v10097_v30  ;;  %v13170_v61 = vld [vmem:[%s20596_s1 + $0xc4c] sm:$0xf]  ;;  %v10065_v63 = vld [vmem:[%s20596_s1 + $0xc58] sm:$0xf0] }
 0x1e9   :  { %4000 = vmatpush.bf16.msrb.mxu3 %v10532_v4  ;;  %v10193_v4 = vld [vmem:[%s20596_s1 + $0xd58] sm:$0xf0]  ;;  %v13230_v17 = vld [vmem:[%s20596_s1 + $0xe2c] sm:$0xf] }
 0x1ea   :  { %3962 = vmatpush.bf16.msrb.mxu0 %v10132_v10  ;;  %v17081_v1 = vpop.f32.mrf.mxu2  ;;  %v3712_v10 = vpop.f32.mrf.mxu0  ;;  %v10196_v12 = vor.u32 %v13202_v0, %v10193_v4  ;;  %v10305_v25 = vld [vmem:[%s20596_s1 + $0xe38] sm:$0xf0]  ;;  %v13262_v21 = vld [vmem:[%s20596_s1 + $0xf2c] sm:$0xf]  ;;  %v13309_v0 = vld [vmem:[%s20599_s3 + $0xa0] sm:$0xff] }
 0x1eb   :  { %3975 = vmatpush.bf16.msrb.mxu1 %v10260_v19  ;;  %v17092_v8 = vpop.f32.mrf.mxu3  ;;  %v3659_v19 = vadd.f32 %v16840_v43, %v16690_v2  ;;  %v3725_v22 = vpop.f32.mrf.mxu1  ;;  %v10452_v2 = vor.u32 %v13266_v18, %v10449_v9  ;;  %v10177_v43 = vld [vmem:[%s20596_s1 + $0xd38] sm:$0xf0]  ;;  %v10308_v30 = vor.u32 %v13230_v17, %v10305_v25  ;;  %v13162_v42 = vld [vmem:[%s20596_s1 + $0xc0c] sm:$0xf]  ;;  %v13289_v25 = vld [vmem:[%s20599_s3] sm:$0xff] }
 0x1ec   :  { %3988 = vmatpush.bf16.msrb.mxu2 %v10388_v11  ;;  %v10068_v11 = vor.u32 %v13170_v61, %v10065_v63  ;;  %v10180_v29 = vor.u32 %v13198_v15, %v10177_v43  ;;  %v13194_v44 = vld [vmem:[%s20596_s1 + $0xd0c] sm:$0xf]  ;;  %v10289_v36 = vld [vmem:[%s20596_s1 + $0xe18] sm:$0xf0]  ;;  %v13301_v63 = vld [vmem:[%s20599_s3 + $0x60] sm:$0xff] }
 0x1ed   :  { %4001 = vmatpush.bf16.msrb.mxu3 %v10516_v14  ;;  %v13166_v14 = vld [vmem:[%s20596_s1 + $0xc2c] sm:$0xf]  ;;  %v10164_v51 = vor.u32 %v13194_v44, %v10161_v27  ;;  %v13296_v52 = vld [vmem:[%s20599_s3 + $0x38] sm:$0xff]  ;;  %v13299_v22 = vld [vmem:[%s20599_s3 + $0x50] sm:$0xff] }
 0x1ee   :  { %3963 = vmatpush.bf16.msrb.mxu0 %v10116_v24  ;;  %v10433_v24 = vld [vmem:[%s20596_s1 + $0xf38] sm:$0xf0]  ;;  %v13226_v32 = vld [vmem:[%s20596_s1 + $0xe0c] sm:$0xf] }
 0x1ef   :  { %3976 = vmatpush.bf16.msrb.mxu1 %v10244_v26  ;;  %v3672_v26 = vadd.f32 %v16851_v49, %v3659_v19  ;;  %v10436_v49 = vor.u32 %v13262_v21, %v10433_v24  ;;  %v13304_v53 = vld [vmem:[%s20599_s3 + $0x78] sm:$0xff]  ;;  %v13302_v61 = vld [vmem:[%s20599_s3 + $0x68] sm:$0xff]  ;;  %v13291_v19 = vld [vmem:[%s20599_s3 + $0x10] sm:$0xff]  ;;  %v4013_v21 = vmax.f32 %v15688_v40, 0.0  ;;  %v560_v40 = vperm.slane %v16624_v20, 3 }
 0x1f0   :  { %3989 = vmatpush.bf16.msrb.mxu2 %v10372_v41  ;;  %v10052_v41 = vor.u32 %v13166_v14, %v10049_v38  ;;  %v13292_v4 = vld [vmem:[%s20599_s3 + $0x18] sm:$0xff]  ;;  %v13290_v14 = vld [vmem:[%s20599_s3 + $0x8] sm:$0xff]  ;;  %v13297_v24 = vld [vmem:[%s20599_s3 + $0x40] sm:$0xff] }
 0x1f1   :  { %4002 = vmatpush.bf16.msrb.mxu3 %v10500_v33  ;;  %v10033_v33 = vld [vmem:[%s20596_s1 + $0xc18] sm:$0xf0]  ;;  %v3685_v48 = vadd.f32 %v16877_v6, %v3672_v26  ;;  %v13298_v38 = vld [vmem:[%s20599_s3 + $0x48] sm:$0xff]  ;;  %v13305_v26 = vld [vmem:[%s20599_s3 + $0x80] sm:$0xff] }
 0x1f2   :  { %3964 = vmatpush.bf16.msrb.mxu0 %v10100_v16  ;;  %v3738_v39 = vpop.f32.mrf.mxu2  ;;  %v13258_v16 = vld [vmem:[%s20596_s1 + $0xf0c] sm:$0xf]  ;;  %v10036_v50 = vor.u32 %v13162_v42, %v10033_v33  ;;  %v13312_v6 = vld [vmem:[%s20599_s3 + $0xb8] sm:$0xff] }
 0x1f3   :  { %3977 = vmatpush.bf16.msrb.mxu1 %v10228_v46  ;;  %v10417_v46 = vld [vmem:[%s20596_s1 + $0xf18] sm:$0xf0]  ;;  %v3698_v56 = vadd.f32 %v16888_v3, %v3685_v48  ;;  %v13311_v3 = vld [vmem:[%s20599_s3 + $0xb0] sm:$0xff]  ;;  %v13306_v15 = vld [vmem:[%s20599_s3 + $0x88] sm:$0xff] }
 0x1f4   :  { %3990 = vmatpush.bf16.msrb.mxu2 %v10356_v47  ;;  %v3751_v47 = vpop.f32.mrf.mxu3  ;;  %v10420_v55 = vor.u32 %v13258_v16, %v10417_v46  ;;  %v13300_v5 = vld [vmem:[%s20599_s3 + $0x58] sm:$0xff] }
 0x1f5   :  { %4003 = vmatpush.bf16.msrb.mxu3 %v10484_v62  ;;  %v10292_v62 = vor.u32 %v13226_v32, %v10289_v36  ;;  %v3711_v57 = vadd.f32 %v17038_v34, %v3698_v56  ;;  %v13308_v7 = vld [vmem:[%s20599_s3 + $0x98] sm:$0xff]  ;;  %v13319_v56 = vld [vmem:[%s20599_s3 + $0xf0] sm:$0xff] }
 0x1f6   :  { %3965 = vmatpush.bf16.msrb.mxu0 %v10084_v58  ;;  %v13295_v58 = vld [vmem:[%s20599_s3 + $0x30] sm:$0xff]  ;;  %v13320_v20 = vld [vmem:[%s20599_s3 + $0xf8] sm:$0xff] }
 0x1f7   :  { %3978 = vmatpush.bf16.msrb.mxu1 %v10212_v59  ;;  %v13303_v59 = vld [vmem:[%s20599_s3 + $0x70] sm:$0xff]  ;;  %v3724_v34 = vadd.f32 %v17046_v45, %v3711_v57 }
 0x1f8   :  { %3991 = vmatpush.bf16.msrb.mxu2 %v10340_v60  ;;  %v13294_v60 = vld [vmem:[%s20599_s3 + $0x28] sm:$0xff] }
 0x1f9   :  { %4004 = vmatpush.bf16.msrb.mxu3 %v10468_v13 }
 0x1fa   :  { %3966 = vmatpush.bf16.msrb.mxu0 %v10068_v11 }
 0x1fb   :  { %3979 = vmatpush.bf16.msrb.mxu1 %v10196_v12  ;;  %v13307_v12 = vld [vmem:[%s20599_s3 + $0x90] sm:$0xff] }
 0x1fc   :  { %3992 = vmatpush.bf16.msrb.mxu2 %v10324_v37 }
 0x1fd   :  { %4005 = vmatpush.bf16.msrb.mxu3 %v10452_v2 }
 0x1fe   :  { %3967 = vmatpush.bf16.msrb.mxu0 %v10052_v41  ;;  %v4014_v41 = vmax.f32 %v16486_v54, 0.0 }
 0x1ff   :  { %3980 = vmatpush.bf16.msrb.mxu1 %v10180_v29 }
 0x200   :  { %3993 = vmatpush.bf16.msrb.mxu2 %v10308_v30  ;;  %v4017_v30 = vpack.c.bf16 %v4013_v21, %v4013_v21  ;;  %v4018_v42 = vpack.c.bf16 %v4014_v41, %v4014_v41  ;;  %v10711_v21 = vld [vmem:[%s20601_s5 + $0x60] sm:$0xf]  ;;  %v13333_v41 = vld [vmem:[%s20601_s5 + $0x64] sm:$0xf] }
 0x201   :  { %4006 = vmatpush.bf16.msrb.mxu3 %v10436_v49 }
 0x202   :  { %3968 = vmatpush.bf16.msrb.mxu0 %v10036_v50 }
 0x203   :  { %3981 = vmatpush.bf16.msrb.mxu1 %v10164_v51  ;;  %v3775_v45 = vpop.f32.mrf.mxu1 }
 0x204   :  { %3994 = vmatpush.bf16.msrb.mxu2 %v10292_v62 }
 0x205   :  { %4007 = vmatpush.bf16.msrb.mxu3 %v10420_v55  ;;  %3969 = vmatmul.bf16.vlgmr.msrb.gmra.mxu0 %v14769_v23  ;;  %v13310_v23 = vld [vmem:[%s20599_s3 + $0xa8] sm:$0xff] }
 0x206   :  { %4281 = vmatpush.bf16.msra.mxu0 %v13296_v52  ;;  %3982 = vmatmul.bf16.vlgmr.msrb.gmra.mxu1 %v14782_v31  ;;  %v3762_v31 = vpop.f32.mrf.mxu0 }
 0x207   :  { %4294 = vmatpush.bf16.msra.mxu1 %v13304_v53  ;;  %3995 = vmatmul.bf16.vlgmr.msrb.gmra.mxu2 %v14780_v28  ;;  %v3737_v28 = vadd.f32 %v17081_v1, %v3724_v34  ;;  %v13316_v34 = vld [vmem:[%s20599_s3 + $0xd8] sm:$0xff] }
 0x208   :  { %4307 = vmatpush.bf16.msra.mxu2 %v13312_v6  ;;  %4008 = vmatmul.bf16.vlgmr.msrb.gmra.mxu3 %v14790_v35  ;;  %v13293_v35 = vld [vmem:[%s20599_s3 + $0x20] sm:$0xff] }
 0x209   :  { %v3750_v13 = vadd.f32 %v17092_v8, %v3737_v28  ;;  %4320 = vmatpush.bf16.msra.mxu3 %v13320_v20  ;;  %v13314_v28 = vld [vmem:[%s20599_s3 + $0xc8] sm:$0xff]  ;;  %v10705_v20 = vld [vmem:[%s20601_s5 + $0x58] sm:$0xf0] }
 0x20a   :  { %4282 = vmatpush.bf16.msra.mxu0 %v13295_v58  ;;  %v3788_v18 = vpop.f32.mrf.mxu2  ;;  %v13318_v58 = vld [vmem:[%s20599_s3 + $0xe8] sm:$0xff] }
 0x20b   :  { %4295 = vmatpush.bf16.msra.mxu1 %v13303_v59  ;;  %v3763_v1 = vadd.f32 %v3762_v31, %v3750_v13  ;;  %v3801_v9 = vpop.f32.mrf.mxu3  ;;  %v3777_v11 = vpop.f32.mrf.mxu1  ;;  %v13313_v13 = vld [vmem:[%s20599_s3 + $0xc0] sm:$0xff] }
 0x20c   :  { %4308 = vmatpush.bf16.msra.mxu2 %v13311_v3  ;;  %v13317_v3 = vld [vmem:[%s20599_s3 + $0xe0] sm:$0xff] }
 0x20d   :  { %v3776_v8 = vadd.f32 %v3775_v45, %v3763_v1  ;;  %4321 = vmatpush.bf16.msra.mxu3 %v13319_v56  ;;  %v13327_v56 = vld [vmem:[%s20601_s5 + $0x2c] sm:$0xf0] }
 0x20e   :  { %4283 = vmatpush.bf16.msra.mxu0 %v13294_v60  ;;  %v3764_v10 = vpop.f32.mrf.mxu0 }
 0x20f   :  { %4296 = vmatpush.bf16.msra.mxu1 %v13302_v61  ;;  %v3789_v37 = vadd.f32 %v3788_v18, %v3776_v8 }
 0x210   :  { %4309 = vmatpush.bf16.msra.mxu2 %v13310_v23  ;;  %v13315_v23 = vld [vmem:[%s20599_s3 + $0xd0] sm:$0xff] }
 0x211   :  { %v3802_v2 = vadd.f32 %v3801_v9, %v3789_v37  ;;  %4322 = vmatpush.bf16.msra.mxu3 %v13318_v58  ;;  %v10681_v58 = vld [vmem:[%s20601_s5 + $0x30] sm:$0xf0] }
 0x212   :  { %4284 = vmatpush.bf16.msra.mxu0 %v13293_v35  ;;  %v3790_v43 = vpop.f32.mrf.mxu2 }
 0x213   :  { %4297 = vmatpush.bf16.msra.mxu1 %v13301_v63  ;;  %v3803_v17 = vpop.f32.mrf.mxu3  ;;  %v4015_v29 = vmax.f32 %v3802_v2, 0.0 }
 0x214   :  { %4310 = vmatpush.bf16.msra.mxu2 %v13309_v0 }
 0x215   :  { %v4019_v33 = vpack.c.bf16 %v4015_v29, %v4015_v29  ;;  %4323 = vmatpush.bf16.msra.mxu3 %v13317_v3  ;;  %v10713_v29 = vld [vmem:[%s20601_s5 + $0x70] sm:$0xf0]  ;;  %v10687_v3 = vld [vmem:[%s20601_s5 + $0x28] sm:$0xf] }
 0x216   :  { %4285 = vmatpush.bf16.msra.mxu0 %v13292_v4 }
 0x217   :  { %4298 = vmatpush.bf16.msra.mxu1 %v13300_v5 }
 0x218   :  { %4311 = vmatpush.bf16.msra.mxu2 %v13308_v7 }
 0x219   :  { %4324 = vmatpush.bf16.msra.mxu3 %v13316_v34  ;;  %v13328_v34 = vld [vmem:[%s20601_s5 + $0x34] sm:$0xf0] }
 0x21a   :  { %4286 = vmatpush.bf16.msra.mxu0 %v13291_v19 }
 0x21b   :  { %4299 = vmatpush.bf16.msra.mxu1 %v13299_v22 }
 0x21c   :  { %4312 = vmatpush.bf16.msra.mxu2 %v13307_v12 }
 0x21d   :  { %4325 = vmatpush.bf16.msra.mxu3 %v13315_v23  ;;  %v10689_v23 = vld [vmem:[%s20601_s5 + $0x38] sm:$0xf0] }
 0x21e   :  { %4287 = vmatpush.bf16.msra.mxu0 %v13290_v14 }
 0x21f   :  { %4300 = vmatpush.bf16.msra.mxu1 %v13298_v38 }
 0x220   :  { %4313 = vmatpush.bf16.msra.mxu2 %v13306_v15 }
 0x221   :  { %4326 = vmatpush.bf16.msra.mxu3 %v13314_v28  ;;  %v10688_v28 = vor.u32 %v13328_v34, %v10687_v3  ;;  %v11499_v3 = vld [vmem:[%s20602_s7 + $0x600] sm:$0xf] }
 0x222   :  { %4288 = vmatpush.bf16.msra.mxu0 %v13289_v25  ;;  %v3814_v44 = vpop.f32.mrf.mxu0  ;;  %v13537_v34 = vld [vmem:[%s20602_s7 + $0x63c] sm:$0xf0] }
 0x223   :  { %4301 = vmatpush.bf16.msra.mxu1 %v13297_v24  ;;  %v3815_v49 = vadd.f32 %v3814_v44, %v560_v40  ;;  %v3827_v27 = vpop.f32.mrf.mxu1  ;;  %v13335_v24 = vld [vmem:[%s20601_s5 + $0x6c] sm:$0xf0]  ;;  %v13336_v40 = vld [vmem:[%s20601_s5 + $0x74] sm:$0xf0]  ;;  %v13334_v44 = vld [vmem:[%s20601_s5 + $0x6c] sm:$0xf] }
 0x224   :  { %4314 = vmatpush.bf16.msra.mxu2 %v13305_v26  ;;  %v10712_v26 = vor.u32 %v13335_v24, %v10711_v21  ;;  %v13585_v24 = vld [vmem:[%s20602_s7 + $0x7bc] sm:$0xf0] }
 0x225   :  { %4289 = vmatmul.bf16.vlgmr.msra.gmra.mxu0 %v4017_v30  ;;  %v3828_v32 = vadd.f32 %v3827_v27, %v3815_v49  ;;  %4327 = vmatpush.bf16.msra.mxu3 %v13313_v13  ;;  %v10719_v30 = vld [vmem:[%s20601_s5 + $0x68] sm:$0xf]  ;;  %v10721_v49 = vld [vmem:[%s20601_s5 + $0x78] sm:$0xf0] }
 0x226   :  { %4302 = vmatmul.bf16.vlgmr.msra.gmra.mxu1 %v4018_v42  ;;  %4449 = vmatpush.bf16.msrb.mxu0 %v10712_v26  ;;  %v11115_v26 = vld [vmem:[%s20602_s7 + $0x300] sm:$0xf] }
 0x227   :  { %4315 = vmatmul.bf16.vlgmr.msra.gmra.mxu2 %v4019_v33  ;;  %v10716_v33 = vor.u32 %v13333_v41, %v10713_v29  ;;  %v13441_v41 = vld [vmem:[%s20602_s7 + $0x33c] sm:$0xf0] }
 0x229   :  { %4462 = vmatpush.bf16.msrb.mxu1 %v10716_v33  ;;  %v12203_v33 = vld [vmem:[%s20602_s7 + $0xb80] sm:$0xf] }
 0x22a   :  { %v3840_v36 = vpop.f32.mrf.mxu2  ;;  %v3816_v46 = vpop.f32.mrf.mxu0 }
 0x22b   :  { %v3841_v39 = vadd.f32 %v3840_v36, %v3828_v32  ;;  %v3853_v16 = vpop.f32.mrf.mxu3  ;;  %v3829_v47 = vpop.f32.mrf.mxu1  ;;  %v10720_v36 = vor.u32 %v13336_v40, %v10719_v30  ;;  %v13329_v46 = vld [vmem:[%s20601_s5 + $0x44] sm:$0xf]  ;;  %v11627_v30 = vld [vmem:[%s20602_s7 + $0x700] sm:$0xf]  ;;  %v11116_v40 = vor.u32 %v13441_v41, %v11115_v26 }
 0x22c   :  { %v13761_v26 = vld [vmem:[%s20602_s7 + $0xd3c] sm:$0xf0] }
 0x22d   :  { %v3854_v54 = vadd.f32 %v3853_v16, %v3841_v39  ;;  %v10724_v39 = vor.u32 %v13334_v44, %v10721_v49  ;;  %v10695_v16 = vld [vmem:[%s20601_s5 + $0x40] sm:$0xf]  ;;  %4475 = vmatpush.bf16.msrb.mxu2 %v10720_v36 }
 0x22e   :  { %v13713_v44 = vld [vmem:[%s20602_s7 + $0xbbc] sm:$0xf0] }
 0x22f   :  { %4488 = vmatpush.bf16.msrb.mxu3 %v10724_v39  ;;  %v12715_v49 = vld [vmem:[%s20602_s7 + $0xf80] sm:$0xf]  ;;  %v12204_v36 = vor.u32 %v13713_v44, %v12203_v33 }
 0x230   :  { %v13489_v33 = vld [vmem:[%s20602_s7 + $0x4bc] sm:$0xf0] }
 0x232   :  { %v3842_v48 = vpop.f32.mrf.mxu2 }
 0x233   :  { %v3855_v50 = vpop.f32.mrf.mxu3  ;;  %v10697_v48 = vld [vmem:[%s20601_s5 + $0x50] sm:$0xf0] }
 0x234   :  { %v10703_v50 = vld [vmem:[%s20601_s5 + $0x48] sm:$0xf] }
 0x242   :  { %v3866_v51 = vpop.f32.mrf.mxu0 }
 0x243   :  { %v3879_v62 = vpop.f32.mrf.mxu1  ;;  %v3867_v31 = vadd.f32 %v3866_v51, %v3854_v54  ;;  %v13331_v54 = vld [vmem:[%s20601_s5 + $0x4c] sm:$0xf0]  ;;  %v13332_v51 = vld [vmem:[%s20601_s5 + $0x54] sm:$0xf0] }
 0x244   :  { %v10696_v47 = vor.u32 %v13331_v54, %v10695_v16  ;;  %v11051_v16 = vld [vmem:[%s20602_s7 + $0x280] sm:$0xf] }
 0x245   :  { %v3880_v1 = vadd.f32 %v3879_v62, %v3867_v31  ;;  %v10700_v62 = vor.u32 %v13329_v46, %v10697_v48  ;;  %v13425_v54 = vld [vmem:[%s20602_s7 + $0x2bc] sm:$0xf0] }
 0x246   :  { %4450 = vmatpush.bf16.msrb.mxu0 %v10696_v47  ;;  %v11563_v46 = vld [vmem:[%s20602_s7 + $0x680] sm:$0xf] }
 0x247   :  { %4463 = vmatpush.bf16.msrb.mxu1 %v10700_v62  ;;  %v13553_v47 = vld [vmem:[%s20602_s7 + $0x6bc] sm:$0xf0] }
 0x248   :  { %v12139_v48 = vld [vmem:[%s20602_s7 + $0xb00] sm:$0xf] }
 0x249   :  { %v12651_v62 = vld [vmem:[%s20602_s7 + $0xf00] sm:$0xf] }
 0x24a   :  { %v3892_v55 = vpop.f32.mrf.mxu2  ;;  %v3868_v53 = vpop.f32.mrf.mxu0 }
 0x24b   :  { %v3905_v52 = vpop.f32.mrf.mxu3  ;;  %v3881_v6 = vpop.f32.mrf.mxu1  ;;  %v3893_v4 = vadd.f32 %v3892_v55, %v3880_v1  ;;  %v10704_v55 = vor.u32 %v13332_v51, %v10703_v50  ;;  %v10679_v53 = vld [vmem:[%s20601_s5 + $0x20] sm:$0xf] }
 0x24c   :  { %v13697_v50 = vld [vmem:[%s20602_s7 + $0xb3c] sm:$0xf0] }
 0x24d   :  { %v3906_v18 = vadd.f32 %v3905_v52, %v3893_v4  ;;  %v13330_v52 = vld [vmem:[%s20601_s5 + $0x4c] sm:$0xf]  ;;  %4476 = vmatpush.bf16.msrb.mxu2 %v10704_v55  ;;  %v12140_v51 = vor.u32 %v13697_v50, %v12139_v48  ;;  %v13825_v55 = vld [vmem:[%s20602_s7 + $0xf3c] sm:$0xf0]  ;;  %v13449_v50 = vld [vmem:[%s20602_s7 + $0x384] sm:$0xf] }
 0x24e   :  { %v10708_v6 = vor.u32 %v13330_v52, %v10705_v20  ;;  %v11052_v52 = vor.u32 %v13425_v54, %v11051_v16  ;;  %v12652_v20 = vor.u32 %v13825_v55, %v12651_v62  ;;  %v13473_v54 = vld [vmem:[%s20602_s7 + $0x43c] sm:$0xf0]  ;;  %v13577_v62 = vld [vmem:[%s20602_s7 + $0x784] sm:$0xf] }
 0x24f   :  { %v11693_v55 = vld [vmem:[%s20602_s7 + $0x7c0] sm:$0xf0] }
 0x250   :  { %4489 = vmatpush.bf16.msrb.mxu3 %v10708_v6  ;;  %v13409_v6 = vld [vmem:[%s20602_s7 + $0x23c] sm:$0xf0] }
 0x251   :  { %4477 = vmatpush.bf16.msrb.mxu2 %v10688_v28  ;;  %v12011_v28 = vld [vmem:[%s20602_s7 + $0xa00] sm:$0xf] }
 0x252   :  { %v3894_v57 = vpop.f32.mrf.mxu2 }
 0x253   :  { %v3907_v59 = vpop.f32.mrf.mxu3  ;;  %v13325_v57 = vld [vmem:[%s20601_s5 + $0x24] sm:$0xf] }
 0x254   :  { %v10680_v59 = vor.u32 %v13327_v56, %v10679_v53  ;;  %v10987_v53 = vld [vmem:[%s20602_s7 + $0x200] sm:$0xf]  ;;  %v11564_v56 = vor.u32 %v13553_v47, %v11563_v46 }
 0x255   :  { %v11819_v46 = vld [vmem:[%s20602_s7 + $0x880] sm:$0xf] }
 0x256   :  { %4451 = vmatpush.bf16.msrb.mxu0 %v10680_v59  ;;  %v12587_v59 = vld [vmem:[%s20602_s7 + $0xe80] sm:$0xf] }
 0x257   :  { %v13617_v47 = vld [vmem:[%s20602_s7 + $0x8bc] sm:$0xf0] }
 0x262   :  { %v3918_v60 = vpop.f32.mrf.mxu0 }
 0x263   :  { %v3931_v61 = vpop.f32.mrf.mxu1  ;;  %v3919_v9 = vadd.f32 %v3918_v60, %v3906_v18  ;;  %v13326_v60 = vld [vmem:[%s20601_s5 + $0x2c] sm:$0xf] }
 0x264   :  { %v10692_v31 = vor.u32 %v13326_v60, %v10689_v23  ;;  %v13809_v60 = vld [vmem:[%s20602_s7 + $0xebc] sm:$0xf0] }
 0x265   :  { %v3932_v10 = vadd.f32 %v3931_v61, %v3919_v9  ;;  %v10684_v61 = vor.u32 %v13325_v57, %v10681_v58  ;;  %v10663_v9 = vld [vmem:[%s20601_s5] sm:$0xf]  ;;  %v12588_v23 = vor.u32 %v13809_v60, %v12587_v59  ;;  %v11117_v59 = vld [vmem:[%s20602_s7 + $0x340] sm:$0xf0]  ;;  %v11696_v60 = vor.u32 %v13577_v62, %v11693_v55 }
 0x266   :  { %4490 = vmatpush.bf16.msrb.mxu3 %v10692_v31  ;;  %v12075_v57 = vld [vmem:[%s20602_s7 + $0xa80] sm:$0xf]  ;;  %v10988_v31 = vor.u32 %v13409_v6, %v10987_v53  ;;  %v11820_v6 = vor.u32 %v13617_v47, %v11819_v46  ;;  %v11437_v46 = vld [vmem:[%s20602_s7 + $0x5c0] sm:$0xf0] }
 0x267   :  { %4464 = vmatpush.bf16.msrb.mxu1 %v10684_v61  ;;  %v13681_v58 = vld [vmem:[%s20602_s7 + $0xabc] sm:$0xf0]  ;;  %v13785_v47 = vld [vmem:[%s20602_s7 + $0xe04] sm:$0xf] }
 0x268   :  { %v12076_v61 = vor.u32 %v13681_v58, %v12075_v57  ;;  %v13369_v55 = vld [vmem:[%s20602_s7 + $0x104] sm:$0xf] }
 0x26a   :  { %v3944_v35 = vpop.f32.mrf.mxu2  ;;  %v3920_v63 = vpop.f32.mrf.mxu0 }
 0x26b   :  { %v3957_v45 = vpop.f32.mrf.mxu3  ;;  %v3933_v0 = vpop.f32.mrf.mxu1  ;;  %v3945_v8 = vadd.f32 %v3944_v35, %v3932_v10  ;;  %v13849_v35 = vld [vmem:[%s20600_s4] ss:$0 sm:$0xff]  ;;  %v13323_v10 = vld [vmem:[%s20601_s5 + $0xc] sm:$0xf0] }
 0x26d   :  { %v3958_v19 = vadd.f32 %v3957_v45, %v3945_v8  ;;  %v13321_v8 = vld [vmem:[%s20601_s5 + $0x4] sm:$0xf] }
 0x272   :  { %v3946_v5 = vpop.f32.mrf.mxu2 }
 0x273   :  { %v3959_v7 = vpop.f32.mrf.mxu3 }
 0x282   :  { %v3970_v11 = vpop.f32.mrf.mxu0 }
 0x283   :  { %v3983_v22 = vpop.f32.mrf.mxu1  ;;  %v3971_v12 = vadd.f32 %v3970_v11, %v3958_v19  ;;  %v10664_v19 = vor.u32 %v13323_v10, %v10663_v9  ;;  %v10665_v11 = vld [vmem:[%s20601_s5 + $0x10] sm:$0xf0]  ;;  %v11947_v10 = vld [vmem:[%s20602_s7 + $0x980] sm:$0xf] }
 0x285   :  { %v3984_v37 = vadd.f32 %v3983_v22, %v3971_v12  ;;  %v10671_v22 = vld [vmem:[%s20601_s5 + $0x8] sm:$0xf]  ;;  %v13324_v12 = vld [vmem:[%s20601_s5 + $0x14] sm:$0xf0]  ;;  %4452 = vmatpush.bf16.msrb.mxu0 %v10664_v19  ;;  %v13649_v19 = vld [vmem:[%s20602_s7 + $0x9bc] sm:$0xf0] }
 0x28a   :  { %v3996_v14 = vpop.f32.mrf.mxu2  ;;  %v3972_v2 = vpop.f32.mrf.mxu0 }
 0x28b   :  { %v4009_v38 = vpop.f32.mrf.mxu3  ;;  %v3997_v15 = vadd.f32 %v3996_v14, %v3984_v37  ;;  %v3985_v43 = vpop.f32.mrf.mxu1  ;;  %v10668_v37 = vor.u32 %v13321_v8, %v10665_v11  ;;  %v10672_v14 = vor.u32 %v13324_v12, %v10671_v22  ;;  %v12459_v11 = vld [vmem:[%s20602_s7 + $0xd80] sm:$0xf] }
 0x28c   :  { %v11179_v43 = vld [vmem:[%s20602_s7 + $0x380] sm:$0xf] }
 0x28d   :  { %v4010_v17 = vadd.f32 %v4009_v38, %v3997_v15  ;;  %v13322_v38 = vld [vmem:[%s20601_s5 + $0xc] sm:$0xf]  ;;  %v10673_v15 = vld [vmem:[%s20601_s5 + $0x18] sm:$0xf0]  ;;  %4465 = vmatpush.bf16.msrb.mxu1 %v10668_v37  ;;  %4478 = vmatpush.bf16.msrb.mxu2 %v10672_v14  ;;  %v13777_v22 = vld [vmem:[%s20602_s7 + $0xdbc] sm:$0xf0] }
 0x28e   :  { %v10676_v2 = vor.u32 %v13322_v38, %v10673_v15  ;;  %v10859_v37 = vld [vmem:[%s20602_s7 + $0x100] sm:$0xf] }
 0x28f   :  { %v4016_v25 = vmax.f32 %v4010_v17, 0.0  ;;  %v13457_v17 = vld [vmem:[%s20602_s7 + $0x3bc] sm:$0xf0] }
 0x290   :  { %4491 = vmatpush.bf16.msrb.mxu3 %v10676_v2  ;;  %v11180_v21 = vor.u32 %v13457_v17, %v11179_v43  ;;  %v13377_v14 = vld [vmem:[%s20602_s7 + $0x13c] sm:$0xf0]  ;;  %v11948_v2 = vor.u32 %v13649_v19, %v11947_v10  ;;  %v12460_v43 = vor.u32 %v13777_v22, %v12459_v11  ;;  %v11053_v19 = vld [vmem:[%s20602_s7 + $0x2c0] sm:$0xf0] }
 0x291   :  { %v4020_v42 = vpack.c.bf16 %v4016_v25, %v4016_v25  ;;  %v11691_v25 = vld [vmem:[%s20602_s7 + $0x780] sm:$0xf]  ;;  %7639 = vmatpush.bf16.msra.mxu2 %v12204_v36  ;;  %v13689_v11 = vld [vmem:[%s20602_s7 + $0xb04] sm:$0xf] }
 0x292   :  { %v3998_v27 = vpop.f32.mrf.mxu2  ;;  %v11692_v29 = vor.u32 %v13585_v24, %v11691_v25  ;;  %7613 = vmatpush.bf16.msra.mxu0 %v11180_v21  ;;  %v11371_v38 = vld [vmem:[%s20602_s7 + $0x500] sm:$0xf]  ;;  %v10860_v25 = vor.u32 %v13377_v14, %v10859_v37  ;;  %v12141_v22 = vld [vmem:[%s20602_s7 + $0xb40] sm:$0xf0] }
 0x293   :  { %v4011_v32 = vpop.f32.mrf.mxu3  ;;  %4328 = vmatmul.bf16.vlgmr.msra.gmra.mxu3 %v4020_v42  ;;  %v13569_v42 = vld [vmem:[%s20602_s7 + $0x73c] sm:$0xf0]  ;;  %v13545_v37 = vld [vmem:[%s20602_s7 + $0x684] sm:$0xf] }
 0x294   :  { %v13841_v27 = vld [vmem:[%s20602_s7 + $0xfbc] sm:$0xf0]  ;;  %7626 = vmatpush.bf16.msra.mxu1 %v11692_v29  ;;  %v11628_v32 = vor.u32 %v13569_v42, %v11627_v30  ;;  %v11565_v14 = vld [vmem:[%s20602_s7 + $0x6c0] sm:$0xf0] }
 0x295   :  { %v12716_v39 = vor.u32 %v13841_v27, %v12715_v49  ;;  %7640 = vmatpush.bf16.msra.mxu2 %v12140_v51  ;;  %v13505_v15 = vld [vmem:[%s20602_s7 + $0x53c] sm:$0xf0]  ;;  %v11181_v51 = vld [vmem:[%s20602_s7 + $0x3c0] sm:$0xf0] }
 0x296   :  { %7614 = vmatpush.bf16.msra.mxu0 %v11116_v40  ;;  %v11883_v17 = vld [vmem:[%s20602_s7 + $0x900] sm:$0xf]  ;;  %v11372_v41 = vor.u32 %v13505_v15, %v11371_v38  ;;  %v11184_v58 = vor.u32 %v13449_v50, %v11181_v51  ;;  %v13817_v38 = vld [vmem:[%s20602_s7 + $0xf04] sm:$0xf] }
 0x297   :  { %7652 = vmatpush.bf16.msra.mxu3 %v12716_v39  ;;  %v13633_v21 = vld [vmem:[%s20602_s7 + $0x93c] sm:$0xf0]  ;;  %v12653_v15 = vld [vmem:[%s20602_s7 + $0xf40] sm:$0xf0] }
 0x298   :  { %7627 = vmatpush.bf16.msra.mxu1 %v11628_v32  ;;  %v12395_v24 = vld [vmem:[%s20602_s7 + $0xd00] sm:$0xf]  ;;  %v11884_v40 = vor.u32 %v13633_v21, %v11883_v17  ;;  %v13401_v17 = vld [vmem:[%s20602_s7 + $0x204] sm:$0xf] }
 0x299   :  { %7641 = vmatpush.bf16.msra.mxu2 %v12076_v61  ;;  %v10795_v29 = vld [vmem:[%s20602_s7 + $0x80] sm:$0xf]  ;;  %v12396_v44 = vor.u32 %v13761_v26, %v12395_v24  ;;  %v10989_v21 = vld [vmem:[%s20602_s7 + $0x240] sm:$0xf0] }
 0x29a   :  { %7615 = vmatpush.bf16.msra.mxu0 %v11052_v52  ;;  %v13361_v30 = vld [vmem:[%s20602_s7 + $0xbc] sm:$0xf0]  ;;  %v13673_v24 = vld [vmem:[%s20602_s7 + $0xa84] sm:$0xf] }
 0x29b   :  { %7653 = vmatpush.bf16.msra.mxu3 %v12652_v20  ;;  %v11307_v42 = vld [vmem:[%s20602_s7 + $0x480] sm:$0xf]  ;;  %v10796_v49 = vor.u32 %v13361_v30, %v10795_v29  ;;  %v12077_v26 = vld [vmem:[%s20602_s7 + $0xac0] sm:$0xf0] }
 0x29c   :  { %7628 = vmatpush.bf16.msra.mxu1 %v11564_v56  ;;  %v10731_v27 = vld [vmem:[%s20602_s7] sm:$0xf]  ;;  %v11308_v16 = vor.u32 %v13489_v33, %v11307_v42  ;;  %v13433_v56 = vld [vmem:[%s20602_s7 + $0x304] sm:$0xf] }
 0x29d   :  { %v13345_v32 = vld [vmem:[%s20602_s7 + $0x3c] sm:$0xf0]  ;;  %v13529_v29 = vld [vmem:[%s20602_s7 + $0x604] sm:$0xf] }
 0x29e   :  { %7616 = vmatpush.bf16.msra.mxu0 %v10988_v31  ;;  %v11243_v36 = vld [vmem:[%s20602_s7 + $0x400] sm:$0xf]  ;;  %v10732_v53 = vor.u32 %v13345_v32, %v10731_v27  ;;  %v12205_v31 = vld [vmem:[%s20602_s7 + $0xbc0] sm:$0xf0] }
 0x29f   :  { %7654 = vmatpush.bf16.msra.mxu3 %v12588_v23  ;;  %v13745_v52 = vld [vmem:[%s20602_s7 + $0xcbc] sm:$0xf0]  ;;  %v11244_v57 = vor.u32 %v13473_v54, %v11243_v36  ;;  %v13561_v23 = vld [vmem:[%s20602_s7 + $0x704] sm:$0xf] }
 0x2a0   :  { %v11501_v30 = vld [vmem:[%s20602_s7 + $0x640] sm:$0xf0] }
 0x2a1   :  { %v13801_v42 = vld [vmem:[%s20602_s7 + $0xe84] sm:$0xf]  ;;  %v11504_v27 = vor.u32 %v13529_v29, %v11501_v30 }
 0x2a2   :  { %v4290_v45 = vpop.f32.mrf.mxu0  ;;  %v12589_v33 = vld [vmem:[%s20602_s7 + $0xec0] sm:$0xf0] }
 0x2a3   :  { %v4291_v63 = vadd.f32 %v13849_v35, %v4290_v45  ;;  %v4303_v0 = vpop.f32.mrf.mxu1  ;;  %v13665_v35 = vld [vmem:[%s20602_s7 + $0xa3c] sm:$0xf0]  ;;  %v10925_v32 = vld [vmem:[%s20602_s7 + $0x1c0] sm:$0xf0] }
 0x2a4   :  { %v12523_v45 = vld [vmem:[%s20602_s7 + $0xe00] sm:$0xf]  ;;  %v13657_v36 = vld [vmem:[%s20602_s7 + $0xa04] sm:$0xf] }
 0x2a5   :  { %v4304_v13 = vadd.f32 %v4303_v0, %v4291_v63  ;;  %v13793_v63 = vld [vmem:[%s20602_s7 + $0xe3c] sm:$0xf0]  ;;  %v11500_v0 = vor.u32 %v13537_v34, %v11499_v3  ;;  %v13513_v54 = vld [vmem:[%s20602_s7 + $0x584] sm:$0xf] }
 0x2a6   :  { %v12524_v9 = vor.u32 %v13793_v63, %v12523_v45  ;;  %v11755_v3 = vld [vmem:[%s20602_s7 + $0x800] sm:$0xf]  ;;  %v11440_v62 = vor.u32 %v13513_v54, %v11437_v46 }
 0x2a7   :  { %7629 = vmatpush.bf16.msra.mxu1 %v11500_v0  ;;  %v13601_v34 = vld [vmem:[%s20602_s7 + $0x83c] sm:$0xf0] }
 0x2a8   :  { %7655 = vmatpush.bf16.msra.mxu3 %v12524_v9  ;;  %v12267_v45 = vld [vmem:[%s20602_s7 + $0xc00] sm:$0xf]  ;;  %v11756_v0 = vor.u32 %v13601_v34, %v11755_v3  ;;  %v13417_v9 = vld [vmem:[%s20602_s7 + $0x284] sm:$0xf] }
 0x2a9   :  { %v13729_v63 = vld [vmem:[%s20602_s7 + $0xc3c] sm:$0xf0]  ;;  %v12461_v34 = vld [vmem:[%s20602_s7 + $0xdc0] sm:$0xf0] }
 0x2aa   :  { %v4316_v1 = vpop.f32.mrf.mxu2  ;;  %v4292_v5 = vpop.f32.mrf.mxu0 }
 0x2ab   :  { %v17335_v4 = vadd.f32 %v4316_v1, %v4304_v13  ;;  %v4305_v7 = vpop.f32.mrf.mxu1  ;;  %v10923_v13 = vld [vmem:[%s20602_s7 + $0x180] sm:$0xf] }
 0x2ac   :  { %v13393_v1 = vld [vmem:[%s20602_s7 + $0x1bc] sm:$0xf0]  ;;  %7656 = vmatpush.bf16.msra.mxu3 %v12460_v43  ;;  %v12144_v43 = vor.u32 %v13689_v11, %v12141_v22  ;;  %v13609_v22 = vld [vmem:[%s20602_s7 + $0x884] sm:$0xf] }
 0x2ad   :  { %v11435_v5 = vld [vmem:[%s20602_s7 + $0x580] sm:$0xf]  ;;  %v10924_v8 = vor.u32 %v13393_v1, %v10923_v13  ;;  %v13833_v13 = vld [vmem:[%s20602_s7 + $0xf84] sm:$0xf] }
 0x2ae   :  { %v13521_v7 = vld [vmem:[%s20602_s7 + $0x5bc] sm:$0xf0]  ;;  %v12717_v1 = vld [vmem:[%s20602_s7 + $0xfc0] sm:$0xf0] }
 0x2af   :  { %v11436_v12 = vor.u32 %v13521_v7, %v11435_v5  ;;  %7617 = vmatpush.bf16.msra.mxu0 %v10924_v8  ;;  %v11120_v7 = vor.u32 %v13433_v56, %v11117_v59  ;;  %v12268_v8 = vor.u32 %v13729_v63, %v12267_v45  ;;  %v13769_v59 = vld [vmem:[%s20602_s7 + $0xd84] sm:$0xf] }
 0x2b0   :  { %7657 = vmatpush.bf16.msra.mxu3 %v12396_v44  ;;  %v12080_v44 = vor.u32 %v13673_v24, %v12077_v26  ;;  %v13625_v63 = vld [vmem:[%s20602_s7 + $0x904] sm:$0xf]  ;;  %v4352_v26 = vld [vmem:[%s20604_s6] sm:$0xf] }
 0x2b1   :  { %7630 = vmatpush.bf16.msra.mxu1 %v11436_v12  ;;  %v12720_v12 = vor.u32 %v13833_v13, %v12717_v1  ;;  %v13753_v13 = vld [vmem:[%s20602_s7 + $0xd04] sm:$0xf]  ;;  %v4355_v29 = vperm.slane %v4352_v26, 1  ;;  %v4357_v54 = vperm.slane %v4352_v26, 3 }
 0x2b2   :  { %v4318_v18 = vpop.f32.mrf.mxu2 }
 0x2b3   :  { %v12012_v18 = vor.u32 %v13665_v35, %v12011_v28  ;;  %7618 = vmatpush.bf16.msra.mxu0 %v10860_v25  ;;  %v13705_v28 = vld [vmem:[%s20602_s7 + $0xb84] sm:$0xf]  ;;  %v11568_v25 = vor.u32 %v13545_v37, %v11565_v14 }
 0x2b4   :  { %v11629_v35 = vld [vmem:[%s20602_s7 + $0x740] sm:$0xf0] }
 0x2b5   :  { %7642 = vmatpush.bf16.msra.mxu2 %v12012_v18  ;;  %7631 = vmatpush.bf16.msra.mxu1 %v11372_v41  ;;  %v12208_v18 = vor.u32 %v13705_v28, %v12205_v31  ;;  %v11632_v10 = vor.u32 %v13561_v23, %v11629_v35  ;;  %v12656_v41 = vor.u32 %v13817_v38, %v12653_v15  ;;  %v10797_v23 = vld [vmem:[%s20602_s7 + $0xc0] sm:$0xf0] }
 0x2b6   :  { %v13481_v31 = vld [vmem:[%s20602_s7 + $0x484] sm:$0xf] }
 0x2b7   :  { %7619 = vmatpush.bf16.msra.mxu0 %v10796_v49  ;;  %v13385_v49 = vld [vmem:[%s20602_s7 + $0x184] sm:$0xf] }
 0x2b8   :  { %v10928_v50 = vor.u32 %v13385_v49, %v10925_v32  ;;  %v11309_v35 = vld [vmem:[%s20602_s7 + $0x4c0] sm:$0xf0]  ;;  %v13458_v49 = vld [vmem:[%s20602_s7 + $0x3c4] sm:$0xf0] }
 0x2b9   :  { %7643 = vmatpush.bf16.msra.mxu2 %v11948_v2  ;;  %7632 = vmatpush.bf16.msra.mxu1 %v11308_v16  ;;  %v11056_v2 = vor.u32 %v13417_v9, %v11053_v19  ;;  %v12592_v16 = vor.u32 %v13801_v42, %v12589_v33  ;;  %v11312_v45 = vor.u32 %v13481_v31, %v11309_v35  ;;  %v10733_v9 = vld [vmem:[%s20602_s7 + $0x40] sm:$0xf0]  ;;  %v11187_v33 = vld [vmem:[%s20602_s7 + $0x388] sm:$0xf] }
 0x2ba   :  { %v11245_v19 = vld [vmem:[%s20602_s7 + $0x440] sm:$0xf0]  ;;  %v13586_v32 = vld [vmem:[%s20602_s7 + $0x7c4] sm:$0xf0]  ;;  %v11188_v46 = vor.u32 %v13458_v49, %v11187_v33 }
 0x2bb   :  { %7620 = vmatpush.bf16.msra.mxu0 %v10732_v53  ;;  %v11373_v53 = vld [vmem:[%s20602_s7 + $0x540] sm:$0xf0]  ;;  %v11571_v31 = vld [vmem:[%s20602_s7 + $0x688] sm:$0xf] }
 0x2bc   :  { %v13737_v14 = vld [vmem:[%s20602_s7 + $0xc84] sm:$0xf]  ;;  %v13554_v35 = vld [vmem:[%s20602_s7 + $0x6c4] sm:$0xf0] }
 0x2bd   :  { %7644 = vmatpush.bf16.msra.mxu2 %v11884_v40  ;;  %7633 = vmatpush.bf16.msra.mxu1 %v11244_v57  ;;  %v10992_v40 = vor.u32 %v13401_v17, %v10989_v21  ;;  %v13641_v57 = vld [vmem:[%s20602_s7 + $0x984] sm:$0xf]  ;;  %v13666_v49 = vld [vmem:[%s20602_s7 + $0xa44] sm:$0xf0] }
 0x2be   :  { %v12333_v38 = vld [vmem:[%s20602_s7 + $0xcc0] sm:$0xf0] }
 0x2bf   :  { %v12336_v15 = vor.u32 %v13737_v14, %v12333_v38  ;;  %v12269_v21 = vld [vmem:[%s20602_s7 + $0xc40] sm:$0xf0] }
 0x2c1   :  { %7645 = vmatpush.bf16.msra.mxu2 %v11820_v6 }
 0x2c5   :  { %7646 = vmatpush.bf16.msra.mxu2 %v11756_v0  ;;  %v11885_v0 = vld [vmem:[%s20602_s7 + $0x940] sm:$0xf0] }
 0x2c6   :  { %v11888_v1 = vor.u32 %v13625_v63, %v11885_v0 }
 0x316   :  { %v4329_v39 = vpop.f32.mrf.mxu3 }
 0x317   :  { %v4330_v48 = vadd.f32 %v4329_v39, %v17335_v4  ;;  %v12331_v4 = vld [vmem:[%s20602_s7 + $0xc80] sm:$0xf]  ;;  %v12013_v39 = vld [vmem:[%s20602_s7 + $0xa40] sm:$0xf0] }
 0x318   :  { %v12332_v61 = vor.u32 %v13745_v52, %v12331_v4  ;;  %v12016_v51 = vor.u32 %v13657_v36, %v12013_v39  ;;  %v10861_v4 = vld [vmem:[%s20602_s7 + $0x140] sm:$0xf0] }
 0x319   :  { %4334 = vst.msk [vmem:[%s20603_s9] sm:$0xff] %vm4333_vm0, %v4330_v48  ;;  %v4335_v20 = vpack.c.bf16 %v4330_v48, %v4330_v48  ;;  %v12525_v48 = vld [vmem:[%s20602_s7 + $0xe40] sm:$0xf0]  ;;  %v10864_v6 = vor.u32 %v13369_v55, %v10861_v4  ;;  %v11635_v55 = vld [vmem:[%s20602_s7 + $0x708] sm:$0xf] }
 0x31a   :  { %7658 = vmatpush.bf16.msra.mxu3 %v12332_v61  ;;  %v12528_v52 = vor.u32 %v13785_v47, %v12525_v48  ;;  %v13353_v61 = vld [vmem:[%s20602_s7 + $0x84] sm:$0xf]  ;;  %v11123_v48 = vld [vmem:[%s20602_s7 + $0x308] sm:$0xf] }
 0x31b   :  { %10725 = vmatmul.msk.bf16.vlgmr.msrb.gmra.mxu0 %vm4333_vm0, %v4335_v20  ;;  %10726 = vmatmul.msk.bf16.vlgmr.msrb.gmra.mxu1 %vm4333_vm0, %v4335_v20  ;;  %v10800_v28 = vor.u32 %v13353_v61, %v10797_v23  ;;  %v13570_v4 = vld [vmem:[%s20602_s7 + $0x744] sm:$0xf0] }
 0x31c   :  { %10727 = vmatmul.msk.bf16.vlgmr.msrb.gmra.mxu2 %vm4333_vm0, %v4335_v20  ;;  %10728 = vmatmul.msk.bf16.vlgmr.msrb.gmra.mxu3 %vm4333_vm0, %v4335_v20  ;;  %v13497_v20 = vld [vmem:[%s20602_s7 + $0x504] sm:$0xf]  ;;  %v13842_v61 = vld [vmem:[%s20602_s7 + $0xfc4] sm:$0xf0] }
 0x31d   :  { %7665 = vmatpush.bf16.msrb.mxu0 %v11184_v58  ;;  %7678 = vmatpush.bf16.msrb.mxu1 %v11696_v60  ;;  %v11376_v56 = vor.u32 %v13497_v20, %v11373_v53  ;;  %v11949_v58 = vld [vmem:[%s20602_s7 + $0x9c0] sm:$0xf0]  ;;  %v12464_v60 = vor.u32 %v13769_v59, %v12461_v34  ;;  %v11059_v23 = vld [vmem:[%s20602_s7 + $0x288] sm:$0xf] }
 0x31e   :  { %v4331_v5 = vpop.f32.mrf.mxu3  ;;  %7691 = vmatpush.bf16.msrb.mxu2 %v12208_v18  ;;  %7659 = vmatpush.bf16.msra.mxu3 %v12268_v8  ;;  %v11952_v3 = vor.u32 %v13641_v57, %v11949_v58  ;;  %v13337_v18 = vld [vmem:[%s20602_s7 + $0x4] sm:$0xf]  ;;  %v12723_v57 = vld [vmem:[%s20602_s7 + $0xf88] sm:$0xf] }
 0x31f   :  { %v12397_v5 = vld [vmem:[%s20602_s7 + $0xd40] sm:$0xf0]  ;;  %v10736_v8 = vor.u32 %v13337_v18, %v10733_v9 }
 0x321   :  { %7666 = vmatpush.bf16.msrb.mxu0 %v11120_v7  ;;  %7679 = vmatpush.bf16.msrb.mxu1 %v11632_v10  ;;  %v12400_v7 = vor.u32 %v13753_v13, %v12397_v5  ;;  %v13465_v10 = vld [vmem:[%s20602_s7 + $0x404] sm:$0xf]  ;;  %v12724_v13 = vor.u32 %v13842_v61, %v12723_v57  ;;  %v12147_v5 = vld [vmem:[%s20602_s7 + $0xb08] sm:$0xf] }
 0x322   :  { %7704 = vmatpush.bf16.msrb.mxu3 %v12720_v12  ;;  %7692 = vmatpush.bf16.msrb.mxu2 %v12144_v43  ;;  %v11248_v11 = vor.u32 %v13465_v10, %v11245_v19  ;;  %v11821_v12 = vld [vmem:[%s20602_s7 + $0x8c0] sm:$0xf0]  ;;  %v11572_v10 = vor.u32 %v13554_v35, %v11571_v31  ;;  %v13826_v19 = vld [vmem:[%s20602_s7 + $0xf44] sm:$0xf0] }
 0x323   :  { %v11824_v37 = vor.u32 %v13609_v22, %v11821_v12  ;;  %v11757_v43 = vld [vmem:[%s20602_s7 + $0x840] sm:$0xf0]  ;;  %v13410_v22 = vld [vmem:[%s20602_s7 + $0x244] sm:$0xf0] }
 0x324   :  { %v11507_v12 = vld [vmem:[%s20602_s7 + $0x608] sm:$0xf] }
 0x325   :  { %7667 = vmatpush.bf16.msrb.mxu0 %v11056_v2  ;;  %7680 = vmatpush.bf16.msrb.mxu1 %v11568_v25  ;;  %v13593_v2 = vld [vmem:[%s20602_s7 + $0x804] sm:$0xf]  ;;  %v13362_v57 = vld [vmem:[%s20602_s7 + $0xc4] sm:$0xf0] }
 0x326   :  { %7705 = vmatpush.bf16.msrb.mxu3 %v12656_v41  ;;  %7693 = vmatpush.bf16.msrb.mxu2 %v12080_v44  ;;  %v11760_v17 = vor.u32 %v13593_v2, %v11757_v43  ;;  %v13721_v25 = vld [vmem:[%s20602_s7 + $0xc04] sm:$0xf]  ;;  %v4354_v41 = vperm.slane %v4352_v26, 0  ;;  %v12083_v43 = vld [vmem:[%s20602_s7 + $0xa88] sm:$0xf] }
 0x327   :  { %v12272_v24 = vor.u32 %v13721_v25, %v12269_v21  ;;  %v13682_v21 = vld [vmem:[%s20602_s7 + $0xac4] sm:$0xf0] }
 0x328   :  { %v12084_v33 = vor.u32 %v13682_v21, %v12083_v43  ;;  %v13634_v61 = vld [vmem:[%s20602_s7 + $0x944] sm:$0xf0]  ;;  %v13434_v43 = vld [vmem:[%s20602_s7 + $0x30c] sm:$0xf] }
 0x329   :  { %7668 = vmatpush.bf16.msrb.mxu0 %v10992_v40  ;;  %7681 = vmatpush.bf16.msrb.mxu1 %v11504_v27  ;;  %v11699_v27 = vld [vmem:[%s20602_s7 + $0x788] sm:$0xf] }
 0x32a   :  { %7706 = vmatpush.bf16.msrb.mxu3 %v12592_v16  ;;  %7694 = vmatpush.bf16.msrb.mxu2 %v12016_v51  ;;  %v4356_v16 = vperm.slane %v4352_v26, 2  ;;  %v11700_v47 = vor.u32 %v13586_v32, %v11699_v27  ;;  %v13810_v26 = vld [vmem:[%s20602_s7 + $0xec4] sm:$0xf0] }
 0x32b   :  { %v12531_v27 = vld [vmem:[%s20602_s7 + $0xe08] sm:$0xf] }
 0x32c   :  { %v13794_v32 = vld [vmem:[%s20602_s7 + $0xe44] sm:$0xf0] }
 0x32d   :  { %7669 = vmatpush.bf16.msrb.mxu0 %v10928_v50  ;;  %7682 = vmatpush.bf16.msrb.mxu1 %v11440_v62  ;;  %v13442_v50 = vld [vmem:[%s20602_s7 + $0x344] sm:$0xf0] }
 0x32e   :  { %7707 = vmatpush.bf16.msrb.mxu3 %v12528_v52  ;;  %7695 = vmatpush.bf16.msrb.mxu2 %v11952_v3  ;;  %v11124_v53 = vor.u32 %v13442_v50, %v11123_v48  ;;  %v12532_v50 = vor.u32 %v13794_v32, %v12531_v27 }
 0x331   :  { %7670 = vmatpush.bf16.msrb.mxu0 %v10864_v6  ;;  %7683 = vmatpush.bf16.msrb.mxu1 %v11376_v56  ;;  %v12211_v6 = vld [vmem:[%s20602_s7 + $0xb88] sm:$0xf] }
 0x332   :  { %7708 = vmatpush.bf16.msrb.mxu3 %v12464_v60  ;;  %7696 = vmatpush.bf16.msrb.mxu2 %v11888_v1  ;;  %v13714_v56 = vld [vmem:[%s20602_s7 + $0xbc4] sm:$0xf0]  ;;  %v11636_v60 = vor.u32 %v13570_v4, %v11635_v55 }
 0x333   :  { %v12212_v0 = vor.u32 %v13714_v56, %v12211_v6  ;;  %v11955_v55 = vld [vmem:[%s20602_s7 + $0x988] sm:$0xf] }
 0x334   :  { %v13650_v4 = vld [vmem:[%s20602_s7 + $0x9c4] sm:$0xf0] }
 0x335   :  { %7671 = vmatpush.bf16.msrb.mxu0 %v10800_v28  ;;  %7684 = vmatpush.bf16.msrb.mxu1 %v11312_v45  ;;  %v13426_v28 = vld [vmem:[%s20602_s7 + $0x2c4] sm:$0xf0] }
 0x336   :  { %7709 = vmatpush.bf16.msrb.mxu3 %v12400_v7  ;;  %7697 = vmatpush.bf16.msrb.mxu2 %v11824_v37  ;;  %v11060_v1 = vor.u32 %v13426_v28, %v11059_v23  ;;  %v13698_v7 = vld [vmem:[%s20602_s7 + $0xb44] sm:$0xf0] }
 0x337   :  { %v13538_v37 = vld [vmem:[%s20602_s7 + $0x644] sm:$0xf0] }
 0x338   :  { %v11508_v25 = vor.u32 %v13538_v37, %v11507_v12  ;;  %v10803_v56 = vld [vmem:[%s20602_s7 + $0x88] sm:$0xf] }
 0x339   :  { %7672 = vmatpush.bf16.msrb.mxu0 %v10736_v8  ;;  %7685 = vmatpush.bf16.msrb.mxu1 %v11248_v11  ;;  %v12659_v8 = vld [vmem:[%s20602_s7 + $0xf08] sm:$0xf]  ;;  %v10804_v31 = vor.u32 %v13362_v57, %v10803_v56  ;;  %v13402_v56 = vld [vmem:[%s20602_s7 + $0x20c] sm:$0xf] }
 0x33a   :  { %7710 = vmatpush.bf16.msrb.mxu3 %v12336_v15  ;;  %7698 = vmatpush.bf16.msrb.mxu2 %v11760_v17  ;;  %v10995_v11 = vld [vmem:[%s20602_s7 + $0x208] sm:$0xf]  ;;  %v12148_v15 = vor.u32 %v13698_v7, %v12147_v5  ;;  %v12660_v2 = vor.u32 %v13826_v19, %v12659_v8  ;;  %v11189_v5 = vld [vmem:[%s20602_s7 + $0x3c8] sm:$0xf0] }
 0x33b   :  { %v10996_v17 = vor.u32 %v13410_v22, %v10995_v11  ;;  %v12403_v23 = vld [vmem:[%s20602_s7 + $0xd08] sm:$0xf]  ;;  %v13578_v8 = vld [vmem:[%s20602_s7 + $0x78c] sm:$0xf] }
 0x33c   :  { %v13762_v28 = vld [vmem:[%s20602_s7 + $0xd44] sm:$0xf0]  ;;  %v11701_v19 = vld [vmem:[%s20602_s7 + $0x7c8] sm:$0xf0] }
 0x33d   :  { %v11827_v11 = vld [vmem:[%s20602_s7 + $0x888] sm:$0xf]  ;;  %v10997_v57 = vld [vmem:[%s20602_s7 + $0x248] sm:$0xf0] }
 0x33e   :  { %7711 = vmatpush.bf16.msrb.mxu3 %v12272_v24  ;;  %v12595_v24 = vld [vmem:[%s20602_s7 + $0xe88] sm:$0xf] }
 0x33f   :  { %v13618_v22 = vld [vmem:[%s20602_s7 + $0x8c4] sm:$0xf0] }
 0x340   :  { %v12339_v12 = vld [vmem:[%s20602_s7 + $0xc88] sm:$0xf]  ;;  %v11828_v21 = vor.u32 %v13618_v22, %v11827_v11 }
 0x341   :  { %v13746_v37 = vld [vmem:[%s20602_s7 + $0xcc4] sm:$0xf0] }
 0x398   :  { %v4454_v30 = vpop.f32.mrf.mxu0  ;;  %v4467_v42 = vpop.f32.mrf.mxu1 }
 0x399   :  { %v4455_v40 = vadd.f32 %v4454_v30, %v4354_v41  ;;  %v4468_v44 = vadd.f32 %v4467_v42, %v4355_v29  ;;  %v10931_v41 = vld [vmem:[%s20602_s7 + $0x188] sm:$0xf] }
 0x39a   :  { %v13394_v29 = vld [vmem:[%s20602_s7 + $0x1c4] sm:$0xf0] }
 0x39b   :  { %v4497_v36 = vmax.f32 %v4455_v40, 0.0  ;;  %v4498_v39 = vmax.f32 %v4468_v44, 0.0  ;;  %v11443_v30 = vld [vmem:[%s20602_s7 + $0x588] sm:$0xf]  ;;  %v12596_v40 = vor.u32 %v13810_v26, %v12595_v24  ;;  %v12340_v24 = vor.u32 %v13746_v37, %v12339_v12  ;;  %v11637_v26 = vld [vmem:[%s20602_s7 + $0x748] sm:$0xf0] }
 0x39c   :  { %v13522_v42 = vld [vmem:[%s20602_s7 + $0x5c4] sm:$0xf0]  ;;  %v13370_v12 = vld [vmem:[%s20602_s7 + $0x10c] sm:$0xf] }
 0x39d   :  { %v17775_v51 = vpack.c.bf16 %v4497_v36, %v4497_v36  ;;  %v17777_v62 = vpack.c.bf16 %v4498_v39, %v4498_v39  ;;  %v12019_v44 = vld [vmem:[%s20602_s7 + $0xa08] sm:$0xf]  ;;  %v10932_v36 = vor.u32 %v13394_v29, %v10931_v41  ;;  %v11444_v39 = vor.u32 %v13522_v42, %v11443_v30  ;;  %v10869_v37 = vld [vmem:[%s20602_s7 + $0x148] sm:$0xf0] }
 0x39e   :  { %v12020_v48 = vor.u32 %v13666_v49, %v12019_v44  ;;  %v11763_v41 = vld [vmem:[%s20602_s7 + $0x808] sm:$0xf]  ;;  %v13834_v44 = vld [vmem:[%s20602_s7 + $0xf8c] sm:$0xf] }
 0x39f   :  { %v4480_v52 = vpop.f32.mrf.mxu2  ;;  %v4493_v20 = vpop.f32.mrf.mxu3  ;;  %7621 = vmatmul.bf16.vlgmr.msra.gmra.mxu0 %v17775_v51  ;;  %7634 = vmatmul.bf16.vlgmr.msra.gmra.mxu1 %v17777_v62  ;;  %v13602_v29 = vld [vmem:[%s20602_s7 + $0x844] sm:$0xf0]  ;;  %v12725_v49 = vld [vmem:[%s20602_s7 + $0xfc8] sm:$0xf0] }
 0x3a0   :  { %v4481_v58 = vadd.f32 %v4480_v52, %v4356_v16  ;;  %v4494_v59 = vadd.f32 %v4493_v20, %v4357_v54  ;;  %7717 = vmatpush.bf16.msra.mxu0 %v11188_v46  ;;  %7730 = vmatpush.bf16.msra.mxu1 %v11700_v47  ;;  %v4456_v3 = vpop.f32.mrf.mxu0  ;;  %v4469_v34 = vpop.f32.mrf.mxu1  ;;  %v10867_v16 = vld [vmem:[%s20602_s7 + $0x108] sm:$0xf] }
 0x3a1   :  { %v13378_v54 = vld [vmem:[%s20602_s7 + $0x144] sm:$0xf0]  ;;  %v11956_v3 = vor.u32 %v13650_v4, %v11955_v55  ;;  %v13690_v55 = vld [vmem:[%s20602_s7 + $0xb0c] sm:$0xf] }
 0x3a2   :  { %v4499_v45 = vmax.f32 %v4481_v58, 0.0  ;;  %v4500_v63 = vmax.f32 %v4494_v59, 0.0  ;;  %v11379_v46 = vld [vmem:[%s20602_s7 + $0x508] sm:$0xf]  ;;  %v12149_v4 = vld [vmem:[%s20602_s7 + $0xb48] sm:$0xf0] }
 0x3a3   :  { %v13506_v47 = vld [vmem:[%s20602_s7 + $0x544] sm:$0xf0] }
 0x3a4   :  { %v17817_v18 = vpack.c.bf16 %v4499_v45, %v4499_v45  ;;  %v17819_v9 = vpack.c.bf16 %v4500_v63, %v4500_v63  ;;  %7718 = vmatpush.bf16.msra.mxu0 %v11124_v53  ;;  %7731 = vmatpush.bf16.msra.mxu1 %v11636_v60  ;;  %v12467_v52 = vld [vmem:[%s20602_s7 + $0xd88] sm:$0xf]  ;;  %v10868_v53 = vor.u32 %v13378_v54, %v10867_v16  ;;  %v11061_v54 = vld [vmem:[%s20602_s7 + $0x2c8] sm:$0xf0] }
 0x3a5   :  { %v13778_v20 = vld [vmem:[%s20602_s7 + $0xdc4] sm:$0xf0]  ;;  %v11380_v6 = vor.u32 %v13506_v47, %v11379_v46  ;;  %v13546_v46 = vld [vmem:[%s20602_s7 + $0x68c] sm:$0xf] }
 0x3a6   :  { %7647 = vmatmul.bf16.vlgmr.msra.gmra.mxu2 %v17817_v18  ;;  %7660 = vmatmul.bf16.vlgmr.msra.gmra.mxu3 %v17819_v9  ;;  %v11315_v58 = vld [vmem:[%s20602_s7 + $0x488] sm:$0xf]  ;;  %v12468_v34 = vor.u32 %v13778_v20, %v12467_v52  ;;  %v11573_v47 = vld [vmem:[%s20602_s7 + $0x6c8] sm:$0xf0] }
 0x3a7   :  { %7743 = vmatpush.bf16.msra.mxu2 %v12212_v0  ;;  %7756 = vmatpush.bf16.msra.mxu3 %v12724_v13  ;;  %v4482_v14 = vpop.f32.mrf.mxu2  ;;  %v4495_v38 = vpop.f32.mrf.mxu3  ;;  %v13490_v59 = vld [vmem:[%s20602_s7 + $0x4c4] sm:$0xf0]  ;;  %v13818_v52 = vld [vmem:[%s20602_s7 + $0xf0c] sm:$0xf] }
 0x3a8   :  { %7719 = vmatpush.bf16.msra.mxu0 %v11060_v1  ;;  %7732 = vmatpush.bf16.msra.mxu1 %v11572_v10  ;;  %v11891_v60 = vld [vmem:[%s20602_s7 + $0x908] sm:$0xf]  ;;  %v11316_v35 = vor.u32 %v13490_v59, %v11315_v58  ;;  %v13450_v1 = vld [vmem:[%s20602_s7 + $0x38c] sm:$0xf]  ;;  %v12404_v10 = vor.u32 %v13762_v28, %v12403_v23 }
 0x3a9   :  { %v10739_v45 = vld [vmem:[%s20602_s7 + $0x8] sm:$0xf]  ;;  %v11892_v7 = vor.u32 %v13634_v61, %v11891_v60  ;;  %v12661_v20 = vld [vmem:[%s20602_s7 + $0xf48] sm:$0xf0] }
 0x3aa   :  { %v13346_v63 = vld [vmem:[%s20602_s7 + $0x44] sm:$0xf0]  ;;  %v13530_v58 = vld [vmem:[%s20602_s7 + $0x60c] sm:$0xf] }
 0x3ab   :  { %7744 = vmatpush.bf16.msra.mxu2 %v12148_v15  ;;  %7757 = vmatpush.bf16.msra.mxu3 %v12660_v2  ;;  %v11251_v0 = vld [vmem:[%s20602_s7 + $0x408] sm:$0xf]  ;;  %v10740_v14 = vor.u32 %v13346_v63, %v10739_v45  ;;  %v11192_v15 = vor.u32 %v13450_v1, %v11189_v5  ;;  %v11704_v2 = vor.u32 %v13578_v8, %v11701_v19  ;;  %v11509_v59 = vld [vmem:[%s20602_s7 + $0x648] sm:$0xf0] }
 0x3ac   :  { %7720 = vmatpush.bf16.msra.mxu0 %v10996_v17  ;;  %7733 = vmatpush.bf16.msra.mxu1 %v11508_v25  ;;  %v13474_v13 = vld [vmem:[%s20602_s7 + $0x444] sm:$0xf0]  ;;  %v11125_v17 = vld [vmem:[%s20602_s7 + $0x348] sm:$0xf0] }
 0x3ad   :  { %v11252_v38 = vor.u32 %v13474_v13, %v11251_v0  ;;  %v13562_v25 = vld [vmem:[%s20602_s7 + $0x70c] sm:$0xf]  ;;  %v12275_v30 = vld [vmem:[%s20602_s7 + $0xc08] sm:$0xf]  ;;  %v11128_v27 = vor.u32 %v13434_v43, %v11125_v17 }
 0x3ae   :  { %v13730_v42 = vld [vmem:[%s20602_s7 + $0xc44] sm:$0xf0]  ;;  %v11640_v32 = vor.u32 %v13562_v25, %v11637_v26  ;;  %v13674_v60 = vld [vmem:[%s20602_s7 + $0xa8c] sm:$0xf] }
 0x3af   :  { %7745 = vmatpush.bf16.msra.mxu2 %v12084_v33  ;;  %7758 = vmatpush.bf16.msra.mxu3 %v12596_v40  ;;  %v13706_v33 = vld [vmem:[%s20602_s7 + $0xb8c] sm:$0xf]  ;;  %v12276_v16 = vor.u32 %v13730_v42, %v12275_v30 }
 0x3b0   :  { %7673 = vmatmul.bf16.vlgmr.msrb.gmra.mxu0 %v17775_v51  ;;  %7686 = vmatmul.bf16.vlgmr.msrb.gmra.mxu1 %v17777_v62  ;;  %v12213_v40 = vld [vmem:[%s20602_s7 + $0xbc8] sm:$0xf0] }
 0x3b1   :  { %7721 = vmatpush.bf16.msra.mxu0 %v10932_v36  ;;  %7734 = vmatpush.bf16.msra.mxu1 %v11444_v39  ;;  %v13418_v36 = vld [vmem:[%s20602_s7 + $0x28c] sm:$0xf]  ;;  %v11764_v39 = vor.u32 %v13602_v29, %v11763_v41 }
 0x3b2   :  { %v12085_v61 = vld [vmem:[%s20602_s7 + $0xac8] sm:$0xf0] }
 0x3b3   :  { %7746 = vmatpush.bf16.msra.mxu2 %v12020_v48  ;;  %7759 = vmatpush.bf16.msra.mxu3 %v12532_v50  ;;  %v12216_v48 = vor.u32 %v13706_v33, %v12213_v40  ;;  %v12728_v50 = vor.u32 %v13834_v44, %v12725_v49  ;;  %v13802_v23 = vld [vmem:[%s20602_s7 + $0xe8c] sm:$0xf]  ;;  %v12088_v1 = vor.u32 %v13674_v60, %v12085_v61  ;;  %v11131_v60 = vld [vmem:[%s20602_s7 + $0x310] sm:$0xf] }
 0x3b4   :  { %v12597_v28 = vld [vmem:[%s20602_s7 + $0xec8] sm:$0xf0]  ;;  %v13443_v61 = vld [vmem:[%s20602_s7 + $0x34c] sm:$0xf0] }
 0x3b5   :  { %7722 = vmatpush.bf16.msra.mxu0 %v10868_v53  ;;  %7735 = vmatpush.bf16.msra.mxu1 %v11380_v6  ;;  %v11064_v53 = vor.u32 %v13418_v36, %v11061_v54  ;;  %v11576_v6 = vor.u32 %v13546_v46, %v11573_v47  ;;  %v13386_v45 = vld [vmem:[%s20602_s7 + $0x18c] sm:$0xf]  ;;  %v12600_v5 = vor.u32 %v13802_v23, %v12597_v28  ;;  %v11643_v23 = vld [vmem:[%s20602_s7 + $0x710] sm:$0xf] }
 0x3b6   :  { %7699 = vmatmul.bf16.vlgmr.msrb.gmra.mxu2 %v17817_v18  ;;  %7712 = vmatmul.bf16.vlgmr.msrb.gmra.mxu3 %v17819_v9  ;;  %v10933_v63 = vld [vmem:[%s20602_s7 + $0x1c8] sm:$0xf0] }
 0x3b7   :  { %7747 = vmatpush.bf16.msra.mxu2 %v11956_v3  ;;  %7760 = vmatpush.bf16.msra.mxu3 %v12468_v34  ;;  %v12152_v3 = vor.u32 %v13690_v55, %v12149_v4  ;;  %v12664_v34 = vor.u32 %v13818_v52, %v12661_v20  ;;  %v13514_v0 = vld [vmem:[%s20602_s7 + $0x58c] sm:$0xf]  ;;  %v10936_v11 = vor.u32 %v13386_v45, %v10933_v63  ;;  %v11707_v52 = vld [vmem:[%s20602_s7 + $0x790] sm:$0xf] }
 0x3b8   :  { %v11445_v13 = vld [vmem:[%s20602_s7 + $0x5c8] sm:$0xf0]  ;;  %v13587_v20 = vld [vmem:[%s20602_s7 + $0x7cc] sm:$0xf0] }
 0x3b9   :  { %7723 = vmatpush.bf16.msra.mxu0 %v10804_v31  ;;  %7736 = vmatpush.bf16.msra.mxu1 %v11316_v35  ;;  %v11000_v31 = vor.u32 %v13402_v56, %v10997_v57  ;;  %v11512_v35 = vor.u32 %v13530_v58, %v11509_v59  ;;  %v13786_v8 = vld [vmem:[%s20602_s7 + $0xe0c] sm:$0xf]  ;;  %v11448_v22 = vor.u32 %v13514_v0, %v11445_v13 }
 0x3ba   :  { %v12533_v19 = vld [vmem:[%s20602_s7 + $0xe48] sm:$0xf0] }
 0x3bb   :  { %7748 = vmatpush.bf16.msra.mxu2 %v11892_v7  ;;  %7761 = vmatpush.bf16.msra.mxu3 %v12404_v10  ;;  %v13658_v7 = vld [vmem:[%s20602_s7 + $0xa0c] sm:$0xf] }
 0x3bc   :  { %v12021_v10 = vld [vmem:[%s20602_s7 + $0xa48] sm:$0xf0] }
 0x3bd   :  { %7724 = vmatpush.bf16.msra.mxu0 %v10740_v14  ;;  %7737 = vmatpush.bf16.msra.mxu1 %v11252_v38  ;;  %v13498_v14 = vld [vmem:[%s20602_s7 + $0x50c] sm:$0xf] }
 0x3be   :  { %v11381_v38 = vld [vmem:[%s20602_s7 + $0x548] sm:$0xf0] }
 0x3bf   :  { %7749 = vmatpush.bf16.msra.mxu2 %v11828_v21  ;;  %7762 = vmatpush.bf16.msra.mxu3 %v12340_v24  ;;  %v13642_v43 = vld [vmem:[%s20602_s7 + $0x98c] sm:$0xf]  ;;  %v10872_v24 = vor.u32 %v13370_v12, %v10869_v37  ;;  %v11384_v26 = vor.u32 %v13498_v14, %v11381_v38  ;;  %v11067_v12 = vld [vmem:[%s20602_s7 + $0x290] sm:$0xf] }
 0x3c0   :  { %7725 = vmatmul.bf16.vlgmr.msra.gmra.mxu0 %v17775_v51  ;;  %7738 = vmatmul.bf16.vlgmr.msra.gmra.mxu1 %v17777_v62  ;;  %v11957_v17 = vld [vmem:[%s20602_s7 + $0x9c8] sm:$0xf0]  ;;  %v13427_v37 = vld [vmem:[%s20602_s7 + $0x2cc] sm:$0xf0] }
 0x3c1   :  { %7769 = vmatpush.bf16.msrb.mxu0 %v11192_v15  ;;  %7782 = vmatpush.bf16.msrb.mxu1 %v11704_v2  ;;  %v12024_v15 = vor.u32 %v13658_v7, %v12021_v10  ;;  %v12536_v2 = vor.u32 %v13786_v8, %v12533_v19  ;;  %v13770_v25 = vld [vmem:[%s20602_s7 + $0xd8c] sm:$0xf]  ;;  %v11960_v33 = vor.u32 %v13642_v43, %v11957_v17  ;;  %v12731_v7 = vld [vmem:[%s20602_s7 + $0xf90] sm:$0xf] }
 0x3c2   :  { %v12469_v21 = vld [vmem:[%s20602_s7 + $0xdc8] sm:$0xf0]  ;;  %v13843_v10 = vld [vmem:[%s20602_s7 + $0xfcc] sm:$0xf0]  ;;  %v11132_v8 = vor.u32 %v13443_v61, %v11131_v60 }
 0x3c3   :  { %7750 = vmatpush.bf16.msra.mxu2 %v11764_v39  ;;  %7763 = vmatpush.bf16.msra.mxu3 %v12276_v16  ;;  %v13354_v41 = vld [vmem:[%s20602_s7 + $0x8c] sm:$0xf]  ;;  %v12472_v40 = vor.u32 %v13770_v25, %v12469_v21  ;;  %v12732_v38 = vor.u32 %v13843_v10, %v12731_v7  ;;  %v12155_v43 = vld [vmem:[%s20602_s7 + $0xb10] sm:$0xf] }
 0x3c4   :  { %v10805_v29 = vld [vmem:[%s20602_s7 + $0xc8] sm:$0xf0]  ;;  %v13699_v17 = vld [vmem:[%s20602_s7 + $0xb4c] sm:$0xf0] }
 0x3c5   :  { %7770 = vmatpush.bf16.msrb.mxu0 %v11128_v27  ;;  %7783 = vmatpush.bf16.msrb.mxu1 %v11640_v32  ;;  %v13482_v30 = vld [vmem:[%s20602_s7 + $0x48c] sm:$0xf]  ;;  %v10808_v36 = vor.u32 %v13354_v41, %v10805_v29  ;;  %v12667_v25 = vld [vmem:[%s20602_s7 + $0xf10] sm:$0xf] }
 0x3c6   :  { %7751 = vmatmul.bf16.vlgmr.msra.gmra.mxu2 %v17817_v18  ;;  %7764 = vmatmul.bf16.vlgmr.msra.gmra.mxu3 %v17819_v9  ;;  %v11317_v42 = vld [vmem:[%s20602_s7 + $0x4c8] sm:$0xf0]  ;;  %v13827_v21 = vld [vmem:[%s20602_s7 + $0xf4c] sm:$0xf0] }
 0x3c7   :  { %7795 = vmatpush.bf16.msrb.mxu2 %v12216_v48  ;;  %7808 = vmatpush.bf16.msrb.mxu3 %v12728_v50  ;;  %v13626_v44 = vld [vmem:[%s20602_s7 + $0x90c] sm:$0xf]  ;;  %v11320_v39 = vor.u32 %v13482_v30, %v11317_v42  ;;  %v11195_v48 = vld [vmem:[%s20602_s7 + $0x390] sm:$0xf]  ;;  %v12156_v30 = vor.u32 %v13699_v17, %v12155_v43  ;;  %v12668_v42 = vor.u32 %v13827_v21, %v12667_v25  ;;  %v13451_v43 = vld [vmem:[%s20602_s7 + $0x394] sm:$0xf] }
 0x3c8   :  { %v11893_v49 = vld [vmem:[%s20602_s7 + $0x948] sm:$0xf0]  ;;  %v13459_v50 = vld [vmem:[%s20602_s7 + $0x3cc] sm:$0xf0]  ;;  %v11197_v17 = vld [vmem:[%s20602_s7 + $0x3d0] sm:$0xf0] }
 0x3c9   :  { %7771 = vmatpush.bf16.msrb.mxu0 %v11064_v53  ;;  %7784 = vmatpush.bf16.msrb.mxu1 %v11576_v6  ;;  %v13754_v27 = vld [vmem:[%s20602_s7 + $0xd0c] sm:$0xf]  ;;  %v11896_v55 = vor.u32 %v13626_v44, %v11893_v49  ;;  %v11003_v41 = vld [vmem:[%s20602_s7 + $0x210] sm:$0xf]  ;;  %v13579_v25 = vld [vmem:[%s20602_s7 + $0x794] sm:$0xf] }
 0x3ca   :  { %v12405_v32 = vld [vmem:[%s20602_s7 + $0xd48] sm:$0xf0]  ;;  %v13411_v29 = vld [vmem:[%s20602_s7 + $0x24c] sm:$0xf0]  ;;  %v11709_v21 = vld [vmem:[%s20602_s7 + $0x7d0] sm:$0xf0] }
 0x3cb   :  { %7796 = vmatpush.bf16.msrb.mxu2 %v12152_v3  ;;  %7809 = vmatpush.bf16.msrb.mxu3 %v12664_v34  ;;  %v13338_v16 = vld [vmem:[%s20602_s7 + $0xc] sm:$0xf]  ;;  %v12408_v4 = vor.u32 %v13754_v27, %v12405_v32  ;;  %v11196_v3 = vor.u32 %v13459_v50, %v11195_v48  ;;  %v11708_v34 = vor.u32 %v13587_v20, %v11707_v52  ;;  %v12091_v44 = vld [vmem:[%s20602_s7 + $0xa90] sm:$0xf] }
 0x3cc   :  { %v10741_v54 = vld [vmem:[%s20602_s7 + $0x48] sm:$0xf0]  ;;  %v13683_v49 = vld [vmem:[%s20602_s7 + $0xacc] sm:$0xf0] }
 0x3cd   :  { %7772 = vmatpush.bf16.msrb.mxu0 %v11000_v31  ;;  %7785 = vmatpush.bf16.msrb.mxu1 %v11512_v35  ;;  %v13466_v46 = vld [vmem:[%s20602_s7 + $0x40c] sm:$0xf]  ;;  %v10744_v58 = vor.u32 %v13338_v16, %v10741_v54  ;;  %v13571_v35 = vld [vmem:[%s20602_s7 + $0x74c] sm:$0xf0] }
 0x3ce   :  { %v11253_v47 = vld [vmem:[%s20602_s7 + $0x448] sm:$0xf0]  ;;  %v11644_v19 = vor.u32 %v13571_v35, %v11643_v23  ;;  %v12603_v27 = vld [vmem:[%s20602_s7 + $0xe90] sm:$0xf] }
 0x3cf   :  { %7797 = vmatpush.bf16.msrb.mxu2 %v12088_v1  ;;  %7810 = vmatpush.bf16.msrb.mxu3 %v12600_v5  ;;  %v13610_v53 = vld [vmem:[%s20602_s7 + $0x88c] sm:$0xf]  ;;  %v11256_v59 = vor.u32 %v13466_v46, %v11253_v47  ;;  %v12219_v1 = vld [vmem:[%s20602_s7 + $0xb90] sm:$0xf]  ;;  %v12092_v46 = vor.u32 %v13683_v49, %v12091_v44  ;;  %v13435_v44 = vld [vmem:[%s20602_s7 + $0x314] sm:$0xf] }
 0x3d0   :  { %v11829_v6 = vld [vmem:[%s20602_s7 + $0x8c8] sm:$0xf0]  ;;  %v13715_v5 = vld [vmem:[%s20602_s7 + $0xbcc] sm:$0xf0]  ;;  %v11133_v49 = vld [vmem:[%s20602_s7 + $0x350] sm:$0xf0] }
 0x3d1   :  { %7773 = vmatpush.bf16.msrb.mxu0 %v10936_v11  ;;  %7786 = vmatpush.bf16.msrb.mxu1 %v11448_v22  ;;  %v13738_v56 = vld [vmem:[%s20602_s7 + $0xc8c] sm:$0xf]  ;;  %v11832_v28 = vor.u32 %v13610_v53, %v11829_v6  ;;  %v12220_v14 = vor.u32 %v13715_v5, %v12219_v1  ;;  %v13811_v32 = vld [vmem:[%s20602_s7 + $0xecc] sm:$0xf0] }
 0x3d2   :  { %v12341_v57 = vld [vmem:[%s20602_s7 + $0xcc8] sm:$0xf0]  ;;  %v10939_v16 = vld [vmem:[%s20602_s7 + $0x190] sm:$0xf]  ;;  %v12604_v47 = vor.u32 %v13811_v32, %v12603_v27  ;;  %v13563_v27 = vld [vmem:[%s20602_s7 + $0x714] sm:$0xf] }
 0x3d3   :  { %7798 = vmatpush.bf16.msrb.mxu2 %v12024_v15  ;;  %7811 = vmatpush.bf16.msrb.mxu3 %v12536_v2  ;;  %v12344_v31 = vor.u32 %v13738_v56, %v12341_v57  ;;  %v13594_v45 = vld [vmem:[%s20602_s7 + $0x80c] sm:$0xf]  ;;  %v11579_v15 = vld [vmem:[%s20602_s7 + $0x690] sm:$0xf] }
 0x3d4   :  { %v11765_v63 = vld [vmem:[%s20602_s7 + $0x848] sm:$0xf0]  ;;  %v13555_v2 = vld [vmem:[%s20602_s7 + $0x6cc] sm:$0xf0] }
 0x3d5   :  { %7774 = vmatpush.bf16.msrb.mxu0 %v10872_v24  ;;  %7787 = vmatpush.bf16.msrb.mxu1 %v11384_v26  ;;  %v13722_v0 = vld [vmem:[%s20602_s7 + $0xc0c] sm:$0xf]  ;;  %v11768_v11 = vor.u32 %v13594_v45, %v11765_v63  ;;  %v11068_v24 = vor.u32 %v13427_v37, %v11067_v12  ;;  %v11580_v26 = vor.u32 %v13555_v2, %v11579_v15  ;;  %v13395_v54 = vld [vmem:[%s20602_s7 + $0x1cc] sm:$0xf0] }
 0x3d6   :  { %v12277_v13 = vld [vmem:[%s20602_s7 + $0xc48] sm:$0xf0]  ;;  %v11451_v48 = vld [vmem:[%s20602_s7 + $0x590] sm:$0xf]  ;;  %v10940_v53 = vor.u32 %v13395_v54, %v10939_v16 }
 0x3d7   :  { %7799 = vmatpush.bf16.msrb.mxu2 %v11960_v33  ;;  %7812 = vmatpush.bf16.msrb.mxu3 %v12472_v40  ;;  %v12280_v22 = vor.u32 %v13722_v0, %v12277_v13  ;;  %v11515_v33 = vld [vmem:[%s20602_s7 + $0x610] sm:$0xf] }
 0x3d8   :  { %v13539_v40 = vld [vmem:[%s20602_s7 + $0x64c] sm:$0xf0] }
 0x3d9   :  { %7775 = vmatpush.bf16.msrb.mxu0 %v10808_v36  ;;  %7788 = vmatpush.bf16.msrb.mxu1 %v11320_v39  ;;  %v11004_v36 = vor.u32 %v13411_v29, %v11003_v41  ;;  %v11516_v39 = vor.u32 %v13539_v40, %v11515_v33  ;;  %v13523_v50 = vld [vmem:[%s20602_s7 + $0x5cc] sm:$0xf0]  ;;  %v11200_v33 = vor.u32 %v13451_v43, %v11197_v17  ;;  %v13659_v43 = vld [vmem:[%s20602_s7 + $0xa14] sm:$0xf] }
 0x3da   :  { %v12539_v52 = vld [vmem:[%s20602_s7 + $0xe10] sm:$0xf]  ;;  %v11452_v6 = vor.u32 %v13523_v50, %v11451_v48  ;;  %v11712_v40 = vor.u32 %v13579_v25, %v11709_v21  ;;  %v13707_v48 = vld [vmem:[%s20602_s7 + $0xb94] sm:$0xf] }
 0x3db   :  { %7800 = vmatpush.bf16.msrb.mxu2 %v11896_v55  ;;  %7813 = vmatpush.bf16.msrb.mxu3 %v12408_v4  ;;  %v12027_v55 = vld [vmem:[%s20602_s7 + $0xa10] sm:$0xf]  ;;  %v12221_v50 = vld [vmem:[%s20602_s7 + $0xbd0] sm:$0xf0] }
 0x3dc   :  { %v13667_v4 = vld [vmem:[%s20602_s7 + $0xa4c] sm:$0xf0]  ;;  %v12029_v17 = vld [vmem:[%s20602_s7 + $0xa50] sm:$0xf0] }
 0x3dd   :  { %7776 = vmatpush.bf16.msrb.mxu0 %v10744_v58  ;;  %7789 = vmatpush.bf16.msrb.mxu1 %v11256_v59  ;;  %v13795_v20 = vld [vmem:[%s20602_s7 + $0xe4c] sm:$0xf0]  ;;  %v12028_v58 = vor.u32 %v13667_v4, %v12027_v55  ;;  %v13835_v55 = vld [vmem:[%s20602_s7 + $0xf94] sm:$0xf] }
 0x3de   :  { %v10875_v56 = vld [vmem:[%s20602_s7 + $0x110] sm:$0xf]  ;;  %v12540_v59 = vor.u32 %v13795_v20, %v12539_v52  ;;  %v12733_v4 = vld [vmem:[%s20602_s7 + $0xfd0] sm:$0xf0]  ;;  %v11136_v52 = vor.u32 %v13435_v44, %v11133_v49 }
 0x3df   :  { %7801 = vmatpush.bf16.msrb.mxu2 %v11832_v28  ;;  %7814 = vmatpush.bf16.msrb.mxu3 %v12344_v31  ;;  %v13379_v57 = vld [vmem:[%s20602_s7 + $0x14c] sm:$0xf0]  ;;  %v13787_v25 = vld [vmem:[%s20602_s7 + $0xe14] sm:$0xf] }
 0x3e0   :  { %7777 = vmatmul.bf16.vlgmr.msrb.gmra.mxu0 %v17775_v51  ;;  %7790 = vmatmul.bf16.vlgmr.msrb.gmra.mxu1 %v17777_v62  ;;  %v11963_v60 = vld [vmem:[%s20602_s7 + $0x990] sm:$0xf]  ;;  %v10876_v31 = vor.u32 %v13379_v57, %v10875_v56  ;;  %v13419_v56 = vld [vmem:[%s20602_s7 + $0x294] sm:$0xf] }
 0x3e1   :  { %7821 = vmatpush.bf16.msra.mxu0 %v11196_v3  ;;  %7834 = vmatpush.bf16.msra.mxu1 %v11708_v34  ;;  %v11387_v3 = vld [vmem:[%s20602_s7 + $0x510] sm:$0xf]  ;;  %v11069_v57 = vld [vmem:[%s20602_s7 + $0x2d0] sm:$0xf0] }
 0x3e2   :  { %v13507_v34 = vld [vmem:[%s20602_s7 + $0x54c] sm:$0xf0]  ;;  %v12541_v21 = vld [vmem:[%s20602_s7 + $0xe50] sm:$0xf0] }
 0x3e3   :  { %7802 = vmatpush.bf16.msrb.mxu2 %v11768_v11  ;;  %7815 = vmatpush.bf16.msrb.mxu3 %v12280_v22  ;;  %v13651_v61 = vld [vmem:[%s20602_s7 + $0x9cc] sm:$0xf0]  ;;  %v11388_v35 = vor.u32 %v13507_v34, %v11387_v3  ;;  %v13547_v3 = vld [vmem:[%s20602_s7 + $0x694] sm:$0xf] }
 0x3e4   :  { %v12475_v23 = vld [vmem:[%s20602_s7 + $0xd90] sm:$0xf]  ;;  %v11964_v0 = vor.u32 %v13651_v61, %v11963_v60  ;;  %v11581_v34 = vld [vmem:[%s20602_s7 + $0x6d0] sm:$0xf0] }
 0x3e5   :  { %7822 = vmatpush.bf16.msra.mxu0 %v11132_v8  ;;  %7835 = vmatpush.bf16.msra.mxu1 %v11644_v19  ;;  %v13779_v28 = vld [vmem:[%s20602_s7 + $0xdcc] sm:$0xf0]  ;;  %v13691_v60 = vld [vmem:[%s20602_s7 + $0xb14] sm:$0xf] }
 0x3e6   :  { %7803 = vmatmul.bf16.vlgmr.msrb.gmra.mxu2 %v17817_v18  ;;  %7816 = vmatmul.bf16.vlgmr.msrb.gmra.mxu3 %v17819_v9  ;;  %v10811_v45 = vld [vmem:[%s20602_s7 + $0x90] sm:$0xf]  ;;  %v12476_v13 = vor.u32 %v13779_v28, %v12475_v23  ;;  %v12157_v61 = vld [vmem:[%s20602_s7 + $0xb50] sm:$0xf0] }
 0x3e7   :  { %7847 = vmatpush.bf16.msra.mxu2 %v12220_v14  ;;  %7860 = vmatpush.bf16.msra.mxu3 %v12732_v38  ;;  %v13363_v63 = vld [vmem:[%s20602_s7 + $0xcc] sm:$0xf0]  ;;  %v13819_v23 = vld [vmem:[%s20602_s7 + $0xf14] sm:$0xf] }
 0x3e8   :  { %v11323_v1 = vld [vmem:[%s20602_s7 + $0x490] sm:$0xf]  ;;  %v10812_v11 = vor.u32 %v13363_v63, %v10811_v45  ;;  %v12669_v28 = vld [vmem:[%s20602_s7 + $0xf50] sm:$0xf0] }
 0x3e9   :  { %7823 = vmatpush.bf16.msra.mxu0 %v11068_v24  ;;  %7836 = vmatpush.bf16.msra.mxu1 %v11580_v26  ;;  %v13491_v5 = vld [vmem:[%s20602_s7 + $0x4cc] sm:$0xf0]  ;;  %v13403_v45 = vld [vmem:[%s20602_s7 + $0x214] sm:$0xf] }
 0x3ea   :  { %v11899_v7 = vld [vmem:[%s20602_s7 + $0x910] sm:$0xf]  ;;  %v11324_v22 = vor.u32 %v13491_v5, %v11323_v1  ;;  %v11005_v63 = vld [vmem:[%s20602_s7 + $0x250] sm:$0xf0] }
 0x3eb   :  { %7848 = vmatpush.bf16.msra.mxu2 %v12156_v30  ;;  %7861 = vmatpush.bf16.msra.mxu3 %v12668_v42  ;;  %v13635_v10 = vld [vmem:[%s20602_s7 + $0x94c] sm:$0xf0]  ;;  %v13531_v1 = vld [vmem:[%s20602_s7 + $0x614] sm:$0xf] }
 0x3ec   :  { %v12411_v8 = vld [vmem:[%s20602_s7 + $0xd10] sm:$0xf]  ;;  %v11900_v38 = vor.u32 %v13635_v10, %v11899_v7  ;;  %v11517_v5 = vld [vmem:[%s20602_s7 + $0x650] sm:$0xf0] }
 0x3ed   :  { %7824 = vmatpush.bf16.msra.mxu0 %v11004_v36  ;;  %7837 = vmatpush.bf16.msra.mxu1 %v11516_v39  ;;  %v13763_v19 = vld [vmem:[%s20602_s7 + $0xd4c] sm:$0xf0]  ;;  %v11645_v39 = vld [vmem:[%s20602_s7 + $0x750] sm:$0xf0] }
 0x3ee   :  { %v10747_v12 = vld [vmem:[%s20602_s7 + $0x10] sm:$0xf]  ;;  %v12412_v15 = vor.u32 %v13763_v19, %v12411_v8  ;;  %v11648_v20 = vor.u32 %v13563_v27, %v11645_v39  ;;  %v13675_v7 = vld [vmem:[%s20602_s7 + $0xa94] sm:$0xf] }
 0x3ef   :  { %7849 = vmatpush.bf16.msra.mxu2 %v12092_v46  ;;  %7862 = vmatpush.bf16.msra.mxu3 %v12604_v47  ;;  %v13347_v37 = vld [vmem:[%s20602_s7 + $0x4c] sm:$0xf0]  ;;  %v12093_v10 = vld [vmem:[%s20602_s7 + $0xad0] sm:$0xf0] }
 0x3f0   :  { %v11259_v14 = vld [vmem:[%s20602_s7 + $0x410] sm:$0xf]  ;;  %v10748_v30 = vor.u32 %v13347_v37, %v10747_v12  ;;  %v13803_v8 = vld [vmem:[%s20602_s7 + $0xe94] sm:$0xf] }
 0x3f1   :  { %7825 = vmatpush.bf16.msra.mxu0 %v10940_v53  ;;  %7838 = vmatpush.bf16.msra.mxu1 %v11452_v6  ;;  %v13475_v2 = vld [vmem:[%s20602_s7 + $0x44c] sm:$0xf0]  ;;  %v12605_v19 = vld [vmem:[%s20602_s7 + $0xed0] sm:$0xf0] }
 0x3f2   :  { %v11835_v24 = vld [vmem:[%s20602_s7 + $0x890] sm:$0xf]  ;;  %v11260_v42 = vor.u32 %v13475_v2, %v11259_v14  ;;  %v13387_v12 = vld [vmem:[%s20602_s7 + $0x194] sm:$0xf]  ;;  %v12096_v14 = vor.u32 %v13675_v7, %v12093_v10  ;;  %v11139_v7 = vld [vmem:[%s20602_s7 + $0x318] sm:$0xf] }
 0x3f3   :  { %7850 = vmatpush.bf16.msra.mxu2 %v12028_v58  ;;  %7863 = vmatpush.bf16.msra.mxu3 %v12540_v59  ;;  %v13619_v26 = vld [vmem:[%s20602_s7 + $0x8cc] sm:$0xf0]  ;;  %v12224_v58 = vor.u32 %v13707_v48, %v12221_v50  ;;  %v12736_v59 = vor.u32 %v13835_v55, %v12733_v4  ;;  %v10941_v37 = vld [vmem:[%s20602_s7 + $0x1d0] sm:$0xf0]  ;;  %v13444_v10 = vld [vmem:[%s20602_s7 + $0x354] sm:$0xf0] }
 0x3f4   :  { %v12347_v41 = vld [vmem:[%s20602_s7 + $0xc90] sm:$0xf]  ;;  %v11836_v32 = vor.u32 %v13619_v26, %v11835_v24  ;;  %v11453_v2 = vld [vmem:[%s20602_s7 + $0x5d0] sm:$0xf0]  ;;  %v10944_v24 = vor.u32 %v13387_v12, %v10941_v37 }
 0x3f5   :  { %7826 = vmatpush.bf16.msra.mxu0 %v10876_v31  ;;  %7839 = vmatpush.bf16.msra.mxu1 %v11388_v35  ;;  %v13747_v29 = vld [vmem:[%s20602_s7 + $0xccc] sm:$0xf0]  ;;  %v11072_v31 = vor.u32 %v13419_v56, %v11069_v57  ;;  %v11584_v35 = vor.u32 %v13547_v3, %v11581_v34  ;;  %v13643_v44 = vld [vmem:[%s20602_s7 + $0x994] sm:$0xf] }
 0x3f6   :  { %v12348_v36 = vor.u32 %v13747_v29, %v12347_v41  ;;  %v11771_v16 = vld [vmem:[%s20602_s7 + $0x810] sm:$0xf]  ;;  %v13371_v41 = vld [vmem:[%s20602_s7 + $0x114] sm:$0xf] }
 0x3f7   :  { %7851 = vmatpush.bf16.msra.mxu2 %v11964_v0  ;;  %7864 = vmatpush.bf16.msra.mxu3 %v12476_v13  ;;  %v13603_v54 = vld [vmem:[%s20602_s7 + $0x84c] sm:$0xf0]  ;;  %v12160_v0 = vor.u32 %v13691_v60, %v12157_v61  ;;  %v12672_v13 = vor.u32 %v13819_v23, %v12669_v28  ;;  %v10877_v29 = vld [vmem:[%s20602_s7 + $0x150] sm:$0xf0]  ;;  %v11203_v60 = vld [vmem:[%s20602_s7 + $0x398] sm:$0xf] }
 0x3f8   :  { %v12283_v46 = vld [vmem:[%s20602_s7 + $0xc10] sm:$0xf]  ;;  %v11772_v53 = vor.u32 %v13603_v54, %v11771_v16  ;;  %v11965_v49 = vld [vmem:[%s20602_s7 + $0x9d0] sm:$0xf0]  ;;  %v13460_v61 = vld [vmem:[%s20602_s7 + $0x3d4] sm:$0xf0] }
 0x3f9   :  { %7827 = vmatpush.bf16.msra.mxu0 %v10812_v11  ;;  %7840 = vmatpush.bf16.msra.mxu1 %v11324_v22  ;;  %v13731_v47 = vld [vmem:[%s20602_s7 + $0xc4c] sm:$0xf0]  ;;  %v11008_v11 = vor.u32 %v13403_v45, %v11005_v63  ;;  %v11520_v22 = vor.u32 %v13531_v1, %v11517_v5  ;;  %v13771_v27 = vld [vmem:[%s20602_s7 + $0xd94] sm:$0xf]  ;;  %v11715_v23 = vld [vmem:[%s20602_s7 + $0x798] sm:$0xf]  ;;  %v11204_v1 = vor.u32 %v13460_v61, %v11203_v60 }
 0x3fa   :  { %v12284_v6 = vor.u32 %v13731_v47, %v12283_v46  ;;  %v13355_v16 = vld [vmem:[%s20602_s7 + $0x94] sm:$0xf]  ;;  %v11968_v46 = vor.u32 %v13643_v44, %v11965_v49  ;;  %v13588_v28 = vld [vmem:[%s20602_s7 + $0x7d4] sm:$0xf0] }
 0x3fb   :  { %7852 = vmatpush.bf16.msra.mxu2 %v11900_v38  ;;  %7865 = vmatpush.bf16.msra.mxu3 %v12412_v15  ;;  %v12608_v38 = vor.u32 %v13803_v8, %v12605_v19  ;;  %v13515_v15 = vld [vmem:[%s20602_s7 + $0x594] sm:$0xf]  ;;  %v11716_v5 = vor.u32 %v13588_v28, %v11715_v23  ;;  %v11651_v8 = vld [vmem:[%s20602_s7 + $0x718] sm:$0xf] }
 0x3fc   :  { %v11456_v26 = vor.u32 %v13515_v15, %v11453_v2  ;;  %v10813_v54 = vld [vmem:[%s20602_s7 + $0xd0] sm:$0xf0]  ;;  %v12227_v15 = vld [vmem:[%s20602_s7 + $0xb98] sm:$0xf] }
 0x3fd   :  { %7828 = vmatpush.bf16.msra.mxu0 %v10748_v30  ;;  %7841 = vmatpush.bf16.msra.mxu1 %v11260_v42  ;;  %v12032_v30 = vor.u32 %v13659_v43, %v12029_v17  ;;  %v12544_v42 = vor.u32 %v13787_v25, %v12541_v21  ;;  %v13483_v48 = vld [vmem:[%s20602_s7 + $0x494] sm:$0xf]  ;;  %v13716_v2 = vld [vmem:[%s20602_s7 + $0xbd4] sm:$0xf0]  ;;  %v11140_v25 = vor.u32 %v13444_v10, %v11139_v7 }
 0x3fe   :  { %v11325_v50 = vld [vmem:[%s20602_s7 + $0x4d0] sm:$0xf0]  ;;  %v12739_v43 = vld [vmem:[%s20602_s7 + $0xf98] sm:$0xf] }
 0x3ff   :  { %7853 = vmatpush.bf16.msra.mxu2 %v11836_v32  ;;  %7866 = vmatpush.bf16.msra.mxu3 %v12348_v36  ;;  %v12477_v32 = vld [vmem:[%s20602_s7 + $0xdd0] sm:$0xf0]  ;;  %v10880_v36 = vor.u32 %v13371_v41, %v10877_v29  ;;  %v13844_v17 = vld [vmem:[%s20602_s7 + $0xfd4] sm:$0xf0] }
 0x400   :  { %7829 = vmatmul.bf16.vlgmr.msra.gmra.mxu0 %v17775_v51  ;;  %7842 = vmatmul.bf16.vlgmr.msra.gmra.mxu1 %v17777_v62  ;;  %v12480_v47 = vor.u32 %v13771_v27, %v12477_v32  ;;  %v13627_v55 = vld [vmem:[%s20602_s7 + $0x914] sm:$0xf]  ;;  %v11075_v41 = vld [vmem:[%s20602_s7 + $0x298] sm:$0xf] }
 0x401   :  { %7873 = vmatpush.bf16.msrb.mxu0 %v11200_v33  ;;  %7886 = vmatpush.bf16.msrb.mxu1 %v11712_v40  ;;  %v13499_v33 = vld [vmem:[%s20602_s7 + $0x514] sm:$0xf]  ;;  %v13428_v29 = vld [vmem:[%s20602_s7 + $0x2d4] sm:$0xf0] }
 0x402   :  { %v11389_v40 = vld [vmem:[%s20602_s7 + $0x550] sm:$0xf0]  ;;  %v12163_v44 = vld [vmem:[%s20602_s7 + $0xb18] sm:$0xf] }
 0x403   :  { %7854 = vmatpush.bf16.msra.mxu2 %v11772_v53  ;;  %7867 = vmatpush.bf16.msra.mxu3 %v12284_v6  ;;  %v11392_v39 = vor.u32 %v13499_v33, %v11389_v40  ;;  %v11901_v4 = vld [vmem:[%s20602_s7 + $0x950] sm:$0xf0]  ;;  %v10816_v53 = vor.u32 %v13355_v16, %v10813_v54  ;;  %v11328_v6 = vor.u32 %v13483_v48, %v11325_v50  ;;  %v11587_v33 = vld [vmem:[%s20602_s7 + $0x698] sm:$0xf]  ;;  %v18618_v16 = vld [vmem:[%s20605_s8] sm:$0xff] }
 0x404   :  { %v13339_v56 = vld [vmem:[%s20602_s7 + $0x14] sm:$0xf]  ;;  %v13556_v40 = vld [vmem:[%s20602_s7 + $0x6d4] sm:$0xf0] }
 0x405   :  { %7874 = vmatpush.bf16.msrb.mxu0 %v11136_v52  ;;  %7887 = vmatpush.bf16.msrb.mxu1 %v11648_v20  ;;  %v13755_v52 = vld [vmem:[%s20602_s7 + $0xd14] sm:$0xf]  ;;  %v13700_v49 = vld [vmem:[%s20602_s7 + $0xb54] sm:$0xf0] }
 0x406   :  { %7855 = vmatmul.bf16.vlgmr.msra.gmra.mxu2 %v17817_v18  ;;  %7868 = vmatmul.bf16.vlgmr.msra.gmra.mxu3 %v17819_v9  ;;  %v12413_v20 = vld [vmem:[%s20602_s7 + $0xd50] sm:$0xf0]  ;;  %v12675_v27 = vld [vmem:[%s20602_s7 + $0xf18] sm:$0xf]  ;;  %v12164_v50 = vor.u32 %v13700_v49, %v12163_v44 }
 0x407   :  { %7899 = vmatpush.bf16.msrb.mxu2 %v12224_v58  ;;  %7912 = vmatpush.bf16.msrb.mxu3 %v12736_v59  ;;  %v10749_v57 = vld [vmem:[%s20602_s7 + $0x50] sm:$0xf0]  ;;  %v11904_v59 = vor.u32 %v13627_v55, %v11901_v4  ;;  %v12416_v3 = vor.u32 %v13755_v52, %v12413_v20  ;;  %v13828_v32 = vld [vmem:[%s20602_s7 + $0xf54] sm:$0xf0] }
 0x408   :  { %v13467_v58 = vld [vmem:[%s20602_s7 + $0x414] sm:$0xf]  ;;  %v13412_v48 = vld [vmem:[%s20602_s7 + $0x254] sm:$0xf0]  ;;  %v12676_v55 = vor.u32 %v13828_v32, %v12675_v27 }
 0x409   :  { %7875 = vmatpush.bf16.msrb.mxu0 %v11072_v31  ;;  %7888 = vmatpush.bf16.msrb.mxu1 %v11584_v35  ;;  %v11261_v34 = vld [vmem:[%s20602_s7 + $0x450] sm:$0xf0]  ;;  %v11523_v4 = vld [vmem:[%s20602_s7 + $0x618] sm:$0xf] }
 0x40a   :  { %v13611_v31 = vld [vmem:[%s20602_s7 + $0x894] sm:$0xf]  ;;  %v13540_v52 = vld [vmem:[%s20602_s7 + $0x654] sm:$0xf0] }
 0x40b   :  { %7900 = vmatpush.bf16.msrb.mxu2 %v12160_v0  ;;  %7913 = vmatpush.bf16.msrb.mxu3 %v12672_v13  ;;  %v11837_v35 = vld [vmem:[%s20602_s7 + $0x8d0] sm:$0xf0]  ;;  %v10752_v0 = vor.u32 %v13339_v56, %v10749_v57  ;;  %v11264_v13 = vor.u32 %v13467_v58, %v11261_v34  ;;  %v12099_v20 = vld [vmem:[%s20602_s7 + $0xa98] sm:$0xf]  ;;  %v5021_v57 = vperm.slane %v18618_v16, 0 }
 0x40c   :  { %v13739_v45 = vld [vmem:[%s20602_s7 + $0xc94] sm:$0xf]  ;;  %v11840_v19 = vor.u32 %v13611_v31, %v11837_v35  ;;  %v13812_v56 = vld [vmem:[%s20602_s7 + $0xed4] sm:$0xf0] }
 0x40d   :  { %7876 = vmatpush.bf16.msrb.mxu0 %v11008_v11  ;;  %7889 = vmatpush.bf16.msrb.mxu1 %v11520_v22  ;;  %v12349_v63 = vld [vmem:[%s20602_s7 + $0xcd0] sm:$0xf0]  ;;  %v13572_v22 = vld [vmem:[%s20602_s7 + $0x754] sm:$0xf0] }
 0x40e   :  { %v12352_v11 = vor.u32 %v13739_v45, %v12349_v63  ;;  %v13595_v12 = vld [vmem:[%s20602_s7 + $0x814] sm:$0xf]  ;;  %v11652_v21 = vor.u32 %v13572_v22, %v11651_v8  ;;  %v13396_v34 = vld [vmem:[%s20602_s7 + $0x1d4] sm:$0xf0] }
 0x40f   :  { %7901 = vmatpush.bf16.msrb.mxu2 %v12096_v14  ;;  %7914 = vmatpush.bf16.msrb.mxu3 %v12608_v38  ;;  %v11773_v37 = vld [vmem:[%s20602_s7 + $0x850] sm:$0xf0]  ;;  %v11459_v23 = vld [vmem:[%s20602_s7 + $0x598] sm:$0xf] }
 0x410   :  { %v13723_v14 = vld [vmem:[%s20602_s7 + $0xc14] sm:$0xf]  ;;  %v13524_v28 = vld [vmem:[%s20602_s7 + $0x5d4] sm:$0xf0] }
 0x411   :  { %7877 = vmatpush.bf16.msrb.mxu0 %v10944_v24  ;;  %7890 = vmatpush.bf16.msrb.mxu1 %v11456_v26  ;;  %v12285_v38 = vld [vmem:[%s20602_s7 + $0xc50] sm:$0xf0]  ;;  %v11776_v24 = vor.u32 %v13595_v12, %v11773_v37  ;;  %v12035_v31 = vld [vmem:[%s20602_s7 + $0xa18] sm:$0xf] }
 0x412   :  { %v12288_v26 = vor.u32 %v13723_v14, %v12285_v38  ;;  %v13668_v35 = vld [vmem:[%s20602_s7 + $0xa54] sm:$0xf0] }
 0x413   :  { %7902 = vmatpush.bf16.msrb.mxu2 %v12032_v30  ;;  %7915 = vmatpush.bf16.msrb.mxu3 %v12544_v42  ;;  %v12228_v30 = vor.u32 %v13716_v2, %v12227_v15  ;;  %v12740_v42 = vor.u32 %v13844_v17, %v12739_v43  ;;  %v12547_v45 = vld [vmem:[%s20602_s7 + $0xe18] sm:$0xf] }
 0x414   :  { %v13796_v63 = vld [vmem:[%s20602_s7 + $0xe54] sm:$0xf0] }
 0x415   :  { %7878 = vmatpush.bf16.msrb.mxu0 %v10880_v36  ;;  %7891 = vmatpush.bf16.msrb.mxu1 %v11392_v39  ;;  %v11076_v36 = vor.u32 %v13428_v29, %v11075_v41  ;;  %v11588_v39 = vor.u32 %v13556_v40, %v11587_v33  ;;  %v10883_v10 = vld [vmem:[%s20602_s7 + $0x118] sm:$0xf] }
 0x416   :  { %v13380_v8 = vld [vmem:[%s20602_s7 + $0x154] sm:$0xf0] }
 0x417   :  { %7903 = vmatpush.bf16.msrb.mxu2 %v11968_v46  ;;  %7916 = vmatpush.bf16.msrb.mxu3 %v12480_v47  ;;  %v11011_v47 = vld [vmem:[%s20602_s7 + $0x218] sm:$0xf]  ;;  %v10884_v43 = vor.u32 %v13380_v8, %v10883_v10 }
 0x418   :  { %v11012_v58 = vor.u32 %v13412_v48, %v11011_v47  ;;  %v11395_v22 = vld [vmem:[%s20602_s7 + $0x518] sm:$0xf] }
 0x419   :  { %7879 = vmatpush.bf16.msrb.mxu0 %v10816_v53  ;;  %7892 = vmatpush.bf16.msrb.mxu1 %v11328_v6  ;;  %v13684_v53 = vld [vmem:[%s20602_s7 + $0xad4] sm:$0xf0] }
 0x41a   :  { %v12611_v6 = vld [vmem:[%s20602_s7 + $0xe98] sm:$0xf]  ;;  %v12100_v60 = vor.u32 %v13684_v53, %v12099_v20  ;;  %v13452_v20 = vld [vmem:[%s20602_s7 + $0x39c] sm:$0xf] }
 0x41b   :  { %7904 = vmatpush.bf16.msrb.mxu2 %v11904_v59  ;;  %7917 = vmatpush.bf16.msrb.mxu3 %v12416_v3  ;;  %v11524_v59 = vor.u32 %v13540_v52, %v11523_v4  ;;  %v10947_v3 = vld [vmem:[%s20602_s7 + $0x198] sm:$0xf]  ;;  %v12612_v61 = vor.u32 %v13812_v56, %v12611_v6  ;;  %v11205_v53 = vld [vmem:[%s20602_s7 + $0x3d8] sm:$0xf0] }
 0x41c   :  { %v7622_v54 = vpop.f32.mrf.mxu0  ;;  %v7635_v46 = vpop.f32.mrf.mxu1  ;;  %v13508_v12 = vld [vmem:[%s20602_s7 + $0x554] sm:$0xf0]  ;;  %v13580_v6 = vld [vmem:[%s20602_s7 + $0x79c] sm:$0xf] }
 0x41d   :  { %7880 = vmatpush.bf16.msrb.mxu0 %v10752_v0  ;;  %7893 = vmatpush.bf16.msrb.mxu1 %v11264_v13  ;;  %v7623_v0 = vadd.f32 %v7622_v54, %v5021_v57  ;;  %v10948_v13 = vor.u32 %v13396_v34, %v10947_v3  ;;  %v11971_v37 = vld [vmem:[%s20602_s7 + $0x998] sm:$0xf]  ;;  %v11396_v17 = vor.u32 %v13508_v12, %v11395_v22  ;;  %v11717_v57 = vld [vmem:[%s20602_s7 + $0x7d8] sm:$0xf0] }
 0x41e   :  { %v13652_v14 = vld [vmem:[%s20602_s7 + $0x9d4] sm:$0xf0]  ;;  %v13708_v22 = vld [vmem:[%s20602_s7 + $0xb9c] sm:$0xf] }
 0x41f   :  { %7905 = vmatpush.bf16.msrb.mxu2 %v11840_v19  ;;  %7918 = vmatpush.bf16.msrb.mxu3 %v12352_v11  ;;  %v12036_v19 = vor.u32 %v13668_v35, %v12035_v31  ;;  %v12548_v11 = vor.u32 %v13796_v63, %v12547_v45  ;;  %v12483_v38 = vld [vmem:[%s20602_s7 + $0xd98] sm:$0xf]  ;;  %v7636_v2 = vadd.f32 %v7635_v46, %v7623_v0  ;;  %v13436_v63 = vld [vmem:[%s20602_s7 + $0x31c] sm:$0xf] }
 0x420   :  { %7881 = vmatmul.bf16.vlgmr.msrb.gmra.mxu0 %v17775_v51  ;;  %7894 = vmatmul.bf16.vlgmr.msrb.gmra.mxu1 %v17777_v62  ;;  %v13780_v15 = vld [vmem:[%s20602_s7 + $0xdd4] sm:$0xf0]  ;;  %v11972_v41 = vor.u32 %v13652_v14, %v11971_v37  ;;  %v11208_v35 = vor.u32 %v13452_v20, %v11205_v53  ;;  %v11720_v45 = vor.u32 %v13580_v6, %v11717_v57  ;;  %v11141_v0 = vld [vmem:[%s20602_s7 + $0x358] sm:$0xf0] }
 0x421   :  { %7925 = vmatpush.bf16.msra.mxu0 %v11204_v1  ;;  %7938 = vmatpush.bf16.msra.mxu1 %v11716_v5  ;;  %v11460_v1 = vor.u32 %v13524_v28, %v11459_v23  ;;  %v12484_v29 = vor.u32 %v13780_v15, %v12483_v38  ;;  %v11907_v33 = vld [vmem:[%s20602_s7 + $0x918] sm:$0xf]  ;;  %v12229_v37 = vld [vmem:[%s20602_s7 + $0xbd8] sm:$0xf0] }
 0x422   :  { %v13636_v44 = vld [vmem:[%s20602_s7 + $0x954] sm:$0xf0]  ;;  %v13836_v14 = vld [vmem:[%s20602_s7 + $0xf9c] sm:$0xf] }
 0x423   :  { %7906 = vmatpush.bf16.msrb.mxu2 %v11776_v24  ;;  %7919 = vmatpush.bf16.msrb.mxu3 %v12288_v26  ;;  %v12419_v49 = vld [vmem:[%s20602_s7 + $0xd18] sm:$0xf]  ;;  %v11908_v4 = vor.u32 %v13636_v44, %v11907_v33  ;;  %v12741_v38 = vld [vmem:[%s20602_s7 + $0xfd8] sm:$0xf0] }
 0x424   :  { %v7624_v5 = vpop.f32.mrf.mxu0  ;;  %v7637_v7 = vpop.f32.mrf.mxu1  ;;  %v13764_v27 = vld [vmem:[%s20602_s7 + $0xd54] sm:$0xf0]  ;;  %v13692_v33 = vld [vmem:[%s20602_s7 + $0xb1c] sm:$0xf] }
 0x425   :  { %7926 = vmatpush.bf16.msra.mxu0 %v11140_v25  ;;  %7939 = vmatpush.bf16.msra.mxu1 %v11652_v21  ;;  %v10819_v25 = vld [vmem:[%s20602_s7 + $0x98] sm:$0xf]  ;;  %v12420_v52 = vor.u32 %v13764_v27, %v12419_v49  ;;  %v11653_v7 = vld [vmem:[%s20602_s7 + $0x758] sm:$0xf0] }
 0x426   :  { %7907 = vmatmul.bf16.vlgmr.msrb.gmra.mxu2 %v17817_v18  ;;  %7920 = vmatmul.bf16.vlgmr.msrb.gmra.mxu3 %v17819_v9  ;;  %v13364_v21 = vld [vmem:[%s20602_s7 + $0xd4] sm:$0xf0]  ;;  %v12165_v44 = vld [vmem:[%s20602_s7 + $0xb58] sm:$0xf0] }
 0x427   :  { %7951 = vmatpush.bf16.msra.mxu2 %v12228_v30  ;;  %7964 = vmatpush.bf16.msra.mxu3 %v12740_v42  ;;  %v11331_v30 = vld [vmem:[%s20602_s7 + $0x498] sm:$0xf]  ;;  %v13820_v49 = vld [vmem:[%s20602_s7 + $0xf1c] sm:$0xf] }
 0x428   :  { %v13492_v42 = vld [vmem:[%s20602_s7 + $0x4d4] sm:$0xf0]  ;;  %v12677_v27 = vld [vmem:[%s20602_s7 + $0xf58] sm:$0xf0] }
 0x429   :  { %7927 = vmatpush.bf16.msra.mxu0 %v11076_v36  ;;  %7940 = vmatpush.bf16.msra.mxu1 %v11588_v39  ;;  %v7648_v24 = vpop.f32.mrf.mxu2  ;;  %v7661_v26 = vpop.f32.mrf.mxu3  ;;  %v10755_v32 = vld [vmem:[%s20602_s7 + $0x18] sm:$0xf]  ;;  %v10820_v39 = vor.u32 %v13364_v21, %v10819_v25  ;;  %v11332_v54 = vor.u32 %v13492_v42, %v11331_v30  ;;  %v13548_v30 = vld [vmem:[%s20602_s7 + $0x69c] sm:$0xf] }
 0x42a   :  { %v7649_v40 = vadd.f32 %v7648_v24, %v7636_v2  ;;  %v13348_v46 = vld [vmem:[%s20602_s7 + $0x54] sm:$0xf0]  ;;  %v13420_v24 = vld [vmem:[%s20602_s7 + $0x29c] sm:$0xf] }
 0x42b   :  { %7952 = vmatpush.bf16.msra.mxu2 %v12164_v50  ;;  %7965 = vmatpush.bf16.msra.mxu3 %v12676_v55  ;;  %v11267_v47 = vld [vmem:[%s20602_s7 + $0x418] sm:$0xf]  ;;  %v11589_v42 = vld [vmem:[%s20602_s7 + $0x6d8] sm:$0xf0] }
 0x42c   :  { %v7662_v36 = vadd.f32 %v7661_v26, %v7649_v40  ;;  %v13476_v48 = vld [vmem:[%s20602_s7 + $0x454] sm:$0xf0]  ;;  %v11077_v26 = vld [vmem:[%s20602_s7 + $0x2d8] sm:$0xf0] }
 0x42d   :  { %7928 = vmatpush.bf16.msra.mxu0 %v11012_v58  ;;  %7941 = vmatpush.bf16.msra.mxu1 %v11524_v59  ;;  %v7674_v50 = vpop.f32.mrf.mxu0  ;;  %v7687_v55 = vpop.f32.mrf.mxu1  ;;  %v11843_v58 = vld [vmem:[%s20602_s7 + $0x898] sm:$0xf]  ;;  %v11268_v23 = vor.u32 %v13476_v48, %v11267_v47  ;;  %v13404_v47 = vld [vmem:[%s20602_s7 + $0x21c] sm:$0xf] }
 0x42e   :  { %v8445_v56 = vmax.f32 %v7662_v36, 0.0  ;;  %v13620_v59 = vld [vmem:[%s20602_s7 + $0x8d4] sm:$0xf0]  ;;  %v11013_v48 = vld [vmem:[%s20602_s7 + $0x258] sm:$0xf0] }
 0x42f   :  { %7953 = vmatpush.bf16.msra.mxu2 %v12100_v60  ;;  %7966 = vmatpush.bf16.msra.mxu3 %v12612_v61  ;;  %v12355_v3 = vld [vmem:[%s20602_s7 + $0xc98] sm:$0xf]  ;;  %v5022_v60 = vperm.slane %v18618_v16, 1  ;;  %v10756_v61 = vor.u32 %v13348_v46, %v10755_v32  ;;  %v11592_v46 = vor.u32 %v13548_v30, %v11589_v42  ;;  %v13676_v20 = vld [vmem:[%s20602_s7 + $0xa9c] sm:$0xf] }
 0x430   :  { %v13748_v34 = vld [vmem:[%s20602_s7 + $0xcd4] sm:$0xf0]  ;;  %8461 = vst [vmem:[%s20606_s10] sm:$0xff] %v8445_v56  ;;  %v12101_v6 = vld [vmem:[%s20602_s7 + $0xad8] sm:$0xf0] }
 0x431   :  { %7929 = vmatpush.bf16.msra.mxu0 %v10948_v13  ;;  %7942 = vmatpush.bf16.msra.mxu1 %v11460_v1  ;;  %v7650_v28 = vpop.f32.mrf.mxu2  ;;  %v7663_v31 = vpop.f32.mrf.mxu3  ;;  %v13564_v13 = vld [vmem:[%s20602_s7 + $0x71c] sm:$0xf]  ;;  %v11844_v1 = vor.u32 %v13620_v59, %v11843_v58  ;;  %v12356_v5 = vor.u32 %v13748_v34, %v12355_v3  ;;  %v11779_v10 = vld [vmem:[%s20602_s7 + $0x818] sm:$0xf]  ;;  %v7675_v12 = vadd.f32 %v7674_v50, %v5022_v60 }
 0x432   :  { %v13604_v8 = vld [vmem:[%s20602_s7 + $0x854] sm:$0xf0]  ;;  %v12168_v50 = vor.u32 %v13692_v33, %v12165_v44  ;;  %v13804_v56 = vld [vmem:[%s20602_s7 + $0xe9c] sm:$0xf]  ;;  %v11016_v60 = vor.u32 %v13404_v47, %v11013_v48  ;;  %v12104_v31 = vor.u32 %v13676_v20, %v12101_v6 }
 0x433   :  { %7954 = vmatpush.bf16.msra.mxu2 %v12036_v19  ;;  %7967 = vmatpush.bf16.msra.mxu3 %v12548_v11  ;;  %v12291_v19 = vld [vmem:[%s20602_s7 + $0xc18] sm:$0xf]  ;;  %v11780_v25 = vor.u32 %v13604_v8, %v11779_v10  ;;  %v7688_v40 = vadd.f32 %v7687_v55, %v7675_v12  ;;  %v12680_v55 = vor.u32 %v13820_v49, %v12677_v27  ;;  %v12613_v57 = vld [vmem:[%s20602_s7 + $0xed8] sm:$0xf0] }
 0x434   :  { %v13732_v11 = vld [vmem:[%s20602_s7 + $0xc54] sm:$0xf0]  ;;  %v13388_v3 = vld [vmem:[%s20602_s7 + $0x19c] sm:$0xf] }
 0x435   :  { %7930 = vmatpush.bf16.msra.mxu0 %v10884_v43  ;;  %7943 = vmatpush.bf16.msra.mxu1 %v11396_v17  ;;  %v7676_v15 = vpop.f32.mrf.mxu0  ;;  %v7689_v2 = vpop.f32.mrf.mxu1  ;;  %v11144_v43 = vor.u32 %v13436_v63, %v11141_v0  ;;  %v11656_v17 = vor.u32 %v13564_v13, %v11653_v7  ;;  %v12292_v21 = vor.u32 %v13732_v11, %v12291_v19  ;;  %v13516_v28 = vld [vmem:[%s20602_s7 + $0x59c] sm:$0xf] }
 0x436   :  { %v13660_v63 = vld [vmem:[%s20602_s7 + $0xa1c] sm:$0xf] }
 0x437   :  { %7955 = vmatpush.bf16.msra.mxu2 %v11972_v41  ;;  %7968 = vmatpush.bf16.msra.mxu3 %v12484_v29  ;;  %v12232_v41 = vor.u32 %v13708_v22, %v12229_v37  ;;  %v12744_v29 = vor.u32 %v13836_v14, %v12741_v38  ;;  %v12037_v0 = vld [vmem:[%s20602_s7 + $0xa58] sm:$0xf0] }
 0x438   :  { %v13788_v13 = vld [vmem:[%s20602_s7 + $0xe1c] sm:$0xf]  ;;  %v12040_v12 = vor.u32 %v13660_v63, %v12037_v0 }
 0x439   :  { %7931 = vmatpush.bf16.msra.mxu0 %v10820_v39  ;;  %7944 = vmatpush.bf16.msra.mxu1 %v11332_v54  ;;  %v7700_v32 = vpop.f32.mrf.mxu2  ;;  %v7713_v36 = vpop.f32.mrf.mxu3  ;;  %v11080_v54 = vor.u32 %v13420_v24, %v11077_v26  ;;  %v13372_v11 = vld [vmem:[%s20602_s7 + $0x11c] sm:$0xf] }
 0x43a   :  { %v7701_v39 = vadd.f32 %v7700_v32, %v7688_v40  ;;  %v10885_v22 = vld [vmem:[%s20602_s7 + $0x158] sm:$0xf0] }
 0x43b   :  { %7956 = vmatpush.bf16.msra.mxu2 %v11908_v4  ;;  %7969 = vmatpush.bf16.msra.mxu3 %v12420_v52  ;;  %v13532_v4 = vld [vmem:[%s20602_s7 + $0x61c] sm:$0xf]  ;;  %v10888_v26 = vor.u32 %v13372_v11, %v10885_v22 }
 0x43c   :  { %v11525_v52 = vld [vmem:[%s20602_s7 + $0x658] sm:$0xf0]  ;;  %v7714_v53 = vadd.f32 %v7713_v36, %v7701_v39 }
 0x43d   :  { %7932 = vmatpush.bf16.msra.mxu0 %v10756_v61  ;;  %7945 = vmatpush.bf16.msra.mxu1 %v11268_v23  ;;  %v7726_v58 = vpop.f32.mrf.mxu0  ;;  %v7739_v59 = vpop.f32.mrf.mxu1  ;;  %v11528_v61 = vor.u32 %v13532_v4, %v11525_v52  ;;  %v10949_v23 = vld [vmem:[%s20602_s7 + $0x1d8] sm:$0xf0] }
 0x43e   :  { %v8446_v34 = vmax.f32 %v7714_v53, 0.0  ;;  %v10952_v8 = vor.u32 %v13388_v3, %v10949_v23  ;;  %v13500_v14 = vld [vmem:[%s20602_s7 + $0x51c] sm:$0xf] }
 0x43f   :  { %7957 = vmatpush.bf16.msra.mxu2 %v11844_v1  ;;  %7970 = vmatpush.bf16.msra.mxu3 %v12356_v5  ;;  %v12549_v1 = vld [vmem:[%s20602_s7 + $0xe58] sm:$0xf0]  ;;  %v5023_v5 = vperm.slane %v18618_v16, 2 }
 0x440   :  { %7933 = vmatmul.bf16.vlgmr.msra.gmra.mxu0 %v17775_v51  ;;  %7946 = vmatmul.bf16.vlgmr.msra.gmra.mxu1 %v17777_v62  ;;  %8462 = vst [vmem:[%s20606_s10 + $0x8] sm:$0xff] %v8446_v34  ;;  %v12552_v37 = vor.u32 %v13788_v13, %v12549_v1  ;;  %v11397_v38 = vld [vmem:[%s20602_s7 + $0x558] sm:$0xf0]  ;;  %v11659_v1 = vld [vmem:[%s20602_s7 + $0x720] sm:$0xf] }
 0x441   :  { %7977 = vmatpush.bf16.msrb.mxu0 %v11208_v35  ;;  %7990 = vmatpush.bf16.msrb.mxu1 %v11720_v45  ;;  %v12616_v35 = vor.u32 %v13804_v56, %v12613_v57  ;;  %v11461_v45 = vld [vmem:[%s20602_s7 + $0x5d8] sm:$0xf0]  ;;  %v7702_v7 = vpop.f32.mrf.mxu2  ;;  %v7715_v10 = vpop.f32.mrf.mxu3  ;;  %v11211_v56 = vld [vmem:[%s20602_s7 + $0x3a0] sm:$0xf] }
 0x442   :  { %v11464_v19 = vor.u32 %v13516_v28, %v11461_v45  ;;  %v13644_v15 = vld [vmem:[%s20602_s7 + $0x99c] sm:$0xf]  ;;  %v13461_v57 = vld [vmem:[%s20602_s7 + $0x3dc] sm:$0xf0] }
 0x443   :  { %7958 = vmatpush.bf16.msra.mxu2 %v11780_v25  ;;  %7971 = vmatpush.bf16.msra.mxu3 %v12292_v21  ;;  %v11973_v2 = vld [vmem:[%s20602_s7 + $0x9d8] sm:$0xf0]  ;;  %v7727_v25 = vadd.f32 %v7726_v58, %v5023_v5  ;;  %v11723_v58 = vld [vmem:[%s20602_s7 + $0x7a0] sm:$0xf]  ;;  %v11212_v0 = vor.u32 %v13461_v57, %v11211_v56 }
 0x444   :  { %v10821_v30 = vld [vmem:[%s20602_s7 + $0xd8] sm:$0xf0]  ;;  %v11976_v42 = vor.u32 %v13644_v15, %v11973_v2  ;;  %v13445_v45 = vld [vmem:[%s20602_s7 + $0x35c] sm:$0xf0] }
 0x445   :  { %7978 = vmatpush.bf16.msrb.mxu0 %v11144_v43  ;;  %7991 = vmatpush.bf16.msrb.mxu1 %v11656_v17  ;;  %v13772_v43 = vld [vmem:[%s20602_s7 + $0xd9c] sm:$0xf]  ;;  %v7728_v21 = vpop.f32.mrf.mxu0  ;;  %v7741_v24 = vpop.f32.mrf.mxu1  ;;  %v7740_v39 = vadd.f32 %v7739_v59, %v7727_v25  ;;  %v13589_v59 = vld [vmem:[%s20602_s7 + $0x7dc] sm:$0xf0] }
 0x446   :  { %7959 = vmatmul.bf16.vlgmr.msra.gmra.mxu2 %v17817_v18  ;;  %7972 = vmatmul.bf16.vlgmr.msra.gmra.mxu3 %v17819_v9  ;;  %v12485_v17 = vld [vmem:[%s20602_s7 + $0xdd8] sm:$0xf0]  ;;  %v11724_v13 = vor.u32 %v13589_v59, %v11723_v58  ;;  %v13573_v5 = vld [vmem:[%s20602_s7 + $0x75c] sm:$0xf0] }
 0x447   :  { %8003 = vmatpush.bf16.msrb.mxu2 %v12232_v41  ;;  %8016 = vmatpush.bf16.msrb.mxu3 %v12744_v29  ;;  %v11400_v41 = vor.u32 %v13500_v14, %v11397_v38  ;;  %v13356_v29 = vld [vmem:[%s20602_s7 + $0x9c] sm:$0xf]  ;;  %v12488_v33 = vor.u32 %v13772_v43, %v12485_v17  ;;  %v13717_v38 = vld [vmem:[%s20602_s7 + $0xbdc] sm:$0xf0]  ;;  %v11660_v17 = vor.u32 %v13573_v5, %v11659_v1 }
 0x448   :  { %v13484_v40 = vld [vmem:[%s20602_s7 + $0x49c] sm:$0xf]  ;;  %v10824_v47 = vor.u32 %v13356_v29, %v10821_v30  ;;  %v12747_v15 = vld [vmem:[%s20602_s7 + $0xfa0] sm:$0xf] }
 0x449   :  { %7979 = vmatpush.bf16.msrb.mxu0 %v11080_v54  ;;  %7992 = vmatpush.bf16.msrb.mxu1 %v11592_v46  ;;  %v11333_v44 = vld [vmem:[%s20602_s7 + $0x4d8] sm:$0xf0]  ;;  %v7752_v54 = vpop.f32.mrf.mxu2  ;;  %v7765_v46 = vpop.f32.mrf.mxu3  ;;  %v13845_v2 = vld [vmem:[%s20602_s7 + $0xfdc] sm:$0xf0] }
 0x44a   :  { %v13628_v49 = vld [vmem:[%s20602_s7 + $0x91c] sm:$0xf]  ;;  %v11336_v48 = vor.u32 %v13484_v40, %v11333_v44  ;;  %v7753_v52 = vadd.f32 %v7752_v54, %v7740_v39  ;;  %v11083_v24 = vld [vmem:[%s20602_s7 + $0x2a0] sm:$0xf]  ;;  %v12748_v29 = vor.u32 %v13845_v2, %v12747_v15 }
 0x44b   :  { %8004 = vmatpush.bf16.msrb.mxu2 %v12168_v50  ;;  %8017 = vmatpush.bf16.msrb.mxu3 %v12680_v55  ;;  %v11909_v27 = vld [vmem:[%s20602_s7 + $0x958] sm:$0xf0]  ;;  %v11595_v30 = vld [vmem:[%s20602_s7 + $0x6a0] sm:$0xf] }
 0x44c   :  { %v13756_v32 = vld [vmem:[%s20602_s7 + $0xd1c] sm:$0xf]  ;;  %v11912_v20 = vor.u32 %v13628_v49, %v11909_v27  ;;  %v7766_v34 = vadd.f32 %v7765_v46, %v7753_v52  ;;  %v13701_v40 = vld [vmem:[%s20602_s7 + $0xb5c] sm:$0xf0] }
 0x44d   :  { %7980 = vmatpush.bf16.msrb.mxu0 %v11016_v60  ;;  %7993 = vmatpush.bf16.msrb.mxu1 %v11528_v61  ;;  %v12421_v36 = vld [vmem:[%s20602_s7 + $0xd58] sm:$0xf0]  ;;  %v12683_v44 = vld [vmem:[%s20602_s7 + $0xf20] sm:$0xf] }
 0x44e   :  { %v13340_v50 = vld [vmem:[%s20602_s7 + $0x1c] sm:$0xf]  ;;  %v12424_v53 = vor.u32 %v13756_v32, %v12421_v36  ;;  %v8447_v63 = vmax.f32 %v7766_v34, 0.0  ;;  %v13829_v49 = vld [vmem:[%s20602_s7 + $0xf5c] sm:$0xf0] }
 0x44f   :  { %8005 = vmatpush.bf16.msrb.mxu2 %v12104_v31  ;;  %8018 = vmatpush.bf16.msrb.mxu3 %v12616_v35  ;;  %v10757_v55 = vld [vmem:[%s20602_s7 + $0x58] sm:$0xf0]  ;;  %v11147_v35 = vld [vmem:[%s20602_s7 + $0x320] sm:$0xf]  ;;  %v12684_v46 = vor.u32 %v13829_v49, %v12683_v44 }
 0x450   :  { %v13468_v4 = vld [vmem:[%s20602_s7 + $0x41c] sm:$0xf]  ;;  %v10760_v28 = vor.u32 %v13340_v50, %v10757_v55  ;;  %8463 = vst [vmem:[%s20606_s10 + $0x10] sm:$0xff] %v8447_v63  ;;  %v11148_v43 = vor.u32 %v13445_v45, %v11147_v35  ;;  %v11019_v36 = vld [vmem:[%s20602_s7 + $0x220] sm:$0xf] }
 0x451   :  { %7981 = vmatpush.bf16.msrb.mxu0 %v10952_v8  ;;  %7994 = vmatpush.bf16.msrb.mxu1 %v11464_v19  ;;  %v11269_v6 = vld [vmem:[%s20602_s7 + $0x458] sm:$0xf0]  ;;  %v7767_v14 = vpop.f32.mrf.mxu3  ;;  %v13413_v39 = vld [vmem:[%s20602_s7 + $0x25c] sm:$0xf0] }
 0x452   :  { %v13612_v3 = vld [vmem:[%s20602_s7 + $0x89c] sm:$0xf]  ;;  %v11272_v31 = vor.u32 %v13468_v4, %v11269_v6  ;;  %v12107_v50 = vld [vmem:[%s20602_s7 + $0xaa0] sm:$0xf]  ;;  %v5024_v6 = vperm.slane %v18618_v16, 3  ;;  %v11020_v56 = vor.u32 %v13413_v39, %v11019_v36 }
 0x453   :  { %8006 = vmatpush.bf16.msrb.mxu2 %v12040_v12  ;;  %8019 = vmatpush.bf16.msrb.mxu3 %v12552_v37  ;;  %v11845_v60 = vld [vmem:[%s20602_s7 + $0x8d8] sm:$0xf0]  ;;  %v12235_v12 = vld [vmem:[%s20602_s7 + $0xba0] sm:$0xf]  ;;  %v7754_v37 = vpop.f32.mrf.mxu2 }
 0x454   :  { %v13740_v61 = vld [vmem:[%s20602_s7 + $0xc9c] sm:$0xf]  ;;  %v11848_v7 = vor.u32 %v13612_v3, %v11845_v60  ;;  %v13685_v52 = vld [vmem:[%s20602_s7 + $0xadc] sm:$0xf0] }
 0x455   :  { %7982 = vmatpush.bf16.msrb.mxu0 %v10888_v26  ;;  %7995 = vmatpush.bf16.msrb.mxu1 %v11400_v41  ;;  %v12357_v23 = vld [vmem:[%s20602_s7 + $0xcd8] sm:$0xf0]  ;;  %v13429_v26 = vld [vmem:[%s20602_s7 + $0x2dc] sm:$0xf0]  ;;  %v12236_v41 = vor.u32 %v13717_v38, %v12235_v12  ;;  %v12108_v3 = vor.u32 %v13685_v52, %v12107_v50  ;;  %v13453_v50 = vld [vmem:[%s20602_s7 + $0x3a4] sm:$0xf] }
 0x456   :  { %v12360_v10 = vor.u32 %v13740_v61, %v12357_v23  ;;  %v13596_v8 = vld [vmem:[%s20602_s7 + $0x81c] sm:$0xf]  ;;  %v11084_v27 = vor.u32 %v13429_v26, %v11083_v24  ;;  %v10955_v58 = vld [vmem:[%s20602_s7 + $0x1a0] sm:$0xf]  ;;  %v11725_v52 = vld [vmem:[%s20602_s7 + $0x7e0] sm:$0xf0] }
 0x457   :  { %8007 = vmatpush.bf16.msrb.mxu2 %v11976_v42  ;;  %8020 = vmatpush.bf16.msrb.mxu3 %v12488_v33  ;;  %v11781_v19 = vld [vmem:[%s20602_s7 + $0x858] sm:$0xf0]  ;;  %v13557_v42 = vld [vmem:[%s20602_s7 + $0x6dc] sm:$0xf0] }
 0x458   :  { %v13724_v11 = vld [vmem:[%s20602_s7 + $0xc1c] sm:$0xf]  ;;  %v11784_v25 = vor.u32 %v13596_v8, %v11781_v19  ;;  %v12171_v33 = vld [vmem:[%s20602_s7 + $0xb20] sm:$0xf]  ;;  %v11596_v32 = vor.u32 %v13557_v42, %v11595_v30 }
 0x459   :  { %7983 = vmatpush.bf16.msrb.mxu0 %v10824_v47  ;;  %7996 = vmatpush.bf16.msrb.mxu1 %v11336_v48  ;;  %v12293_v22 = vld [vmem:[%s20602_s7 + $0xc58] sm:$0xf0]  ;;  %v12172_v54 = vor.u32 %v13701_v40, %v12171_v33  ;;  %v11531_v47 = vld [vmem:[%s20602_s7 + $0x620] sm:$0xf] }
 0x45a   :  { %v12296_v21 = vor.u32 %v13724_v11, %v12293_v22  ;;  %v13541_v48 = vld [vmem:[%s20602_s7 + $0x65c] sm:$0xf0] }
 0x45b   :  { %8008 = vmatpush.bf16.msrb.mxu2 %v11912_v20  ;;  %8021 = vmatpush.bf16.msrb.mxu3 %v12424_v53  ;;  %v12619_v20 = vld [vmem:[%s20602_s7 + $0xea0] sm:$0xf]  ;;  %v11532_v57 = vor.u32 %v13541_v48, %v11531_v47 }
 0x45c   :  { %v13813_v53 = vld [vmem:[%s20602_s7 + $0xedc] sm:$0xf0] }
 0x45d   :  { %7984 = vmatpush.bf16.msrb.mxu0 %v10760_v28  ;;  %7997 = vmatpush.bf16.msrb.mxu1 %v11272_v31  ;;  %v7778_v55 = vpop.f32.mrf.mxu0  ;;  %v7791_v4 = vpop.f32.mrf.mxu1  ;;  %v13397_v59 = vld [vmem:[%s20602_s7 + $0x1dc] sm:$0xf0]  ;;  %v12620_v34 = vor.u32 %v13813_v53, %v12619_v20 }
 0x45e   :  { %v11467_v60 = vld [vmem:[%s20602_s7 + $0x5a0] sm:$0xf]  ;;  %v10956_v45 = vor.u32 %v13397_v59, %v10955_v58  ;;  %v7779_v1 = vadd.f32 %v7778_v55, %v5024_v6  ;;  %v11213_v55 = vld [vmem:[%s20602_s7 + $0x3e0] sm:$0xf0] }
 0x45f   :  { %8009 = vmatpush.bf16.msrb.mxu2 %v11848_v7  ;;  %8022 = vmatpush.bf16.msrb.mxu3 %v12360_v10  ;;  %v13525_v61 = vld [vmem:[%s20602_s7 + $0x5dc] sm:$0xf0] }
 0x460   :  { %7985 = vmatmul.bf16.vlgmr.msrb.gmra.mxu0 %v17775_v51  ;;  %7998 = vmatmul.bf16.vlgmr.msrb.gmra.mxu1 %v17777_v62  ;;  %v12043_v23 = vld [vmem:[%s20602_s7 + $0xa20] sm:$0xf]  ;;  %v11468_v63 = vor.u32 %v13525_v61, %v11467_v60  ;;  %v11149_v61 = vld [vmem:[%s20602_s7 + $0x360] sm:$0xf0] }
 0x461   :  { %8029 = vmatpush.bf16.msra.mxu0 %v11212_v0  ;;  %8042 = vmatpush.bf16.msra.mxu1 %v11724_v13  ;;  %v13669_v28 = vld [vmem:[%s20602_s7 + $0xa5c] sm:$0xf0] }
 0x462   :  { %v12555_v31 = vld [vmem:[%s20602_s7 + $0xe20] sm:$0xf]  ;;  %v12044_v5 = vor.u32 %v13669_v28, %v12043_v23  ;;  %v13565_v23 = vld [vmem:[%s20602_s7 + $0x724] sm:$0xf] }
 0x463   :  { %8010 = vmatpush.bf16.msrb.mxu2 %v11784_v25  ;;  %8023 = vmatpush.bf16.msrb.mxu3 %v12296_v21  ;;  %v13797_v35 = vld [vmem:[%s20602_s7 + $0xe5c] sm:$0xf0] }
 0x464   :  { %v10891_v0 = vld [vmem:[%s20602_s7 + $0x120] sm:$0xf]  ;;  %v12556_v7 = vor.u32 %v13797_v35, %v12555_v31 }
 0x465   :  { %8030 = vmatpush.bf16.msra.mxu0 %v11148_v43  ;;  %8043 = vmatpush.bf16.msra.mxu1 %v11660_v17  ;;  %v13381_v13 = vld [vmem:[%s20602_s7 + $0x15c] sm:$0xf0]  ;;  %v7780_v11 = vpop.f32.mrf.mxu0  ;;  %v7793_v22 = vpop.f32.mrf.mxu1  ;;  %v7792_v17 = vadd.f32 %v7791_v4, %v7779_v1  ;;  %v13581_v4 = vld [vmem:[%s20602_s7 + $0x7a4] sm:$0xf] }
 0x466   :  { %8011 = vmatmul.bf16.vlgmr.msrb.gmra.mxu2 %v17817_v18  ;;  %8024 = vmatmul.bf16.vlgmr.msrb.gmra.mxu3 %v17819_v9  ;;  %v11403_v10 = vld [vmem:[%s20602_s7 + $0x520] sm:$0xf]  ;;  %v10892_v38 = vor.u32 %v13381_v13, %v10891_v0  ;;  %v11728_v60 = vor.u32 %v13581_v4, %v11725_v52  ;;  %v10957_v4 = vld [vmem:[%s20602_s7 + $0x1e0] sm:$0xf0] }
 0x467   :  { %8055 = vmatpush.bf16.msra.mxu2 %v12236_v41  ;;  %8068 = vmatpush.bf16.msra.mxu3 %v12748_v29  ;;  %v13509_v8 = vld [vmem:[%s20602_s7 + $0x55c] sm:$0xf0] }
 0x468   :  { %v11979_v19 = vld [vmem:[%s20602_s7 + $0x9a0] sm:$0xf]  ;;  %v11404_v15 = vor.u32 %v13509_v8, %v11403_v10  ;;  %v12237_v10 = vld [vmem:[%s20602_s7 + $0xbe0] sm:$0xf0] }
 0x469   :  { %8031 = vmatpush.bf16.msra.mxu0 %v11084_v27  ;;  %8044 = vmatpush.bf16.msra.mxu1 %v11596_v32  ;;  %v13653_v12 = vld [vmem:[%s20602_s7 + $0x9dc] sm:$0xf0]  ;;  %v7804_v29 = vpop.f32.mrf.mxu2  ;;  %v7817_v30 = vpop.f32.mrf.mxu3  ;;  %v13837_v8 = vld [vmem:[%s20602_s7 + $0xfa4] sm:$0xf] }
 0x46a   :  { %v12491_v37 = vld [vmem:[%s20602_s7 + $0xda0] sm:$0xf]  ;;  %v11980_v25 = vor.u32 %v13653_v12, %v11979_v19  ;;  %v7805_v44 = vadd.f32 %v7804_v29, %v7792_v17  ;;  %v12749_v19 = vld [vmem:[%s20602_s7 + $0xfe0] sm:$0xf0] }
 0x46b   :  { %8056 = vmatpush.bf16.msra.mxu2 %v12172_v54  ;;  %8069 = vmatpush.bf16.msra.mxu3 %v12684_v46  ;;  %v13781_v14 = vld [vmem:[%s20602_s7 + $0xddc] sm:$0xf0]  ;;  %v11597_v17 = vld [vmem:[%s20602_s7 + $0x6e0] sm:$0xf0] }
 0x46c   :  { %v10827_v2 = vld [vmem:[%s20602_s7 + $0xa0] sm:$0xf]  ;;  %v12492_v21 = vor.u32 %v13781_v14, %v12491_v37  ;;  %v7818_v46 = vadd.f32 %v7817_v30, %v7805_v44  ;;  %v13421_v14 = vld [vmem:[%s20602_s7 + $0x2a4] sm:$0xf] }
 0x46d   :  { %8032 = vmatpush.bf16.msra.mxu0 %v11020_v56  ;;  %8045 = vmatpush.bf16.msra.mxu1 %v11532_v57  ;;  %v13365_v43 = vld [vmem:[%s20602_s7 + $0xdc] sm:$0xf0]  ;;  %v13405_v30 = vld [vmem:[%s20602_s7 + $0x224] sm:$0xf] }
 0x46e   :  { %v11339_v24 = vld [vmem:[%s20602_s7 + $0x4a0] sm:$0xf]  ;;  %v10828_v27 = vor.u32 %v13365_v43, %v10827_v2  ;;  %v8448_v6 = vmax.f32 %v7818_v46, 0.0  ;;  %v12752_v2 = vor.u32 %v13837_v8, %v12749_v19  ;;  %v13549_v43 = vld [vmem:[%s20602_s7 + $0x6a4] sm:$0xf] }
 0x46f   :  { %8057 = vmatpush.bf16.msra.mxu2 %v12108_v3  ;;  %8070 = vmatpush.bf16.msra.mxu3 %v12620_v34  ;;  %v13493_v26 = vld [vmem:[%s20602_s7 + $0x4dc] sm:$0xf0]  ;;  %v13437_v3 = vld [vmem:[%s20602_s7 + $0x324] sm:$0xf]  ;;  %v11216_v34 = vor.u32 %v13453_v50, %v11213_v55  ;;  %v11600_v29 = vor.u32 %v13549_v43, %v11597_v17 }
 0x470   :  { %v11915_v41 = vld [vmem:[%s20602_s7 + $0x920] sm:$0xf]  ;;  %v11340_v32 = vor.u32 %v13493_v26, %v11339_v24  ;;  %8464 = vst [vmem:[%s20606_s10 + $0x18] sm:$0xff] %v8448_v6  ;;  %v11152_v11 = vor.u32 %v13437_v3, %v11149_v61  ;;  %v13821_v24 = vld [vmem:[%s20602_s7 + $0xf24] sm:$0xf] }
 0x471   :  { %8033 = vmatpush.bf16.msra.mxu0 %v10956_v45  ;;  %8046 = vmatpush.bf16.msra.mxu1 %v11468_v63  ;;  %v13637_v42 = vld [vmem:[%s20602_s7 + $0x95c] sm:$0xf0]  ;;  %v7806_v35 = vpop.f32.mrf.mxu2  ;;  %v7819_v45 = vpop.f32.mrf.mxu3  ;;  %v11661_v63 = vld [vmem:[%s20602_s7 + $0x760] sm:$0xf0] }
 0x472   :  { %v12427_v33 = vld [vmem:[%s20602_s7 + $0xd20] sm:$0xf]  ;;  %v11916_v47 = vor.u32 %v13637_v42, %v11915_v41  ;;  %v11664_v22 = vor.u32 %v13565_v23, %v11661_v63  ;;  %v12685_v26 = vld [vmem:[%s20602_s7 + $0xf60] sm:$0xf0] }
 0x473   :  { %8058 = vmatpush.bf16.msra.mxu2 %v12044_v5  ;;  %8071 = vmatpush.bf16.msra.mxu3 %v12556_v7  ;;  %v13765_v40 = vld [vmem:[%s20602_s7 + $0xd5c] sm:$0xf0]  ;;  %v13709_v7 = vld [vmem:[%s20602_s7 + $0xba4] sm:$0xf] }
 0x474   :  { %v10763_v49 = vld [vmem:[%s20602_s7 + $0x20] sm:$0xf]  ;;  %v12428_v48 = vor.u32 %v13765_v40, %v12427_v33  ;;  %v11021_v42 = vld [vmem:[%s20602_s7 + $0x260] sm:$0xf0]  ;;  %v12688_v40 = vor.u32 %v13821_v24, %v12685_v26 }
 0x475   :  { %8034 = vmatpush.bf16.msra.mxu0 %v10892_v38  ;;  %8047 = vmatpush.bf16.msra.mxu1 %v11404_v15  ;;  %v13349_v36 = vld [vmem:[%s20602_s7 + $0x5c] sm:$0xf0]  ;;  %v11085_v38 = vld [vmem:[%s20602_s7 + $0x2e0] sm:$0xf0]  ;;  %v12240_v15 = vor.u32 %v13709_v7, %v12237_v10 }
 0x476   :  { %v11275_v39 = vld [vmem:[%s20602_s7 + $0x420] sm:$0xf]  ;;  %v10764_v58 = vor.u32 %v13349_v36, %v10763_v49  ;;  %v11088_v41 = vor.u32 %v13421_v14, %v11085_v38  ;;  %v13533_v44 = vld [vmem:[%s20602_s7 + $0x624] sm:$0xf] }
 0x477   :  { %v13477_v54 = vld [vmem:[%s20602_s7 + $0x45c] sm:$0xf0]  ;;  %8059 = vmatpush.bf16.msra.mxu2 %v11980_v25  ;;  %8072 = vmatpush.bf16.msra.mxu3 %v12492_v21  ;;  %v13693_v25 = vld [vmem:[%s20602_s7 + $0xb24] sm:$0xf] }
 0x478   :  { %v11851_v20 = vld [vmem:[%s20602_s7 + $0x8a0] sm:$0xf]  ;;  %v11276_v59 = vor.u32 %v13477_v54, %v11275_v39  ;;  %v12173_v21 = vld [vmem:[%s20602_s7 + $0xb60] sm:$0xf0] }
 0x479   :  { %v13621_v53 = vld [vmem:[%s20602_s7 + $0x8dc] sm:$0xf0]  ;;  %8035 = vmatpush.bf16.msra.mxu0 %v10828_v27  ;;  %8048 = vmatpush.bf16.msra.mxu1 %v11340_v32  ;;  %v12176_v33 = vor.u32 %v13693_v25, %v12173_v21  ;;  %v11533_v49 = vld [vmem:[%s20602_s7 + $0x660] sm:$0xf0] }
 0x47a   :  { %v12363_v56 = vld [vmem:[%s20602_s7 + $0xca0] sm:$0xf]  ;;  %v11852_v28 = vor.u32 %v13621_v53, %v11851_v20  ;;  %v13677_v27 = vld [vmem:[%s20602_s7 + $0xaa4] sm:$0xf]  ;;  %v11536_v50 = vor.u32 %v13533_v44, %v11533_v49  ;;  %v11219_v49 = vld [vmem:[%s20602_s7 + $0x3a8] sm:$0xf] }
 0x47b   :  { %v13749_v57 = vld [vmem:[%s20602_s7 + $0xcdc] sm:$0xf0]  ;;  %8060 = vmatpush.bf16.msra.mxu2 %v11916_v47  ;;  %8073 = vmatpush.bf16.msra.mxu3 %v12428_v48  ;;  %v12109_v39 = vld [vmem:[%s20602_s7 + $0xae0] sm:$0xf0]  ;;  %v5025_v47 = vperm.slane %v18618_v16, 4  ;;  %v11024_v48 = vor.u32 %v13405_v30, %v11021_v42 }
 0x47c   :  { %v12364_v31 = vor.u32 %v13749_v57, %v12363_v56  ;;  %v11787_v0 = vld [vmem:[%s20602_s7 + $0x820] sm:$0xf]  ;;  %v13805_v54 = vld [vmem:[%s20602_s7 + $0xea4] sm:$0xf]  ;;  %v12112_v52 = vor.u32 %v13677_v27, %v12109_v39  ;;  %v13462_v27 = vld [vmem:[%s20602_s7 + $0x3e4] sm:$0xf0] }
 0x47d   :  { %v13605_v13 = vld [vmem:[%s20602_s7 + $0x85c] sm:$0xf0]  ;;  %8036 = vmatpush.bf16.msra.mxu0 %v10764_v58  ;;  %8049 = vmatpush.bf16.msra.mxu1 %v11276_v59  ;;  %v7830_v32 = vpop.f32.mrf.mxu0  ;;  %v7843_v36 = vpop.f32.mrf.mxu1  ;;  %v12621_v46 = vld [vmem:[%s20602_s7 + $0xee0] sm:$0xf0] }
 0x47e   :  { %v12299_v1 = vld [vmem:[%s20602_s7 + $0xc20] sm:$0xf]  ;;  %v11788_v12 = vor.u32 %v13605_v13, %v11787_v0  ;;  %v13389_v55 = vld [vmem:[%s20602_s7 + $0x1a4] sm:$0xf]  ;;  %v12624_v20 = vor.u32 %v13805_v54, %v12621_v46  ;;  %v7831_v61 = vadd.f32 %v7830_v32, %v5025_v47  ;;  %v11731_v32 = vld [vmem:[%s20602_s7 + $0x7a8] sm:$0xf] }
 0x47f   :  { %v13733_v5 = vld [vmem:[%s20602_s7 + $0xc5c] sm:$0xf0]  ;;  %8061 = vmatpush.bf16.msra.mxu2 %v11852_v28  ;;  %8074 = vmatpush.bf16.msra.mxu3 %v12364_v31  ;;  %v13517_v53 = vld [vmem:[%s20602_s7 + $0x5a4] sm:$0xf]  ;;  %v10960_v59 = vor.u32 %v13389_v55, %v10957_v4  ;;  %v11155_v4 = vld [vmem:[%s20602_s7 + $0x328] sm:$0xf] }
 0x480   :  { %v12300_v37 = vor.u32 %v13733_v5, %v12299_v1  ;;  %8037 = vmatmul.bf16.vlgmr.msra.gmra.mxu0 %v17775_v51  ;;  %8050 = vmatmul.bf16.vlgmr.msra.gmra.mxu1 %v17777_v62  ;;  %v11469_v16 = vld [vmem:[%s20602_s7 + $0x5e0] sm:$0xf0] }
 0x481   :  { %8081 = vmatpush.bf16.msrb.mxu0 %v11216_v34  ;;  %8094 = vmatpush.bf16.msrb.mxu1 %v11728_v60  ;;  %v13661_v6 = vld [vmem:[%s20602_s7 + $0xa24] sm:$0xf]  ;;  %v11472_v3 = vor.u32 %v13517_v53, %v11469_v16  ;;  %v13446_v53 = vld [vmem:[%s20602_s7 + $0x364] sm:$0xf0] }
 0x482   :  { %v12045_v56 = vld [vmem:[%s20602_s7 + $0xa60] sm:$0xf0]  ;;  %v11667_v16 = vld [vmem:[%s20602_s7 + $0x728] sm:$0xf] }
 0x483   :  { %8062 = vmatpush.bf16.msra.mxu2 %v11788_v12  ;;  %8075 = vmatpush.bf16.msra.mxu3 %v12300_v37  ;;  %v13789_v57 = vld [vmem:[%s20602_s7 + $0xe24] sm:$0xf]  ;;  %v12048_v23 = vor.u32 %v13661_v6, %v12045_v56 }
 0x484   :  { %v12557_v58 = vld [vmem:[%s20602_s7 + $0xe60] sm:$0xf0] }
 0x485   :  { %8082 = vmatpush.bf16.msrb.mxu0 %v11152_v11  ;;  %8095 = vmatpush.bf16.msrb.mxu1 %v11664_v22  ;;  %v13373_v34 = vld [vmem:[%s20602_s7 + $0x124] sm:$0xf]  ;;  %v12560_v28 = vor.u32 %v13789_v57, %v12557_v58  ;;  %v7832_v63 = vpop.f32.mrf.mxu0  ;;  %v7845_v0 = vpop.f32.mrf.mxu1  ;;  %v7844_v11 = vadd.f32 %v7843_v36, %v7831_v61  ;;  %v13590_v36 = vld [vmem:[%s20602_s7 + $0x7e4] sm:$0xf0] }
 0x486   :  { %8063 = vmatmul.bf16.vlgmr.msra.gmra.mxu2 %v17817_v18  ;;  %8076 = vmatmul.bf16.vlgmr.msra.gmra.mxu3 %v17819_v9  ;;  %v10893_v60 = vld [vmem:[%s20602_s7 + $0x160] sm:$0xf0] }
 0x487   :  { %8107 = vmatpush.bf16.msrb.mxu2 %v12240_v15  ;;  %8120 = vmatpush.bf16.msrb.mxu3 %v12752_v2  ;;  %v13501_v31 = vld [vmem:[%s20602_s7 + $0x524] sm:$0xf]  ;;  %v10896_v7 = vor.u32 %v13373_v34, %v10893_v60 }
 0x488   :  { %v11405_v35 = vld [vmem:[%s20602_s7 + $0x560] sm:$0xf0] }
 0x489   :  { %8083 = vmatpush.bf16.msrb.mxu0 %v11088_v41  ;;  %8096 = vmatpush.bf16.msrb.mxu1 %v11600_v29  ;;  %v13645_v45 = vld [vmem:[%s20602_s7 + $0x9a4] sm:$0xf]  ;;  %v11408_v10 = vor.u32 %v13501_v31, %v11405_v35  ;;  %v7856_v15 = vpop.f32.mrf.mxu2  ;;  %v7869_v2 = vpop.f32.mrf.mxu3  ;;  %v12755_v31 = vld [vmem:[%s20602_s7 + $0xfa8] sm:$0xf] }
 0x48a   :  { %v11981_v13 = vld [vmem:[%s20602_s7 + $0x9e0] sm:$0xf0]  ;;  %v7857_v21 = vadd.f32 %v7856_v15, %v7844_v11  ;;  %v13846_v35 = vld [vmem:[%s20602_s7 + $0xfe4] sm:$0xf0] }
 0x48b   :  { %8108 = vmatpush.bf16.msrb.mxu2 %v12176_v33  ;;  %8121 = vmatpush.bf16.msrb.mxu3 %v12688_v40  ;;  %v13773_v1 = vld [vmem:[%s20602_s7 + $0xda4] sm:$0xf]  ;;  %v11984_v22 = vor.u32 %v13645_v45, %v11981_v13  ;;  %v11156_v45 = vor.u32 %v13446_v53, %v11155_v4  ;;  %v12179_v11 = vld [vmem:[%s20602_s7 + $0xb28] sm:$0xf] }
 0x48c   :  { %v12493_v5 = vld [vmem:[%s20602_s7 + $0xde0] sm:$0xf0]  ;;  %v7870_v33 = vadd.f32 %v7869_v2, %v7857_v21  ;;  %v11027_v15 = vld [vmem:[%s20602_s7 + $0x228] sm:$0xf] }
 0x48d   :  { %8084 = vmatpush.bf16.msrb.mxu0 %v11024_v48  ;;  %8097 = vmatpush.bf16.msrb.mxu1 %v11536_v50  ;;  %v13357_v8 = vld [vmem:[%s20602_s7 + $0xa4] sm:$0xf]  ;;  %v12496_v12 = vor.u32 %v13773_v1, %v12493_v5  ;;  %v11091_v1 = vld [vmem:[%s20602_s7 + $0x2a8] sm:$0xf] }
 0x48e   :  { %v10829_v19 = vld [vmem:[%s20602_s7 + $0xe0] sm:$0xf0]  ;;  %v8449_v46 = vmax.f32 %v7870_v33, 0.0  ;;  %v13430_v5 = vld [vmem:[%s20602_s7 + $0x2e4] sm:$0xf0] }
 0x48f   :  { %8109 = vmatpush.bf16.msrb.mxu2 %v12112_v52  ;;  %8122 = vmatpush.bf16.msrb.mxu3 %v12624_v20  ;;  %v13485_v37 = vld [vmem:[%s20602_s7 + $0x4a4] sm:$0xf]  ;;  %v10832_v26 = vor.u32 %v13357_v8, %v10829_v19  ;;  %v11220_v52 = vor.u32 %v13462_v27, %v11219_v49  ;;  %v11732_v20 = vor.u32 %v13590_v36, %v11731_v32  ;;  %v11603_v8 = vld [vmem:[%s20602_s7 + $0x6a8] sm:$0xf] }
 0x490   :  { %v11341_v14 = vld [vmem:[%s20602_s7 + $0x4e0] sm:$0xf0]  ;;  %8465 = vst [vmem:[%s20606_s10 + $0x20] sm:$0xff] %v8449_v46  ;;  %v13558_v19 = vld [vmem:[%s20602_s7 + $0x6e4] sm:$0xf0] }
 0x491   :  { %8085 = vmatpush.bf16.msrb.mxu0 %v10960_v59  ;;  %8098 = vmatpush.bf16.msrb.mxu1 %v11472_v3  ;;  %v13629_v38 = vld [vmem:[%s20602_s7 + $0x924] sm:$0xf]  ;;  %v11344_v41 = vor.u32 %v13485_v37, %v11341_v14  ;;  %v7858_v57 = vpop.f32.mrf.mxu2  ;;  %v7871_v58 = vpop.f32.mrf.mxu3  ;;  %v13574_v59 = vld [vmem:[%s20602_s7 + $0x764] sm:$0xf0]  ;;  %v11092_v14 = vor.u32 %v13430_v5, %v11091_v1 }
 0x492   :  { %v11917_v43 = vld [vmem:[%s20602_s7 + $0x960] sm:$0xf0]  ;;  %v11668_v63 = vor.u32 %v13574_v59, %v11667_v16  ;;  %v13830_v37 = vld [vmem:[%s20602_s7 + $0xf64] sm:$0xf0] }
 0x493   :  { %8110 = vmatpush.bf16.msrb.mxu2 %v12048_v23  ;;  %8123 = vmatpush.bf16.msrb.mxu3 %v12560_v28  ;;  %v13757_v17 = vld [vmem:[%s20602_s7 + $0xd24] sm:$0xf]  ;;  %v11920_v40 = vor.u32 %v13629_v38, %v11917_v43  ;;  %v12243_v23 = vld [vmem:[%s20602_s7 + $0xba8] sm:$0xf]  ;;  %v11604_v38 = vor.u32 %v13558_v19, %v11603_v8 }
 0x494   :  { %v12429_v25 = vld [vmem:[%s20602_s7 + $0xd60] sm:$0xf0]  ;;  %v13718_v28 = vld [vmem:[%s20602_s7 + $0xbe4] sm:$0xf0] }
 0x495   :  { %v13341_v24 = vld [vmem:[%s20602_s7 + $0x24] sm:$0xf]  ;;  %8086 = vmatpush.bf16.msrb.mxu0 %v10896_v7  ;;  %8099 = vmatpush.bf16.msrb.mxu1 %v11408_v10  ;;  %v12432_v44 = vor.u32 %v13757_v17, %v12429_v25  ;;  %v12244_v7 = vor.u32 %v13718_v28, %v12243_v23  ;;  %v12756_v10 = vor.u32 %v13846_v35, %v12755_v31  ;;  %v13414_v2 = vld [vmem:[%s20602_s7 + $0x264] sm:$0xf0] }
 0x496   :  { %v10765_v29 = vld [vmem:[%s20602_s7 + $0x60] sm:$0xf0]  ;;  %v11539_v25 = vld [vmem:[%s20602_s7 + $0x628] sm:$0xf] }
 0x497   :  { %v13469_v30 = vld [vmem:[%s20602_s7 + $0x424] sm:$0xf]  ;;  %8111 = vmatpush.bf16.msrb.mxu2 %v11984_v22  ;;  %8124 = vmatpush.bf16.msrb.mxu3 %v12496_v12  ;;  %v10768_v50 = vor.u32 %v13341_v24, %v10765_v29  ;;  %v13702_v22 = vld [vmem:[%s20602_s7 + $0xb64] sm:$0xf0] }
 0x498   :  { %v11277_v42 = vld [vmem:[%s20602_s7 + $0x460] sm:$0xf0]  ;;  %v12691_v12 = vld [vmem:[%s20602_s7 + $0xf28] sm:$0xf]  ;;  %v12180_v43 = vor.u32 %v13702_v22, %v12179_v11 }
 0x499   :  { %v13613_v39 = vld [vmem:[%s20602_s7 + $0x8a4] sm:$0xf]  ;;  %8087 = vmatpush.bf16.msrb.mxu0 %v10832_v26  ;;  %8100 = vmatpush.bf16.msrb.mxu1 %v11344_v41  ;;  %v11280_v55 = vor.u32 %v13469_v30, %v11277_v42  ;;  %v12692_v17 = vor.u32 %v13830_v37, %v12691_v12  ;;  %v13542_v21 = vld [vmem:[%s20602_s7 + $0x664] sm:$0xf0] }
 0x49a   :  { %v11853_v54 = vld [vmem:[%s20602_s7 + $0x8e0] sm:$0xf0]  ;;  %v12115_v24 = vld [vmem:[%s20602_s7 + $0xaa8] sm:$0xf]  ;;  %v11540_v49 = vor.u32 %v13542_v21, %v11539_v25 }
 0x49b   :  { %v13741_v47 = vld [vmem:[%s20602_s7 + $0xca4] sm:$0xf]  ;;  %8112 = vmatpush.bf16.msrb.mxu2 %v11920_v40  ;;  %8125 = vmatpush.bf16.msrb.mxu3 %v12432_v44  ;;  %v11856_v6 = vor.u32 %v13613_v39, %v11853_v54  ;;  %v13686_v29 = vld [vmem:[%s20602_s7 + $0xae4] sm:$0xf0]  ;;  %v11028_v44 = vor.u32 %v13414_v2, %v11027_v15 }
 0x49c   :  { %v12365_v48 = vld [vmem:[%s20602_s7 + $0xce0] sm:$0xf0]  ;;  %v12627_v30 = vld [vmem:[%s20602_s7 + $0xea8] sm:$0xf]  ;;  %v12116_v36 = vor.u32 %v13686_v29, %v12115_v24  ;;  %v13454_v24 = vld [vmem:[%s20602_s7 + $0x3ac] sm:$0xf] }
 0x49d   :  { %v12368_v56 = vor.u32 %v13741_v47, %v12365_v48  ;;  %v13597_v3 = vld [vmem:[%s20602_s7 + $0x824] sm:$0xf]  ;;  %8088 = vmatpush.bf16.msrb.mxu0 %v10768_v50  ;;  %8101 = vmatpush.bf16.msrb.mxu1 %v11280_v55  ;;  %v7882_v26 = vpop.f32.mrf.mxu0  ;;  %v7895_v41 = vpop.f32.mrf.mxu1  ;;  %v13814_v42 = vld [vmem:[%s20602_s7 + $0xee4] sm:$0xf0]  ;;  %v11733_v29 = vld [vmem:[%s20602_s7 + $0x7e8] sm:$0xf0] }
 0x49e   :  { %v11789_v34 = vld [vmem:[%s20602_s7 + $0x860] sm:$0xf0]  ;;  %v10963_v27 = vld [vmem:[%s20602_s7 + $0x1a8] sm:$0xf]  ;;  %v12628_v39 = vor.u32 %v13814_v42, %v12627_v30 }
 0x49f   :  { %v13725_v60 = vld [vmem:[%s20602_s7 + $0xc24] sm:$0xf]  ;;  %8113 = vmatpush.bf16.msrb.mxu2 %v11856_v6  ;;  %8126 = vmatpush.bf16.msrb.mxu3 %v12368_v56  ;;  %v11792_v0 = vor.u32 %v13597_v3, %v11789_v34  ;;  %v13398_v32 = vld [vmem:[%s20602_s7 + $0x1e4] sm:$0xf0] }
 0x4a0   :  { %v12301_v61 = vld [vmem:[%s20602_s7 + $0xc60] sm:$0xf0]  ;;  %8089 = vmatmul.bf16.vlgmr.msrb.gmra.mxu0 %v17775_v51  ;;  %8102 = vmatmul.bf16.vlgmr.msrb.gmra.mxu1 %v17777_v62  ;;  %v11475_v54 = vld [vmem:[%s20602_s7 + $0x5a8] sm:$0xf]  ;;  %v10964_v4 = vor.u32 %v13398_v32, %v10963_v27 }
 0x4a1   :  { %8133 = vmatpush.bf16.msra.mxu0 %v11220_v52  ;;  %8146 = vmatpush.bf16.msra.mxu1 %v11732_v20  ;;  %v12304_v13 = vor.u32 %v13725_v60, %v12301_v61  ;;  %v19453_v33 = vld [vmem:[%s20605_s8] sm:$0xff]  ;;  %v13526_v46 = vld [vmem:[%s20602_s7 + $0x5e4] sm:$0xf0] }
 0x4a2   :  { %v5026_v40 = vperm.slane %v19453_v33, 5  ;;  %v12051_v47 = vld [vmem:[%s20602_s7 + $0xa28] sm:$0xf]  ;;  %v11476_v52 = vor.u32 %v13526_v46, %v11475_v54  ;;  %v11157_v46 = vld [vmem:[%s20602_s7 + $0x368] sm:$0xf0] }
 0x4a3   :  { %8114 = vmatpush.bf16.msrb.mxu2 %v11792_v0  ;;  %8127 = vmatpush.bf16.msrb.mxu3 %v12304_v13  ;;  %v13670_v48 = vld [vmem:[%s20602_s7 + $0xa64] sm:$0xf0] }
 0x4a4   :  { %v12563_v50 = vld [vmem:[%s20602_s7 + $0xe28] sm:$0xf]  ;;  %v7883_v16 = vadd.f32 %v7882_v26, %v5026_v40  ;;  %v12052_v6 = vor.u32 %v13670_v48, %v12051_v47  ;;  %v11221_v26 = vld [vmem:[%s20602_s7 + $0x3e8] sm:$0xf0] }
 0x4a5   :  { %8134 = vmatpush.bf16.msra.mxu0 %v11156_v45  ;;  %8147 = vmatpush.bf16.msra.mxu1 %v11668_v63  ;;  %v13798_v55 = vld [vmem:[%s20602_s7 + $0xe64] sm:$0xf0]  ;;  %v7884_v3 = vpop.f32.mrf.mxu0  ;;  %v7897_v34 = vpop.f32.mrf.mxu1  ;;  %v13566_v47 = vld [vmem:[%s20602_s7 + $0x72c] sm:$0xf] }
 0x4a6   :  { %8115 = vmatmul.bf16.vlgmr.msrb.gmra.mxu2 %v17817_v18  ;;  %8128 = vmatmul.bf16.vlgmr.msrb.gmra.mxu3 %v17819_v9  ;;  %v10899_v20 = vld [vmem:[%s20602_s7 + $0x128] sm:$0xf]  ;;  %v12564_v56 = vor.u32 %v13798_v55, %v12563_v50  ;;  %v7896_v63 = vadd.f32 %v7895_v41, %v7883_v16  ;;  %v13582_v41 = vld [vmem:[%s20602_s7 + $0x7ac] sm:$0xf] }
 0x4a7   :  { %8159 = vmatpush.bf16.msra.mxu2 %v12244_v7  ;;  %8172 = vmatpush.bf16.msra.mxu3 %v12756_v10  ;;  %v13382_v53 = vld [vmem:[%s20602_s7 + $0x164] sm:$0xf0]  ;;  %v11736_v54 = vor.u32 %v13582_v41, %v11733_v29  ;;  %v10965_v41 = vld [vmem:[%s20602_s7 + $0x1e8] sm:$0xf0] }
 0x4a8   :  { %v11411_v57 = vld [vmem:[%s20602_s7 + $0x528] sm:$0xf]  ;;  %v10900_v28 = vor.u32 %v13382_v53, %v10899_v20 }
 0x4a9   :  { %8135 = vmatpush.bf16.msra.mxu0 %v11092_v14  ;;  %8148 = vmatpush.bf16.msra.mxu1 %v11604_v38  ;;  %v13510_v58 = vld [vmem:[%s20602_s7 + $0x564] sm:$0xf0]  ;;  %v7908_v10 = vpop.f32.mrf.mxu2  ;;  %v7921_v8 = vpop.f32.mrf.mxu3 }
 0x4aa   :  { %v11987_v59 = vld [vmem:[%s20602_s7 + $0x9a8] sm:$0xf]  ;;  %v11412_v31 = vor.u32 %v13510_v58, %v11411_v57  ;;  %v7909_v12 = vadd.f32 %v7908_v10, %v7896_v63  ;;  %v12245_v57 = vld [vmem:[%s20602_s7 + $0xbe8] sm:$0xf0] }
 0x4ab   :  { %8160 = vmatpush.bf16.msra.mxu2 %v12180_v43  ;;  %8173 = vmatpush.bf16.msra.mxu3 %v12692_v17  ;;  %v13654_v60 = vld [vmem:[%s20602_s7 + $0x9e4] sm:$0xf0]  ;;  %v13838_v58 = vld [vmem:[%s20602_s7 + $0xfac] sm:$0xf] }
 0x4ac   :  { %v12499_v61 = vld [vmem:[%s20602_s7 + $0xda8] sm:$0xf]  ;;  %v11988_v0 = vor.u32 %v13654_v60, %v11987_v59  ;;  %v7922_v17 = vadd.f32 %v7921_v8, %v7909_v12  ;;  %v12757_v59 = vld [vmem:[%s20602_s7 + $0xfe8] sm:$0xf0] }
 0x4ad   :  { %8136 = vmatpush.bf16.msra.mxu0 %v11028_v44  ;;  %8149 = vmatpush.bf16.msra.mxu1 %v11540_v49  ;;  %v13782_v23 = vld [vmem:[%s20602_s7 + $0xde4] sm:$0xf0]  ;;  %v11605_v63 = vld [vmem:[%s20602_s7 + $0x6e8] sm:$0xf0] }
 0x4ae   :  { %v10835_v35 = vld [vmem:[%s20602_s7 + $0xa8] sm:$0xf]  ;;  %v12500_v13 = vor.u32 %v13782_v23, %v12499_v61  ;;  %v8450_v40 = vmax.f32 %v7922_v17, 0.0  ;;  %v13422_v23 = vld [vmem:[%s20602_s7 + $0x2ac] sm:$0xf] }
 0x4af   :  { %8161 = vmatpush.bf16.msra.mxu2 %v12116_v36  ;;  %8174 = vmatpush.bf16.msra.mxu3 %v12628_v39  ;;  %v13366_v45 = vld [vmem:[%s20602_s7 + $0xe4] sm:$0xf0]  ;;  %v13438_v36 = vld [vmem:[%s20602_s7 + $0x32c] sm:$0xf]  ;;  %v11224_v39 = vor.u32 %v13454_v24, %v11221_v26 }
 0x4b0   :  { %v11347_v1 = vld [vmem:[%s20602_s7 + $0x4a8] sm:$0xf]  ;;  %v10836_v14 = vor.u32 %v13366_v45, %v10835_v35  ;;  %8466 = vst [vmem:[%s20606_s10 + $0x28] sm:$0xff] %v8450_v40  ;;  %v11160_v3 = vor.u32 %v13438_v36, %v11157_v46  ;;  %v12760_v35 = vor.u32 %v13838_v58, %v12757_v59  ;;  %v13550_v45 = vld [vmem:[%s20602_s7 + $0x6ac] sm:$0xf] }
 0x4b1   :  { %8137 = vmatpush.bf16.msra.mxu0 %v10964_v4  ;;  %8150 = vmatpush.bf16.msra.mxu1 %v11476_v52  ;;  %v13494_v5 = vld [vmem:[%s20602_s7 + $0x4e4] sm:$0xf0]  ;;  %v7910_v55 = vpop.f32.mrf.mxu2  ;;  %v7923_v4 = vpop.f32.mrf.mxu3  ;;  %v11669_v52 = vld [vmem:[%s20602_s7 + $0x768] sm:$0xf0]  ;;  %v11608_v10 = vor.u32 %v13550_v45, %v11605_v63 }
 0x4b2   :  { %v11923_v7 = vld [vmem:[%s20602_s7 + $0x928] sm:$0xf]  ;;  %v11348_v38 = vor.u32 %v13494_v5, %v11347_v1  ;;  %v11672_v34 = vor.u32 %v13566_v47, %v11669_v52  ;;  %v13822_v1 = vld [vmem:[%s20602_s7 + $0xf2c] sm:$0xf] }
 0x4b3   :  { %8162 = vmatpush.bf16.msra.mxu2 %v12052_v6  ;;  %8175 = vmatpush.bf16.msra.mxu3 %v12564_v56  ;;  %v13638_v19 = vld [vmem:[%s20602_s7 + $0x964] sm:$0xf0]  ;;  %v13710_v56 = vld [vmem:[%s20602_s7 + $0xbac] sm:$0xf] }
 0x4b4   :  { %v12435_v11 = vld [vmem:[%s20602_s7 + $0xd28] sm:$0xf]  ;;  %v11924_v25 = vor.u32 %v13638_v19, %v11923_v7  ;;  %v12693_v5 = vld [vmem:[%s20602_s7 + $0xf68] sm:$0xf0] }
 0x4b5   :  { %v13766_v22 = vld [vmem:[%s20602_s7 + $0xd64] sm:$0xf0]  ;;  %8138 = vmatpush.bf16.msra.mxu0 %v10900_v28  ;;  %8151 = vmatpush.bf16.msra.mxu1 %v11412_v31  ;;  %v11093_v28 = vld [vmem:[%s20602_s7 + $0x2e8] sm:$0xf0]  ;;  %v12248_v31 = vor.u32 %v13710_v56, %v12245_v57 }
 0x4b6   :  { %v10771_v37 = vld [vmem:[%s20602_s7 + $0x28] sm:$0xf]  ;;  %v12436_v21 = vor.u32 %v13766_v22, %v12435_v11  ;;  %v11096_v7 = vor.u32 %v13422_v23, %v11093_v28  ;;  %v13406_v8 = vld [vmem:[%s20602_s7 + $0x22c] sm:$0xf]  ;;  %v12696_v22 = vor.u32 %v13822_v1, %v12693_v5 }
 0x4b7   :  { %v13350_v15 = vld [vmem:[%s20602_s7 + $0x64] sm:$0xf0]  ;;  %8163 = vmatpush.bf16.msra.mxu2 %v11988_v0  ;;  %8176 = vmatpush.bf16.msra.mxu3 %v12500_v13  ;;  %v13694_v0 = vld [vmem:[%s20602_s7 + $0xb2c] sm:$0xf] }
 0x4b8   :  { %v11283_v2 = vld [vmem:[%s20602_s7 + $0x428] sm:$0xf]  ;;  %v10772_v27 = vor.u32 %v13350_v15, %v10771_v37  ;;  %v12181_v13 = vld [vmem:[%s20602_s7 + $0xb68] sm:$0xf0] }
 0x4b9   :  { %v13478_v43 = vld [vmem:[%s20602_s7 + $0x464] sm:$0xf0]  ;;  %8139 = vmatpush.bf16.msra.mxu0 %v10836_v14  ;;  %8152 = vmatpush.bf16.msra.mxu1 %v11348_v38  ;;  %v11029_v19 = vld [vmem:[%s20602_s7 + $0x268] sm:$0xf0]  ;;  %v12184_v11 = vor.u32 %v13694_v0, %v12181_v13 }
 0x4ba   :  { %v11859_v30 = vld [vmem:[%s20602_s7 + $0x8a8] sm:$0xf]  ;;  %v11284_v32 = vor.u32 %v13478_v43, %v11283_v2  ;;  %v13534_v12 = vld [vmem:[%s20602_s7 + $0x62c] sm:$0xf] }
 0x4bb   :  { %v13622_v42 = vld [vmem:[%s20602_s7 + $0x8e4] sm:$0xf0]  ;;  %8164 = vmatpush.bf16.msra.mxu2 %v11924_v25  ;;  %8177 = vmatpush.bf16.msra.mxu3 %v12436_v21  ;;  %v11541_v37 = vld [vmem:[%s20602_s7 + $0x668] sm:$0xf0]  ;;  %v5027_v25 = vperm.slane %v19453_v33, 6  ;;  %v11032_v21 = vor.u32 %v13406_v8, %v11029_v19 }
 0x4bc   :  { %v12371_v44 = vld [vmem:[%s20602_s7 + $0xca8] sm:$0xf]  ;;  %v11860_v48 = vor.u32 %v13622_v42, %v11859_v30  ;;  %v13678_v14 = vld [vmem:[%s20602_s7 + $0xaac] sm:$0xf]  ;;  %v11544_v24 = vor.u32 %v13534_v12, %v11541_v37 }
 0x4bd   :  { %v13750_v49 = vld [vmem:[%s20602_s7 + $0xce4] sm:$0xf0]  ;;  %8140 = vmatpush.bf16.msra.mxu0 %v10772_v27  ;;  %8153 = vmatpush.bf16.msra.mxu1 %v11284_v32  ;;  %v7934_v38 = vpop.f32.mrf.mxu0  ;;  %v7947_v15 = vpop.f32.mrf.mxu1  ;;  %v12117_v2 = vld [vmem:[%s20602_s7 + $0xae8] sm:$0xf0] }
 0x4be   :  { %v12372_v50 = vor.u32 %v13750_v49, %v12371_v44  ;;  %v11795_v20 = vld [vmem:[%s20602_s7 + $0x828] sm:$0xf]  ;;  %v13806_v43 = vld [vmem:[%s20602_s7 + $0xeac] sm:$0xf]  ;;  %v12120_v29 = vor.u32 %v13678_v14, %v12117_v2  ;;  %v7935_v47 = vadd.f32 %v7934_v38, %v5027_v25  ;;  %v11227_v14 = vld [vmem:[%s20602_s7 + $0x3b0] sm:$0xf] }
 0x4bf   :  { %v13606_v53 = vld [vmem:[%s20602_s7 + $0x864] sm:$0xf0]  ;;  %8165 = vmatpush.bf16.msra.mxu2 %v11860_v48  ;;  %v12629_v17 = vld [vmem:[%s20602_s7 + $0xee8] sm:$0xf0]  ;;  %v13463_v38 = vld [vmem:[%s20602_s7 + $0x3ec] sm:$0xf0] }
 0x4c0   :  { %v12307_v16 = vld [vmem:[%s20602_s7 + $0xc28] sm:$0xf]  ;;  %8178 = vmatpush.bf16.msra.mxu3 %v12372_v50  ;;  %v11796_v60 = vor.u32 %v13606_v53, %v11795_v20  ;;  %8141 = vmatmul.bf16.vlgmr.msra.gmra.mxu0 %v17775_v51  ;;  %v13390_v26 = vld [vmem:[%s20602_s7 + $0x1ac] sm:$0xf]  ;;  %v12632_v30 = vor.u32 %v13806_v43, %v12629_v17  ;;  %v13591_v2 = vld [vmem:[%s20602_s7 + $0x7ec] sm:$0xf0] }
 0x4c1   :  { %v13734_v6 = vld [vmem:[%s20602_s7 + $0xc64] sm:$0xf0]  ;;  %8185 = vmatpush.bf16.msrb.mxu0 %v11224_v39  ;;  %8198 = vmatpush.bf16.msrb.mxu1 %v11736_v54  ;;  %v13518_v42 = vld [vmem:[%s20602_s7 + $0x5ac] sm:$0xf]  ;;  %v10968_v36 = vor.u32 %v13390_v26, %v10965_v41 }
 0x4c2   :  { %v12308_v61 = vor.u32 %v13734_v6, %v12307_v16  ;;  %8154 = vmatmul.bf16.vlgmr.msra.gmra.mxu1 %v17777_v62  ;;  %v11477_v40 = vld [vmem:[%s20602_s7 + $0x5e8] sm:$0xf0] }
 0x4c3   :  { %8166 = vmatpush.bf16.msra.mxu2 %v11796_v60  ;;  %v13662_v44 = vld [vmem:[%s20602_s7 + $0xa2c] sm:$0xf]  ;;  %v11480_v39 = vor.u32 %v13518_v42, %v11477_v40  ;;  %v13447_v40 = vld [vmem:[%s20602_s7 + $0x36c] sm:$0xf0] }
 0x4c4   :  { %8179 = vmatpush.bf16.msra.mxu3 %v12308_v61  ;;  %v12053_v49 = vld [vmem:[%s20602_s7 + $0xa68] sm:$0xf0] }
 0x4c5   :  { %8186 = vmatpush.bf16.msrb.mxu0 %v11160_v3  ;;  %8199 = vmatpush.bf16.msrb.mxu1 %v11672_v34  ;;  %v13790_v27 = vld [vmem:[%s20602_s7 + $0xe2c] sm:$0xf]  ;;  %v12056_v48 = vor.u32 %v13662_v44, %v12053_v49  ;;  %v7936_v20 = vpop.f32.mrf.mxu0  ;;  %v7949_v53 = vpop.f32.mrf.mxu1  ;;  %v7948_v34 = vadd.f32 %v7947_v15, %v7935_v47  ;;  %v11739_v15 = vld [vmem:[%s20602_s7 + $0x7b0] sm:$0xf] }
 0x4c6   :  { %8167 = vmatmul.bf16.vlgmr.msra.gmra.mxu2 %v17817_v18  ;;  %v12565_v32 = vld [vmem:[%s20602_s7 + $0xe68] sm:$0xf0]  ;;  %v11740_v42 = vor.u32 %v13591_v2, %v11739_v15  ;;  %v11675_v44 = vld [vmem:[%s20602_s7 + $0x730] sm:$0xf] }
 0x4c7   :  { %8211 = vmatpush.bf16.msrb.mxu2 %v12248_v31  ;;  %8180 = vmatmul.bf16.vlgmr.msra.gmra.mxu3 %v17819_v9  ;;  %v13374_v54 = vld [vmem:[%s20602_s7 + $0x12c] sm:$0xf]  ;;  %v12568_v50 = vor.u32 %v13790_v27, %v12565_v32  ;;  %v13399_v15 = vld [vmem:[%s20602_s7 + $0x1ec] sm:$0xf0] }
 0x4c8   :  { %8224 = vmatpush.bf16.msrb.mxu3 %v12760_v35  ;;  %v10901_v46 = vld [vmem:[%s20602_s7 + $0x168] sm:$0xf0] }
 0x4c9   :  { %8187 = vmatpush.bf16.msrb.mxu0 %v11096_v7  ;;  %8200 = vmatpush.bf16.msrb.mxu1 %v11608_v10  ;;  %v13502_v55 = vld [vmem:[%s20602_s7 + $0x52c] sm:$0xf]  ;;  %v10904_v57 = vor.u32 %v13374_v54, %v10901_v46  ;;  %v7960_v35 = vpop.f32.mrf.mxu2  ;;  %v7973_v45 = vpop.f32.mrf.mxu3 }
 0x4ca   :  { %v11413_v4 = vld [vmem:[%s20602_s7 + $0x568] sm:$0xf0]  ;;  %v7961_v1 = vadd.f32 %v7960_v35, %v7948_v34  ;;  %v13559_v34 = vld [vmem:[%s20602_s7 + $0x6ec] sm:$0xf0] }
 0x4cb   :  { %8212 = vmatpush.bf16.msrb.mxu2 %v12184_v11  ;;  %v13646_v52 = vld [vmem:[%s20602_s7 + $0x9ac] sm:$0xf]  ;;  %v11416_v58 = vor.u32 %v13502_v55, %v11413_v4  ;;  %v13719_v55 = vld [vmem:[%s20602_s7 + $0xbec] sm:$0xf0] }
 0x4cc   :  { %8225 = vmatpush.bf16.msrb.mxu3 %v12696_v22  ;;  %v11989_v16 = vld [vmem:[%s20602_s7 + $0x9e8] sm:$0xf0]  ;;  %v7974_v22 = vadd.f32 %v7973_v45, %v7961_v1  ;;  %v12763_v4 = vld [vmem:[%s20602_s7 + $0xfb0] sm:$0xf] }
 0x4cd   :  { %8188 = vmatpush.bf16.msrb.mxu0 %v11032_v21  ;;  %8201 = vmatpush.bf16.msrb.mxu1 %v11544_v24  ;;  %v13774_v6 = vld [vmem:[%s20602_s7 + $0xdac] sm:$0xf]  ;;  %v11992_v60 = vor.u32 %v13646_v52, %v11989_v16  ;;  %v13847_v52 = vld [vmem:[%s20602_s7 + $0xfec] sm:$0xf0] }
 0x4ce   :  { %v12501_v56 = vld [vmem:[%s20602_s7 + $0xde8] sm:$0xf0]  ;;  %v8451_v25 = vmax.f32 %v7974_v22, 0.0  ;;  %v11035_v45 = vld [vmem:[%s20602_s7 + $0x230] sm:$0xf] }
 0x4cf   :  { %8213 = vmatpush.bf16.msrb.mxu2 %v12120_v29  ;;  %v13358_v59 = vld [vmem:[%s20602_s7 + $0xac] sm:$0xf]  ;;  %v12504_v61 = vor.u32 %v13774_v6, %v12501_v56  ;;  %v11163_v29 = vld [vmem:[%s20602_s7 + $0x330] sm:$0xf] }
 0x4d0   :  { %8226 = vmatpush.bf16.msrb.mxu3 %v12632_v30  ;;  %v10837_v3 = vld [vmem:[%s20602_s7 + $0xe8] sm:$0xf0]  ;;  %8467 = vst [vmem:[%s20606_s10 + $0x30] sm:$0xff] %v8451_v25  ;;  %v11228_v30 = vor.u32 %v13463_v38, %v11227_v14  ;;  %v11164_v20 = vor.u32 %v13447_v40, %v11163_v29  ;;  %v11099_v56 = vld [vmem:[%s20602_s7 + $0x2b0] sm:$0xf] }
 0x4d1   :  { %8189 = vmatpush.bf16.msrb.mxu0 %v10968_v36  ;;  %8202 = vmatpush.bf16.msrb.mxu1 %v11480_v39  ;;  %v13486_v23 = vld [vmem:[%s20602_s7 + $0x4ac] sm:$0xf]  ;;  %v10840_v7 = vor.u32 %v13358_v59, %v10837_v3  ;;  %v7962_v32 = vpop.f32.mrf.mxu2  ;;  %v7975_v36 = vpop.f32.mrf.mxu3  ;;  %v13575_v39 = vld [vmem:[%s20602_s7 + $0x76c] sm:$0xf0]  ;;  %v12764_v59 = vor.u32 %v13847_v52, %v12763_v4 }
 0x4d2   :  { %v11349_v28 = vld [vmem:[%s20602_s7 + $0x4e8] sm:$0xf0]  ;;  %v11676_v53 = vor.u32 %v13575_v39, %v11675_v44  ;;  %v11611_v3 = vld [vmem:[%s20602_s7 + $0x6b0] sm:$0xf] }
 0x4d3   :  { %8214 = vmatpush.bf16.msrb.mxu2 %v12056_v48  ;;  %v13630_v31 = vld [vmem:[%s20602_s7 + $0x92c] sm:$0xf]  ;;  %v11352_v10 = vor.u32 %v13486_v23, %v11349_v28  ;;  %v12699_v23 = vld [vmem:[%s20602_s7 + $0xf30] sm:$0xf]  ;;  %v11612_v35 = vor.u32 %v13559_v34, %v11611_v3 }
 0x4d4   :  { %8227 = vmatpush.bf16.msrb.mxu3 %v12568_v50  ;;  %v11925_v63 = vld [vmem:[%s20602_s7 + $0x968] sm:$0xf0]  ;;  %v12251_v50 = vld [vmem:[%s20602_s7 + $0xbb0] sm:$0xf] }
 0x4d5   :  { %v13758_v0 = vld [vmem:[%s20602_s7 + $0xd2c] sm:$0xf]  ;;  %8190 = vmatpush.bf16.msrb.mxu0 %v10904_v57  ;;  %8203 = vmatpush.bf16.msrb.mxu1 %v11416_v58  ;;  %v11928_v12 = vor.u32 %v13630_v31, %v11925_v63  ;;  %v13431_v57 = vld [vmem:[%s20602_s7 + $0x2ec] sm:$0xf0]  ;;  %v12252_v58 = vor.u32 %v13719_v55, %v12251_v50 }
 0x4d6   :  { %v12437_v13 = vld [vmem:[%s20602_s7 + $0xd68] sm:$0xf0]  ;;  %v13831_v28 = vld [vmem:[%s20602_s7 + $0xf6c] sm:$0xf0]  ;;  %v11100_v31 = vor.u32 %v13431_v57, %v11099_v56 }
 0x4d7   :  { %v13342_v5 = vld [vmem:[%s20602_s7 + $0x2c] sm:$0xf]  ;;  %8215 = vmatpush.bf16.msrb.mxu2 %v11992_v60  ;;  %v12440_v37 = vor.u32 %v13758_v0, %v12437_v13  ;;  %v12187_v60 = vld [vmem:[%s20602_s7 + $0xb30] sm:$0xf]  ;;  %v12700_v13 = vor.u32 %v13831_v28, %v12699_v23 }
 0x4d8   :  { %v10773_v8 = vld [vmem:[%s20602_s7 + $0x68] sm:$0xf0]  ;;  %8228 = vmatpush.bf16.msrb.mxu3 %v12504_v61  ;;  %v13703_v61 = vld [vmem:[%s20602_s7 + $0xb6c] sm:$0xf0] }
 0x4d9   :  { %v13470_v19 = vld [vmem:[%s20602_s7 + $0x42c] sm:$0xf]  ;;  %8191 = vmatpush.bf16.msrb.mxu0 %v10840_v7  ;;  %8204 = vmatpush.bf16.msrb.mxu1 %v11352_v10  ;;  %v10776_v26 = vor.u32 %v13342_v5, %v10773_v8  ;;  %v13415_v63 = vld [vmem:[%s20602_s7 + $0x26c] sm:$0xf0]  ;;  %v12188_v0 = vor.u32 %v13703_v61, %v12187_v60 }
 0x4da   :  { %v11285_v11 = vld [vmem:[%s20602_s7 + $0x468] sm:$0xf0]  ;;  %v11547_v1 = vld [vmem:[%s20602_s7 + $0x630] sm:$0xf] }
 0x4db   :  { %v13614_v43 = vld [vmem:[%s20602_s7 + $0x8ac] sm:$0xf]  ;;  %v11288_v41 = vor.u32 %v13470_v19, %v11285_v11  ;;  %8216 = vmatpush.bf16.msrb.mxu2 %v11928_v12  ;;  %v13543_v5 = vld [vmem:[%s20602_s7 + $0x66c] sm:$0xf0]  ;;  %v5028_v12 = vperm.slane %v19453_v33, 7 }
 0x4dc   :  { %v11861_v17 = vld [vmem:[%s20602_s7 + $0x8e8] sm:$0xf0]  ;;  %8229 = vmatpush.bf16.msrb.mxu3 %v12440_v37  ;;  %v12123_v7 = vld [vmem:[%s20602_s7 + $0xab0] sm:$0xf]  ;;  %v11036_v37 = vor.u32 %v13415_v63, %v11035_v45  ;;  %v11548_v14 = vor.u32 %v13543_v5, %v11547_v1  ;;  %v13455_v5 = vld [vmem:[%s20602_s7 + $0x3b4] sm:$0xf] }
 0x4dd   :  { %v13742_v21 = vld [vmem:[%s20602_s7 + $0xcac] sm:$0xf]  ;;  %v11864_v49 = vor.u32 %v13614_v43, %v11861_v17  ;;  %8192 = vmatpush.bf16.msrb.mxu0 %v10776_v26  ;;  %8205 = vmatpush.bf16.msrb.mxu1 %v11288_v41  ;;  %v7986_v10 = vpop.f32.mrf.mxu0  ;;  %v7999_v8 = vpop.f32.mrf.mxu1  ;;  %v13687_v19 = vld [vmem:[%s20602_s7 + $0xaec] sm:$0xf0] }
 0x4de   :  { %v12373_v24 = vld [vmem:[%s20602_s7 + $0xce8] sm:$0xf0]  ;;  %v12635_v11 = vld [vmem:[%s20602_s7 + $0xeb0] sm:$0xf]  ;;  %v12124_v2 = vor.u32 %v13687_v19, %v12123_v7  ;;  %v7987_v40 = vadd.f32 %v7986_v10, %v5028_v12  ;;  %v11229_v7 = vld [vmem:[%s20602_s7 + $0x3f0] sm:$0xf0] }
 0x4df   :  { %v12376_v27 = vor.u32 %v13742_v21, %v12373_v24  ;;  %v13598_v54 = vld [vmem:[%s20602_s7 + $0x82c] sm:$0xf]  ;;  %8217 = vmatpush.bf16.msrb.mxu2 %v11864_v49  ;;  %v13815_v22 = vld [vmem:[%s20602_s7 + $0xeec] sm:$0xf0]  ;;  %v13583_v10 = vld [vmem:[%s20602_s7 + $0x7b4] sm:$0xf] }
 0x4e0   :  { %v11797_v46 = vld [vmem:[%s20602_s7 + $0x868] sm:$0xf0]  ;;  %8193 = vmatmul.bf16.vlgmr.msrb.gmra.mxu0 %v17775_v51  ;;  %8206 = vmatmul.bf16.vlgmr.msrb.gmra.mxu1 %v17777_v62  ;;  %v10971_v38 = vld [vmem:[%s20602_s7 + $0x1b0] sm:$0xf]  ;;  %v12636_v43 = vor.u32 %v13815_v22, %v12635_v11 }
 0x4e1   :  { %v13726_v47 = vld [vmem:[%s20602_s7 + $0xc2c] sm:$0xf]  ;;  %8237 = vmatpush.bf16.msra.mxu0 %v11228_v30  ;;  %8250 = vmatpush.bf16.msra.mxu1 %v11740_v42  ;;  %v11800_v16 = vor.u32 %v13598_v54, %v11797_v46  ;;  %v11483_v17 = vld [vmem:[%s20602_s7 + $0x5b0] sm:$0xf]  ;;  %v10972_v41 = vor.u32 %v13399_v15, %v10971_v38  ;;  %v13439_v15 = vld [vmem:[%s20602_s7 + $0x334] sm:$0xf] }
 0x4e2   :  { %v12309_v48 = vld [vmem:[%s20602_s7 + $0xc68] sm:$0xf0]  ;;  %8230 = vmatpush.bf16.msrb.mxu3 %v12376_v27  ;;  %v13527_v33 = vld [vmem:[%s20602_s7 + $0x5ec] sm:$0xf0] }
 0x4e3   :  { %v12312_v6 = vor.u32 %v13726_v47, %v12309_v48  ;;  %8218 = vmatpush.bf16.msrb.mxu2 %v11800_v16  ;;  %v12059_v25 = vld [vmem:[%s20602_s7 + $0xa30] sm:$0xf]  ;;  %v11484_v29 = vor.u32 %v13527_v33, %v11483_v17  ;;  %v11165_v17 = vld [vmem:[%s20602_s7 + $0x370] sm:$0xf0] }
 0x4e4   :  { %v13671_v21 = vld [vmem:[%s20602_s7 + $0xa6c] sm:$0xf0]  ;;  %v13567_v33 = vld [vmem:[%s20602_s7 + $0x734] sm:$0xf] }
 0x4e5   :  { %8238 = vmatpush.bf16.msra.mxu0 %v11164_v20  ;;  %8251 = vmatpush.bf16.msra.mxu1 %v11676_v53  ;;  %v12571_v24 = vld [vmem:[%s20602_s7 + $0xe30] sm:$0xf]  ;;  %v12060_v44 = vor.u32 %v13671_v21, %v12059_v25  ;;  %v7988_v39 = vpop.f32.mrf.mxu0  ;;  %v8001_v54 = vpop.f32.mrf.mxu1  ;;  %v8000_v20 = vadd.f32 %v7999_v8, %v7987_v40  ;;  %v11741_v8 = vld [vmem:[%s20602_s7 + $0x7f0] sm:$0xf0] }
 0x4e6   :  { %8231 = vmatpush.bf16.msrb.mxu3 %v12312_v6  ;;  %8219 = vmatmul.bf16.vlgmr.msrb.gmra.mxu2 %v17817_v18  ;;  %v13799_v26 = vld [vmem:[%s20602_s7 + $0xe6c] sm:$0xf0] }
 0x4e7   :  { %8263 = vmatpush.bf16.msra.mxu2 %v12252_v58  ;;  %v10907_v30 = vld [vmem:[%s20602_s7 + $0x130] sm:$0xf]  ;;  %v12572_v49 = vor.u32 %v13799_v26, %v12571_v24 }
 0x4e8   :  { %v13383_v42 = vld [vmem:[%s20602_s7 + $0x16c] sm:$0xf0] }
 0x4e9   :  { %8232 = vmatmul.bf16.vlgmr.msrb.gmra.mxu3 %v17819_v9  ;;  %8239 = vmatpush.bf16.msra.mxu0 %v11100_v31  ;;  %v11419_v27 = vld [vmem:[%s20602_s7 + $0x530] sm:$0xf]  ;;  %v10908_v50 = vor.u32 %v13383_v42, %v10907_v30  ;;  %v8012_v58 = vpop.f32.mrf.mxu2 }
 0x4ea   :  { %8276 = vmatpush.bf16.msra.mxu3 %v12764_v59  ;;  %8252 = vmatpush.bf16.msra.mxu1 %v11612_v35  ;;  %v13511_v32 = vld [vmem:[%s20602_s7 + $0x56c] sm:$0xf0]  ;;  %v8025_v59 = vpop.f32.mrf.mxu3  ;;  %v8013_v61 = vadd.f32 %v8012_v58, %v8000_v20  ;;  %v13695_v20 = vld [vmem:[%s20602_s7 + $0xb34] sm:$0xf]  ;;  %v20032_v58 = vld [vmem:[%s20605_s8 + $0x8] sm:$0xff] }
 0x4eb   :  { %8264 = vmatpush.bf16.msra.mxu2 %v12188_v0  ;;  %v11995_v36 = vld [vmem:[%s20602_s7 + $0x9b0] sm:$0xf]  ;;  %v11420_v55 = vor.u32 %v13511_v32, %v11419_v27  ;;  %v13839_v27 = vld [vmem:[%s20602_s7 + $0xfb4] sm:$0xf] }
 0x4ec   :  { %v13655_v46 = vld [vmem:[%s20602_s7 + $0x9ec] sm:$0xf0]  ;;  %v8026_v0 = vadd.f32 %v8025_v59, %v8013_v61  ;;  %v12765_v32 = vld [vmem:[%s20602_s7 + $0xff0] sm:$0xf0] }
 0x4ed   :  { %8240 = vmatpush.bf16.msra.mxu0 %v11036_v37  ;;  %v12507_v47 = vld [vmem:[%s20602_s7 + $0xdb0] sm:$0xf]  ;;  %v11996_v53 = vor.u32 %v13655_v46, %v11995_v36  ;;  %v11168_v36 = vor.u32 %v13439_v15, %v11165_v17  ;;  %v13407_v59 = vld [vmem:[%s20602_s7 + $0x234] sm:$0xf] }
 0x4ee   :  { %8277 = vmatpush.bf16.msra.mxu3 %v12700_v13  ;;  %8253 = vmatpush.bf16.msra.mxu1 %v11548_v14  ;;  %v13783_v48 = vld [vmem:[%s20602_s7 + $0xdec] sm:$0xf0]  ;;  %v8452_v22 = vmax.f32 %v8026_v0, 0.0  ;;  %v13535_v61 = vld [vmem:[%s20602_s7 + $0x634] sm:$0xf] }
 0x4ef   :  { %8265 = vmatpush.bf16.msra.mxu2 %v12124_v2  ;;  %v10843_v4 = vld [vmem:[%s20602_s7 + $0xb0] sm:$0xf]  ;;  %v12508_v16 = vor.u32 %v13783_v48, %v12507_v47  ;;  %v11232_v2 = vor.u32 %v13455_v5, %v11229_v7  ;;  %v13423_v47 = vld [vmem:[%s20602_s7 + $0x2b4] sm:$0xf] }
 0x4f0   :  { %v13367_v52 = vld [vmem:[%s20602_s7 + $0xec] sm:$0xf0]  ;;  %8468 = vst [vmem:[%s20606_s10 + $0x38] sm:$0xff] %v8452_v22  ;;  %v11101_v48 = vld [vmem:[%s20602_s7 + $0x2f0] sm:$0xf0] }
 0x4f1   :  { %8241 = vmatpush.bf16.msra.mxu0 %v10972_v41  ;;  %v11355_v6 = vld [vmem:[%s20602_s7 + $0x4b0] sm:$0xf]  ;;  %v10844_v28 = vor.u32 %v13367_v52, %v10843_v4  ;;  %v8014_v24 = vpop.f32.mrf.mxu2  ;;  %v11677_v41 = vld [vmem:[%s20602_s7 + $0x770] sm:$0xf0] }
 0x4f2   :  { %8278 = vmatpush.bf16.msra.mxu3 %v12636_v43  ;;  %8254 = vmatpush.bf16.msra.mxu1 %v11484_v29  ;;  %v13495_v56 = vld [vmem:[%s20602_s7 + $0x4ec] sm:$0xf0]  ;;  %v11744_v43 = vor.u32 %v13583_v10, %v11741_v8  ;;  %v8027_v26 = vpop.f32.mrf.mxu3  ;;  %v11680_v39 = vor.u32 %v13567_v33, %v11677_v41  ;;  %v13551_v4 = vld [vmem:[%s20602_s7 + $0x6b4] sm:$0xf] }
 0x4f3   :  { %8266 = vmatpush.bf16.msra.mxu2 %v12060_v44  ;;  %v11931_v57 = vld [vmem:[%s20602_s7 + $0x930] sm:$0xf]  ;;  %v11356_v31 = vor.u32 %v13495_v56, %v11355_v6  ;;  %v13711_v44 = vld [vmem:[%s20602_s7 + $0xbb4] sm:$0xf]  ;;  %v11104_v56 = vor.u32 %v13423_v47, %v11101_v48 }
 0x4f4   :  { %v13639_v3 = vld [vmem:[%s20602_s7 + $0x96c] sm:$0xf0]  ;;  %v11613_v52 = vld [vmem:[%s20602_s7 + $0x6f0] sm:$0xf0] }
 0x4f5   :  { %v12443_v34 = vld [vmem:[%s20602_s7 + $0xd30] sm:$0xf]  ;;  %8242 = vmatpush.bf16.msra.mxu0 %v10908_v50  ;;  %v11932_v13 = vor.u32 %v13639_v3, %v11931_v57  ;;  %v12701_v6 = vld [vmem:[%s20602_s7 + $0xf70] sm:$0xf0]  ;;  %v11616_v57 = vor.u32 %v13551_v4, %v11613_v52 }
 0x4f6   :  { %8279 = vmatpush.bf16.msra.mxu3 %v12572_v49  ;;  %v13767_v60 = vld [vmem:[%s20602_s7 + $0xd6c] sm:$0xf0]  ;;  %8255 = vmatpush.bf16.msra.mxu1 %v11420_v55  ;;  %v12253_v49 = vld [vmem:[%s20602_s7 + $0xbf0] sm:$0xf0]  ;;  %v12768_v55 = vor.u32 %v13839_v27, %v12765_v32 }
 0x4f7   :  { %v10779_v23 = vld [vmem:[%s20602_s7 + $0x30] sm:$0xf]  ;;  %8267 = vmatpush.bf16.msra.mxu2 %v11996_v53  ;;  %v12444_v1 = vor.u32 %v13767_v60, %v12443_v34  ;;  %v12256_v50 = vor.u32 %v13711_v44, %v12253_v49  ;;  %v12189_v53 = vld [vmem:[%s20602_s7 + $0xb70] sm:$0xf0] }
 0x4f8   :  { %v13351_v35 = vld [vmem:[%s20602_s7 + $0x6c] sm:$0xf0]  ;;  %v11037_v3 = vld [vmem:[%s20602_s7 + $0x270] sm:$0xf0]  ;;  %v12192_v34 = vor.u32 %v13695_v20, %v12189_v53 }
 0x4f9   :  { %v11291_v45 = vld [vmem:[%s20602_s7 + $0x430] sm:$0xf]  ;;  %8243 = vmatpush.bf16.msra.mxu0 %v10844_v28  ;;  %v10780_v14 = vor.u32 %v13351_v35, %v10779_v23  ;;  %v11549_v23 = vld [vmem:[%s20602_s7 + $0x670] sm:$0xf0] }
 0x4fa   :  { %v13479_v63 = vld [vmem:[%s20602_s7 + $0x46c] sm:$0xf0]  ;;  %8280 = vmatpush.bf16.msra.mxu3 %v12508_v16  ;;  %8256 = vmatpush.bf16.msra.mxu1 %v11356_v31  ;;  %v13823_v16 = vld [vmem:[%s20602_s7 + $0xf34] sm:$0xf]  ;;  %v11552_v5 = vor.u32 %v13535_v61, %v11549_v23 }
 0x4fb   :  { %v11867_v19 = vld [vmem:[%s20602_s7 + $0x8b0] sm:$0xf]  ;;  %v11292_v38 = vor.u32 %v13479_v63, %v11291_v45  ;;  %8268 = vmatpush.bf16.msra.mxu2 %v11932_v13  ;;  %v12704_v60 = vor.u32 %v13823_v16, %v12701_v6  ;;  %v13679_v28 = vld [vmem:[%s20602_s7 + $0xab4] sm:$0xf]  ;;  %v5029_v13 = vperm.slane %v20032_v58, 0 }
 0x4fc   :  { %v13623_v11 = vld [vmem:[%s20602_s7 + $0x8ec] sm:$0xf0]  ;;  %v12125_v45 = vld [vmem:[%s20602_s7 + $0xaf0] sm:$0xf0] }
 0x4fd   :  { %v12379_v12 = vld [vmem:[%s20602_s7 + $0xcb0] sm:$0xf]  ;;  %v11868_v25 = vor.u32 %v13623_v11, %v11867_v19  ;;  %8244 = vmatpush.bf16.msra.mxu0 %v10780_v14  ;;  %v8038_v31 = vpop.f32.mrf.mxu0  ;;  %v8051_v35 = vpop.f32.mrf.mxu1  ;;  %v13807_v63 = vld [vmem:[%s20602_s7 + $0xeb4] sm:$0xf]  ;;  %v12128_v8 = vor.u32 %v13679_v28, %v12125_v45  ;;  %v11235_v28 = vld [vmem:[%s20602_s7 + $0x3b8] sm:$0xf] }
 0x4fe   :  { %v13751_v37 = vld [vmem:[%s20602_s7 + $0xcec] sm:$0xf0]  ;;  %8281 = vmatpush.bf16.msra.mxu3 %v12444_v1  ;;  %8257 = vmatpush.bf16.msra.mxu1 %v11292_v38  ;;  %v12637_v0 = vld [vmem:[%s20602_s7 + $0xef0] sm:$0xf0]  ;;  %v11040_v1 = vor.u32 %v13407_v59, %v11037_v3  ;;  %v8039_v33 = vadd.f32 %v8038_v31, %v5029_v13  ;;  %v13464_v31 = vld [vmem:[%s20602_s7 + $0x3f4] sm:$0xf0] }
 0x4ff   :  { %v12380_v21 = vor.u32 %v13751_v37, %v12379_v12  ;;  %v11803_v29 = vld [vmem:[%s20602_s7 + $0x830] sm:$0xf]  ;;  %8269 = vmatpush.bf16.msra.mxu2 %v11868_v25  ;;  %v13391_v7 = vld [vmem:[%s20602_s7 + $0x1b4] sm:$0xf]  ;;  %v12640_v19 = vor.u32 %v13807_v63, %v12637_v0  ;;  %v13592_v45 = vld [vmem:[%s20602_s7 + $0x7f4] sm:$0xf0] }
 0x500   :  { %v13607_v30 = vld [vmem:[%s20602_s7 + $0x86c] sm:$0xf0]  ;;  %8245 = vmatmul.bf16.vlgmr.msra.gmra.mxu0 %v17775_v51  ;;  %v10973_v10 = vld [vmem:[%s20602_s7 + $0x1f0] sm:$0xf0] }
 0x501   :  { %v12315_v42 = vld [vmem:[%s20602_s7 + $0xc30] sm:$0xf]  ;;  %8289 = vmatpush.bf16.msrb.mxu0 %v11232_v2  ;;  %v11804_v54 = vor.u32 %v13607_v30, %v11803_v29  ;;  %8258 = vmatmul.bf16.vlgmr.msra.gmra.mxu1 %v17777_v62  ;;  %v13519_v11 = vld [vmem:[%s20602_s7 + $0x5b4] sm:$0xf]  ;;  %v10976_v15 = vor.u32 %v13391_v7, %v10973_v10 }
 0x502   :  { %v13735_v40 = vld [vmem:[%s20602_s7 + $0xc6c] sm:$0xf0]  ;;  %8302 = vmatpush.bf16.msrb.mxu1 %v11744_v43  ;;  %8282 = vmatpush.bf16.msra.mxu3 %v12380_v21  ;;  %v11485_v22 = vld [vmem:[%s20602_s7 + $0x5f0] sm:$0xf0] }
 0x503   :  { %v12316_v46 = vor.u32 %v13735_v40, %v12315_v42  ;;  %8270 = vmatpush.bf16.msra.mxu2 %v11804_v54  ;;  %v13663_v12 = vld [vmem:[%s20602_s7 + $0xa34] sm:$0xf]  ;;  %v11488_v2 = vor.u32 %v13519_v11, %v11485_v22  ;;  %v13448_v22 = vld [vmem:[%s20602_s7 + $0x374] sm:$0xf0] }
 0x504   :  { %v12061_v37 = vld [vmem:[%s20602_s7 + $0xa70] sm:$0xf0] }
 0x505   :  { %8290 = vmatpush.bf16.msrb.mxu0 %v11168_v36  ;;  %v13791_v14 = vld [vmem:[%s20602_s7 + $0xe34] sm:$0xf]  ;;  %v12064_v25 = vor.u32 %v13663_v12, %v12061_v37  ;;  %v8040_v29 = vpop.f32.mrf.mxu0  ;;  %v8053_v30 = vpop.f32.mrf.mxu1  ;;  %v11683_v12 = vld [vmem:[%s20602_s7 + $0x738] sm:$0xf] }
 0x506   :  { %8303 = vmatpush.bf16.msrb.mxu1 %v11680_v39  ;;  %8283 = vmatpush.bf16.msra.mxu3 %v12316_v46  ;;  %v12573_v38 = vld [vmem:[%s20602_s7 + $0xe70] sm:$0xf0]  ;;  %v8052_v39 = vadd.f32 %v8051_v35, %v8039_v33  ;;  %v11747_v35 = vld [vmem:[%s20602_s7 + $0x7b8] sm:$0xf] }
 0x507   :  { %8315 = vmatpush.bf16.msrb.mxu2 %v12256_v50  ;;  %v13375_v43 = vld [vmem:[%s20602_s7 + $0x134] sm:$0xf]  ;;  %v12576_v21 = vor.u32 %v13791_v14, %v12573_v38  ;;  %v11748_v11 = vor.u32 %v13592_v45, %v11747_v35  ;;  %v13400_v35 = vld [vmem:[%s20602_s7 + $0x1f4] sm:$0xf0] }
 0x508   :  { %8271 = vmatmul.bf16.vlgmr.msra.gmra.mxu2 %v17817_v18  ;;  %v10909_v17 = vld [vmem:[%s20602_s7 + $0x170] sm:$0xf0] }
 0x509   :  { %8284 = vmatmul.bf16.vlgmr.msra.gmra.mxu3 %v17819_v9  ;;  %8291 = vmatpush.bf16.msrb.mxu0 %v11104_v56  ;;  %v13503_v24 = vld [vmem:[%s20602_s7 + $0x534] sm:$0xf]  ;;  %v10912_v49 = vor.u32 %v13375_v43, %v10909_v17  ;;  %v8077_v4 = vpop.f32.mrf.mxu3 }
 0x50a   :  { %8328 = vmatpush.bf16.msrb.mxu3 %v12768_v55  ;;  %8304 = vmatpush.bf16.msrb.mxu1 %v11616_v57  ;;  %v11421_v26 = vld [vmem:[%s20602_s7 + $0x570] sm:$0xf0]  ;;  %v8064_v55 = vpop.f32.mrf.mxu2 }
 0x50b   :  { %8316 = vmatpush.bf16.msrb.mxu2 %v12192_v34  ;;  %v13647_v41 = vld [vmem:[%s20602_s7 + $0x9b4] sm:$0xf]  ;;  %v11424_v27 = vor.u32 %v13503_v24, %v11421_v26  ;;  %v8065_v16 = vadd.f32 %v8064_v55, %v8052_v39  ;;  %v13720_v24 = vld [vmem:[%s20602_s7 + $0xbf4] sm:$0xf0] }
 0x50c   :  { %v11997_v42 = vld [vmem:[%s20602_s7 + $0x9f0] sm:$0xf0]  ;;  %v12771_v26 = vld [vmem:[%s20602_s7 + $0xfb8] sm:$0xf] }
 0x50d   :  { %8292 = vmatpush.bf16.msrb.mxu0 %v11040_v1  ;;  %v13775_v40 = vld [vmem:[%s20602_s7 + $0xdb4] sm:$0xf]  ;;  %v12000_v54 = vor.u32 %v13647_v41, %v11997_v42  ;;  %v13848_v41 = vld [vmem:[%s20602_s7 + $0xff4] sm:$0xf0] }
 0x50e   :  { %8329 = vmatpush.bf16.msrb.mxu3 %v12704_v60  ;;  %8305 = vmatpush.bf16.msrb.mxu1 %v11552_v5  ;;  %v12509_v44 = vld [vmem:[%s20602_s7 + $0xdf0] sm:$0xf0]  ;;  %v8078_v60 = vadd.f32 %v8077_v4, %v8065_v16  ;;  %v13560_v39 = vld [vmem:[%s20602_s7 + $0x6f4] sm:$0xf0] }
 0x50f   :  { %8317 = vmatpush.bf16.msrb.mxu2 %v12128_v8  ;;  %v13359_v32 = vld [vmem:[%s20602_s7 + $0xb4] sm:$0xf]  ;;  %v12512_v46 = vor.u32 %v13775_v40, %v12509_v44  ;;  %v11171_v8 = vld [vmem:[%s20602_s7 + $0x338] sm:$0xf] }
 0x510   :  { %v10845_v36 = vld [vmem:[%s20602_s7 + $0xf0] sm:$0xf0]  ;;  %v8453_v13 = vmax.f32 %v8078_v60, 0.0  ;;  %v11172_v29 = vor.u32 %v13448_v22, %v11171_v8  ;;  %v11107_v44 = vld [vmem:[%s20602_s7 + $0x2b8] sm:$0xf] }
 0x511   :  { %8293 = vmatpush.bf16.msrb.mxu0 %v10976_v15  ;;  %v13487_v47 = vld [vmem:[%s20602_s7 + $0x4b4] sm:$0xf]  ;;  %v10848_v56 = vor.u32 %v13359_v32, %v10845_v36  ;;  %v8079_v15 = vpop.f32.mrf.mxu3  ;;  %v12772_v32 = vor.u32 %v13848_v41, %v12771_v26  ;;  %v11619_v36 = vld [vmem:[%s20602_s7 + $0x6b8] sm:$0xf] }
 0x512   :  { %8330 = vmatpush.bf16.msrb.mxu3 %v12640_v19  ;;  %8306 = vmatpush.bf16.msrb.mxu1 %v11488_v2  ;;  %v11357_v48 = vld [vmem:[%s20602_s7 + $0x4f0] sm:$0xf0]  ;;  %8469 = vst [vmem:[%s20606_s10 + $0x40] sm:$0xff] %v8453_v13  ;;  %v11236_v19 = vor.u32 %v13464_v31, %v11235_v28  ;;  %v8066_v38 = vpop.f32.mrf.mxu2  ;;  %v13576_v2 = vld [vmem:[%s20602_s7 + $0x774] sm:$0xf0]  ;;  %v11620_v55 = vor.u32 %v13560_v39, %v11619_v36 }
 0x513   :  { %8318 = vmatpush.bf16.msrb.mxu2 %v12064_v25  ;;  %v13631_v50 = vld [vmem:[%s20602_s7 + $0x934] sm:$0xf]  ;;  %v11360_v57 = vor.u32 %v13487_v47, %v11357_v48  ;;  %v11684_v30 = vor.u32 %v13576_v2, %v11683_v12  ;;  %v12707_v47 = vld [vmem:[%s20602_s7 + $0xf38] sm:$0xf] }
 0x514   :  { %v11933_v52 = vld [vmem:[%s20602_s7 + $0x970] sm:$0xf0]  ;;  %v13832_v48 = vld [vmem:[%s20602_s7 + $0xf74] sm:$0xf0] }
 0x515   :  { %v13759_v20 = vld [vmem:[%s20602_s7 + $0xd34] sm:$0xf]  ;;  %8294 = vmatpush.bf16.msrb.mxu0 %v10912_v49  ;;  %v11936_v61 = vor.u32 %v13631_v50, %v11933_v52  ;;  %v13432_v49 = vld [vmem:[%s20602_s7 + $0x2f4] sm:$0xf0] }
 0x516   :  { %8331 = vmatpush.bf16.msrb.mxu3 %v12576_v21  ;;  %v12445_v53 = vld [vmem:[%s20602_s7 + $0xd70] sm:$0xf0]  ;;  %8307 = vmatpush.bf16.msrb.mxu1 %v11424_v27  ;;  %v12259_v21 = vld [vmem:[%s20602_s7 + $0xbb8] sm:$0xf]  ;;  %v11108_v50 = vor.u32 %v13432_v49, %v11107_v44 }
 0x517   :  { %v13343_v6 = vld [vmem:[%s20602_s7 + $0x34] sm:$0xf]  ;;  %8319 = vmatpush.bf16.msrb.mxu2 %v12000_v54  ;;  %v12448_v23 = vor.u32 %v13759_v20, %v12445_v53  ;;  %v12260_v27 = vor.u32 %v13720_v24, %v12259_v21  ;;  %v12195_v54 = vld [vmem:[%s20602_s7 + $0xb38] sm:$0xf]  ;;  %v12708_v53 = vor.u32 %v13832_v48, %v12707_v47 }
 0x518   :  { %v10781_v59 = vld [vmem:[%s20602_s7 + $0x70] sm:$0xf0]  ;;  %v11043_v4 = vld [vmem:[%s20602_s7 + $0x238] sm:$0xf] }
 0x519   :  { %v13471_v3 = vld [vmem:[%s20602_s7 + $0x434] sm:$0xf]  ;;  %8295 = vmatpush.bf16.msrb.mxu0 %v10848_v56  ;;  %v10784_v7 = vor.u32 %v13343_v6, %v10781_v59  ;;  %v13416_v52 = vld [vmem:[%s20602_s7 + $0x274] sm:$0xf0] }
 0x51a   :  { %v11293_v34 = vld [vmem:[%s20602_s7 + $0x470] sm:$0xf0]  ;;  %8332 = vmatpush.bf16.msrb.mxu3 %v12512_v46  ;;  %8308 = vmatpush.bf16.msrb.mxu1 %v11360_v57  ;;  %v13704_v46 = vld [vmem:[%s20602_s7 + $0xb74] sm:$0xf0] }
 0x51b   :  { %v13615_v63 = vld [vmem:[%s20602_s7 + $0x8b4] sm:$0xf]  ;;  %v11296_v10 = vor.u32 %v13471_v3, %v11293_v34  ;;  %8320 = vmatpush.bf16.msrb.mxu2 %v11936_v61  ;;  %v12196_v20 = vor.u32 %v13704_v46, %v12195_v54  ;;  %v11555_v16 = vld [vmem:[%s20602_s7 + $0x638] sm:$0xf]  ;;  %v5030_v61 = vperm.slane %v20032_v58, 1 }
 0x51c   :  { %v11869_v0 = vld [vmem:[%s20602_s7 + $0x8f0] sm:$0xf0]  ;;  %v13544_v6 = vld [vmem:[%s20602_s7 + $0x674] sm:$0xf0] }
 0x51d   :  { %v13743_v1 = vld [vmem:[%s20602_s7 + $0xcb4] sm:$0xf]  ;;  %v11872_v37 = vor.u32 %v13615_v63, %v11869_v0  ;;  %8296 = vmatpush.bf16.msrb.mxu0 %v10784_v7  ;;  %v12131_v56 = vld [vmem:[%s20602_s7 + $0xab8] sm:$0xf]  ;;  %v8090_v57 = vpop.f32.mrf.mxu0  ;;  %v8103_v59 = vpop.f32.mrf.mxu1  ;;  %v11556_v28 = vor.u32 %v13544_v6, %v11555_v16 }
 0x51e   :  { %v12381_v5 = vld [vmem:[%s20602_s7 + $0xcf0] sm:$0xf0]  ;;  %8333 = vmatpush.bf16.msrb.mxu3 %v12448_v23  ;;  %8309 = vmatpush.bf16.msrb.mxu1 %v11296_v10  ;;  %v13688_v3 = vld [vmem:[%s20602_s7 + $0xaf4] sm:$0xf0]  ;;  %v11044_v23 = vor.u32 %v13416_v52, %v11043_v4  ;;  %v8091_v12 = vadd.f32 %v8090_v57, %v5030_v61  ;;  %v11237_v57 = vld [vmem:[%s20602_s7 + $0x3f8] sm:$0xf0] }
 0x51f   :  { %v12384_v14 = vor.u32 %v13743_v1, %v12381_v5  ;;  %v13599_v43 = vld [vmem:[%s20602_s7 + $0x834] sm:$0xf]  ;;  %8321 = vmatpush.bf16.msrb.mxu2 %v11872_v37  ;;  %v12643_v34 = vld [vmem:[%s20602_s7 + $0xeb8] sm:$0xf]  ;;  %v12132_v45 = vor.u32 %v13688_v3, %v12131_v56  ;;  %v13456_v56 = vld [vmem:[%s20602_s7 + $0x3bc] sm:$0xf] }
 0x520   :  { %v11805_v17 = vld [vmem:[%s20602_s7 + $0x870] sm:$0xf0]  ;;  %8297 = vmatmul.bf16.vlgmr.msrb.gmra.mxu0 %v17775_v51  ;;  %v13816_v60 = vld [vmem:[%s20602_s7 + $0xef4] sm:$0xf0]  ;;  %v11749_v3 = vld [vmem:[%s20602_s7 + $0x7f8] sm:$0xf0] }
 0x521   :  { %v13727_v33 = vld [vmem:[%s20602_s7 + $0xc34] sm:$0xf]  ;;  %8341 = vmatpush.bf16.msra.mxu0 %v11236_v19  ;;  %v11808_v42 = vor.u32 %v13599_v43, %v11805_v17  ;;  %8310 = vmatmul.bf16.vlgmr.msrb.gmra.mxu1 %v17777_v62  ;;  %v10979_v31 = vld [vmem:[%s20602_s7 + $0x1b8] sm:$0xf]  ;;  %v12644_v63 = vor.u32 %v13816_v60, %v12643_v34 }
 0x522   :  { %v12317_v25 = vld [vmem:[%s20602_s7 + $0xc70] sm:$0xf0]  ;;  %8354 = vmatpush.bf16.msra.mxu1 %v11748_v11  ;;  %8334 = vmatpush.bf16.msrb.mxu3 %v12384_v14  ;;  %v11491_v0 = vld [vmem:[%s20602_s7 + $0x5b8] sm:$0xf]  ;;  %v10980_v8 = vor.u32 %v13400_v35, %v10979_v31 }
 0x523   :  { %v12320_v40 = vor.u32 %v13727_v33, %v12317_v25  ;;  %8322 = vmatpush.bf16.msrb.mxu2 %v11808_v42  ;;  %v13528_v13 = vld [vmem:[%s20602_s7 + $0x5f4] sm:$0xf0] }
 0x524   :  { %v12067_v1 = vld [vmem:[%s20602_s7 + $0xa38] sm:$0xf]  ;;  %v11492_v19 = vor.u32 %v13528_v13, %v11491_v0  ;;  %v11173_v13 = vld [vmem:[%s20602_s7 + $0x378] sm:$0xf0] }
 0x525   :  { %8342 = vmatpush.bf16.msra.mxu0 %v11172_v29  ;;  %v13672_v5 = vld [vmem:[%s20602_s7 + $0xa74] sm:$0xf0]  ;;  %v8092_v43 = vpop.f32.mrf.mxu0  ;;  %v8105_v17 = vpop.f32.mrf.mxu1 }
 0x526   :  { %8355 = vmatpush.bf16.msra.mxu1 %v11684_v30  ;;  %8335 = vmatpush.bf16.msrb.mxu3 %v12320_v40  ;;  %v12579_v7 = vld [vmem:[%s20602_s7 + $0xe38] sm:$0xf]  ;;  %v12068_v37 = vor.u32 %v13672_v5, %v12067_v1  ;;  %v8104_v30 = vadd.f32 %v8103_v59, %v8091_v12  ;;  %v13584_v59 = vld [vmem:[%s20602_s7 + $0x7bc] sm:$0xf] }
 0x527   :  { %8367 = vmatpush.bf16.msra.mxu2 %v12260_v27  ;;  %v13800_v10 = vld [vmem:[%s20602_s7 + $0xe74] sm:$0xf0]  ;;  %v11752_v0 = vor.u32 %v13584_v59, %v11749_v3  ;;  %v13568_v1 = vld [vmem:[%s20602_s7 + $0x73c] sm:$0xf] }
 0x528   :  { %8323 = vmatmul.bf16.vlgmr.msrb.gmra.mxu2 %v17817_v18  ;;  %v10915_v11 = vld [vmem:[%s20602_s7 + $0x138] sm:$0xf]  ;;  %v12580_v14 = vor.u32 %v13800_v10, %v12579_v7  ;;  %v10981_v59 = vld [vmem:[%s20602_s7 + $0x1f8] sm:$0xf0] }
 0x529   :  { %8336 = vmatmul.bf16.vlgmr.msrb.gmra.mxu3 %v17819_v9  ;;  %8343 = vmatpush.bf16.msra.mxu0 %v11108_v50  ;;  %v13384_v22 = vld [vmem:[%s20602_s7 + $0x174] sm:$0xf0]  ;;  %v8129_v36 = vpop.f32.mrf.mxu3 }
 0x52a   :  { %8380 = vmatpush.bf16.msra.mxu3 %v12772_v32  ;;  %8356 = vmatpush.bf16.msra.mxu1 %v11620_v55  ;;  %v11427_v38 = vld [vmem:[%s20602_s7 + $0x538] sm:$0xf]  ;;  %v10916_v24 = vor.u32 %v13384_v22, %v10915_v11  ;;  %v8116_v32 = vpop.f32.mrf.mxu2 }
 0x52b   :  { %8368 = vmatpush.bf16.msra.mxu2 %v12196_v20  ;;  %v13512_v15 = vld [vmem:[%s20602_s7 + $0x574] sm:$0xf0]  ;;  %v8117_v47 = vadd.f32 %v8116_v32, %v8104_v30  ;;  %v11621_v30 = vld [vmem:[%s20602_s7 + $0x6f8] sm:$0xf0] }
 0x52c   :  { %v12003_v2 = vld [vmem:[%s20602_s7 + $0x9b8] sm:$0xf]  ;;  %v11428_v26 = vor.u32 %v13512_v15, %v11427_v38  ;;  %v12261_v38 = vld [vmem:[%s20602_s7 + $0xbf8] sm:$0xf0] }
 0x52d   :  { %8344 = vmatpush.bf16.msra.mxu0 %v11044_v23  ;;  %v13656_v33 = vld [vmem:[%s20602_s7 + $0x9f4] sm:$0xf0]  ;;  %v13840_v15 = vld [vmem:[%s20602_s7 + $0xfbc] sm:$0xf] }
 0x52e   :  { %8381 = vmatpush.bf16.msra.mxu3 %v12708_v53  ;;  %8357 = vmatpush.bf16.msra.mxu1 %v11556_v28  ;;  %v12515_v25 = vld [vmem:[%s20602_s7 + $0xdb8] sm:$0xf]  ;;  %v12004_v42 = vor.u32 %v13656_v33, %v12003_v2  ;;  %v8130_v53 = vadd.f32 %v8129_v36, %v8117_v47  ;;  %v12773_v2 = vld [vmem:[%s20602_s7 + $0xff8] sm:$0xf0] }
 0x52f   :  { %8369 = vmatpush.bf16.msra.mxu2 %v12132_v45  ;;  %v13784_v21 = vld [vmem:[%s20602_s7 + $0xdf4] sm:$0xf0]  ;;  %v13440_v45 = vld [vmem:[%s20602_s7 + $0x33c] sm:$0xf] }
 0x530   :  { %v10851_v41 = vld [vmem:[%s20602_s7 + $0xb8] sm:$0xf]  ;;  %v12516_v40 = vor.u32 %v13784_v21, %v12515_v25  ;;  %v8454_v61 = vmax.f32 %v8130_v53, 0.0  ;;  %v11176_v43 = vor.u32 %v13440_v45, %v11173_v13  ;;  %v13424_v21 = vld [vmem:[%s20602_s7 + $0x2bc] sm:$0xf] }
 0x531   :  { %8345 = vmatpush.bf16.msra.mxu0 %v10980_v8  ;;  %v13368_v29 = vld [vmem:[%s20602_s7 + $0xf4] sm:$0xf0]  ;;  %v8131_v8 = vpop.f32.mrf.mxu3  ;;  %v13408_v36 = vld [vmem:[%s20602_s7 + $0x23c] sm:$0xf] }
 0x532   :  { %8382 = vmatpush.bf16.msra.mxu3 %v12644_v63  ;;  %8358 = vmatpush.bf16.msra.mxu1 %v11492_v19  ;;  %v11363_v44 = vld [vmem:[%s20602_s7 + $0x4b8] sm:$0xf]  ;;  %v10852_v50 = vor.u32 %v13368_v29, %v10851_v41  ;;  %8470 = vst [vmem:[%s20606_s10 + $0x48] sm:$0xff] %v8454_v61  ;;  %v11240_v63 = vor.u32 %v13456_v56, %v11237_v57  ;;  %v8118_v10 = vpop.f32.mrf.mxu2  ;;  %v11685_v19 = vld [vmem:[%s20602_s7 + $0x778] sm:$0xf0] }
 0x533   :  { %8370 = vmatpush.bf16.msra.mxu2 %v12068_v37  ;;  %v13496_v49 = vld [vmem:[%s20602_s7 + $0x4f4] sm:$0xf0]  ;;  %v11688_v17 = vor.u32 %v13568_v1, %v11685_v19  ;;  %v12776_v41 = vor.u32 %v13840_v15, %v12773_v2  ;;  %v13552_v29 = vld [vmem:[%s20602_s7 + $0x6bc] sm:$0xf] }
 0x534   :  { %v11939_v27 = vld [vmem:[%s20602_s7 + $0x938] sm:$0xf]  ;;  %v11364_v55 = vor.u32 %v13496_v49, %v11363_v44  ;;  %v13824_v44 = vld [vmem:[%s20602_s7 + $0xf3c] sm:$0xf]  ;;  %v11624_v32 = vor.u32 %v13552_v29, %v11621_v30 }
 0x535   :  { %v13640_v39 = vld [vmem:[%s20602_s7 + $0x974] sm:$0xf0]  ;;  %8346 = vmatpush.bf16.msra.mxu0 %v10916_v24  ;;  %v11109_v24 = vld [vmem:[%s20602_s7 + $0x2f8] sm:$0xf0] }
 0x536   :  { %8383 = vmatpush.bf16.msra.mxu3 %v12580_v14  ;;  %v12451_v54 = vld [vmem:[%s20602_s7 + $0xd38] sm:$0xf]  ;;  %8359 = vmatpush.bf16.msra.mxu1 %v11428_v26  ;;  %v11940_v16 = vor.u32 %v13640_v39, %v11939_v27  ;;  %v13712_v14 = vld [vmem:[%s20602_s7 + $0xbbc] sm:$0xf]  ;;  %v11112_v27 = vor.u32 %v13424_v21, %v11109_v24 }
 0x537   :  { %v13768_v46 = vld [vmem:[%s20602_s7 + $0xd74] sm:$0xf0]  ;;  %8371 = vmatpush.bf16.msra.mxu2 %v12004_v42  ;;  %v12264_v26 = vor.u32 %v13712_v14, %v12261_v38  ;;  %v13696_v42 = vld [vmem:[%s20602_s7 + $0xb3c] sm:$0xf] }
 0x538   :  { %v10787_v48 = vld [vmem:[%s20602_s7 + $0x38] sm:$0xf]  ;;  %v12452_v6 = vor.u32 %v13768_v46, %v12451_v54  ;;  %v12709_v49 = vld [vmem:[%s20602_s7 + $0xf78] sm:$0xf0] }
 0x539   :  { %v13352_v4 = vld [vmem:[%s20602_s7 + $0x74] sm:$0xf0]  ;;  %8347 = vmatpush.bf16.msra.mxu0 %v10852_v50  ;;  %v11045_v39 = vld [vmem:[%s20602_s7 + $0x278] sm:$0xf0]  ;;  %v12712_v46 = vor.u32 %v13824_v44, %v12709_v49 }
 0x53a   :  { %v11299_v52 = vld [vmem:[%s20602_s7 + $0x438] sm:$0xf]  ;;  %8384 = vmatpush.bf16.msra.mxu3 %v12516_v40  ;;  %8360 = vmatpush.bf16.msra.mxu1 %v11364_v55  ;;  %v10788_v31 = vor.u32 %v13352_v4, %v10787_v48  ;;  %v12197_v40 = vld [vmem:[%s20602_s7 + $0xb78] sm:$0xf0] }
 0x53b   :  { %v13480_v20 = vld [vmem:[%s20602_s7 + $0x474] sm:$0xf0]  ;;  %8372 = vmatpush.bf16.msra.mxu2 %v11940_v16  ;;  %v12200_v54 = vor.u32 %v13696_v42, %v12197_v40  ;;  %v13536_v47 = vld [vmem:[%s20602_s7 + $0x63c] sm:$0xf]  ;;  %v5031_v16 = vperm.slane %v20032_v58, 2 }
 0x53c   :  { %v11875_v34 = vld [vmem:[%s20602_s7 + $0x8b8] sm:$0xf]  ;;  %v11300_v35 = vor.u32 %v13480_v20, %v11299_v52  ;;  %v11557_v48 = vld [vmem:[%s20602_s7 + $0x678] sm:$0xf0] }
 0x53d   :  { %v13624_v60 = vld [vmem:[%s20602_s7 + $0x8f4] sm:$0xf0]  ;;  %8348 = vmatpush.bf16.msra.mxu0 %v10788_v31  ;;  %v13680_v50 = vld [vmem:[%s20602_s7 + $0xabc] sm:$0xf]  ;;  %v8142_v55 = vpop.f32.mrf.mxu0  ;;  %v11560_v56 = vor.u32 %v13536_v47, %v11557_v48 }
 0x53e   :  { %v12387_v23 = vld [vmem:[%s20602_s7 + $0xcb8] sm:$0xf]  ;;  %8385 = vmatpush.bf16.msra.mxu3 %v12452_v6  ;;  %v11876_v5 = vor.u32 %v13624_v60, %v11875_v34  ;;  %8361 = vmatpush.bf16.msra.mxu1 %v11300_v35  ;;  %v12133_v52 = vld [vmem:[%s20602_s7 + $0xaf8] sm:$0xf0]  ;;  %v11048_v6 = vor.u32 %v13408_v36, %v11045_v39  ;;  %v8143_v1 = vadd.f32 %v8142_v55, %v5031_v16 }
 0x53f   :  { %v13752_v28 = vld [vmem:[%s20602_s7 + $0xcf4] sm:$0xf0]  ;;  %v8155_v4 = vpop.f32.mrf.mxu1  ;;  %v13808_v20 = vld [vmem:[%s20602_s7 + $0xebc] sm:$0xf]  ;;  %v12136_v3 = vor.u32 %v13680_v50, %v12133_v52 }
 0x540   :  { %v12388_v7 = vor.u32 %v13752_v28, %v12387_v23  ;;  %v11811_v11 = vld [vmem:[%s20602_s7 + $0x838] sm:$0xf]  ;;  %8373 = vmatpush.bf16.msra.mxu2 %v11876_v5  ;;  %8349 = vmatmul.bf16.vlgmr.msra.gmra.mxu0 %v17775_v51  ;;  %v12645_v53 = vld [vmem:[%s20602_s7 + $0xef8] sm:$0xf0] }
 0x541   :  { %v13608_v22 = vld [vmem:[%s20602_s7 + $0x874] sm:$0xf0]  ;;  %8393 = vmatpush.bf16.msrb.mxu0 %v11240_v63  ;;  %8362 = vmatmul.bf16.vlgmr.msra.gmra.mxu1 %v17777_v62  ;;  %v13392_v57 = vld [vmem:[%s20602_s7 + $0x1bc] sm:$0xf]  ;;  %v12648_v34 = vor.u32 %v13808_v20, %v12645_v53 }
 0x542   :  { %v12323_v12 = vld [vmem:[%s20602_s7 + $0xc38] sm:$0xf]  ;;  %8406 = vmatpush.bf16.msrb.mxu1 %v11752_v0  ;;  %8386 = vmatpush.bf16.msra.mxu3 %v12388_v7  ;;  %v11812_v33 = vor.u32 %v13608_v22, %v11811_v11  ;;  %v13520_v60 = vld [vmem:[%s20602_s7 + $0x5bc] sm:$0xf]  ;;  %v10984_v45 = vor.u32 %v13392_v57, %v10981_v59 }
 0x543   :  { %v13736_v37 = vld [vmem:[%s20602_s7 + $0xc74] sm:$0xf0]  ;;  %v11493_v61 = vld [vmem:[%s20602_s7 + $0x5f8] sm:$0xf0] }
 0x544   :  { %v12324_v25 = vor.u32 %v13736_v37, %v12323_v12  ;;  %8374 = vmatpush.bf16.msra.mxu2 %v11812_v33  ;;  %v13664_v23 = vld [vmem:[%s20602_s7 + $0xa3c] sm:$0xf]  ;;  %v11496_v63 = vor.u32 %v13520_v60, %v11493_v61 }
 0x545   :  { %8394 = vmatpush.bf16.msrb.mxu0 %v11176_v43  ;;  %v12069_v28 = vld [vmem:[%s20602_s7 + $0xa78] sm:$0xf0]  ;;  %v8144_v11 = vpop.f32.mrf.mxu0 }
 0x546   :  { %8407 = vmatpush.bf16.msrb.mxu1 %v11688_v17  ;;  %8387 = vmatpush.bf16.msra.mxu3 %v12324_v25  ;;  %v13792_v31 = vld [vmem:[%s20602_s7 + $0xe3c] sm:$0xf]  ;;  %v12072_v5 = vor.u32 %v13664_v23, %v12069_v28  ;;  %v8156_v17 = vadd.f32 %v8155_v4, %v8143_v1  ;;  %v5033_v11 = vperm.slane %v20032_v58, 4 }
 0x547   :  { %8375 = vmatmul.bf16.vlgmr.msra.gmra.mxu2 %v17817_v18  ;;  %v12581_v35 = vld [vmem:[%s20602_s7 + $0xe78] sm:$0xf0]  ;;  %v8157_v22 = vpop.f32.mrf.mxu1 }
 0x548   :  { %8419 = vmatpush.bf16.msrb.mxu2 %v12264_v26  ;;  %v13376_v0 = vld [vmem:[%s20602_s7 + $0x13c] sm:$0xf]  ;;  %v12584_v7 = vor.u32 %v13792_v31, %v12581_v35 }
 0x549   :  { %8388 = vmatmul.bf16.vlgmr.msra.gmra.mxu3 %v17819_v9  ;;  %8395 = vmatpush.bf16.msrb.mxu0 %v11112_v27  ;;  %v10917_v13 = vld [vmem:[%s20602_s7 + $0x178] sm:$0xf0] }
 0x54a   :  { %8432 = vmatpush.bf16.msrb.mxu3 %v12776_v41  ;;  %8408 = vmatpush.bf16.msrb.mxu1 %v11624_v32  ;;  %v13504_v10 = vld [vmem:[%s20602_s7 + $0x53c] sm:$0xf]  ;;  %v10920_v38 = vor.u32 %v13376_v0, %v10917_v13  ;;  %v8168_v41 = vpop.f32.mrf.mxu2  ;;  %v8181_v29 = vpop.f32.mrf.mxu3 }
 0x54b   :  { %v11429_v8 = vld [vmem:[%s20602_s7 + $0x578] sm:$0xf0]  ;;  %v8169_v44 = vadd.f32 %v8168_v41, %v8156_v17 }
 0x54c   :  { %8420 = vmatpush.bf16.msrb.mxu2 %v12200_v54  ;;  %v13648_v19 = vld [vmem:[%s20602_s7 + $0x9bc] sm:$0xf]  ;;  %v11432_v15 = vor.u32 %v13504_v10, %v11429_v8 }
 0x54d   :  { %8396 = vmatpush.bf16.msrb.mxu0 %v11048_v6  ;;  %v12005_v12 = vld [vmem:[%s20602_s7 + $0x9f8] sm:$0xf0]  ;;  %v8182_v39 = vadd.f32 %v8181_v29, %v8169_v44 }
 0x54e   :  { %8433 = vmatpush.bf16.msrb.mxu3 %v12712_v46  ;;  %8409 = vmatpush.bf16.msrb.mxu1 %v11560_v56  ;;  %v13776_v37 = vld [vmem:[%s20602_s7 + $0xdbc] sm:$0xf]  ;;  %v12008_v33 = vor.u32 %v13648_v19, %v12005_v12 }
 0x54f   :  { %v12517_v14 = vld [vmem:[%s20602_s7 + $0xdf8] sm:$0xf0]  ;;  %v8455_v20 = vmax.f32 %v8182_v39, 0.0 }
 0x550   :  { %8421 = vmatpush.bf16.msrb.mxu2 %v12136_v3  ;;  %v13360_v2 = vld [vmem:[%s20602_s7 + $0xbc] sm:$0xf]  ;;  %v12520_v25 = vor.u32 %v13776_v37, %v12517_v14 }
 0x551   :  { %8397 = vmatpush.bf16.msrb.mxu0 %v10984_v45  ;;  %v10853_v43 = vld [vmem:[%s20602_s7 + $0xf8] sm:$0xf0]  ;;  %8471 = vst [vmem:[%s20606_s10 + $0x50] sm:$0xff] %v8455_v20  ;;  %v5032_v45 = vperm.slane %v20032_v58, 3 }
 0x552   :  { %8434 = vmatpush.bf16.msrb.mxu3 %v12648_v34  ;;  %8410 = vmatpush.bf16.msrb.mxu1 %v11496_v63  ;;  %v13488_v21 = vld [vmem:[%s20602_s7 + $0x4bc] sm:$0xf]  ;;  %v10856_v49 = vor.u32 %v13360_v2, %v10853_v43  ;;  %v8170_v59 = vpop.f32.mrf.mxu2  ;;  %v8183_v3 = vpop.f32.mrf.mxu3 }
 0x553   :  { %v11365_v24 = vld [vmem:[%s20602_s7 + $0x4f8] sm:$0xf0] }
 0x554   :  { %8422 = vmatpush.bf16.msrb.mxu2 %v12072_v5  ;;  %v13632_v26 = vld [vmem:[%s20602_s7 + $0x93c] sm:$0xf]  ;;  %v11368_v27 = vor.u32 %v13488_v21, %v11365_v24 }
 0x555   :  { %v11941_v30 = vld [vmem:[%s20602_s7 + $0x978] sm:$0xf0]  ;;  %8398 = vmatpush.bf16.msrb.mxu0 %v10920_v38 }
 0x556   :  { %8435 = vmatpush.bf16.msrb.mxu3 %v12584_v7  ;;  %v13760_v42 = vld [vmem:[%s20602_s7 + $0xd3c] sm:$0xf]  ;;  %8411 = vmatpush.bf16.msrb.mxu1 %v11432_v15  ;;  %v11944_v54 = vor.u32 %v13632_v26, %v11941_v30  ;;  %v5034_v26 = vperm.slane %v20032_v58, 5 }
 0x557   :  { %v12453_v40 = vld [vmem:[%s20602_s7 + $0xd78] sm:$0xf0] }
 0x558   :  { %v13344_v32 = vld [vmem:[%s20602_s7 + $0x3c] sm:$0xf]  ;;  %8423 = vmatpush.bf16.msrb.mxu2 %v12008_v33  ;;  %v12456_v46 = vor.u32 %v13760_v42, %v12453_v40 }
 0x559   :  { %v10789_v36 = vld [vmem:[%s20602_s7 + $0x78] sm:$0xf0]  ;;  %8399 = vmatpush.bf16.msrb.mxu0 %v10856_v49 }
 0x55a   :  { %8436 = vmatpush.bf16.msrb.mxu3 %v12520_v25  ;;  %v13472_v47 = vld [vmem:[%s20602_s7 + $0x43c] sm:$0xf]  ;;  %8412 = vmatpush.bf16.msrb.mxu1 %v11368_v27  ;;  %v10792_v53 = vor.u32 %v13344_v32, %v10789_v36 }
 0x55b   :  { %v11301_v48 = vld [vmem:[%s20602_s7 + $0x478] sm:$0xf0] }
 0x55c   :  { %v13616_v50 = vld [vmem:[%s20602_s7 + $0x8bc] sm:$0xf]  ;;  %v11304_v16 = vor.u32 %v13472_v47, %v11301_v48  ;;  %8424 = vmatpush.bf16.msrb.mxu2 %v11944_v54  ;;  %v5035_v47 = vperm.slane %v20032_v58, 6 }
 0x55d   :  { %v11877_v55 = vld [vmem:[%s20602_s7 + $0x8f8] sm:$0xf0]  ;;  %8400 = vmatpush.bf16.msrb.mxu0 %v10792_v53  ;;  %v8194_v31 = vpop.f32.mrf.mxu0  ;;  %v8207_v35 = vpop.f32.mrf.mxu1 }
 0x55e   :  { %v13744_v4 = vld [vmem:[%s20602_s7 + $0xcbc] sm:$0xf]  ;;  %8437 = vmatpush.bf16.msrb.mxu3 %v12456_v46  ;;  %v11880_v6 = vor.u32 %v13616_v50, %v11877_v55  ;;  %8413 = vmatpush.bf16.msrb.mxu1 %v11304_v16  ;;  %v8195_v63 = vadd.f32 %v8194_v31, %v5032_v45 }
 0x55f   :  { %v12389_v52 = vld [vmem:[%s20602_s7 + $0xcf8] sm:$0xf0] }
 0x560   :  { %v12392_v56 = vor.u32 %v13744_v4, %v12389_v52  ;;  %v13600_v57 = vld [vmem:[%s20602_s7 + $0x83c] sm:$0xf]  ;;  %8425 = vmatpush.bf16.msrb.mxu2 %v11880_v6  ;;  %8401 = vmatmul.bf16.vlgmr.msrb.gmra.mxu0 %v17775_v51  ;;  %v8208_v1 = vadd.f32 %v8207_v35, %v8195_v63 }
 0x561   :  { %v11813_v34 = vld [vmem:[%s20602_s7 + $0x878] sm:$0xf0]  ;;  %8414 = vmatmul.bf16.vlgmr.msrb.gmra.mxu1 %v17777_v62 }
 0x562   :  { %v13728_v60 = vld [vmem:[%s20602_s7 + $0xc3c] sm:$0xf]  ;;  %8438 = vmatpush.bf16.msrb.mxu3 %v12392_v56  ;;  %v11816_v23 = vor.u32 %v13600_v57, %v11813_v34  ;;  %v5036_v34 = vperm.slane %v20032_v58, 7 }
 0x563   :  { %v12325_v61 = vld [vmem:[%s20602_s7 + $0xc78] sm:$0xf0] }
 0x564   :  { %v12328_v28 = vor.u32 %v13728_v60, %v12325_v61  ;;  %8426 = vmatpush.bf16.msrb.mxu2 %v11816_v23 }
 0x565   :  { %v8196_v0 = vpop.f32.mrf.mxu0  ;;  %v8209_v13 = vpop.f32.mrf.mxu1 }
 0x566   :  { %8439 = vmatpush.bf16.msrb.mxu3 %v12328_v28 }
 0x567   :  { %8427 = vmatmul.bf16.vlgmr.msrb.gmra.mxu2 %v17817_v18 }
 0x569   :  { %8440 = vmatmul.bf16.vlgmr.msrb.gmra.mxu3 %v17819_v9  ;;  %v8220_v5 = vpop.f32.mrf.mxu2 }
 0x56a   :  { %v8221_v10 = vadd.f32 %v8220_v5, %v8208_v1 }
 0x56c   :  { %v8233_v7 = vpop.f32.mrf.mxu3 }
 0x56d   :  { %v8234_v51 = vadd.f32 %v8233_v7, %v8221_v10 }
 0x56f   :  { %v8456_v8 = vmax.f32 %v8234_v51, 0.0 }
 0x571   :  { %8472 = vst [vmem:[%s20606_s10 + $0x58] sm:$0xff] %v8456_v8  ;;  %v8222_v62 = vpop.f32.mrf.mxu2 }
 0x574   :  { %v8235_v18 = vpop.f32.mrf.mxu3 }
 0x57d   :  { %v8246_v9 = vpop.f32.mrf.mxu0 }
 0x57e   :  { %v8259_v19 = vpop.f32.mrf.mxu1  ;;  %v8247_v22 = vadd.f32 %v8246_v9, %v5033_v11 }
 0x580   :  { %v8260_v14 = vadd.f32 %v8259_v19, %v8247_v22 }
 0x585   :  { %v8248_v12 = vpop.f32.mrf.mxu0 }
 0x586   :  { %v8261_v37 = vpop.f32.mrf.mxu1 }
 0x58b   :  { %v8272_v38 = vpop.f32.mrf.mxu2 }
 0x58c   :  { %v8285_v15 = vpop.f32.mrf.mxu3  ;;  %v8273_v2 = vadd.f32 %v8272_v38, %v8260_v14 }
 0x58e   :  { %v8286_v43 = vadd.f32 %v8285_v15, %v8273_v2 }
 0x590   :  { %v8457_v17 = vmax.f32 %v8286_v43, 0.0 }
 0x592   :  { %8473 = vst [vmem:[%s20606_s10 + $0x60] sm:$0xff] %v8457_v17 }
 0x593   :  { %v8274_v33 = vpop.f32.mrf.mxu2 }
 0x594   :  { %v8287_v25 = vpop.f32.mrf.mxu3 }
 0x59d   :  { %v8298_v21 = vpop.f32.mrf.mxu0 }
 0x59e   :  { %v8311_v24 = vpop.f32.mrf.mxu1  ;;  %v8299_v41 = vadd.f32 %v8298_v21, %v5034_v26 }
 0x5a0   :  { %v8312_v42 = vadd.f32 %v8311_v24, %v8299_v41 }
 0x5a5   :  { %v8300_v29 = vpop.f32.mrf.mxu0 }
 0x5a6   :  { %v8313_v30 = vpop.f32.mrf.mxu1 }
 0x5ab   :  { %v8324_v40 = vpop.f32.mrf.mxu2 }
 0x5ac   :  { %v8337_v44 = vpop.f32.mrf.mxu3  ;;  %v8325_v49 = vadd.f32 %v8324_v40, %v8312_v42 }
 0x5ae   :  { %v8338_v27 = vadd.f32 %v8337_v44, %v8325_v49 }
 0x5b0   :  { %v8458_v32 = vmax.f32 %v8338_v27, 0.0 }
 0x5b2   :  { %8474 = vst [vmem:[%s20606_s10 + $0x68] sm:$0xff] %v8458_v32 }
 0x5b3   :  { %v8326_v36 = vpop.f32.mrf.mxu2 }
 0x5b4   :  { %v8339_v39 = vpop.f32.mrf.mxu3 }
 0x5bd   :  { %v8350_v54 = vpop.f32.mrf.mxu0 }
 0x5be   :  { %v8363_v46 = vpop.f32.mrf.mxu1  ;;  %v8351_v48 = vadd.f32 %v8350_v54, %v5035_v47 }
 0x5c0   :  { %v8364_v4 = vadd.f32 %v8363_v46, %v8351_v48 }
 0x5c5   :  { %v8352_v50 = vpop.f32.mrf.mxu0 }
 0x5c6   :  { %v8365_v55 = vpop.f32.mrf.mxu1 }
 0x5ca   :  { %v8376_v52 = vpop.f32.mrf.mxu2 }
 0x5cb   :  { %v8377_v53 = vadd.f32 %v8376_v52, %v8364_v4 }
 0x5cc   :  { %v8389_v20 = vpop.f32.mrf.mxu3 }
 0x5cd   :  { %v8390_v16 = vadd.f32 %v8389_v20, %v8377_v53 }
 0x5cf   :  { %v8459_v6 = vmax.f32 %v8390_v16, 0.0 }
 0x5d1   :  { %8475 = vst [vmem:[%s20606_s10 + $0x70] sm:$0xff] %v8459_v6 }
 0x5d2   :  { %v8378_v56 = vpop.f32.mrf.mxu2 }
 0x5d4   :  { %v8391_v57 = vpop.f32.mrf.mxu3 }
 0x5dd   :  { %v8402_v59 = vpop.f32.mrf.mxu0 }
 0x5de   :  { %v8415_v3 = vpop.f32.mrf.mxu1  ;;  %v8403_v60 = vadd.f32 %v8402_v59, %v5036_v34 }
 0x5e0   :  { %v8416_v28 = vadd.f32 %v8415_v3, %v8403_v60 }
 0x5e5   :  { %v8404_v61 = vpop.f32.mrf.mxu0 }
 0x5e6   :  { %v8417_v23 = vpop.f32.mrf.mxu1 }
 0x5ea   :  { %v8428_v31 = vpop.f32.mrf.mxu2 }
 0x5eb   :  { %v8429_v45 = vadd.f32 %v8428_v31, %v8416_v28 }
 0x5ec   :  { %v8441_v35 = vpop.f32.mrf.mxu3 }
 0x5ed   :  { %v8442_v63 = vadd.f32 %v8441_v35, %v8429_v45 }
 0x5ef   :  { %v8460_v0 = vmax.f32 %v8442_v63, 0.0 }
 0x5f1   :  { %8476 = vst [vmem:[%s20606_s10 + $0x78] sm:$0xff] %v8460_v0 }
 0x5f2   :  { %v8430_v13 = vpop.f32.mrf.mxu2 }
 0x5f4   :  { %v8443_v1 = vpop.f32.mrf.mxu3 }

// kernel: autoencoder_forward.12
= control target key start
LH: loop header
LB: loop body
LE: loop exit
PB: predicated region body
PF: predicated region fallthrough
CT: control target
= control target key end

     0   :  { %vm167_vm0 = vcmask 523264   ;;  %s939_s1 = inlined_call_operand.vmem [shape: bf16[64,512], index: 1, kind: input, shape index: {}]   ;;  %s940_s0 = inlined_call_operand.vmem [shape: bf16[104,64], index: 0, kind: input, shape index: {}]   ;;  %s941_s2 = inlined_call_operand.vmem [shape: f32[1,512], index: 2, kind: input, shape index: {}]   ;;  %s942_s3 = inlined_call_operand.vmem [shape: f32[104,512], index: 3, kind: output, shape index: {}]  }
   0x1   :  { %v491_v0 = vld [vmem:[%s939_s1 + $0x60] sm:$0xf]  ;;  %v553_v1 = vld [vmem:[%s939_s1 + $0x6c] sm:$0xf0]  ;;  %v551_v2 = vld [vmem:[%s939_s1 + $0x64] sm:$0xf] }
   0x2   :  { %v492_v3 = vor.u32 %v553_v1, %v491_v0  ;;  %v493_v4 = vld [vmem:[%s939_s1 + $0x70] sm:$0xf0]  ;;  %v499_v5 = vld [vmem:[%s939_s1 + $0x68] sm:$0xf]  ;;  %v554_v6 = vld [vmem:[%s939_s1 + $0x74] sm:$0xf0] }
   0x3   :  { %v496_v7 = vor.u32 %v551_v2, %v493_v4  ;;  %v500_v8 = vor.u32 %v554_v6, %v499_v5  ;;  %v552_v9 = vld [vmem:[%s939_s1 + $0x6c] sm:$0xf]  ;;  %v501_v10 = vld [vmem:[%s939_s1 + $0x78] sm:$0xf0]  ;;  %v475_v11 = vld [vmem:[%s939_s1 + $0x40] sm:$0xf] }
   0x4   :  { %193 = vmatpush.bf16.msra.mxu0 %v492_v3  ;;  %v504_v12 = vor.u32 %v552_v9, %v501_v10  ;;  %v549_v13 = vld [vmem:[%s939_s1 + $0x4c] sm:$0xf0]  ;;  %v547_v14 = vld [vmem:[%s939_s1 + $0x44] sm:$0xf]  ;;  %v477_v15 = vld [vmem:[%s939_s1 + $0x50] sm:$0xf0] }
   0x5   :  { %236 = vmatpush.bf16.msra.mxu1 %v496_v7  ;;  %279 = vmatpush.bf16.msra.mxu2 %v500_v8  ;;  %v476_v16 = vor.u32 %v549_v13, %v475_v11  ;;  %v480_v17 = vor.u32 %v547_v14, %v477_v15  ;;  %v483_v18 = vld [vmem:[%s939_s1 + $0x48] sm:$0xf]  ;;  %v550_v19 = vld [vmem:[%s939_s1 + $0x54] sm:$0xf0]  ;;  %v548_v20 = vld [vmem:[%s939_s1 + $0x4c] sm:$0xf] }
   0x6   :  { %322 = vmatpush.bf16.msra.mxu3 %v504_v12  ;;  %v484_v21 = vor.u32 %v550_v19, %v483_v18  ;;  %v485_v22 = vld [vmem:[%s939_s1 + $0x58] sm:$0xf0]  ;;  %v459_v23 = vld [vmem:[%s939_s1 + $0x20] sm:$0xf]  ;;  %v545_v24 = vld [vmem:[%s939_s1 + $0x2c] sm:$0xf0] }
   0x7   :  { %v488_v25 = vor.u32 %v548_v20, %v485_v22  ;;  %v543_v26 = vld [vmem:[%s939_s1 + $0x24] sm:$0xf]  ;;  %v461_v27 = vld [vmem:[%s939_s1 + $0x30] sm:$0xf0]  ;;  %v467_v28 = vld [vmem:[%s939_s1 + $0x28] sm:$0xf]  ;;  %v460_v29 = vor.u32 %v545_v24, %v459_v23 }
   0x8   :  { %194 = vmatpush.bf16.msra.mxu0 %v476_v16  ;;  %v546_v30 = vld [vmem:[%s939_s1 + $0x34] sm:$0xf0]  ;;  %v544_v31 = vld [vmem:[%s939_s1 + $0x2c] sm:$0xf]  ;;  %v469_v32 = vld [vmem:[%s939_s1 + $0x38] sm:$0xf0]  ;;  %v464_v33 = vor.u32 %v543_v26, %v461_v27 }
   0x9   :  { %237 = vmatpush.bf16.msra.mxu1 %v480_v17  ;;  %280 = vmatpush.bf16.msra.mxu2 %v484_v21  ;;  %v468_v34 = vor.u32 %v546_v30, %v467_v28  ;;  %v443_v35 = vld [vmem:[%s939_s1] sm:$0xf]  ;;  %v541_v36 = vld [vmem:[%s939_s1 + $0xc] sm:$0xf0]  ;;  %v539_v37 = vld [vmem:[%s939_s1 + $0x4] sm:$0xf]  ;;  %v472_v38 = vor.u32 %v544_v31, %v469_v32 }
   0xa   :  { %323 = vmatpush.bf16.msra.mxu3 %v488_v25  ;;  %v445_v39 = vld [vmem:[%s939_s1 + $0x10] sm:$0xf0]  ;;  %v451_v40 = vld [vmem:[%s939_s1 + $0x8] sm:$0xf]  ;;  %v542_v41 = vld [vmem:[%s939_s1 + $0x14] sm:$0xf0]  ;;  %v444_v44 = vor.u32 %v541_v36, %v443_v35 }
   0xb   :  { %v540_v42 = vld [vmem:[%s939_s1 + $0xc] sm:$0xf]  ;;  %v453_v43 = vld [vmem:[%s939_s1 + $0x18] sm:$0xf0]  ;;  %v448_v45 = vor.u32 %v539_v37, %v445_v39  ;;  %v452_v46 = vor.u32 %v542_v41, %v451_v40  ;;  %v533_v48 = vld [vmem:[%s940_s0] sm:$0xff] }
   0xc   :  { %195 = vmatpush.bf16.msra.mxu0 %v460_v29  ;;  %v456_v47 = vor.u32 %v540_v42, %v453_v43  ;;  %v534_v49 = vld [vmem:[%s940_s0 + $0x8] sm:$0xff]  ;;  %v535_v50 = vld [vmem:[%s940_s0 + $0x10] sm:$0xff]  ;;  %v536_v51 = vld [vmem:[%s940_s0 + $0x18] sm:$0xff] }
   0xd   :  { %238 = vmatpush.bf16.msra.mxu1 %v464_v33  ;;  %281 = vmatpush.bf16.msra.mxu2 %v468_v34  ;;  %v537_v52 = vld [vmem:[%s940_s0 + $0x20] sm:$0xff]  ;;  %v538_v53 = vld [vmem:[%s940_s0 + $0x28] sm:$0xff]  ;;  %v27_v54 = vld [vmem:[%s940_s0 + $0x30] sm:$0xf] }
   0xe   :  { %324 = vmatpush.bf16.msra.mxu3 %v472_v38  ;;  %v79_v55 = vunpack.c.l.b16 %v27_v54  ;;  %v44_v57 = vld [vmem:[%s941_s2] sm:$0xf] }
   0xf   :  { %v723_v58 = vperm.slane %v44_v57, 0  ;;  %v725_v59 = vperm.slane %v44_v57, 1  ;;  %v735_v0 = vperm.slane %v44_v57, 2  ;;  %v737_v1 = vperm.slane %v44_v57, 3 }
  0x10   :  { %196 = vmatpush.bf16.msra.mxu0 %v444_v44  ;;  %v86_v56 = vpack.c.b16 %v79_v55, %v79_v55 }
  0x11   :  { %239 = vmatpush.bf16.msra.mxu1 %v448_v45  ;;  %282 = vmatpush.bf16.msra.mxu2 %v452_v46 }
  0x12   :  { %325 = vmatpush.bf16.msra.mxu3 %v456_v47 }
  0x13   :  { %505 = vmatmul.msk.bf16.vlgmr.msra.gmra.mxu0 %vm167_vm0, %v533_v48 }
  0x14   :  { %512 = vmatmul.msk.bf16.vlgmr.msra.gmra.mxu1 %vm167_vm0, %v533_v48  ;;  %519 = vmatmul.msk.bf16.vlgmr.msra.gmra.mxu2 %vm167_vm0, %v533_v48 }
  0x15   :  { %526 = vmatmul.msk.bf16.vlgmr.msra.gmra.mxu3 %vm167_vm0, %v533_v48 }
  0x23   :  { %506 = vmatmul.msk.bf16.gmra.mxu0 %vm167_vm0, %v534_v49 }
  0x24   :  { %513 = vmatmul.msk.bf16.gmra.mxu1 %vm167_vm0, %v534_v49  ;;  %520 = vmatmul.msk.bf16.gmra.mxu2 %vm167_vm0, %v534_v49 }
  0x25   :  { %527 = vmatmul.msk.bf16.gmra.mxu3 %vm167_vm0, %v534_v49 }
  0x33   :  { %507 = vmatmul.msk.bf16.gmra.mxu0 %vm167_vm0, %v535_v50 }
  0x34   :  { %514 = vmatmul.msk.bf16.gmra.mxu1 %vm167_vm0, %v535_v50  ;;  %521 = vmatmul.msk.bf16.gmra.mxu2 %vm167_vm0, %v535_v50 }
  0x35   :  { %528 = vmatmul.msk.bf16.gmra.mxu3 %vm167_vm0, %v535_v50 }
  0x43   :  { %508 = vmatmul.msk.bf16.gmra.mxu0 %vm167_vm0, %v536_v51 }
  0x44   :  { %515 = vmatmul.msk.bf16.gmra.mxu1 %vm167_vm0, %v536_v51  ;;  %522 = vmatmul.msk.bf16.gmra.mxu2 %vm167_vm0, %v536_v51 }
  0x45   :  { %529 = vmatmul.msk.bf16.gmra.mxu3 %vm167_vm0, %v536_v51 }
  0x53   :  { %509 = vmatmul.msk.bf16.gmra.mxu0 %vm167_vm0, %v537_v52 }
  0x54   :  { %516 = vmatmul.msk.bf16.gmra.mxu1 %vm167_vm0, %v537_v52  ;;  %523 = vmatmul.msk.bf16.gmra.mxu2 %vm167_vm0, %v537_v52 }
  0x55   :  { %530 = vmatmul.msk.bf16.gmra.mxu3 %vm167_vm0, %v537_v52 }
  0x63   :  { %510 = vmatmul.msk.bf16.gmra.mxu0 %vm167_vm0, %v538_v53 }
  0x64   :  { %517 = vmatmul.msk.bf16.gmra.mxu1 %vm167_vm0, %v538_v53  ;;  %524 = vmatmul.msk.bf16.gmra.mxu2 %vm167_vm0, %v538_v53 }
  0x65   :  { %531 = vmatmul.msk.bf16.gmra.mxu3 %vm167_vm0, %v538_v53 }
  0x73   :  { %511 = vmatmul.msk.bf16.gmra.mxu0 %vm167_vm0, %v86_v56 }
  0x74   :  { %518 = vmatmul.msk.bf16.gmra.mxu1 %vm167_vm0, %v86_v56  ;;  %525 = vmatmul.msk.bf16.gmra.mxu2 %vm167_vm0, %v86_v56 }
  0x75   :  { %532 = vmatmul.msk.bf16.gmra.mxu3 %vm167_vm0, %v86_v56 }
  0x90   :  { %v198_v60 = vpop.f32.mrf.mxu0 }
  0x91   :  { %v199_v61 = vadd.f32 %v198_v60, %v723_v58  ;;  %v241_v62 = vpop.f32.mrf.mxu1 }
  0x92   :  { %v242_v63 = vadd.f32 %v241_v62, %v725_v59 }
  0x93   :  { %361 = vst [vmem:[%s942_s3] sm:$0xff] %v199_v61 }
  0x94   :  { %362 = vst [vmem:[%s942_s3 + $0x8] sm:$0xff] %v242_v63 }
  0x97   :  { %v284_v2 = vpop.f32.mrf.mxu2 }
  0x98   :  { %v285_v3 = vadd.f32 %v284_v2, %v735_v0  ;;  %v327_v4 = vpop.f32.mrf.mxu3  ;;  %v200_v5 = vpop.f32.mrf.mxu0 }
  0x99   :  { %v328_v6 = vadd.f32 %v327_v4, %v737_v1  ;;  %v201_v7 = vadd.f32 %v200_v5, %v723_v58  ;;  %v243_v8 = vpop.f32.mrf.mxu1 }
  0x9a   :  { %363 = vst [vmem:[%s942_s3 + $0x10] sm:$0xff] %v285_v3  ;;  %v244_v9 = vadd.f32 %v243_v8, %v725_v59 }
  0x9b   :  { %364 = vst [vmem:[%s942_s3 + $0x18] sm:$0xff] %v328_v6 }
  0x9c   :  { %365 = vst [vmem:[%s942_s3 + $0x20] sm:$0xff] %v201_v7 }
  0x9d   :  { %366 = vst [vmem:[%s942_s3 + $0x28] sm:$0xff] %v244_v9 }
  0x9f   :  { %v286_v10 = vpop.f32.mrf.mxu2 }
  0xa0   :  { %v287_v11 = vadd.f32 %v286_v10, %v735_v0  ;;  %v329_v12 = vpop.f32.mrf.mxu3  ;;  %v203_v13 = vpop.f32.mrf.mxu0 }
  0xa1   :  { %v330_v14 = vadd.f32 %v329_v12, %v737_v1  ;;  %v204_v15 = vadd.f32 %v203_v13, %v723_v58  ;;  %v246_v16 = vpop.f32.mrf.mxu1 }
  0xa2   :  { %367 = vst [vmem:[%s942_s3 + $0x30] sm:$0xff] %v287_v11  ;;  %v247_v17 = vadd.f32 %v246_v16, %v725_v59 }
  0xa3   :  { %368 = vst [vmem:[%s942_s3 + $0x38] sm:$0xff] %v330_v14 }
  0xa4   :  { %369 = vst [vmem:[%s942_s3 + $0x40] sm:$0xff] %v204_v15 }
  0xa5   :  { %370 = vst [vmem:[%s942_s3 + $0x48] sm:$0xff] %v247_v17 }
  0xa7   :  { %v289_v18 = vpop.f32.mrf.mxu2 }
  0xa8   :  { %v290_v19 = vadd.f32 %v289_v18, %v735_v0  ;;  %v332_v20 = vpop.f32.mrf.mxu3  ;;  %v205_v21 = vpop.f32.mrf.mxu0 }
  0xa9   :  { %v333_v22 = vadd.f32 %v332_v20, %v737_v1  ;;  %v206_v23 = vadd.f32 %v205_v21, %v723_v58  ;;  %v248_v24 = vpop.f32.mrf.mxu1 }
  0xaa   :  { %371 = vst [vmem:[%s942_s3 + $0x50] sm:$0xff] %v290_v19  ;;  %v249_v25 = vadd.f32 %v248_v24, %v725_v59 }
  0xab   :  { %372 = vst [vmem:[%s942_s3 + $0x58] sm:$0xff] %v333_v22 }
  0xac   :  { %373 = vst [vmem:[%s942_s3 + $0x60] sm:$0xff] %v206_v23 }
  0xad   :  { %374 = vst [vmem:[%s942_s3 + $0x68] sm:$0xff] %v249_v25 }
  0xaf   :  { %v291_v26 = vpop.f32.mrf.mxu2 }
  0xb0   :  { %v292_v27 = vadd.f32 %v291_v26, %v735_v0  ;;  %v334_v28 = vpop.f32.mrf.mxu3  ;;  %v208_v29 = vpop.f32.mrf.mxu0 }
  0xb1   :  { %v335_v30 = vadd.f32 %v334_v28, %v737_v1  ;;  %v209_v31 = vadd.f32 %v208_v29, %v723_v58  ;;  %v251_v32 = vpop.f32.mrf.mxu1 }
  0xb2   :  { %375 = vst [vmem:[%s942_s3 + $0x70] sm:$0xff] %v292_v27  ;;  %v252_v33 = vadd.f32 %v251_v32, %v725_v59 }
  0xb3   :  { %376 = vst [vmem:[%s942_s3 + $0x78] sm:$0xff] %v335_v30 }
  0xb4   :  { %377 = vst [vmem:[%s942_s3 + $0x80] sm:$0xff] %v209_v31 }
  0xb5   :  { %378 = vst [vmem:[%s942_s3 + $0x88] sm:$0xff] %v252_v33 }
  0xb7   :  { %v294_v34 = vpop.f32.mrf.mxu2 }
  0xb8   :  { %v295_v35 = vadd.f32 %v294_v34, %v735_v0  ;;  %v337_v36 = vpop.f32.mrf.mxu3  ;;  %v210_v37 = vpop.f32.mrf.mxu0 }
  0xb9   :  { %v338_v38 = vadd.f32 %v337_v36, %v737_v1  ;;  %v211_v39 = vadd.f32 %v210_v37, %v723_v58  ;;  %v253_v40 = vpop.f32.mrf.mxu1 }
  0xba   :  { %379 = vst [vmem:[%s942_s3 + $0x90] sm:$0xff] %v295_v35  ;;  %v254_v41 = vadd.f32 %v253_v40, %v725_v59 }
  0xbb   :  { %380 = vst [vmem:[%s942_s3 + $0x98] sm:$0xff] %v338_v38 }
  0xbc   :  { %381 = vst [vmem:[%s942_s3 + $0xa0] sm:$0xff] %v211_v39 }
  0xbd   :  { %382 = vst [vmem:[%s942_s3 + $0xa8] sm:$0xff] %v254_v41 }
  0xbf   :  { %v296_v42 = vpop.f32.mrf.mxu2 }
  0xc0   :  { %v297_v43 = vadd.f32 %v296_v42, %v735_v0  ;;  %v339_v44 = vpop.f32.mrf.mxu3  ;;  %v213_v45 = vpop.f32.mrf.mxu0 }
  0xc1   :  { %v340_v46 = vadd.f32 %v339_v44, %v737_v1  ;;  %v214_v47 = vadd.f32 %v213_v45, %v723_v58  ;;  %v256_v48 = vpop.f32.mrf.mxu1 }
  0xc2   :  { %383 = vst [vmem:[%s942_s3 + $0xb0] sm:$0xff] %v297_v43  ;;  %v257_v49 = vadd.f32 %v256_v48, %v725_v59 }
  0xc3   :  { %384 = vst [vmem:[%s942_s3 + $0xb8] sm:$0xff] %v340_v46 }
  0xc4   :  { %385 = vst [vmem:[%s942_s3 + $0xc0] sm:$0xff] %v214_v47 }
  0xc5   :  { %386 = vst [vmem:[%s942_s3 + $0xc8] sm:$0xff] %v257_v49 }
  0xc7   :  { %v299_v50 = vpop.f32.mrf.mxu2 }
  0xc8   :  { %v300_v51 = vadd.f32 %v299_v50, %v735_v0  ;;  %v342_v52 = vpop.f32.mrf.mxu3  ;;  %v215_v53 = vpop.f32.mrf.mxu0 }
  0xc9   :  { %v343_v54 = vadd.f32 %v342_v52, %v737_v1  ;;  %v216_v55 = vadd.f32 %v215_v53, %v723_v58  ;;  %v258_v56 = vpop.f32.mrf.mxu1 }
  0xca   :  { %387 = vst [vmem:[%s942_s3 + $0xd0] sm:$0xff] %v300_v51  ;;  %v259_v57 = vadd.f32 %v258_v56, %v725_v59 }
  0xcb   :  { %388 = vst [vmem:[%s942_s3 + $0xd8] sm:$0xff] %v343_v54 }
  0xcc   :  { %389 = vst [vmem:[%s942_s3 + $0xe0] sm:$0xff] %v216_v55 }
  0xcd   :  { %390 = vst [vmem:[%s942_s3 + $0xe8] sm:$0xff] %v259_v57 }
  0xcf   :  { %v301_v60 = vpop.f32.mrf.mxu2 }
  0xd0   :  { %v302_v61 = vadd.f32 %v301_v60, %v735_v0  ;;  %v344_v62 = vpop.f32.mrf.mxu3  ;;  %v218_v63 = vpop.f32.mrf.mxu0 }
  0xd1   :  { %v345_v2 = vadd.f32 %v344_v62, %v737_v1  ;;  %v219_v3 = vadd.f32 %v218_v63, %v723_v58  ;;  %v261_v4 = vpop.f32.mrf.mxu1 }
  0xd2   :  { %391 = vst [vmem:[%s942_s3 + $0xf0] sm:$0xff] %v302_v61  ;;  %v262_v5 = vadd.f32 %v261_v4, %v725_v59 }
  0xd3   :  { %392 = vst [vmem:[%s942_s3 + $0xf8] sm:$0xff] %v345_v2 }
  0xd4   :  { %393 = vst [vmem:[%s942_s3 + $0x100] sm:$0xff] %v219_v3 }
  0xd5   :  { %394 = vst [vmem:[%s942_s3 + $0x108] sm:$0xff] %v262_v5 }
  0xd7   :  { %v304_v6 = vpop.f32.mrf.mxu2 }
  0xd8   :  { %v305_v7 = vadd.f32 %v304_v6, %v735_v0  ;;  %v347_v8 = vpop.f32.mrf.mxu3  ;;  %v220_v9 = vpop.f32.mrf.mxu0 }
  0xd9   :  { %v348_v10 = vadd.f32 %v347_v8, %v737_v1  ;;  %v221_v11 = vadd.f32 %v220_v9, %v723_v58  ;;  %v263_v12 = vpop.f32.mrf.mxu1 }
  0xda   :  { %395 = vst [vmem:[%s942_s3 + $0x110] sm:$0xff] %v305_v7  ;;  %v264_v13 = vadd.f32 %v263_v12, %v725_v59 }
  0xdb   :  { %396 = vst [vmem:[%s942_s3 + $0x118] sm:$0xff] %v348_v10 }
  0xdc   :  { %397 = vst [vmem:[%s942_s3 + $0x120] sm:$0xff] %v221_v11 }
  0xdd   :  { %398 = vst [vmem:[%s942_s3 + $0x128] sm:$0xff] %v264_v13 }
  0xdf   :  { %v306_v14 = vpop.f32.mrf.mxu2 }
  0xe0   :  { %v307_v15 = vadd.f32 %v306_v14, %v735_v0  ;;  %v349_v16 = vpop.f32.mrf.mxu3  ;;  %v223_v17 = vpop.f32.mrf.mxu0 }
  0xe1   :  { %v350_v18 = vadd.f32 %v349_v16, %v737_v1  ;;  %v224_v19 = vadd.f32 %v223_v17, %v723_v58  ;;  %v266_v20 = vpop.f32.mrf.mxu1 }
  0xe2   :  { %399 = vst [vmem:[%s942_s3 + $0x130] sm:$0xff] %v307_v15  ;;  %v267_v21 = vadd.f32 %v266_v20, %v725_v59 }
  0xe3   :  { %400 = vst [vmem:[%s942_s3 + $0x138] sm:$0xff] %v350_v18 }
  0xe4   :  { %401 = vst [vmem:[%s942_s3 + $0x140] sm:$0xff] %v224_v19 }
  0xe5   :  { %402 = vst [vmem:[%s942_s3 + $0x148] sm:$0xff] %v267_v21 }
  0xe7   :  { %v309_v22 = vpop.f32.mrf.mxu2 }
  0xe8   :  { %v310_v23 = vadd.f32 %v309_v22, %v735_v0  ;;  %v352_v24 = vpop.f32.mrf.mxu3  ;;  %v225_v25 = vpop.f32.mrf.mxu0 }
  0xe9   :  { %v353_v26 = vadd.f32 %v352_v24, %v737_v1  ;;  %v226_v27 = vadd.f32 %v225_v25, %v723_v58  ;;  %v268_v28 = vpop.f32.mrf.mxu1 }
  0xea   :  { %403 = vst [vmem:[%s942_s3 + $0x150] sm:$0xff] %v310_v23  ;;  %v269_v29 = vadd.f32 %v268_v28, %v725_v59 }
  0xeb   :  { %404 = vst [vmem:[%s942_s3 + $0x158] sm:$0xff] %v353_v26 }
  0xec   :  { %405 = vst [vmem:[%s942_s3 + $0x160] sm:$0xff] %v226_v27 }
  0xed   :  { %406 = vst [vmem:[%s942_s3 + $0x168] sm:$0xff] %v269_v29 }
  0xef   :  { %v311_v30 = vpop.f32.mrf.mxu2 }
  0xf0   :  { %v312_v31 = vadd.f32 %v311_v30, %v735_v0  ;;  %v354_v32 = vpop.f32.mrf.mxu3  ;;  %v228_v33 = vpop.f32.mrf.mxu0 }
  0xf1   :  { %v355_v34 = vadd.f32 %v354_v32, %v737_v1  ;;  %v229_v35 = vadd.f32 %v228_v33, %v723_v58  ;;  %v271_v36 = vpop.f32.mrf.mxu1 }
  0xf2   :  { %407 = vst [vmem:[%s942_s3 + $0x170] sm:$0xff] %v312_v31  ;;  %v272_v37 = vadd.f32 %v271_v36, %v725_v59 }
  0xf3   :  { %408 = vst [vmem:[%s942_s3 + $0x178] sm:$0xff] %v355_v34 }
  0xf4   :  { %409 = vst [vmem:[%s942_s3 + $0x180] sm:$0xff] %v229_v35 }
  0xf5   :  { %410 = vst [vmem:[%s942_s3 + $0x188] sm:$0xff] %v272_v37 }
  0xf7   :  { %v314_v58 = vpop.f32.mrf.mxu2 }
  0xf8   :  { %v315_v38 = vadd.f32 %v314_v58, %v735_v0  ;;  %v357_v39 = vpop.f32.mrf.mxu3  ;;  %v230_v40 = vpop.f32.mrf.mxu0 }
  0xf9   :  { %v358_v41 = vadd.f32 %v357_v39, %v737_v1  ;;  %v273_v59 = vpop.f32.mrf.mxu1 }
  0xfa   :  { %411 = vst [vmem:[%s942_s3 + $0x190] sm:$0xff] %v315_v38 }
  0xfb   :  { %412 = vst [vmem:[%s942_s3 + $0x198] sm:$0xff] %v358_v41 }
  0xff   :  { %v316_v42 = vpop.f32.mrf.mxu2 }
 0x100   :  { %v359_v43 = vpop.f32.mrf.mxu3 }

// kernel: autoencoder_forward.13
= control target key start
LH: loop header
LB: loop body
LE: loop exit
PB: predicated region body
PF: predicated region fallthrough
CT: control target
= control target key end

     0   :  { %vm207_vm0 = vcmask 261120   ;;  %vm416_vm1 = vcmask 130048   ;;  %s1008_s1 = inlined_call_operand.vmem [shape: bf16[32,16], index: 1, kind: input, shape index: {}]   ;;  %s1009_s0 = inlined_call_operand.vmem [shape: bf16[392,32], index: 0, kind: input, shape index: {}]   ;;  %s1010_s2 = inlined_call_operand.vmem [shape: f32[1,16], index: 2, kind: input, shape index: {}]   ;;  %s1011_s3 = inlined_call_operand.vmem [shape: f32[392,16], index: 3, kind: output, shape index: {}]  }
   0x1   :  { %v624_v0 = vld [vmem:[%s1008_s1 + $0x8] sm:$0xff]  ;;  %v623_v1 = vld [vmem:[%s1008_s1] sm:$0xff]  ;;  %v605_v2 = vld [vmem:[%s1009_s0 + $0x30] sm:$0xff] }
   0x2   :  { %625 = vmatpush.bf16.msra.mxu1 %v624_v0  ;;  %626 = vmatpush.bf16.msra.mxu2 %v624_v0  ;;  %v612_v3 = vld [vmem:[%s1009_s0 + $0x68] sm:$0xff]  ;;  %v599_v4 = vld [vmem:[%s1009_s0] sm:$0xff]  ;;  %v606_v6 = vld [vmem:[%s1009_s0 + $0x38] sm:$0xff] }
   0x3   :  { %289 = vmatpush.bf16.msra.mxu0 %v624_v0  ;;  %627 = vmatpush.bf16.msra.mxu3 %v624_v0  ;;  %v619_v5 = vld [vmem:[%s1009_s0 + $0xa0] sm:$0xff]  ;;  %v613_v7 = vld [vmem:[%s1009_s0 + $0x70] sm:$0xff]  ;;  %v600_v8 = vld [vmem:[%s1009_s0 + $0x8] sm:$0xff] }
   0x4   :  { %v620_v9 = vld [vmem:[%s1009_s0 + $0xa8] sm:$0xff]  ;;  %v607_v10 = vld [vmem:[%s1009_s0 + $0x40] sm:$0xff]  ;;  %v614_v11 = vld [vmem:[%s1009_s0 + $0x78] sm:$0xff] }
   0x5   :  { %v601_v12 = vld [vmem:[%s1009_s0 + $0x10] sm:$0xff]  ;;  %v608_v14 = vld [vmem:[%s1009_s0 + $0x48] sm:$0xff]  ;;  %v615_v15 = vld [vmem:[%s1009_s0 + $0x80] sm:$0xff] }
   0x6   :  { %628 = vmatpush.bf16.msra.mxu1 %v623_v1  ;;  %629 = vmatpush.bf16.msra.mxu2 %v623_v1  ;;  %v621_v13 = vld [vmem:[%s1009_s0 + $0xb0] sm:$0xff]  ;;  %v602_v16 = vld [vmem:[%s1009_s0 + $0x18] sm:$0xff]  ;;  %v63_v18 = vld [vmem:[%s1009_s0 + $0xc0] sm:$0xf] }
   0x7   :  { %290 = vmatpush.bf16.msra.mxu0 %v623_v1  ;;  %630 = vmatpush.bf16.msra.mxu3 %v623_v1  ;;  %v622_v17 = vld [vmem:[%s1009_s0 + $0xb8] sm:$0xff]  ;;  %v169_v19 = vunpack.c.l.b16 %v63_v18  ;;  %v609_v20 = vld [vmem:[%s1009_s0 + $0x50] sm:$0xff]  ;;  %v616_v21 = vld [vmem:[%s1009_s0 + $0x88] sm:$0xff] }
   0x8   :  { %v603_v22 = vld [vmem:[%s1009_s0 + $0x20] sm:$0xff]  ;;  %v610_v24 = vld [vmem:[%s1009_s0 + $0x58] sm:$0xff]  ;;  %v617_v25 = vld [vmem:[%s1009_s0 + $0x90] sm:$0xff] }
   0x9   :  { %580 = vmatmul.msk.bf16.vlgmr.msra.gmra.mxu1 %vm207_vm0, %v605_v2  ;;  %587 = vmatmul.msk.bf16.vlgmr.msra.gmra.mxu2 %vm207_vm0, %v612_v3  ;;  %v194_v23 = vpack.c.b16 %v169_v19, %v169_v19  ;;  %v604_v26 = vld [vmem:[%s1009_s0 + $0x28] sm:$0xff]  ;;  %v611_v27 = vld [vmem:[%s1009_s0 + $0x60] sm:$0xff]  ;;  %v618_v28 = vld [vmem:[%s1009_s0 + $0x98] sm:$0xff] }
   0xa   :  { %574 = vmatmul.msk.bf16.vlgmr.msra.gmra.mxu0 %vm207_vm0, %v599_v4  ;;  %594 = vmatmul.msk.bf16.vlgmr.msra.gmra.mxu3 %vm207_vm0, %v619_v5  ;;  %v761_v29 = vld [vmem:[%s1010_s2] ss:$0 sm:$0xff] }
  0x19   :  { %581 = vmatmul.msk.bf16.gmra.mxu1 %vm207_vm0, %v606_v6  ;;  %588 = vmatmul.msk.bf16.gmra.mxu2 %vm207_vm0, %v613_v7 }
  0x1a   :  { %575 = vmatmul.msk.bf16.gmra.mxu0 %vm207_vm0, %v600_v8  ;;  %595 = vmatmul.msk.bf16.gmra.mxu3 %vm207_vm0, %v620_v9 }
  0x29   :  { %582 = vmatmul.msk.bf16.gmra.mxu1 %vm207_vm0, %v607_v10  ;;  %589 = vmatmul.msk.bf16.gmra.mxu2 %vm207_vm0, %v614_v11 }
  0x2a   :  { %576 = vmatmul.msk.bf16.gmra.mxu0 %vm207_vm0, %v601_v12  ;;  %596 = vmatmul.msk.bf16.gmra.mxu3 %vm207_vm0, %v621_v13 }
  0x39   :  { %583 = vmatmul.msk.bf16.gmra.mxu1 %vm207_vm0, %v608_v14  ;;  %590 = vmatmul.msk.bf16.gmra.mxu2 %vm207_vm0, %v615_v15 }
  0x3a   :  { %577 = vmatmul.msk.bf16.gmra.mxu0 %vm207_vm0, %v602_v16  ;;  %597 = vmatmul.msk.bf16.gmra.mxu3 %vm207_vm0, %v622_v17 }
  0x49   :  { %584 = vmatmul.msk.bf16.gmra.mxu1 %vm207_vm0, %v609_v20  ;;  %591 = vmatmul.msk.bf16.gmra.mxu2 %vm207_vm0, %v616_v21 }
  0x4a   :  { %578 = vmatmul.msk.bf16.gmra.mxu0 %vm207_vm0, %v603_v22  ;;  %598 = vmatmul.msk.bf16.gmra.mxu3 %vm207_vm0, %v194_v23 }
  0x59   :  { %585 = vmatmul.msk.bf16.gmra.mxu1 %vm207_vm0, %v610_v24  ;;  %592 = vmatmul.msk.bf16.gmra.mxu2 %vm207_vm0, %v617_v25 }
  0x5a   :  { %579 = vmatmul.msk.bf16.gmra.mxu0 %vm207_vm0, %v604_v26 }
  0x69   :  { %586 = vmatmul.msk.bf16.gmra.mxu1 %vm207_vm0, %v611_v27  ;;  %593 = vmatmul.msk.bf16.gmra.mxu2 %vm207_vm0, %v618_v28 }
  0x86   :  { %v322_v30 = vpop.f32.mrf.mxu1 }
  0x87   :  { %v323_v31 = vadd.f32 %v761_v29, %v322_v30  ;;  %v292_v32 = vpop.f32.mrf.mxu0 }
  0x88   :  { %v293_v33 = vadd.f32 %v761_v29, %v292_v32 }
  0x89   :  { %429 = vst.msk [vmem:[%s1011_s3 + $0x60] sm:$0xff] %vm416_vm1, %v323_v31 }
  0x8a   :  { %417 = vst.msk [vmem:[%s1011_s3] sm:$0xff] %vm416_vm1, %v293_v33 }
  0x8c   :  { %v357_v34 = vpop.f32.mrf.mxu2 }
  0x8d   :  { %v358_v35 = vadd.f32 %v761_v29, %v357_v34  ;;  %v392_v36 = vpop.f32.mrf.mxu3 }
  0x8e   :  { %v324_v37 = vpop.f32.mrf.mxu1  ;;  %v393_v38 = vadd.f32 %v761_v29, %v392_v36 }
  0x8f   :  { %443 = vst.msk [vmem:[%s1011_s3 + $0xd0] sm:$0xff] %vm416_vm1, %v358_v35  ;;  %v325_v39 = vadd.f32 %v761_v29, %v324_v37  ;;  %v294_v40 = vpop.f32.mrf.mxu0 }
  0x90   :  { %v295_v41 = vadd.f32 %v761_v29, %v294_v40  ;;  %457 = vst.msk [vmem:[%s1011_s3 + $0x140] sm:$0xff] %vm416_vm1, %v393_v38 }
  0x91   :  { %430 = vst.msk [vmem:[%s1011_s3 + $0x68] sm:$0xff] %vm416_vm1, %v325_v39 }
  0x92   :  { %418 = vst.msk [vmem:[%s1011_s3 + $0x8] sm:$0xff] %vm416_vm1, %v295_v41 }
  0x94   :  { %v359_v42 = vpop.f32.mrf.mxu2 }
  0x95   :  { %v360_v43 = vadd.f32 %v761_v29, %v359_v42  ;;  %v394_v44 = vpop.f32.mrf.mxu3 }
  0x96   :  { %v327_v45 = vpop.f32.mrf.mxu1  ;;  %v395_v46 = vadd.f32 %v761_v29, %v394_v44 }
  0x97   :  { %444 = vst.msk [vmem:[%s1011_s3 + $0xd8] sm:$0xff] %vm416_vm1, %v360_v43  ;;  %v328_v47 = vadd.f32 %v761_v29, %v327_v45  ;;  %v297_v48 = vpop.f32.mrf.mxu0 }
  0x98   :  { %v298_v49 = vadd.f32 %v761_v29, %v297_v48  ;;  %458 = vst.msk [vmem:[%s1011_s3 + $0x148] sm:$0xff] %vm416_vm1, %v395_v46 }
  0x99   :  { %431 = vst.msk [vmem:[%s1011_s3 + $0x70] sm:$0xff] %vm416_vm1, %v328_v47 }
  0x9a   :  { %419 = vst.msk [vmem:[%s1011_s3 + $0x10] sm:$0xff] %vm416_vm1, %v298_v49 }
  0x9c   :  { %v362_v50 = vpop.f32.mrf.mxu2 }
  0x9d   :  { %v363_v51 = vadd.f32 %v761_v29, %v362_v50  ;;  %v397_v52 = vpop.f32.mrf.mxu3 }
  0x9e   :  { %v329_v53 = vpop.f32.mrf.mxu1  ;;  %v398_v54 = vadd.f32 %v761_v29, %v397_v52 }
  0x9f   :  { %445 = vst.msk [vmem:[%s1011_s3 + $0xe0] sm:$0xff] %vm416_vm1, %v363_v51  ;;  %v330_v55 = vadd.f32 %v761_v29, %v329_v53  ;;  %v299_v56 = vpop.f32.mrf.mxu0 }
  0xa0   :  { %v300_v57 = vadd.f32 %v761_v29, %v299_v56  ;;  %459 = vst.msk [vmem:[%s1011_s3 + $0x150] sm:$0xff] %vm416_vm1, %v398_v54 }
  0xa1   :  { %432 = vst.msk [vmem:[%s1011_s3 + $0x78] sm:$0xff] %vm416_vm1, %v330_v55 }
  0xa2   :  { %420 = vst.msk [vmem:[%s1011_s3 + $0x18] sm:$0xff] %vm416_vm1, %v300_v57 }
  0xa4   :  { %v364_v58 = vpop.f32.mrf.mxu2 }
  0xa5   :  { %v365_v59 = vadd.f32 %v761_v29, %v364_v58  ;;  %v399_v60 = vpop.f32.mrf.mxu3 }
  0xa6   :  { %v332_v61 = vpop.f32.mrf.mxu1  ;;  %v400_v62 = vadd.f32 %v761_v29, %v399_v60 }
  0xa7   :  { %446 = vst.msk [vmem:[%s1011_s3 + $0xe8] sm:$0xff] %vm416_vm1, %v365_v59  ;;  %v333_v63 = vadd.f32 %v761_v29, %v332_v61  ;;  %v302_v0 = vpop.f32.mrf.mxu0 }
  0xa8   :  { %v303_v1 = vadd.f32 %v761_v29, %v302_v0  ;;  %460 = vst.msk [vmem:[%s1011_s3 + $0x158] sm:$0xff] %vm416_vm1, %v400_v62 }
  0xa9   :  { %433 = vst.msk [vmem:[%s1011_s3 + $0x80] sm:$0xff] %vm416_vm1, %v333_v63 }
  0xaa   :  { %421 = vst.msk [vmem:[%s1011_s3 + $0x20] sm:$0xff] %vm416_vm1, %v303_v1 }
  0xac   :  { %v367_v2 = vpop.f32.mrf.mxu2 }
  0xad   :  { %v368_v3 = vadd.f32 %v761_v29, %v367_v2  ;;  %v402_v4 = vpop.f32.mrf.mxu3 }
  0xae   :  { %v334_v5 = vpop.f32.mrf.mxu1  ;;  %v403_v6 = vadd.f32 %v761_v29, %v402_v4 }
  0xaf   :  { %447 = vst.msk [vmem:[%s1011_s3 + $0xf0] sm:$0xff] %vm416_vm1, %v368_v3  ;;  %v335_v7 = vadd.f32 %v761_v29, %v334_v5  ;;  %v304_v8 = vpop.f32.mrf.mxu0 }
  0xb0   :  { %v305_v9 = vadd.f32 %v761_v29, %v304_v8  ;;  %461 = vst.msk [vmem:[%s1011_s3 + $0x160] sm:$0xff] %vm416_vm1, %v403_v6 }
  0xb1   :  { %434 = vst.msk [vmem:[%s1011_s3 + $0x88] sm:$0xff] %vm416_vm1, %v335_v7 }
  0xb2   :  { %422 = vst.msk [vmem:[%s1011_s3 + $0x28] sm:$0xff] %vm416_vm1, %v305_v9 }
  0xb4   :  { %v369_v10 = vpop.f32.mrf.mxu2 }
  0xb5   :  { %v370_v11 = vadd.f32 %v761_v29, %v369_v10  ;;  %v404_v12 = vpop.f32.mrf.mxu3 }
  0xb6   :  { %v337_v13 = vpop.f32.mrf.mxu1  ;;  %v405_v14 = vadd.f32 %v761_v29, %v404_v12 }
  0xb7   :  { %448 = vst.msk [vmem:[%s1011_s3 + $0xf8] sm:$0xff] %vm416_vm1, %v370_v11  ;;  %v338_v15 = vadd.f32 %v761_v29, %v337_v13  ;;  %v307_v16 = vpop.f32.mrf.mxu0 }
  0xb8   :  { %v308_v17 = vadd.f32 %v761_v29, %v307_v16  ;;  %462 = vst.msk [vmem:[%s1011_s3 + $0x168] sm:$0xff] %vm416_vm1, %v405_v14 }
  0xb9   :  { %435 = vst.msk [vmem:[%s1011_s3 + $0x90] sm:$0xff] %vm416_vm1, %v338_v15 }
  0xba   :  { %423 = vst.msk [vmem:[%s1011_s3 + $0x30] sm:$0xff] %vm416_vm1, %v308_v17 }
  0xbc   :  { %v372_v18 = vpop.f32.mrf.mxu2 }
  0xbd   :  { %v373_v19 = vadd.f32 %v761_v29, %v372_v18  ;;  %v407_v20 = vpop.f32.mrf.mxu3 }
  0xbe   :  { %v339_v21 = vpop.f32.mrf.mxu1  ;;  %v408_v22 = vadd.f32 %v761_v29, %v407_v20 }
  0xbf   :  { %449 = vst.msk [vmem:[%s1011_s3 + $0x100] sm:$0xff] %vm416_vm1, %v373_v19  ;;  %v340_v23 = vadd.f32 %v761_v29, %v339_v21  ;;  %v309_v24 = vpop.f32.mrf.mxu0 }
  0xc0   :  { %v310_v25 = vadd.f32 %v761_v29, %v309_v24  ;;  %463 = vst.msk [vmem:[%s1011_s3 + $0x170] sm:$0xff] %vm416_vm1, %v408_v22 }
  0xc1   :  { %436 = vst.msk [vmem:[%s1011_s3 + $0x98] sm:$0xff] %vm416_vm1, %v340_v23 }
  0xc2   :  { %424 = vst.msk [vmem:[%s1011_s3 + $0x38] sm:$0xff] %vm416_vm1, %v310_v25 }
  0xc4   :  { %v374_v26 = vpop.f32.mrf.mxu2 }
  0xc5   :  { %v375_v27 = vadd.f32 %v761_v29, %v374_v26  ;;  %v409_v28 = vpop.f32.mrf.mxu3 }
  0xc6   :  { %v342_v30 = vpop.f32.mrf.mxu1  ;;  %v410_v31 = vadd.f32 %v761_v29, %v409_v28 }
  0xc7   :  { %450 = vst.msk [vmem:[%s1011_s3 + $0x108] sm:$0xff] %vm416_vm1, %v375_v27  ;;  %v343_v32 = vadd.f32 %v761_v29, %v342_v30  ;;  %v312_v33 = vpop.f32.mrf.mxu0 }
  0xc8   :  { %v313_v34 = vadd.f32 %v761_v29, %v312_v33  ;;  %464 = vst.msk [vmem:[%s1011_s3 + $0x178] sm:$0xff] %vm416_vm1, %v410_v31 }
  0xc9   :  { %437 = vst.msk [vmem:[%s1011_s3 + $0xa0] sm:$0xff] %vm416_vm1, %v343_v32 }
  0xca   :  { %425 = vst.msk [vmem:[%s1011_s3 + $0x40] sm:$0xff] %vm416_vm1, %v313_v34 }
  0xcc   :  { %v377_v35 = vpop.f32.mrf.mxu2 }
  0xcd   :  { %v378_v36 = vadd.f32 %v761_v29, %v377_v35  ;;  %v412_v37 = vpop.f32.mrf.mxu3 }
  0xce   :  { %v344_v38 = vpop.f32.mrf.mxu1  ;;  %v413_v39 = vadd.f32 %v761_v29, %v412_v37 }
  0xcf   :  { %451 = vst.msk [vmem:[%s1011_s3 + $0x110] sm:$0xff] %vm416_vm1, %v378_v36  ;;  %v345_v40 = vadd.f32 %v761_v29, %v344_v38  ;;  %v314_v41 = vpop.f32.mrf.mxu0 }
  0xd0   :  { %v315_v42 = vadd.f32 %v761_v29, %v314_v41  ;;  %465 = vst.msk [vmem:[%s1011_s3 + $0x180] sm:$0xff] %vm416_vm1, %v413_v39 }
  0xd1   :  { %438 = vst.msk [vmem:[%s1011_s3 + $0xa8] sm:$0xff] %vm416_vm1, %v345_v40 }
  0xd2   :  { %426 = vst.msk [vmem:[%s1011_s3 + $0x48] sm:$0xff] %vm416_vm1, %v315_v42 }
  0xd4   :  { %v379_v43 = vpop.f32.mrf.mxu2 }
  0xd5   :  { %v380_v44 = vadd.f32 %v761_v29, %v379_v43  ;;  %v414_v45 = vpop.f32.mrf.mxu3 }
  0xd6   :  { %v347_v46 = vpop.f32.mrf.mxu1 }
  0xd7   :  { %452 = vst.msk [vmem:[%s1011_s3 + $0x118] sm:$0xff] %vm416_vm1, %v380_v44  ;;  %v348_v47 = vadd.f32 %v761_v29, %v347_v46  ;;  %v317_v48 = vpop.f32.mrf.mxu0 }
  0xd8   :  { %v318_v49 = vadd.f32 %v761_v29, %v317_v48 }
  0xd9   :  { %439 = vst.msk [vmem:[%s1011_s3 + $0xb0] sm:$0xff] %vm416_vm1, %v348_v47 }
  0xda   :  { %427 = vst.msk [vmem:[%s1011_s3 + $0x50] sm:$0xff] %vm416_vm1, %v318_v49 }
  0xdc   :  { %v382_v50 = vpop.f32.mrf.mxu2 }
  0xdd   :  { %v383_v51 = vadd.f32 %v761_v29, %v382_v50 }
  0xde   :  { %v349_v52 = vpop.f32.mrf.mxu1 }
  0xdf   :  { %453 = vst.msk [vmem:[%s1011_s3 + $0x120] sm:$0xff] %vm416_vm1, %v383_v51  ;;  %v350_v53 = vadd.f32 %v761_v29, %v349_v52  ;;  %v319_v54 = vpop.f32.mrf.mxu0 }
  0xe0   :  { %v320_v55 = vadd.f32 %v761_v29, %v319_v54 }
  0xe1   :  { %440 = vst.msk [vmem:[%s1011_s3 + $0xb8] sm:$0xff] %vm416_vm1, %v350_v53 }
  0xe2   :  { %428 = vst.msk [vmem:[%s1011_s3 + $0x58] sm:$0xff] %vm416_vm1, %v320_v55 }
  0xe4   :  { %v384_v56 = vpop.f32.mrf.mxu2 }
  0xe5   :  { %v385_v57 = vadd.f32 %v761_v29, %v384_v56 }
  0xe6   :  { %v352_v58 = vpop.f32.mrf.mxu1 }
  0xe7   :  { %454 = vst.msk [vmem:[%s1011_s3 + $0x128] sm:$0xff] %vm416_vm1, %v385_v57  ;;  %v353_v59 = vadd.f32 %v761_v29, %v352_v58 }
  0xe9   :  { %441 = vst.msk [vmem:[%s1011_s3 + $0xc0] sm:$0xff] %vm416_vm1, %v353_v59 }
  0xec   :  { %v387_v60 = vpop.f32.mrf.mxu2 }
  0xed   :  { %v388_v61 = vadd.f32 %v761_v29, %v387_v60 }
  0xee   :  { %v354_v62 = vpop.f32.mrf.mxu1 }
  0xef   :  { %455 = vst.msk [vmem:[%s1011_s3 + $0x130] sm:$0xff] %vm416_vm1, %v388_v61  ;;  %v355_v63 = vadd.f32 %v761_v29, %v354_v62 }
  0xf1   :  { %442 = vst.msk [vmem:[%s1011_s3 + $0xc8] sm:$0xff] %vm416_vm1, %v355_v63 }
  0xf4   :  { %v389_v0 = vpop.f32.mrf.mxu2 }
  0xf5   :  { %v390_v1 = vadd.f32 %v761_v29, %v389_v0 }
  0xf7   :  { %456 = vst.msk [vmem:[%s1011_s3 + $0x138] sm:$0xff] %vm416_vm1, %v390_v1 }

</bundles_post_ra>
